<compile_context>
chip_gen: v7x
topology: tpu7x:2x2x1
jax: 0.10.0
libtpu: 0.0.40
codegen_flags: <defaults>
</compile_context>

<pallas_src>
import jax
import jax.numpy as jnp
from jax.experimental import pallas as pl
from jax.experimental.pallas import tpu as pltpu


# ----------------------------------------------------------------------------
# Pallas kernels
# ----------------------------------------------------------------------------
def _mm_bias_relu_kernel(x_ref, w_ref, b_ref, o_ref):
    acc = jnp.dot(x_ref[...], w_ref[...], preferred_element_type=jnp.float32)
    o_ref[...] = jnp.maximum(acc + b_ref[...], 0.0).astype(o_ref.dtype)


def mm_bias_relu(x, w, b):
    """y = relu(x @ w + b) in bf16 (f32 accumulation); single block."""
    M, K = x.shape
    _, N = w.shape
    return pl.pallas_call(
        _mm_bias_relu_kernel,
        out_shape=jax.ShapeDtypeStruct((M, N), jnp.bfloat16),
        grid=(1,),
        in_specs=[
            pl.BlockSpec((M, K), lambda i: (0, 0)),
            pl.BlockSpec((K, N), lambda i: (0, 0)),
            pl.BlockSpec((1, N), lambda i: (0, 0)),
        ],
        out_specs=pl.BlockSpec((M, N), lambda i: (0, 0)),
    )(x, w, b.reshape(1, N))


def _fc_head_kernel(feat_ref, w1_ref, b1_ref, w2_ref, b2_ref, o_ref, acc_ref):
    """K-tiled fused [value|advantage] hidden layer + dueling head epilogue."""
    k = pl.program_id(0)

    @pl.when(k == 0)
    def _():
        acc_ref[...] = jnp.zeros_like(acc_ref)

    acc_ref[...] += jnp.dot(feat_ref[...], w1_ref[...],
                            preferred_element_type=jnp.float32)

    @pl.when(k == pl.num_programs(0) - 1)
    def _():
        hidden = jnp.maximum(acc_ref[...] + b1_ref[...], 0.0)      # (B, 1024)
        # w2 is block-diagonal [value | advantage]; col 0 is V, cols 1.. are A.
        pre = jnp.dot(hidden, w2_ref[...],
                      preferred_element_type=jnp.float32) + b2_ref[...]
        value = pre[:, :1]
        adv = pre[:, 1:]
        o_ref[...] = value + adv - jnp.mean(adv, axis=1, keepdims=True)


def fc_dueling_head(feat, w1, b1, w2, b2):
    """Fused hidden layer (both streams) + second FCs + dueling combine.

    feat : (B, K_pad) bf16   NHWC-flattened conv features, zero-padded K
    w1   : (K_pad, 1024) bf16  [value_w | advantage_w], rows permuted + padded
    b1   : (1024,) f32
    w2   : (1024, A+1) f32     block-diagonal [value col | advantage block]
    b2   : (A+1,) f32

    Two K steps (tk = K_pad/2, 128/256-aligned): double-buffered weight blocks
    (~3.4 MB bf16 each) stay well under the default scoped VMEM on every
    generation while the second half of the weight DMA overlaps the first
    half's matmul.  Output axis is a single lane-dense 1024-wide block so the
    dueling head can run in the epilogue of the same kernel.
    """
    B, Kp = feat.shape
    _, N = w1.shape
    _, A1 = w2.shape
    tk = Kp // 2
    assert Kp % 2 == 0 and tk % 128 == 0
    return pl.pallas_call(
        _fc_head_kernel,
        out_shape=jax.ShapeDtypeStruct((B, A1 - 1), jnp.float32),
        grid_spec=pltpu.PrefetchScalarGridSpec(
            num_scalar_prefetch=0,
            grid=(2,),
            in_specs=[
                pl.BlockSpec((B, tk), lambda k: (0, k)),
                pl.BlockSpec((tk, N), lambda k: (k, 0)),
                pl.BlockSpec((1, N), lambda k: (0, 0)),
                pl.BlockSpec((N, A1), lambda k: (0, 0)),
                pl.BlockSpec((1, A1), lambda k: (0, 0)),
            ],
            out_specs=pl.BlockSpec((B, A1 - 1), lambda k: (0, 0)),
            scratch_shapes=[pltpu.VMEM((B, N), jnp.float32)],
        ),
        compiler_params=pltpu.CompilerParams(
            dimension_semantics=("arbitrary",)),
    )(feat, w1, b1.reshape(1, N), w2, b2.reshape(1, A1))


# ----------------------------------------------------------------------------
# Conv layer: one XLA patches op + Pallas matmul (output stays NHWC, bf16)
# ----------------------------------------------------------------------------
def conv2d_relu(x, w_mat, b, *, stride, ksize, lhs_spec):
    """PyTorch-semantics Conv2d (VALID padding) + ReLU.

    Patch extraction is a single conv_general_dilated_patches op whose feature
    ordering is (c, kh, kw), matching the flattened PyTorch OIHW weight; the
    matmul + bias + ReLU runs on the MXU in Pallas.  Output is NHWC bf16.
    """
    # TODO(synk): patch extraction (im2col) stays an XLA op; an in-kernel
    # strided gather would fuse the whole conv stack but is not worth the risk
    # at these tiny activation sizes.
    patches = jax.lax.conv_general_dilated_patches(
        x, filter_shape=(ksize, ksize), window_strides=(stride, stride),
        padding="VALID", dimension_numbers=(lhs_spec, "OIHW", "NHWC"))
    N, OH, OW, CKK = patches.shape
    out = mm_bias_relu(patches.reshape(N * OH * OW, CKK), w_mat, b)
    return out.reshape(N, OH, OW, -1)


# ----------------------------------------------------------------------------
# Parameters (PyTorch layout) + one-time kernel-ready transform
# ----------------------------------------------------------------------------
def _uniform(key, shape, bound):
    return jax.random.uniform(key, shape, jnp.float32, -bound, bound)


def init_params(key, in_channels, num_actions, feature_size):
    # NoisyLinear.forward uses only weight_mu / bias_mu at inference.
    ks = jax.random.split(key, 14)
    p = {}
    p["conv1_w"] = _uniform(ks[0], (32, in_channels, 8, 8), 1.0 / (in_channels * 64) ** 0.5)
    p["conv1_b"] = _uniform(ks[1], (32,), 1.0 / (in_channels * 64) ** 0.5)
    p["conv2_w"] = _uniform(ks[2], (64, 32, 4, 4), 1.0 / (32 * 16) ** 0.5)
    p["conv2_b"] = _uniform(ks[3], (64,), 1.0 / (32 * 16) ** 0.5)
    p["conv3_w"] = _uniform(ks[4], (64, 64, 3, 3), 1.0 / (64 * 9) ** 0.5)
    p["conv3_b"] = _uniform(ks[5], (64,), 1.0 / (64 * 9) ** 0.5)
    p["v1_w"] = _uniform(ks[6], (feature_size, 512), 1.0 / feature_size ** 0.5)
    p["v1_b"] = _uniform(ks[7], (512,), 1.0 / feature_size ** 0.5)
    p["v2_w"] = _uniform(ks[8], (512, 1), 1.0 / 512 ** 0.5)
    p["v2_b"] = _uniform(ks[9], (1,), 1.0 / 512 ** 0.5)
    p["a1_w"] = _uniform(ks[10], (feature_size, 512), 1.0 / feature_size ** 0.5)
    p["a1_b"] = _uniform(ks[11], (512,), 1.0 / feature_size ** 0.5)
    p["a2_w"] = _uniform(ks[12], (512, num_actions), 1.0 / 512 ** 0.5)
    p["a2_b"] = _uniform(ks[13], (num_actions,), 1.0 / 512 ** 0.5)
    return p


def prepare_params(params, *, num_actions, conv_out_chw):
    """One-time transform of PyTorch-layout params into kernel-ready layout."""
    C, OH, OW = conv_out_chw
    prep = {}
    # Conv weights -> im2col matmul layout (C*KH*KW, OC), rows ordered (c, kh, kw),
    # stored bf16 (halves weight/patch DMA; accumulation stays f32).
    for i in (1, 2, 3):
        w = params[f"conv{i}_w"]
        prep[f"c{i}_w"] = w.reshape(w.shape[0], -1).T.astype(jnp.bfloat16)
        prep[f"c{i}_b"] = params[f"conv{i}_b"]

    # Fold PyTorch's channel-major Flatten into the FC weight rows:
    # rows ordered (c, h, w) -> (h, w, c) so the NHWC conv output flattens directly.
    def to_nhwc_rows(w):
        return (w.reshape(C, OH, OW, w.shape[1])
                 .transpose(1, 2, 0, 3)
                 .reshape(C * OH * OW, w.shape[1]))

    w1 = jnp.concatenate([to_nhwc_rows(params["v1_w"]),
                          to_nhwc_rows(params["a1_w"])], axis=1)      # (3136, 1024)
    K = w1.shape[0]
    k_pad = ((K + 255) // 256) * 256                                  # 3136 -> 3328
    w1 = jnp.pad(w1, ((0, k_pad - K), (0, 0)))
    prep["w1"] = w1.astype(jnp.bfloat16)
    # TODO(synk): generation-dependent w1 quantization (int8 on v5e/v6e, fp8 on
    # v7x) would halve the dominant weight stream again; kept bf16 for a single
    # portable code path.
    prep["b1"] = jnp.concatenate([params["v1_b"], params["a1_b"]])    # (1024,)

    # Dueling head: pack value column + advantage block-diagonally -> one matmul.
    Hh = params["v2_w"].shape[0]                                      # 512
    w2 = jnp.zeros((2 * Hh, num_actions + 1), jnp.float32)
    w2 = w2.at[:Hh, 0].set(params["v2_w"][:, 0])
    w2 = w2.at[Hh:, 1:].set(params["a2_w"])
    prep["w2"] = w2
    prep["b2"] = jnp.concatenate([params["v2_b"], params["a2_b"]])    # (A+1,)
    return prep


# ----------------------------------------------------------------------------
# Forward pass (DuelingCNN.forward)
# ----------------------------------------------------------------------------
def dueling_cnn_forward(x, prep):
    # bf16 activations end-to-end (f32 MXU accumulation); activations stay NHWC.
    x = x.astype(jnp.bfloat16)
    h = conv2d_relu(x, prep["c1_w"], prep["c1_b"], stride=4, ksize=8, lhs_spec="NCHW")
    h = conv2d_relu(h, prep["c2_w"], prep["c2_b"], stride=2, ksize=4, lhs_spec="NHWC")
    h = conv2d_relu(h, prep["c3_w"], prep["c3_b"], stride=1, ksize=3, lhs_spec="NHWC")

    # NHWC flatten (FC weight rows were permuted to match PyTorch's channel-major
    # Flatten); zero-pad K to the weight's padded K (multiple of 256).
    n = h.shape[0]
    feat = h.reshape(n, -1)
    k_pad = prep["w1"].shape[0]
    feat = jnp.pad(feat, ((0, 0), (0, k_pad - feat.shape[1])))

    # Single fused kernel: hidden matmul (2 K-steps) + bias/ReLU + dueling head.
    return fc_dueling_head(feat, prep["w1"], prep["b1"], prep["w2"], prep["b2"])


if __name__ == "__main__":
    in_channels = 4
    num_actions = 6
    batch = 2
    H_in, W_in = 84, 90               # module sizes its linear layers for 84x90 input
    # conv stack: 84x90 -> 20x21 -> 9x9 -> 7x7, 64 channels
    conv_out_chw = (64, 7, 7)
    feature_size = 64 * 7 * 7         # 3136

    key = jax.random.PRNGKey(0)
    k_x, k_p = jax.random.split(key)
    x = jax.random.normal(k_x, (batch, in_channels, H_in, W_in), dtype=jnp.float32)
    params = init_params(k_p, in_channels, num_actions, feature_size)
    prep = prepare_params(params, num_actions=num_actions, conv_out_chw=conv_out_chw)

    fwd = jax.jit(dueling_cnn_forward)
    q = fwd(x, prep)
    jax.block_until_ready(q)
    assert q.shape == (batch, num_actions) and q.dtype == jnp.float32
    assert bool(jnp.all(jnp.isfinite(q)))
    print("KERNEL_OK")
</pallas_src>

<mosaic_0001>
module attributes {stable_mosaic.version = 11 : i64} {
  func.func @_mm_bias_relu_kernel(%arg0: i32, %arg1: memref<840x256xbf16, #tpu.memory_space<vmem>>, %arg2: memref<256x32xbf16, #tpu.memory_space<vmem>>, %arg3: memref<1x32xf32, #tpu.memory_space<vmem>>, %arg4: memref<840x32xbf16, #tpu.memory_space<vmem>>) attributes {dimension_semantics = [#tpu.dimension_semantics<arbitrary>], iteration_bounds = array<i64: 1>, scalar_prefetch = 0 : i64, scratch_operands = 0 : i64, tpu.core_type = #tpu.core_type<tc>, window_params = [{pipeline_mode = #tpu.pipeline_mode<synchronous>, transform_indices = @transform_0, window_bounds = array<i64: 840, 256>}, {pipeline_mode = #tpu.pipeline_mode<synchronous>, transform_indices = @transform_1, window_bounds = array<i64: 256, 32>}, {pipeline_mode = #tpu.pipeline_mode<synchronous>, transform_indices = @transform_2, window_bounds = array<i64: 1, 32>}, {pipeline_mode = #tpu.pipeline_mode<synchronous>, transform_indices = @transform_3, window_bounds = array<i64: 840, 32>}]} {
    %c0 = arith.constant 0 : index
    %c0_0 = arith.constant 0 : index
    %0 = vector.load %arg1[%c0, %c0_0] : memref<840x256xbf16, #tpu.memory_space<vmem>>, vector<840x256xbf16>
    %c0_1 = arith.constant 0 : index
    %c0_2 = arith.constant 0 : index
    %1 = vector.load %arg2[%c0_1, %c0_2] : memref<256x32xbf16, #tpu.memory_space<vmem>>, vector<256x32xbf16>
    %cst = arith.constant dense<0.000000e+00> : vector<840x32xf32>
    %2 = tpu.matmul %0, %1, %cst {dimension_numbers = #tpu.dot_dimension_numbers<[1], [0], [0], [1], [0, 0, 1, 1], [], []>} : vector<840x256xbf16>, vector<256x32xbf16>, vector<840x32xf32> -> vector<840x32xf32>
    %c0_3 = arith.constant 0 : index
    %c0_4 = arith.constant 0 : index
    %3 = vector.load %arg3[%c0_3, %c0_4] : memref<1x32xf32, #tpu.memory_space<vmem>>, vector<1x32xf32>
    %4 = vector.broadcast %3 : vector<1x32xf32> to vector<840x32xf32>
    %5 = arith.addf %2, %4 : vector<840x32xf32>
    %cst_5 = arith.constant 0.000000e+00 : f32
    %6 = vector.broadcast %cst_5 : f32 to vector<840x32xf32>
    %7 = arith.maximumf %5, %6 : vector<840x32xf32>
    %8 = arith.truncf %7 : vector<840x32xf32> to vector<840x32xbf16>
    %c0_6 = arith.constant 0 : index
    %c0_7 = arith.constant 0 : index
    %9 = vector.load %arg4[%c0_6, %c0_7] : memref<840x32xbf16, #tpu.memory_space<vmem>>, vector<840x32xbf16>
    tpu.vector_store %arg4[%c0_6, %c0_7], %8 {strides = array<i32>} : memref<840x32xbf16, #tpu.memory_space<vmem>>, vector<840x32xbf16>,
    return
  }
  func.func @transform_0(%arg0: i32) -> (i32, i32) {
    %c0_i32 = arith.constant 0 : i32
    %c0_i32_0 = arith.constant 0 : i32
    %c0_i32_1 = arith.constant 0 : i32
    return %c0_i32, %c0_i32_0 : i32, i32
  }
  func.func @transform_1(%arg0: i32) -> (i32, i32) {
    %c0_i32 = arith.constant 0 : i32
    %c0_i32_0 = arith.constant 0 : i32
    %c0_i32_1 = arith.constant 0 : i32
    return %c0_i32, %c0_i32_0 : i32, i32
  }
  func.func @transform_2(%arg0: i32) -> (i32, i32) {
    %c0_i32 = arith.constant 0 : i32
    %c0_i32_0 = arith.constant 0 : i32
    %c0_i32_1 = arith.constant 0 : i32
    return %c0_i32, %c0_i32_0 : i32, i32
  }
  func.func @transform_3(%arg0: i32) -> (i32, i32) {
    %c0_i32 = arith.constant 0 : i32
    %c0_i32_0 = arith.constant 0 : i32
    %c0_i32_1 = arith.constant 0 : i32
    return %c0_i32, %c0_i32_0 : i32, i32
  }
}

module attributes {stable_mosaic.version = 11 : i64} {
  func.func @_mm_bias_relu_kernel(%arg0: i32, %arg1: memref<162x512xbf16, #tpu.memory_space<vmem>>, %arg2: memref<512x64xbf16, #tpu.memory_space<vmem>>, %arg3: memref<1x64xf32, #tpu.memory_space<vmem>>, %arg4: memref<162x64xbf16, #tpu.memory_space<vmem>>) attributes {dimension_semantics = [#tpu.dimension_semantics<arbitrary>], iteration_bounds = array<i64: 1>, scalar_prefetch = 0 : i64, scratch_operands = 0 : i64, tpu.core_type = #tpu.core_type<tc>, window_params = [{pipeline_mode = #tpu.pipeline_mode<synchronous>, transform_indices = @transform_0, window_bounds = array<i64: 162, 512>}, {pipeline_mode = #tpu.pipeline_mode<synchronous>, transform_indices = @transform_1, window_bounds = array<i64: 512, 64>}, {pipeline_mode = #tpu.pipeline_mode<synchronous>, transform_indices = @transform_2, window_bounds = array<i64: 1, 64>}, {pipeline_mode = #tpu.pipeline_mode<synchronous>, transform_indices = @transform_3, window_bounds = array<i64: 162, 64>}]} {
    %c0 = arith.constant 0 : index
    %c0_0 = arith.constant 0 : index
    %0 = vector.load %arg1[%c0, %c0_0] : memref<162x512xbf16, #tpu.memory_space<vmem>>, vector<162x512xbf16>
    %c0_1 = arith.constant 0 : index
    %c0_2 = arith.constant 0 : index
    %1 = vector.load %arg2[%c0_1, %c0_2] : memref<512x64xbf16, #tpu.memory_space<vmem>>, vector<512x64xbf16>
    %cst = arith.constant dense<0.000000e+00> : vector<162x64xf32>
    %2 = tpu.matmul %0, %1, %cst {dimension_numbers = #tpu.dot_dimension_numbers<[1], [0], [0], [1], [0, 0, 1, 1], [], []>} : vector<162x512xbf16>, vector<512x64xbf16>, vector<162x64xf32> -> vector<162x64xf32>
    %c0_3 = arith.constant 0 : index
    %c0_4 = arith.constant 0 : index
    %3 = vector.load %arg3[%c0_3, %c0_4] : memref<1x64xf32, #tpu.memory_space<vmem>>, vector<1x64xf32>
    %4 = vector.broadcast %3 : vector<1x64xf32> to vector<162x64xf32>
    %5 = arith.addf %2, %4 : vector<162x64xf32>
    %cst_5 = arith.constant 0.000000e+00 : f32
    %6 = vector.broadcast %cst_5 : f32 to vector<162x64xf32>
    %7 = arith.maximumf %5, %6 : vector<162x64xf32>
    %8 = arith.truncf %7 : vector<162x64xf32> to vector<162x64xbf16>
    %c0_6 = arith.constant 0 : index
    %c0_7 = arith.constant 0 : index
    %9 = vector.load %arg4[%c0_6, %c0_7] : memref<162x64xbf16, #tpu.memory_space<vmem>>, vector<162x64xbf16>
    tpu.vector_store %arg4[%c0_6, %c0_7], %8 {strides = array<i32>} : memref<162x64xbf16, #tpu.memory_space<vmem>>, vector<162x64xbf16>,
    return
  }
  func.func @transform_0(%arg0: i32) -> (i32, i32) {
    %c0_i32 = arith.constant 0 : i32
    %c0_i32_0 = arith.constant 0 : i32
    %c0_i32_1 = arith.constant 0 : i32
    return %c0_i32, %c0_i32_0 : i32, i32
  }
  func.func @transform_1(%arg0: i32) -> (i32, i32) {
    %c0_i32 = arith.constant 0 : i32
    %c0_i32_0 = arith.constant 0 : i32
    %c0_i32_1 = arith.constant 0 : i32
    return %c0_i32, %c0_i32_0 : i32, i32
  }
  func.func @transform_2(%arg0: i32) -> (i32, i32) {
    %c0_i32 = arith.constant 0 : i32
    %c0_i32_0 = arith.constant 0 : i32
    %c0_i32_1 = arith.constant 0 : i32
    return %c0_i32, %c0_i32_0 : i32, i32
  }
  func.func @transform_3(%arg0: i32) -> (i32, i32) {
    %c0_i32 = arith.constant 0 : i32
    %c0_i32_0 = arith.constant 0 : i32
    %c0_i32_1 = arith.constant 0 : i32
    return %c0_i32, %c0_i32_0 : i32, i32
  }
}

module attributes {stable_mosaic.version = 11 : i64} {
  func.func @_mm_bias_relu_kernel(%arg0: i32, %arg1: memref<98x576xbf16, #tpu.memory_space<vmem>>, %arg2: memref<576x64xbf16, #tpu.memory_space<vmem>>, %arg3: memref<1x64xf32, #tpu.memory_space<vmem>>, %arg4: memref<98x64xbf16, #tpu.memory_space<vmem>>) attributes {dimension_semantics = [#tpu.dimension_semantics<arbitrary>], iteration_bounds = array<i64: 1>, scalar_prefetch = 0 : i64, scratch_operands = 0 : i64, tpu.core_type = #tpu.core_type<tc>, window_params = [{pipeline_mode = #tpu.pipeline_mode<synchronous>, transform_indices = @transform_0, window_bounds = array<i64: 98, 576>}, {pipeline_mode = #tpu.pipeline_mode<synchronous>, transform_indices = @transform_1, window_bounds = array<i64: 576, 64>}, {pipeline_mode = #tpu.pipeline_mode<synchronous>, transform_indices = @transform_2, window_bounds = array<i64: 1, 64>}, {pipeline_mode = #tpu.pipeline_mode<synchronous>, transform_indices = @transform_3, window_bounds = array<i64: 98, 64>}]} {
    %c0 = arith.constant 0 : index
    %c0_0 = arith.constant 0 : index
    %0 = vector.load %arg1[%c0, %c0_0] : memref<98x576xbf16, #tpu.memory_space<vmem>>, vector<98x576xbf16>
    %c0_1 = arith.constant 0 : index
    %c0_2 = arith.constant 0 : index
    %1 = vector.load %arg2[%c0_1, %c0_2] : memref<576x64xbf16, #tpu.memory_space<vmem>>, vector<576x64xbf16>
    %cst = arith.constant dense<0.000000e+00> : vector<98x64xf32>
    %2 = tpu.matmul %0, %1, %cst {dimension_numbers = #tpu.dot_dimension_numbers<[1], [0], [0], [1], [0, 0, 1, 1], [], []>} : vector<98x576xbf16>, vector<576x64xbf16>, vector<98x64xf32> -> vector<98x64xf32>
    %c0_3 = arith.constant 0 : index
    %c0_4 = arith.constant 0 : index
    %3 = vector.load %arg3[%c0_3, %c0_4] : memref<1x64xf32, #tpu.memory_space<vmem>>, vector<1x64xf32>
    %4 = vector.broadcast %3 : vector<1x64xf32> to vector<98x64xf32>
    %5 = arith.addf %2, %4 : vector<98x64xf32>
    %cst_5 = arith.constant 0.000000e+00 : f32
    %6 = vector.broadcast %cst_5 : f32 to vector<98x64xf32>
    %7 = arith.maximumf %5, %6 : vector<98x64xf32>
    %8 = arith.truncf %7 : vector<98x64xf32> to vector<98x64xbf16>
    %c0_6 = arith.constant 0 : index
    %c0_7 = arith.constant 0 : index
    %9 = vector.load %arg4[%c0_6, %c0_7] : memref<98x64xbf16, #tpu.memory_space<vmem>>, vector<98x64xbf16>
    tpu.vector_store %arg4[%c0_6, %c0_7], %8 {strides = array<i32>} : memref<98x64xbf16, #tpu.memory_space<vmem>>, vector<98x64xbf16>,
    return
  }
  func.func @transform_0(%arg0: i32) -> (i32, i32) {
    %c0_i32 = arith.constant 0 : i32
    %c0_i32_0 = arith.constant 0 : i32
    %c0_i32_1 = arith.constant 0 : i32
    return %c0_i32, %c0_i32_0 : i32, i32
  }
  func.func @transform_1(%arg0: i32) -> (i32, i32) {
    %c0_i32 = arith.constant 0 : i32
    %c0_i32_0 = arith.constant 0 : i32
    %c0_i32_1 = arith.constant 0 : i32
    return %c0_i32, %c0_i32_0 : i32, i32
  }
  func.func @transform_2(%arg0: i32) -> (i32, i32) {
    %c0_i32 = arith.constant 0 : i32
    %c0_i32_0 = arith.constant 0 : i32
    %c0_i32_1 = arith.constant 0 : i32
    return %c0_i32, %c0_i32_0 : i32, i32
  }
  func.func @transform_3(%arg0: i32) -> (i32, i32) {
    %c0_i32 = arith.constant 0 : i32
    %c0_i32_0 = arith.constant 0 : i32
    %c0_i32_1 = arith.constant 0 : i32
    return %c0_i32, %c0_i32_0 : i32, i32
  }
}

module attributes {stable_mosaic.version = 11 : i64} {
  func.func @_fc_head_kernel(%arg0: i32, %arg1: memref<2x1664xbf16, #tpu.memory_space<vmem>>, %arg2: memref<1664x1024xbf16, #tpu.memory_space<vmem>>, %arg3: memref<1x1024xf32, #tpu.memory_space<vmem>>, %arg4: memref<1024x7xf32, #tpu.memory_space<vmem>>, %arg5: memref<1x7xf32, #tpu.memory_space<vmem>>, %arg6: memref<2x6xf32, #tpu.memory_space<vmem>>, %arg7: memref<2x1024xf32, #tpu.memory_space<vmem>>) attributes {dimension_semantics = [#tpu.dimension_semantics<arbitrary>], iteration_bounds = array<i64: 2>, scalar_prefetch = 0 : i64, scratch_operands = 1 : i64, tpu.core_type = #tpu.core_type<tc>, window_params = [{transform_indices = @transform_0, window_bounds = array<i64: 2, 1664>}, {transform_indices = @transform_1, window_bounds = array<i64: 1664, 1024>}, {pipeline_mode = #tpu.pipeline_mode<synchronous>, transform_indices = @transform_2, window_bounds = array<i64: 1, 1024>}, {pipeline_mode = #tpu.pipeline_mode<synchronous>, transform_indices = @transform_3, window_bounds = array<i64: 1024, 7>}, {pipeline_mode = #tpu.pipeline_mode<synchronous>, transform_indices = @transform_4, window_bounds = array<i64: 1, 7>}, {pipeline_mode = #tpu.pipeline_mode<synchronous>, transform_indices = @transform_5, window_bounds = array<i64: 2, 6>}]} {
    %c0_i32 = arith.constant 0 : i32
    %0 = arith.cmpi eq, %arg0, %c0_i32 : i32
    %1 = arith.extui %0 : i1 to i32
    %c0_i32_0 = arith.constant 0 : i32
    %2 = arith.cmpi ne, %1, %c0_i32_0 : i32
    scf.if %2 {
      %cst_9 = arith.constant 0.000000e+00 : f32
      %12 = vector.broadcast %cst_9 : f32 to vector<2x1024xf32>
      %c0_10 = arith.constant 0 : index
      %c0_11 = arith.constant 0 : index
      %13 = vector.load %arg7[%c0_10, %c0_11] : memref<2x1024xf32, #tpu.memory_space<vmem>>, vector<2x1024xf32>
      tpu.vector_store %arg7[%c0_10, %c0_11], %12 {strides = array<i32>} : memref<2x1024xf32, #tpu.memory_space<vmem>>, vector<2x1024xf32>,
    } else {
    }
    %c0 = arith.constant 0 : index
    %c0_1 = arith.constant 0 : index
    %3 = vector.load %arg7[%c0, %c0_1] : memref<2x1024xf32, #tpu.memory_space<vmem>>, vector<2x1024xf32>
    %c0_2 = arith.constant 0 : index
    %c0_3 = arith.constant 0 : index
    %4 = vector.load %arg1[%c0_2, %c0_3] : memref<2x1664xbf16, #tpu.memory_space<vmem>>, vector<2x1664xbf16>
    %c0_4 = arith.constant 0 : index
    %c0_5 = arith.constant 0 : index
    %5 = vector.load %arg2[%c0_4, %c0_5] : memref<1664x1024xbf16, #tpu.memory_space<vmem>>, vector<1664x1024xbf16>
    %cst = arith.constant dense<0.000000e+00> : vector<2x1024xf32>
    %6 = tpu.matmul %4, %5, %cst {dimension_numbers = #tpu.dot_dimension_numbers<[1], [0], [0], [1], [0, 0, 1, 1], [], []>} : vector<2x1664xbf16>, vector<1664x1024xbf16>, vector<2x1024xf32> -> vector<2x1024xf32>
    %7 = arith.addf %3, %6 : vector<2x1024xf32>
    %c0_6 = arith.constant 0 : index
    %c0_7 = arith.constant 0 : index
    %8 = vector.load %arg7[%c0_6, %c0_7] : memref<2x1024xf32, #tpu.memory_space<vmem>>, vector<2x1024xf32>
    tpu.vector_store %arg7[%c0_6, %c0_7], %7 {strides = array<i32>} : memref<2x1024xf32, #tpu.memory_space<vmem>>, vector<2x1024xf32>,
    %c1_i32 = arith.constant 1 : i32
    %9 = arith.cmpi eq, %arg0, %c1_i32 : i32
    %10 = arith.extui %9 : i1 to i32
    %c0_i32_8 = arith.constant 0 : i32
    %11 = arith.cmpi ne, %10, %c0_i32_8 : i32
    scf.if %11 {
      %c0_9 = arith.constant 0 : index
      %c0_10 = arith.constant 0 : index
      %12 = vector.load %arg7[%c0_9, %c0_10] : memref<2x1024xf32, #tpu.memory_space<vmem>>, vector<2x1024xf32>
      %c0_11 = arith.constant 0 : index
      %c0_12 = arith.constant 0 : index
      %13 = vector.load %arg3[%c0_11, %c0_12] : memref<1x1024xf32, #tpu.memory_space<vmem>>, vector<1x1024xf32>
      %14 = vector.broadcast %13 : vector<1x1024xf32> to vector<2x1024xf32>
      %15 = arith.addf %12, %14 : vector<2x1024xf32>
      %cst_13 = arith.constant 0.000000e+00 : f32
      %16 = vector.broadcast %cst_13 : f32 to vector<2x1024xf32>
      %17 = arith.maximumf %15, %16 : vector<2x1024xf32>
      %c0_14 = arith.constant 0 : index
      %c0_15 = arith.constant 0 : index
      %18 = vector.load %arg4[%c0_14, %c0_15] : memref<1024x7xf32, #tpu.memory_space<vmem>>, vector<1024x7xf32>
      %cst_16 = arith.constant dense<0.000000e+00> : vector<2x7xf32>
      %19 = tpu.matmul %17, %18, %cst_16 {dimension_numbers = #tpu.dot_dimension_numbers<[1], [0], [0], [1], [0, 0, 1, 1], [], []>} : vector<2x1024xf32>, vector<1024x7xf32>, vector<2x7xf32> -> vector<2x7xf32>
      %c0_17 = arith.constant 0 : index
      %c0_18 = arith.constant 0 : index
      %20 = vector.load %arg5[%c0_17, %c0_18] : memref<1x7xf32, #tpu.memory_space<vmem>>, vector<1x7xf32>
      %21 = vector.broadcast %20 : vector<1x7xf32> to vector<2x7xf32>
      %22 = arith.addf %19, %21 : vector<2x7xf32>
      %23 = vector.extract_strided_slice %22 {offsets = [0, 0], sizes = [2, 1], strides = [1, 1]} : vector<2x7xf32> to vector<2x1xf32>
      %24 = vector.extract_strided_slice %22 {offsets = [0, 1], sizes = [2, 6], strides = [1, 1]} : vector<2x7xf32> to vector<2x6xf32>
      %25 = vector.broadcast %23 : vector<2x1xf32> to vector<2x6xf32>
      %26 = arith.addf %25, %24 : vector<2x6xf32>
      %cst_19 = arith.constant dense<0.000000e+00> : vector<2xf32>
      %27 = vector.multi_reduction <add>, %24, %cst_19 [1] : vector<2x6xf32> to vector<2xf32>
      %28 = vector.shape_cast %27 : vector<2xf32> to vector<2x1xf32>
      %cst_20 = arith.constant 6.000000e+00 : f32
      %29 = vector.broadcast %cst_20 : f32 to vector<2x1xf32>
      %30 = arith.divf %28, %29 : vector<2x1xf32>
      %31 = vector.broadcast %30 : vector<2x1xf32> to vector<2x6xf32>
      %32 = arith.subf %26, %31 : vector<2x6xf32>
      %c0_21 = arith.constant 0 : index
      %c0_22 = arith.constant 0 : index
      %33 = vector.load %arg6[%c0_21, %c0_22] : memref<2x6xf32, #tpu.memory_space<vmem>>, vector<2x6xf32>
      tpu.vector_store %arg6[%c0_21, %c0_22], %32 {strides = array<i32>} : memref<2x6xf32, #tpu.memory_space<vmem>>, vector<2x6xf32>,
    } else {
    }
    return
  }
  func.func @transform_0(%arg0: i32) -> (i32, i32) {
    %c0_i32 = arith.constant 0 : i32
    %c0_i32_0 = arith.constant 0 : i32
    return %c0_i32, %arg0 : i32, i32
  }
  func.func @transform_1(%arg0: i32) -> (i32, i32) {
    %c0_i32 = arith.constant 0 : i32
    %c0_i32_0 = arith.constant 0 : i32
    return %arg0, %c0_i32 : i32, i32
  }
  func.func @transform_2(%arg0: i32) -> (i32, i32) {
    %c0_i32 = arith.constant 0 : i32
    %c0_i32_0 = arith.constant 0 : i32
    %c0_i32_1 = arith.constant 0 : i32
    return %c0_i32, %c0_i32_0 : i32, i32
  }
  func.func @transform_3(%arg0: i32) -> (i32, i32) {
    %c0_i32 = arith.constant 0 : i32
    %c0_i32_0 = arith.constant 0 : i32
    %c0_i32_1 = arith.constant 0 : i32
    return %c0_i32, %c0_i32_0 : i32, i32
  }
  func.func @transform_4(%arg0: i32) -> (i32, i32) {
    %c0_i32 = arith.constant 0 : i32
    %c0_i32_0 = arith.constant 0 : i32
    %c0_i32_1 = arith.constant 0 : i32
    return %c0_i32, %c0_i32_0 : i32, i32
  }
  func.func @transform_5(%arg0: i32) -> (i32, i32) {
    %c0_i32 = arith.constant 0 : i32
    %c0_i32_0 = arith.constant 0 : i32
    %c0_i32_1 = arith.constant 0 : i32
    return %c0_i32, %c0_i32_0 : i32, i32
  }
}

</mosaic_0001>

<bundles_post_ra>
// kernel: dueling_cnn_forward.4
= control target key start
LH: loop header
LB: loop body
LE: loop exit
PB: predicated region body
PF: predicated region fallthrough
CT: control target
= control target key end

     0   :  { %v2415_v0 = vmov 0   ;;  %vm1764_vm0 = vcmask 257024   ;;  %s3366_s1 = inlined_call_operand.vmem [shape: bf16[256,32], index: 1, kind: input, shape index: {}]   ;;  %s3367_s0 = inlined_call_operand.vmem [shape: bf16[840,256], index: 0, kind: input, shape index: {}]   ;;  %s3368_s2 = inlined_call_operand.vmem [shape: f32[1,32], index: 2, kind: input, shape index: {}]   ;;  %s3369_s3 = inlined_call_operand.vmem [shape: bf16[840,32], index: 3, kind: output, shape index: {}]  }
   0x1   :  { %782 = vmatprep.subr.bf16.mxu0 %v2415_v0  ;;  %v2240_v1 = vld [vmem:[%s3366_s1] sm:$0xff]   ;;  %2207 = vmatprep.subr.bf16.mxu1 %v2415_v0  ;;  %v2241_v2 = vld [vmem:[%s3366_s1 + $0x8] sm:$0xff]   ;;  %v2242_v3 = vld [vmem:[%s3366_s1 + $0x10] sm:$0xff]  }
   0x2   :  { %783 = vmatpush1.bf16.msra.mxu0 %v2240_v1  ;;  %2223 = vmatpush1.bf16.msra.mxu1 %v2240_v1  ;;  %v2243_v4 = vld [vmem:[%s3366_s1 + $0x18] sm:$0xff]   ;;  %v2244_v5 = vld [vmem:[%s3366_s1 + $0x20] sm:$0xff]   ;;  %v2245_v7 = vld [vmem:[%s3366_s1 + $0x28] sm:$0xff]  }
   0x3   :  { %784 = vmatprep.subr.bf16.mxu0 %v2415_v0  ;;  %2208 = vmatprep.subr.bf16.mxu1 %v2415_v0  ;;  %v2258_v6 = vld [vmem:[%s3367_s0 + $0x4] ss:$8 sps:$4 sm:$0xff]   ;;  %v2261_v8 = vld [vmem:[%s3367_s0 + $0x1b4] ss:$8 sps:$4 sm:$0xff]   ;;  %v2256_v19 = vld [vmem:[%s3367_s0] ss:$8 sps:$4 sm:$0xff]  }
   0x4   :  { %814 = vmatprep.mubr.bf16.mxu0 %v2258_v6  ;;  %1030 = vmatprep.mubr.bf16.mxu1 %v2261_v8  ;;  %v2246_v9 = vld [vmem:[%s3366_s1 + $0x30] sm:$0xff]   ;;  %v2247_v10 = vld [vmem:[%s3366_s1 + $0x38] sm:$0xff]   ;;  %v2248_v11 = vld [vmem:[%s3366_s1 + $0x40] sm:$0xff]  }
   0x5   :  { %v2249_v12 = vld [vmem:[%s3366_s1 + $0x48] sm:$0xff]   ;;  %v2250_v13 = vld [vmem:[%s3366_s1 + $0x50] sm:$0xff]   ;;  %v2251_v14 = vld [vmem:[%s3366_s1 + $0x58] sm:$0xff]  }
   0x6   :  { %785 = vmatpush1.bf16.msra.mxu0 %v2241_v2  ;;  %2224 = vmatpush1.bf16.msra.mxu1 %v2241_v2  ;;  %v2252_v15 = vld [vmem:[%s3366_s1 + $0x60] sm:$0xff]   ;;  %v2253_v16 = vld [vmem:[%s3366_s1 + $0x68] sm:$0xff]   ;;  %v2254_v17 = vld [vmem:[%s3366_s1 + $0x70] sm:$0xff]  }
   0x7   :  { %786 = vmatprep.subr.bf16.mxu0 %v2415_v0  ;;  %2209 = vmatprep.subr.bf16.mxu1 %v2415_v0  ;;  %v2255_v18 = vld [vmem:[%s3366_s1 + $0x78] sm:$0xff]   ;;  %v2265_v22 = vld [vmem:[%s3367_s0 + $0x1c4] ss:$8 sps:$4 sm:$0xff]   ;;  %v2269_v24 = vld [vmem:[%s3367_s0 + $0x1c0] ss:$8 sps:$4 sm:$0xff]  }
   0x8   :  { %v2259_v20 = vld [vmem:[%s3367_s0 + $0x1b0] ss:$8 sps:$4 sm:$0xff]   ;;  %v2262_v21 = vld [vmem:[%s3367_s0 + $0x14] ss:$8 sps:$4 sm:$0xff]   ;;  %v2267_v25 = vld [vmem:[%s3367_s0 + $0x24] ss:$8 sps:$4 sm:$0xff]  }
   0x9   :  { %v2264_v23 = vld [vmem:[%s3367_s0 + $0x10] ss:$8 sps:$4 sm:$0xff]   ;;  %v2271_v26 = vld [vmem:[%s3367_s0 + $0x1d4] ss:$8 sps:$4 sm:$0xff]   ;;  %v2270_v27 = vld [vmem:[%s3367_s0 + $0x20] ss:$8 sps:$4 sm:$0xff]  }
   0xa   :  { %787 = vmatpush1.bf16.msra.mxu0 %v2242_v3  ;;  %2225 = vmatpush1.bf16.msra.mxu1 %v2242_v3  ;;  %v2275_v28 = vld [vmem:[%s3367_s0 + $0x1d0] ss:$8 sps:$4 sm:$0xff]   ;;  %v2273_v29 = vld [vmem:[%s3367_s0 + $0x34] ss:$8 sps:$4 sm:$0xff]   ;;  %v2277_v30 = vld [vmem:[%s3367_s0 + $0x1e4] ss:$8 sps:$4 sm:$0xff]  }
   0xb   :  { %788 = vmatprep.subr.bf16.mxu0 %v2415_v0  ;;  %2210 = vmatprep.subr.bf16.mxu1 %v2415_v0  ;;  %v2276_v31 = vld [vmem:[%s3367_s0 + $0x30] ss:$8 sps:$4 sm:$0xff]   ;;  %v2281_v32 = vld [vmem:[%s3367_s0 + $0x1e0] ss:$8 sps:$4 sm:$0xff]   ;;  %v2279_v33 = vld [vmem:[%s3367_s0 + $0x44] ss:$8 sps:$4 sm:$0xff]  }
   0xc   :  { %v2283_v34 = vld [vmem:[%s3367_s0 + $0x1f4] ss:$8 sps:$4 sm:$0xff]   ;;  %v2282_v35 = vld [vmem:[%s3367_s0 + $0x40] ss:$8 sps:$4 sm:$0xff]   ;;  %v2287_v36 = vld [vmem:[%s3367_s0 + $0x1f0] ss:$8 sps:$4 sm:$0xff]  }
   0xd   :  { %v2285_v37 = vld [vmem:[%s3367_s0 + $0x54] ss:$8 sps:$4 sm:$0xff]   ;;  %v2289_v38 = vld [vmem:[%s3367_s0 + $0x204] ss:$8 sps:$4 sm:$0xff]   ;;  %v2288_v39 = vld [vmem:[%s3367_s0 + $0x50] ss:$8 sps:$4 sm:$0xff]  }
   0xe   :  { %789 = vmatpush1.bf16.msra.mxu0 %v2243_v4  ;;  %2226 = vmatpush1.bf16.msra.mxu1 %v2243_v4  ;;  %v2293_v40 = vld [vmem:[%s3367_s0 + $0x200] ss:$8 sps:$4 sm:$0xff]   ;;  %v2291_v41 = vld [vmem:[%s3367_s0 + $0x64] ss:$8 sps:$4 sm:$0xff]   ;;  %v2295_v42 = vld [vmem:[%s3367_s0 + $0x214] ss:$8 sps:$4 sm:$0xff]  }
   0xf   :  { %790 = vmatprep.subr.bf16.mxu0 %v2415_v0  ;;  %2211 = vmatprep.subr.bf16.mxu1 %v2415_v0  ;;  %v2294_v43 = vld [vmem:[%s3367_s0 + $0x60] ss:$8 sps:$4 sm:$0xff]   ;;  %v2299_v44 = vld [vmem:[%s3367_s0 + $0x210] ss:$8 sps:$4 sm:$0xff]   ;;  %v2297_v45 = vld [vmem:[%s3367_s0 + $0x74] ss:$8 sps:$4 sm:$0xff]  }
  0x10   :  { %v2301_v46 = vld [vmem:[%s3367_s0 + $0x224] ss:$8 sps:$4 sm:$0xff]   ;;  %v2300_v47 = vld [vmem:[%s3367_s0 + $0x70] ss:$8 sps:$4 sm:$0xff]   ;;  %v2305_v48 = vld [vmem:[%s3367_s0 + $0x220] ss:$8 sps:$4 sm:$0xff]  }
  0x11   :  { %v2303_v49 = vld [vmem:[%s3367_s0 + $0x84] ss:$8 sps:$4 sm:$0xff]   ;;  %v2307_v50 = vld [vmem:[%s3367_s0 + $0x234] ss:$8 sps:$4 sm:$0xff]   ;;  %v2306_v51 = vld [vmem:[%s3367_s0 + $0x80] ss:$8 sps:$4 sm:$0xff]  }
  0x12   :  { %791 = vmatpush1.bf16.msra.mxu0 %v2244_v5  ;;  %2227 = vmatpush1.bf16.msra.mxu1 %v2244_v5  ;;  %v2311_v52 = vld [vmem:[%s3367_s0 + $0x230] ss:$8 sps:$4 sm:$0xff]   ;;  %v2309_v53 = vld [vmem:[%s3367_s0 + $0x94] ss:$8 sps:$4 sm:$0xff]   ;;  %v2313_v54 = vld [vmem:[%s3367_s0 + $0x244] ss:$8 sps:$4 sm:$0xff]  }
  0x13   :  { %792 = vmatprep.subr.bf16.mxu0 %v2415_v0  ;;  %2212 = vmatprep.subr.bf16.mxu1 %v2415_v0  ;;  %v2312_v55 = vld [vmem:[%s3367_s0 + $0x90] ss:$8 sps:$4 sm:$0xff]   ;;  %v2317_v56 = vld [vmem:[%s3367_s0 + $0x240] ss:$8 sps:$4 sm:$0xff]   ;;  %v2315_v57 = vld [vmem:[%s3367_s0 + $0xa4] ss:$8 sps:$4 sm:$0xff]  }
  0x14   :  { %v2319_v58 = vld [vmem:[%s3367_s0 + $0x254] ss:$8 sps:$4 sm:$0xff]   ;;  %v2318_v59 = vld [vmem:[%s3367_s0 + $0xa0] ss:$8 sps:$4 sm:$0xff]   ;;  %v2323_v60 = vld [vmem:[%s3367_s0 + $0x250] ss:$8 sps:$4 sm:$0xff]  }
  0x15   :  { %v2321_v61 = vld [vmem:[%s3367_s0 + $0xb4] ss:$8 sps:$4 sm:$0xff]   ;;  %v2325_v62 = vld [vmem:[%s3367_s0 + $0x264] ss:$8 sps:$4 sm:$0xff]   ;;  %v2324_v63 = vld [vmem:[%s3367_s0 + $0xb0] ss:$8 sps:$4 sm:$0xff]  }
  0x16   :  { %793 = vmatpush1.bf16.msra.mxu0 %v2245_v7  ;;  %2228 = vmatpush1.bf16.msra.mxu1 %v2245_v7  ;;  %v2327_v1 = vld [vmem:[%s3367_s0 + $0xc4] ss:$8 sps:$4 sm:$0xff]   ;;  %v2331_v2 = vld [vmem:[%s3367_s0 + $0x274] ss:$8 sps:$4 sm:$0xff]   ;;  %v2330_v3 = vld [vmem:[%s3367_s0 + $0xc0] ss:$8 sps:$4 sm:$0xff]  }
  0x17   :  { %794 = vmatprep.subr.bf16.mxu0 %v2415_v0  ;;  %2213 = vmatprep.subr.bf16.mxu1 %v2415_v0  ;;  %v2335_v4 = vld [vmem:[%s3367_s0 + $0x270] ss:$8 sps:$4 sm:$0xff]   ;;  %v2333_v5 = vld [vmem:[%s3367_s0 + $0xd4] ss:$8 sps:$4 sm:$0xff]   ;;  %v2337_v6 = vld [vmem:[%s3367_s0 + $0x284] ss:$8 sps:$4 sm:$0xff]  }
  0x18   :  { %v2336_v7 = vld [vmem:[%s3367_s0 + $0xd0] ss:$8 sps:$4 sm:$0xff]   ;;  %v2341_v8 = vld [vmem:[%s3367_s0 + $0x280] ss:$8 sps:$4 sm:$0xff]  }
  0x1a   :  { %795 = vmatpush1.bf16.msra.mxu0 %v2246_v9  ;;  %2229 = vmatpush1.bf16.msra.mxu1 %v2246_v9  ;;  %v2339_v9 = vld [vmem:[%s3367_s0 + $0xe4] ss:$8 sps:$4 sm:$0xff]  }
  0x1b   :  { %796 = vmatprep.subr.bf16.mxu0 %v2415_v0  ;;  %2214 = vmatprep.subr.bf16.mxu1 %v2415_v0 }
  0x1e   :  { %797 = vmatpush1.bf16.msra.mxu0 %v2247_v10  ;;  %2230 = vmatpush1.bf16.msra.mxu1 %v2247_v10  ;;  %v2343_v10 = vld [vmem:[%s3367_s0 + $0x294] ss:$8 sps:$4 sm:$0xff]  }
  0x1f   :  { %798 = vmatprep.subr.bf16.mxu0 %v2415_v0  ;;  %2215 = vmatprep.subr.bf16.mxu1 %v2415_v0 }
  0x22   :  { %799 = vmatpush1.bf16.msra.mxu0 %v2248_v11  ;;  %2231 = vmatpush1.bf16.msra.mxu1 %v2248_v11  ;;  %v2342_v11 = vld [vmem:[%s3367_s0 + $0xe0] ss:$8 sps:$4 sm:$0xff]  }
  0x23   :  { %800 = vmatprep.subr.bf16.mxu0 %v2415_v0  ;;  %2216 = vmatprep.subr.bf16.mxu1 %v2415_v0 }
  0x26   :  { %801 = vmatpush1.bf16.msra.mxu0 %v2249_v12  ;;  %2232 = vmatpush1.bf16.msra.mxu1 %v2249_v12  ;;  %v2347_v12 = vld [vmem:[%s3367_s0 + $0x290] ss:$8 sps:$4 sm:$0xff]  }
  0x27   :  { %802 = vmatprep.subr.bf16.mxu0 %v2415_v0  ;;  %2217 = vmatprep.subr.bf16.mxu1 %v2415_v0 }
  0x2a   :  { %803 = vmatpush1.bf16.msra.mxu0 %v2250_v13  ;;  %2233 = vmatpush1.bf16.msra.mxu1 %v2250_v13  ;;  %v2345_v13 = vld [vmem:[%s3367_s0 + $0xf4] ss:$8 sps:$4 sm:$0xff]  }
  0x2b   :  { %804 = vmatprep.subr.bf16.mxu0 %v2415_v0  ;;  %2218 = vmatprep.subr.bf16.mxu1 %v2415_v0 }
  0x2e   :  { %805 = vmatpush1.bf16.msra.mxu0 %v2251_v14  ;;  %2234 = vmatpush1.bf16.msra.mxu1 %v2251_v14  ;;  %v2349_v14 = vld [vmem:[%s3367_s0 + $0x2a4] ss:$8 sps:$4 sm:$0xff]  }
  0x2f   :  { %806 = vmatprep.subr.bf16.mxu0 %v2415_v0  ;;  %2219 = vmatprep.subr.bf16.mxu1 %v2415_v0 }
  0x32   :  { %807 = vmatpush1.bf16.msra.mxu0 %v2252_v15  ;;  %2235 = vmatpush1.bf16.msra.mxu1 %v2252_v15  ;;  %v2348_v15 = vld [vmem:[%s3367_s0 + $0xf0] ss:$8 sps:$4 sm:$0xff]  }
  0x33   :  { %808 = vmatprep.subr.bf16.mxu0 %v2415_v0  ;;  %2220 = vmatprep.subr.bf16.mxu1 %v2415_v0 }
  0x36   :  { %809 = vmatpush1.bf16.msra.mxu0 %v2253_v16  ;;  %2236 = vmatpush1.bf16.msra.mxu1 %v2253_v16  ;;  %v2353_v16 = vld [vmem:[%s3367_s0 + $0x2a0] ss:$8 sps:$4 sm:$0xff]  }
  0x37   :  { %810 = vmatprep.subr.bf16.mxu0 %v2415_v0  ;;  %2221 = vmatprep.subr.bf16.mxu1 %v2415_v0 }
  0x3a   :  { %811 = vmatpush1.bf16.msra.mxu0 %v2254_v17  ;;  %2237 = vmatpush1.bf16.msra.mxu1 %v2254_v17  ;;  %v2351_v17 = vld [vmem:[%s3367_s0 + $0x104] ss:$8 sps:$4 sm:$0xff]  }
  0x3b   :  { %812 = vmatprep.subr.bf16.mxu0 %v2415_v0  ;;  %2222 = vmatprep.subr.bf16.mxu1 %v2415_v0  ;;  %v2329_v0 = vld [vmem:[%s3367_s0 + $0x260] ss:$8 sps:$4 sm:$0xff]  }
  0x3e   :  { %813 = vmatpush1.bf16.msra.mxu0 %v2255_v18  ;;  %2238 = vmatpush1.bf16.msra.mxu1 %v2255_v18  ;;  %v2355_v18 = vld [vmem:[%s3367_s0 + $0x2b4] ss:$8 sps:$4 sm:$0xff]  }
  0x41   :  { %815 = vmatmul.mubr.bf16.vlgmr.msra.gmra.mrb[0].mxu0 %v2256_v19  ;;  %1031 = vmatmul.mubr.bf16.vlgmr.msra.gmra.mrb[0].mxu1 %v2259_v20  ;;  %v2354_v19 = vld [vmem:[%s3367_s0 + $0x100] ss:$8 sps:$4 sm:$0xff]   ;;  %v2359_v20 = vld [vmem:[%s3367_s0 + $0x2b0] ss:$8 sps:$4 sm:$0xff]  }
  0x42   :  { %822 = vmatprep.mubr.bf16.mxu0 %v2262_v21  ;;  %1038 = vmatprep.mubr.bf16.mxu1 %v2265_v22  ;;  %v2357_v21 = vld [vmem:[%s3367_s0 + $0x114] ss:$8 sps:$4 sm:$0xff]   ;;  %v2361_v22 = vld [vmem:[%s3367_s0 + $0x2c4] ss:$8 sps:$4 sm:$0xff]  }
  0x49   :  { %823 = vmatmul.mubr.bf16.gmra.mrb[4].mxu0 %v2264_v23  ;;  %1039 = vmatmul.mubr.bf16.gmra.mrb[4].mxu1 %v2269_v24  ;;  %v2360_v23 = vld [vmem:[%s3367_s0 + $0x110] ss:$8 sps:$4 sm:$0xff]   ;;  %v2365_v24 = vld [vmem:[%s3367_s0 + $0x2c0] ss:$8 sps:$4 sm:$0xff]  }
  0x4a   :  { %830 = vmatprep.mubr.bf16.mxu0 %v2267_v25  ;;  %1046 = vmatprep.mubr.bf16.mxu1 %v2271_v26  ;;  %v2363_v25 = vld [vmem:[%s3367_s0 + $0x124] ss:$8 sps:$4 sm:$0xff]   ;;  %v2367_v26 = vld [vmem:[%s3367_s0 + $0x2d4] ss:$8 sps:$4 sm:$0xff]  }
  0x51   :  { %831 = vmatmul.mubr.bf16.gmra.mrb[8].mxu0 %v2270_v27  ;;  %1047 = vmatmul.mubr.bf16.gmra.mrb[8].mxu1 %v2275_v28  ;;  %v2366_v27 = vld [vmem:[%s3367_s0 + $0x120] ss:$8 sps:$4 sm:$0xff]   ;;  %v2371_v28 = vld [vmem:[%s3367_s0 + $0x2d0] ss:$8 sps:$4 sm:$0xff]  }
  0x52   :  { %838 = vmatprep.mubr.bf16.mxu0 %v2273_v29  ;;  %1054 = vmatprep.mubr.bf16.mxu1 %v2277_v30  ;;  %v2369_v29 = vld [vmem:[%s3367_s0 + $0x134] ss:$8 sps:$4 sm:$0xff]   ;;  %v2373_v30 = vld [vmem:[%s3367_s0 + $0x2e4] ss:$8 sps:$4 sm:$0xff]  }
  0x59   :  { %839 = vmatmul.mubr.bf16.gmra.mrb[12].mxu0 %v2276_v31  ;;  %1055 = vmatmul.mubr.bf16.gmra.mrb[12].mxu1 %v2281_v32  ;;  %v2372_v31 = vld [vmem:[%s3367_s0 + $0x130] ss:$8 sps:$4 sm:$0xff]   ;;  %v2377_v32 = vld [vmem:[%s3367_s0 + $0x2e0] ss:$8 sps:$4 sm:$0xff]  }
  0x5a   :  { %846 = vmatprep.mubr.bf16.mxu0 %v2279_v33  ;;  %1062 = vmatprep.mubr.bf16.mxu1 %v2283_v34  ;;  %v2375_v33 = vld [vmem:[%s3367_s0 + $0x144] ss:$8 sps:$4 sm:$0xff]   ;;  %v2379_v34 = vld [vmem:[%s3367_s0 + $0x2f4] ss:$8 sps:$4 sm:$0xff]  }
  0x61   :  { %847 = vmatmul.mubr.bf16.gmra.mrb[16].mxu0 %v2282_v35  ;;  %1063 = vmatmul.mubr.bf16.gmra.mrb[16].mxu1 %v2287_v36  ;;  %v2378_v35 = vld [vmem:[%s3367_s0 + $0x140] ss:$8 sps:$4 sm:$0xff]   ;;  %v2383_v36 = vld [vmem:[%s3367_s0 + $0x2f0] ss:$8 sps:$4 sm:$0xff]  }
  0x62   :  { %854 = vmatprep.mubr.bf16.mxu0 %v2285_v37  ;;  %1070 = vmatprep.mubr.bf16.mxu1 %v2289_v38  ;;  %v2381_v37 = vld [vmem:[%s3367_s0 + $0x154] ss:$8 sps:$4 sm:$0xff]   ;;  %v2385_v38 = vld [vmem:[%s3367_s0 + $0x304] ss:$8 sps:$4 sm:$0xff]  }
  0x69   :  { %855 = vmatmul.mubr.bf16.gmra.mrb[20].mxu0 %v2288_v39  ;;  %1071 = vmatmul.mubr.bf16.gmra.mrb[20].mxu1 %v2293_v40  ;;  %v2384_v39 = vld [vmem:[%s3367_s0 + $0x150] ss:$8 sps:$4 sm:$0xff]   ;;  %v2389_v40 = vld [vmem:[%s3367_s0 + $0x300] ss:$8 sps:$4 sm:$0xff]  }
  0x6a   :  { %862 = vmatprep.mubr.bf16.mxu0 %v2291_v41  ;;  %1078 = vmatprep.mubr.bf16.mxu1 %v2295_v42  ;;  %v2387_v41 = vld [vmem:[%s3367_s0 + $0x164] ss:$8 sps:$4 sm:$0xff]   ;;  %v2391_v42 = vld [vmem:[%s3367_s0 + $0x314] ss:$8 sps:$4 sm:$0xff]  }
  0x71   :  { %863 = vmatmul.mubr.bf16.gmra.mrb[24].mxu0 %v2294_v43  ;;  %1079 = vmatmul.mubr.bf16.gmra.mrb[24].mxu1 %v2299_v44  ;;  %v2390_v43 = vld [vmem:[%s3367_s0 + $0x160] ss:$8 sps:$4 sm:$0xff]   ;;  %v2395_v44 = vld [vmem:[%s3367_s0 + $0x310] ss:$8 sps:$4 sm:$0xff]  }
  0x72   :  { %870 = vmatprep.mubr.bf16.mxu0 %v2297_v45  ;;  %1086 = vmatprep.mubr.bf16.mxu1 %v2301_v46  ;;  %v2393_v45 = vld [vmem:[%s3367_s0 + $0x174] ss:$8 sps:$4 sm:$0xff]   ;;  %v2397_v46 = vld [vmem:[%s3367_s0 + $0x324] ss:$8 sps:$4 sm:$0xff]  }
  0x79   :  { %871 = vmatmul.mubr.bf16.gmra.mrb[28].mxu0 %v2300_v47  ;;  %1087 = vmatmul.mubr.bf16.gmra.mrb[28].mxu1 %v2305_v48  ;;  %v2396_v47 = vld [vmem:[%s3367_s0 + $0x170] ss:$8 sps:$4 sm:$0xff]   ;;  %v2401_v48 = vld [vmem:[%s3367_s0 + $0x320] ss:$8 sps:$4 sm:$0xff]  }
  0x7a   :  { %878 = vmatprep.mubr.bf16.mxu0 %v2303_v49  ;;  %1094 = vmatprep.mubr.bf16.mxu1 %v2307_v50  ;;  %v2399_v49 = vld [vmem:[%s3367_s0 + $0x184] ss:$8 sps:$4 sm:$0xff]   ;;  %v2403_v50 = vld [vmem:[%s3367_s0 + $0x334] ss:$8 sps:$4 sm:$0xff]  }
  0x81   :  { %879 = vmatmul.mubr.bf16.gmra.mrb[32].mxu0 %v2306_v51  ;;  %1095 = vmatmul.mubr.bf16.gmra.mrb[32].mxu1 %v2311_v52  ;;  %v119_v51 = vld [vmem:[%s3367_s0 + $0x340] sm:$0xff] }
  0x82   :  { %886 = vmatprep.mubr.bf16.mxu0 %v2309_v53  ;;  %1102 = vmatprep.mubr.bf16.mxu1 %v2313_v54  ;;  %v2402_v52 = vld [vmem:[%s3367_s0 + $0x180] ss:$8 sps:$4 sm:$0xff]   ;;  %v2407_v53 = vld [vmem:[%s3367_s0 + $0x330] ss:$8 sps:$4 sm:$0xff]   ;;  %v2405_v54 = vld [vmem:[%s3367_s0 + $0x194] ss:$8 sps:$4 sm:$0xff]  }
  0x89   :  { %887 = vmatmul.mubr.bf16.gmra.mrb[36].mxu0 %v2312_v55  ;;  %1103 = vmatmul.mubr.bf16.gmra.mrb[36].mxu1 %v2317_v56  ;;  %v1980_v55 = vcombine.high %v119_v51, %v119_v51  ;;  %v2408_v56 = vld [vmem:[%s3367_s0 + $0x190] ss:$8 sps:$4 sm:$0xff]  }
  0x8a   :  { %894 = vmatprep.mubr.bf16.mxu0 %v2315_v57  ;;  %1110 = vmatprep.mubr.bf16.mxu1 %v2319_v58  ;;  %v1979_v57 = vcombine.low %v119_v51, %v119_v51  ;;  %v2410_v58 = vld [vmem:[%s3367_s0 + $0x1a4] ss:$8 sps:$4 sm:$0xff]  }
  0x91   :  { %895 = vmatmul.mubr.bf16.gmra.mrb[40].mxu0 %v2318_v59  ;;  %1111 = vmatmul.mubr.bf16.gmra.mrb[40].mxu1 %v2323_v60  ;;  %v2413_v59 = vld [vmem:[%s3367_s0 + $0x1a0] ss:$8 sps:$4 sm:$0xff]  }
  0x92   :  { %902 = vmatprep.mubr.bf16.mxu0 %v2321_v61  ;;  %1118 = vmatprep.mubr.bf16.mxu1 %v2325_v62  ;;  %v2834_v60 = vld [vmem:[%s3368_s2] ss:$0 sm:$0xff] }
  0x99   :  { %903 = vmatmul.mubr.bf16.gmra.mrb[44].mxu0 %v2324_v63  ;;  %1119 = vmatmul.mubr.bf16.gmra.mrb[44].mxu1 %v2329_v0 }
  0x9a   :  { %910 = vmatprep.mubr.bf16.mxu0 %v2327_v1  ;;  %1126 = vmatprep.mubr.bf16.mxu1 %v2331_v2 }
  0xa1   :  { %911 = vmatmul.mubr.bf16.gmra.mrb[48].mxu0 %v2330_v3  ;;  %1127 = vmatmul.mubr.bf16.gmra.mrb[48].mxu1 %v2335_v4 }
  0xa2   :  { %918 = vmatprep.mubr.bf16.mxu0 %v2333_v5  ;;  %1134 = vmatprep.mubr.bf16.mxu1 %v2337_v6 }
  0xa9   :  { %919 = vmatmul.mubr.bf16.gmra.mrb[52].mxu0 %v2336_v7  ;;  %1135 = vmatmul.mubr.bf16.gmra.mrb[52].mxu1 %v2341_v8 }
  0xaa   :  { %926 = vmatprep.mubr.bf16.mxu0 %v2339_v9  ;;  %1142 = vmatprep.mubr.bf16.mxu1 %v2343_v10 }
  0xb1   :  { %927 = vmatmul.mubr.bf16.gmra.mrb[56].mxu0 %v2342_v11  ;;  %1143 = vmatmul.mubr.bf16.gmra.mrb[56].mxu1 %v2347_v12 }
  0xb2   :  { %934 = vmatprep.mubr.bf16.mxu0 %v2345_v13  ;;  %1150 = vmatprep.mubr.bf16.mxu1 %v2349_v14 }
  0xb9   :  { %935 = vmatmul.mubr.bf16.gmra.mrb[60].mxu0 %v2348_v15  ;;  %1151 = vmatmul.mubr.bf16.gmra.mrb[60].mxu1 %v2353_v16 }
  0xba   :  { %942 = vmatprep.mubr.bf16.mxu0 %v2351_v17  ;;  %1158 = vmatprep.mubr.bf16.mxu1 %v2355_v18 }
  0xc1   :  { %943 = vmatmul.mubr.bf16.gmra.mrb[64].mxu0 %v2354_v19  ;;  %1159 = vmatmul.mubr.bf16.gmra.mrb[64].mxu1 %v2359_v20 }
  0xc2   :  { %950 = vmatprep.mubr.bf16.mxu0 %v2357_v21  ;;  %1166 = vmatprep.mubr.bf16.mxu1 %v2361_v22 }
  0xc9   :  { %951 = vmatmul.mubr.bf16.gmra.mrb[68].mxu0 %v2360_v23  ;;  %1167 = vmatmul.mubr.bf16.gmra.mrb[68].mxu1 %v2365_v24 }
  0xca   :  { %958 = vmatprep.mubr.bf16.mxu0 %v2363_v25  ;;  %1174 = vmatprep.mubr.bf16.mxu1 %v2367_v26 }
  0xd1   :  { %959 = vmatmul.mubr.bf16.gmra.mrb[72].mxu0 %v2366_v27  ;;  %1175 = vmatmul.mubr.bf16.gmra.mrb[72].mxu1 %v2371_v28 }
  0xd2   :  { %966 = vmatprep.mubr.bf16.mxu0 %v2369_v29  ;;  %1182 = vmatprep.mubr.bf16.mxu1 %v2373_v30 }
  0xd9   :  { %967 = vmatmul.mubr.bf16.gmra.mrb[76].mxu0 %v2372_v31  ;;  %1183 = vmatmul.mubr.bf16.gmra.mrb[76].mxu1 %v2377_v32 }
  0xda   :  { %974 = vmatprep.mubr.bf16.mxu0 %v2375_v33  ;;  %1190 = vmatprep.mubr.bf16.mxu1 %v2379_v34 }
  0xe1   :  { %975 = vmatmul.mubr.bf16.gmra.mrb[80].mxu0 %v2378_v35  ;;  %1191 = vmatmul.mubr.bf16.gmra.mrb[80].mxu1 %v2383_v36 }
  0xe2   :  { %982 = vmatprep.mubr.bf16.mxu0 %v2381_v37  ;;  %1198 = vmatprep.mubr.bf16.mxu1 %v2385_v38 }
  0xe9   :  { %983 = vmatmul.mubr.bf16.gmra.mrb[84].mxu0 %v2384_v39  ;;  %1199 = vmatmul.mubr.bf16.gmra.mrb[84].mxu1 %v2389_v40 }
  0xea   :  { %990 = vmatprep.mubr.bf16.mxu0 %v2387_v41  ;;  %1206 = vmatprep.mubr.bf16.mxu1 %v2391_v42 }
  0xf1   :  { %991 = vmatmul.mubr.bf16.gmra.mrb[88].mxu0 %v2390_v43  ;;  %1207 = vmatmul.mubr.bf16.gmra.mrb[88].mxu1 %v2395_v44 }
  0xf2   :  { %998 = vmatprep.mubr.bf16.mxu0 %v2393_v45  ;;  %1214 = vmatprep.mubr.bf16.mxu1 %v2397_v46 }
  0xf9   :  { %999 = vmatmul.mubr.bf16.gmra.mrb[92].mxu0 %v2396_v47  ;;  %1215 = vmatmul.mubr.bf16.gmra.mrb[92].mxu1 %v2401_v48 }
  0xfa   :  { %1006 = vmatprep.mubr.bf16.mxu0 %v2399_v49  ;;  %1222 = vmatprep.mubr.bf16.mxu1 %v2403_v50 }
 0x101   :  { %1007 = vmatmul.mubr.bf16.gmra.mrb[96].mxu0 %v2402_v52  ;;  %1223 = vmatmul.mubr.bf16.gmra.mrb[96].mxu1 %v2407_v53 }
 0x102   :  { %1014 = vmatprep.mubr.bf16.mxu0 %v2405_v54  ;;  %1230 = vmatprep.mubr.bf16.mxu1 %v1980_v55 }
 0x109   :  { %1015 = vmatmul.mubr.bf16.gmra.mrb[100].mxu0 %v2408_v56  ;;  %1231 = vmatmul.mubr.bf16.gmra.mrb[100].mxu1 %v1979_v57 }
 0x10a   :  { %1022 = vmatprep.mubr.bf16.mxu0 %v2410_v58 }
 0x111   :  { %1023 = vmatmul.mubr.bf16.gmra.mrb[104].mxu0 %v2413_v59 }
 0x114   :  { %v816_v61 = vpop.f32.mrb[0].mxu0  ;;  %v1032_v62 = vpop.f32.mrb[0].mxu1 }
 0x115   :  { %v817_v63 = vadd.f32 %v2834_v60, %v816_v61  ;;  %v818_v0 = vpop.f32.mrb[1].mxu0  ;;  %v1033_v1 = vadd.f32 %v2834_v60, %v1032_v62  ;;  %v1034_v2 = vpop.f32.mrb[1].mxu1 }
 0x116   :  { %v819_v3 = vpop.f32.mrb[2].mxu0  ;;  %v1035_v4 = vpop.f32.mrb[2].mxu1 }
 0x117   :  { %v1238_v5 = vmax.f32 %v817_v63, 0.0  ;;  %v820_v6 = vadd.f32 %v2834_v60, %v819_v3  ;;  %v821_v7 = vpop.f32.mrb[3].mxu0  ;;  %v1292_v8 = vmax.f32 %v1033_v1, 0.0  ;;  %v1036_v9 = vadd.f32 %v2834_v60, %v1035_v4  ;;  %v1037_v10 = vpop.f32.mrb[3].mxu1 }
 0x119   :  { %v2102_v11 = vpack.c.bf16 %v1238_v5, %v1238_v5  ;;  %v1239_v12 = vmax.f32 %v820_v6, 0.0  ;;  %v2156_v13 = vpack.c.bf16 %v1292_v8, %v1292_v8  ;;  %v1293_v14 = vmax.f32 %v1036_v9, 0.0 }
 0x11b   :  { %1765 = vst.msk [vmem:[%s3369_s3] sm:$0xf] %vm1764_vm0, %v2102_v11  ;;  %v2103_v15 = vpack.c.bf16 %v1239_v12, %v1239_v12  ;;  %1819 = vst.msk [vmem:[%s3369_s3 + $0xd8] sm:$0xf] %vm1764_vm0, %v2156_v13  ;;  %v2157_v16 = vpack.c.bf16 %v1293_v14, %v1293_v14 }
 0x11c   :  { %v824_v17 = vpop.f32.mrb[4].mxu0  ;;  %v1040_v18 = vpop.f32.mrb[4].mxu1 }
 0x11d   :  { %1766 = vst.msk [vmem:[%s3369_s3 + $0x4] sm:$0xf] %vm1764_vm0, %v2103_v15  ;;  %v825_v19 = vadd.f32 %v2834_v60, %v824_v17  ;;  %v826_v20 = vpop.f32.mrb[5].mxu0  ;;  %1820 = vst.msk [vmem:[%s3369_s3 + $0xdc] sm:$0xf] %vm1764_vm0, %v2157_v16  ;;  %v1041_v21 = vadd.f32 %v2834_v60, %v1040_v18  ;;  %v1042_v22 = vpop.f32.mrb[5].mxu1 }
 0x11e   :  { %v827_v23 = vpop.f32.mrb[6].mxu0  ;;  %v1043_v24 = vpop.f32.mrb[6].mxu1 }
 0x11f   :  { %v1240_v25 = vmax.f32 %v825_v19, 0.0  ;;  %v828_v26 = vadd.f32 %v2834_v60, %v827_v23  ;;  %v829_v27 = vpop.f32.mrb[7].mxu0  ;;  %v1294_v28 = vmax.f32 %v1041_v21, 0.0  ;;  %v1044_v29 = vadd.f32 %v2834_v60, %v1043_v24  ;;  %v1045_v30 = vpop.f32.mrb[7].mxu1 }
 0x121   :  { %v2104_v31 = vpack.c.bf16 %v1240_v25, %v1240_v25  ;;  %v1241_v32 = vmax.f32 %v828_v26, 0.0  ;;  %v2158_v33 = vpack.c.bf16 %v1294_v28, %v1294_v28  ;;  %v1295_v34 = vmax.f32 %v1044_v29, 0.0 }
 0x123   :  { %1767 = vst.msk [vmem:[%s3369_s3 + $0x8] sm:$0xf] %vm1764_vm0, %v2104_v31  ;;  %v2105_v35 = vpack.c.bf16 %v1241_v32, %v1241_v32  ;;  %1821 = vst.msk [vmem:[%s3369_s3 + $0xe0] sm:$0xf] %vm1764_vm0, %v2158_v33  ;;  %v2159_v36 = vpack.c.bf16 %v1295_v34, %v1295_v34 }
 0x124   :  { %v832_v37 = vpop.f32.mrb[8].mxu0  ;;  %v1048_v38 = vpop.f32.mrb[8].mxu1 }
 0x125   :  { %1768 = vst.msk [vmem:[%s3369_s3 + $0xc] sm:$0xf] %vm1764_vm0, %v2105_v35  ;;  %v833_v39 = vadd.f32 %v2834_v60, %v832_v37  ;;  %v834_v40 = vpop.f32.mrb[9].mxu0  ;;  %1822 = vst.msk [vmem:[%s3369_s3 + $0xe4] sm:$0xf] %vm1764_vm0, %v2159_v36  ;;  %v1049_v41 = vadd.f32 %v2834_v60, %v1048_v38  ;;  %v1050_v42 = vpop.f32.mrb[9].mxu1 }
 0x126   :  { %v835_v43 = vpop.f32.mrb[10].mxu0  ;;  %v1051_v44 = vpop.f32.mrb[10].mxu1 }
 0x127   :  { %v1242_v45 = vmax.f32 %v833_v39, 0.0  ;;  %v836_v46 = vadd.f32 %v2834_v60, %v835_v43  ;;  %v837_v47 = vpop.f32.mrb[11].mxu0  ;;  %v1296_v48 = vmax.f32 %v1049_v41, 0.0  ;;  %v1052_v49 = vadd.f32 %v2834_v60, %v1051_v44  ;;  %v1053_v50 = vpop.f32.mrb[11].mxu1 }
 0x129   :  { %v2106_v51 = vpack.c.bf16 %v1242_v45, %v1242_v45  ;;  %v1243_v52 = vmax.f32 %v836_v46, 0.0  ;;  %v2160_v53 = vpack.c.bf16 %v1296_v48, %v1296_v48  ;;  %v1297_v54 = vmax.f32 %v1052_v49, 0.0 }
 0x12b   :  { %1769 = vst.msk [vmem:[%s3369_s3 + $0x10] sm:$0xf] %vm1764_vm0, %v2106_v51  ;;  %v2107_v55 = vpack.c.bf16 %v1243_v52, %v1243_v52  ;;  %1823 = vst.msk [vmem:[%s3369_s3 + $0xe8] sm:$0xf] %vm1764_vm0, %v2160_v53  ;;  %v2161_v56 = vpack.c.bf16 %v1297_v54, %v1297_v54 }
 0x12c   :  { %v840_v57 = vpop.f32.mrb[12].mxu0  ;;  %v1056_v58 = vpop.f32.mrb[12].mxu1 }
 0x12d   :  { %1770 = vst.msk [vmem:[%s3369_s3 + $0x14] sm:$0xf] %vm1764_vm0, %v2107_v55  ;;  %v841_v59 = vadd.f32 %v2834_v60, %v840_v57  ;;  %v842_v61 = vpop.f32.mrb[13].mxu0  ;;  %1824 = vst.msk [vmem:[%s3369_s3 + $0xec] sm:$0xf] %vm1764_vm0, %v2161_v56  ;;  %v1057_v62 = vadd.f32 %v2834_v60, %v1056_v58  ;;  %v1058_v63 = vpop.f32.mrb[13].mxu1 }
 0x12e   :  { %v843_v0 = vpop.f32.mrb[14].mxu0  ;;  %v1059_v1 = vpop.f32.mrb[14].mxu1 }
 0x12f   :  { %v1244_v2 = vmax.f32 %v841_v59, 0.0  ;;  %v844_v3 = vadd.f32 %v2834_v60, %v843_v0  ;;  %v845_v4 = vpop.f32.mrb[15].mxu0  ;;  %v1298_v5 = vmax.f32 %v1057_v62, 0.0  ;;  %v1060_v6 = vadd.f32 %v2834_v60, %v1059_v1  ;;  %v1061_v7 = vpop.f32.mrb[15].mxu1 }
 0x131   :  { %v2108_v8 = vpack.c.bf16 %v1244_v2, %v1244_v2  ;;  %v1245_v9 = vmax.f32 %v844_v3, 0.0  ;;  %v2162_v10 = vpack.c.bf16 %v1298_v5, %v1298_v5  ;;  %v1299_v11 = vmax.f32 %v1060_v6, 0.0 }
 0x133   :  { %1771 = vst.msk [vmem:[%s3369_s3 + $0x18] sm:$0xf] %vm1764_vm0, %v2108_v8  ;;  %v2109_v12 = vpack.c.bf16 %v1245_v9, %v1245_v9  ;;  %1825 = vst.msk [vmem:[%s3369_s3 + $0xf0] sm:$0xf] %vm1764_vm0, %v2162_v10  ;;  %v2163_v13 = vpack.c.bf16 %v1299_v11, %v1299_v11 }
 0x134   :  { %v848_v14 = vpop.f32.mrb[16].mxu0  ;;  %v1064_v15 = vpop.f32.mrb[16].mxu1 }
 0x135   :  { %1772 = vst.msk [vmem:[%s3369_s3 + $0x1c] sm:$0xf] %vm1764_vm0, %v2109_v12  ;;  %v849_v16 = vadd.f32 %v2834_v60, %v848_v14  ;;  %v850_v17 = vpop.f32.mrb[17].mxu0  ;;  %1826 = vst.msk [vmem:[%s3369_s3 + $0xf4] sm:$0xf] %vm1764_vm0, %v2163_v13  ;;  %v1065_v18 = vadd.f32 %v2834_v60, %v1064_v15  ;;  %v1066_v19 = vpop.f32.mrb[17].mxu1 }
 0x136   :  { %v851_v20 = vpop.f32.mrb[18].mxu0  ;;  %v1067_v21 = vpop.f32.mrb[18].mxu1 }
 0x137   :  { %v1246_v22 = vmax.f32 %v849_v16, 0.0  ;;  %v852_v23 = vadd.f32 %v2834_v60, %v851_v20  ;;  %v853_v24 = vpop.f32.mrb[19].mxu0  ;;  %v1300_v25 = vmax.f32 %v1065_v18, 0.0  ;;  %v1068_v26 = vadd.f32 %v2834_v60, %v1067_v21  ;;  %v1069_v27 = vpop.f32.mrb[19].mxu1 }
 0x139   :  { %v2110_v28 = vpack.c.bf16 %v1246_v22, %v1246_v22  ;;  %v1247_v29 = vmax.f32 %v852_v23, 0.0  ;;  %v2164_v30 = vpack.c.bf16 %v1300_v25, %v1300_v25  ;;  %v1301_v31 = vmax.f32 %v1068_v26, 0.0 }
 0x13b   :  { %1773 = vst.msk [vmem:[%s3369_s3 + $0x20] sm:$0xf] %vm1764_vm0, %v2110_v28  ;;  %v2111_v32 = vpack.c.bf16 %v1247_v29, %v1247_v29  ;;  %1827 = vst.msk [vmem:[%s3369_s3 + $0xf8] sm:$0xf] %vm1764_vm0, %v2164_v30  ;;  %v2165_v33 = vpack.c.bf16 %v1301_v31, %v1301_v31 }
 0x13c   :  { %v856_v34 = vpop.f32.mrb[20].mxu0  ;;  %v1072_v35 = vpop.f32.mrb[20].mxu1 }
 0x13d   :  { %1774 = vst.msk [vmem:[%s3369_s3 + $0x24] sm:$0xf] %vm1764_vm0, %v2111_v32  ;;  %v857_v36 = vadd.f32 %v2834_v60, %v856_v34  ;;  %v858_v37 = vpop.f32.mrb[21].mxu0  ;;  %1828 = vst.msk [vmem:[%s3369_s3 + $0xfc] sm:$0xf] %vm1764_vm0, %v2165_v33  ;;  %v1073_v38 = vadd.f32 %v2834_v60, %v1072_v35  ;;  %v1074_v39 = vpop.f32.mrb[21].mxu1 }
 0x13e   :  { %v859_v40 = vpop.f32.mrb[22].mxu0  ;;  %v1075_v41 = vpop.f32.mrb[22].mxu1 }
 0x13f   :  { %v1248_v42 = vmax.f32 %v857_v36, 0.0  ;;  %v860_v43 = vadd.f32 %v2834_v60, %v859_v40  ;;  %v861_v44 = vpop.f32.mrb[23].mxu0  ;;  %v1302_v45 = vmax.f32 %v1073_v38, 0.0  ;;  %v1076_v46 = vadd.f32 %v2834_v60, %v1075_v41  ;;  %v1077_v47 = vpop.f32.mrb[23].mxu1 }
 0x141   :  { %v2112_v48 = vpack.c.bf16 %v1248_v42, %v1248_v42  ;;  %v1249_v49 = vmax.f32 %v860_v43, 0.0  ;;  %v2166_v50 = vpack.c.bf16 %v1302_v45, %v1302_v45  ;;  %v1303_v51 = vmax.f32 %v1076_v46, 0.0 }
 0x143   :  { %1775 = vst.msk [vmem:[%s3369_s3 + $0x28] sm:$0xf] %vm1764_vm0, %v2112_v48  ;;  %v2113_v52 = vpack.c.bf16 %v1249_v49, %v1249_v49  ;;  %1829 = vst.msk [vmem:[%s3369_s3 + $0x100] sm:$0xf] %vm1764_vm0, %v2166_v50  ;;  %v2167_v53 = vpack.c.bf16 %v1303_v51, %v1303_v51 }
 0x144   :  { %v864_v54 = vpop.f32.mrb[24].mxu0  ;;  %v1080_v55 = vpop.f32.mrb[24].mxu1 }
 0x145   :  { %1776 = vst.msk [vmem:[%s3369_s3 + $0x2c] sm:$0xf] %vm1764_vm0, %v2113_v52  ;;  %v865_v56 = vadd.f32 %v2834_v60, %v864_v54  ;;  %v866_v57 = vpop.f32.mrb[25].mxu0  ;;  %1830 = vst.msk [vmem:[%s3369_s3 + $0x104] sm:$0xf] %vm1764_vm0, %v2167_v53  ;;  %v1081_v58 = vadd.f32 %v2834_v60, %v1080_v55  ;;  %v1082_v59 = vpop.f32.mrb[25].mxu1 }
 0x146   :  { %v867_v61 = vpop.f32.mrb[26].mxu0  ;;  %v1083_v62 = vpop.f32.mrb[26].mxu1 }
 0x147   :  { %v1250_v63 = vmax.f32 %v865_v56, 0.0  ;;  %v868_v0 = vadd.f32 %v2834_v60, %v867_v61  ;;  %v869_v1 = vpop.f32.mrb[27].mxu0  ;;  %v1304_v2 = vmax.f32 %v1081_v58, 0.0  ;;  %v1084_v3 = vadd.f32 %v2834_v60, %v1083_v62  ;;  %v1085_v4 = vpop.f32.mrb[27].mxu1 }
 0x149   :  { %v2114_v5 = vpack.c.bf16 %v1250_v63, %v1250_v63  ;;  %v1251_v6 = vmax.f32 %v868_v0, 0.0  ;;  %v2168_v7 = vpack.c.bf16 %v1304_v2, %v1304_v2  ;;  %v1305_v8 = vmax.f32 %v1084_v3, 0.0 }
 0x14b   :  { %1777 = vst.msk [vmem:[%s3369_s3 + $0x30] sm:$0xf] %vm1764_vm0, %v2114_v5  ;;  %v2115_v9 = vpack.c.bf16 %v1251_v6, %v1251_v6  ;;  %1831 = vst.msk [vmem:[%s3369_s3 + $0x108] sm:$0xf] %vm1764_vm0, %v2168_v7  ;;  %v2169_v10 = vpack.c.bf16 %v1305_v8, %v1305_v8 }
 0x14c   :  { %v872_v11 = vpop.f32.mrb[28].mxu0  ;;  %v1088_v12 = vpop.f32.mrb[28].mxu1 }
 0x14d   :  { %1778 = vst.msk [vmem:[%s3369_s3 + $0x34] sm:$0xf] %vm1764_vm0, %v2115_v9  ;;  %v873_v13 = vadd.f32 %v2834_v60, %v872_v11  ;;  %v874_v14 = vpop.f32.mrb[29].mxu0  ;;  %1832 = vst.msk [vmem:[%s3369_s3 + $0x10c] sm:$0xf] %vm1764_vm0, %v2169_v10  ;;  %v1089_v15 = vadd.f32 %v2834_v60, %v1088_v12  ;;  %v1090_v16 = vpop.f32.mrb[29].mxu1 }
 0x14e   :  { %v875_v17 = vpop.f32.mrb[30].mxu0  ;;  %v1091_v18 = vpop.f32.mrb[30].mxu1 }
 0x14f   :  { %v1252_v19 = vmax.f32 %v873_v13, 0.0  ;;  %v876_v20 = vadd.f32 %v2834_v60, %v875_v17  ;;  %v877_v21 = vpop.f32.mrb[31].mxu0  ;;  %v1306_v22 = vmax.f32 %v1089_v15, 0.0  ;;  %v1092_v23 = vadd.f32 %v2834_v60, %v1091_v18  ;;  %v1093_v24 = vpop.f32.mrb[31].mxu1 }
 0x151   :  { %v2116_v25 = vpack.c.bf16 %v1252_v19, %v1252_v19  ;;  %v1253_v26 = vmax.f32 %v876_v20, 0.0  ;;  %v2170_v27 = vpack.c.bf16 %v1306_v22, %v1306_v22  ;;  %v1307_v28 = vmax.f32 %v1092_v23, 0.0 }
 0x153   :  { %1779 = vst.msk [vmem:[%s3369_s3 + $0x38] sm:$0xf] %vm1764_vm0, %v2116_v25  ;;  %v2117_v29 = vpack.c.bf16 %v1253_v26, %v1253_v26  ;;  %1833 = vst.msk [vmem:[%s3369_s3 + $0x110] sm:$0xf] %vm1764_vm0, %v2170_v27  ;;  %v2171_v30 = vpack.c.bf16 %v1307_v28, %v1307_v28 }
 0x154   :  { %v880_v31 = vpop.f32.mrb[32].mxu0  ;;  %v1096_v32 = vpop.f32.mrb[32].mxu1 }
 0x155   :  { %1780 = vst.msk [vmem:[%s3369_s3 + $0x3c] sm:$0xf] %vm1764_vm0, %v2117_v29  ;;  %v881_v33 = vadd.f32 %v2834_v60, %v880_v31  ;;  %v882_v34 = vpop.f32.mrb[33].mxu0  ;;  %1834 = vst.msk [vmem:[%s3369_s3 + $0x114] sm:$0xf] %vm1764_vm0, %v2171_v30  ;;  %v1097_v35 = vadd.f32 %v2834_v60, %v1096_v32  ;;  %v1098_v36 = vpop.f32.mrb[33].mxu1 }
 0x156   :  { %v883_v37 = vpop.f32.mrb[34].mxu0  ;;  %v1099_v38 = vpop.f32.mrb[34].mxu1 }
 0x157   :  { %v1254_v39 = vmax.f32 %v881_v33, 0.0  ;;  %v884_v40 = vadd.f32 %v2834_v60, %v883_v37  ;;  %v885_v41 = vpop.f32.mrb[35].mxu0  ;;  %v1308_v42 = vmax.f32 %v1097_v35, 0.0  ;;  %v1100_v43 = vadd.f32 %v2834_v60, %v1099_v38  ;;  %v1101_v44 = vpop.f32.mrb[35].mxu1 }
 0x159   :  { %v2118_v45 = vpack.c.bf16 %v1254_v39, %v1254_v39  ;;  %v1255_v46 = vmax.f32 %v884_v40, 0.0  ;;  %v2172_v47 = vpack.c.bf16 %v1308_v42, %v1308_v42  ;;  %v1309_v48 = vmax.f32 %v1100_v43, 0.0 }
 0x15b   :  { %1781 = vst.msk [vmem:[%s3369_s3 + $0x40] sm:$0xf] %vm1764_vm0, %v2118_v45  ;;  %v2119_v49 = vpack.c.bf16 %v1255_v46, %v1255_v46  ;;  %1835 = vst.msk [vmem:[%s3369_s3 + $0x118] sm:$0xf] %vm1764_vm0, %v2172_v47  ;;  %v2173_v50 = vpack.c.bf16 %v1309_v48, %v1309_v48 }
 0x15c   :  { %v888_v51 = vpop.f32.mrb[36].mxu0  ;;  %v1104_v52 = vpop.f32.mrb[36].mxu1 }
 0x15d   :  { %1782 = vst.msk [vmem:[%s3369_s3 + $0x44] sm:$0xf] %vm1764_vm0, %v2119_v49  ;;  %v889_v53 = vadd.f32 %v2834_v60, %v888_v51  ;;  %v890_v54 = vpop.f32.mrb[37].mxu0  ;;  %1836 = vst.msk [vmem:[%s3369_s3 + $0x11c] sm:$0xf] %vm1764_vm0, %v2173_v50  ;;  %v1105_v55 = vadd.f32 %v2834_v60, %v1104_v52  ;;  %v1106_v56 = vpop.f32.mrb[37].mxu1 }
 0x15e   :  { %v891_v57 = vpop.f32.mrb[38].mxu0  ;;  %v1107_v58 = vpop.f32.mrb[38].mxu1 }
 0x15f   :  { %v1256_v59 = vmax.f32 %v889_v53, 0.0  ;;  %v892_v61 = vadd.f32 %v2834_v60, %v891_v57  ;;  %v893_v62 = vpop.f32.mrb[39].mxu0  ;;  %v1310_v63 = vmax.f32 %v1105_v55, 0.0  ;;  %v1108_v0 = vadd.f32 %v2834_v60, %v1107_v58  ;;  %v1109_v1 = vpop.f32.mrb[39].mxu1 }
 0x161   :  { %v2120_v2 = vpack.c.bf16 %v1256_v59, %v1256_v59  ;;  %v1257_v3 = vmax.f32 %v892_v61, 0.0  ;;  %v2174_v4 = vpack.c.bf16 %v1310_v63, %v1310_v63  ;;  %v1311_v5 = vmax.f32 %v1108_v0, 0.0 }
 0x163   :  { %1783 = vst.msk [vmem:[%s3369_s3 + $0x48] sm:$0xf] %vm1764_vm0, %v2120_v2  ;;  %v2121_v6 = vpack.c.bf16 %v1257_v3, %v1257_v3  ;;  %1837 = vst.msk [vmem:[%s3369_s3 + $0x120] sm:$0xf] %vm1764_vm0, %v2174_v4  ;;  %v2175_v7 = vpack.c.bf16 %v1311_v5, %v1311_v5 }
 0x164   :  { %v896_v8 = vpop.f32.mrb[40].mxu0  ;;  %v1112_v9 = vpop.f32.mrb[40].mxu1 }
 0x165   :  { %1784 = vst.msk [vmem:[%s3369_s3 + $0x4c] sm:$0xf] %vm1764_vm0, %v2121_v6  ;;  %v897_v10 = vadd.f32 %v2834_v60, %v896_v8  ;;  %v898_v11 = vpop.f32.mrb[41].mxu0  ;;  %1838 = vst.msk [vmem:[%s3369_s3 + $0x124] sm:$0xf] %vm1764_vm0, %v2175_v7  ;;  %v1113_v12 = vadd.f32 %v2834_v60, %v1112_v9  ;;  %v1114_v13 = vpop.f32.mrb[41].mxu1 }
 0x166   :  { %v899_v14 = vpop.f32.mrb[42].mxu0  ;;  %v1115_v15 = vpop.f32.mrb[42].mxu1 }
 0x167   :  { %v1258_v16 = vmax.f32 %v897_v10, 0.0  ;;  %v900_v17 = vadd.f32 %v2834_v60, %v899_v14  ;;  %v901_v18 = vpop.f32.mrb[43].mxu0  ;;  %v1312_v19 = vmax.f32 %v1113_v12, 0.0  ;;  %v1116_v20 = vadd.f32 %v2834_v60, %v1115_v15  ;;  %v1117_v21 = vpop.f32.mrb[43].mxu1 }
 0x169   :  { %v2122_v22 = vpack.c.bf16 %v1258_v16, %v1258_v16  ;;  %v1259_v23 = vmax.f32 %v900_v17, 0.0  ;;  %v2176_v24 = vpack.c.bf16 %v1312_v19, %v1312_v19  ;;  %v1313_v25 = vmax.f32 %v1116_v20, 0.0 }
 0x16b   :  { %1785 = vst.msk [vmem:[%s3369_s3 + $0x50] sm:$0xf] %vm1764_vm0, %v2122_v22  ;;  %v2123_v26 = vpack.c.bf16 %v1259_v23, %v1259_v23  ;;  %1839 = vst.msk [vmem:[%s3369_s3 + $0x128] sm:$0xf] %vm1764_vm0, %v2176_v24  ;;  %v2177_v27 = vpack.c.bf16 %v1313_v25, %v1313_v25 }
 0x16c   :  { %v904_v28 = vpop.f32.mrb[44].mxu0  ;;  %v1120_v29 = vpop.f32.mrb[44].mxu1 }
 0x16d   :  { %1786 = vst.msk [vmem:[%s3369_s3 + $0x54] sm:$0xf] %vm1764_vm0, %v2123_v26  ;;  %v905_v30 = vadd.f32 %v2834_v60, %v904_v28  ;;  %v906_v31 = vpop.f32.mrb[45].mxu0  ;;  %1840 = vst.msk [vmem:[%s3369_s3 + $0x12c] sm:$0xf] %vm1764_vm0, %v2177_v27  ;;  %v1121_v32 = vadd.f32 %v2834_v60, %v1120_v29  ;;  %v1122_v33 = vpop.f32.mrb[45].mxu1 }
 0x16e   :  { %v907_v34 = vpop.f32.mrb[46].mxu0  ;;  %v1123_v35 = vpop.f32.mrb[46].mxu1 }
 0x16f   :  { %v1260_v36 = vmax.f32 %v905_v30, 0.0  ;;  %v908_v37 = vadd.f32 %v2834_v60, %v907_v34  ;;  %v909_v38 = vpop.f32.mrb[47].mxu0  ;;  %v1314_v39 = vmax.f32 %v1121_v32, 0.0  ;;  %v1124_v40 = vadd.f32 %v2834_v60, %v1123_v35  ;;  %v1125_v41 = vpop.f32.mrb[47].mxu1 }
 0x171   :  { %v2124_v42 = vpack.c.bf16 %v1260_v36, %v1260_v36  ;;  %v1261_v43 = vmax.f32 %v908_v37, 0.0  ;;  %v2178_v44 = vpack.c.bf16 %v1314_v39, %v1314_v39  ;;  %v1315_v45 = vmax.f32 %v1124_v40, 0.0 }
 0x173   :  { %1787 = vst.msk [vmem:[%s3369_s3 + $0x58] sm:$0xf] %vm1764_vm0, %v2124_v42  ;;  %v2125_v46 = vpack.c.bf16 %v1261_v43, %v1261_v43  ;;  %1841 = vst.msk [vmem:[%s3369_s3 + $0x130] sm:$0xf] %vm1764_vm0, %v2178_v44  ;;  %v2179_v47 = vpack.c.bf16 %v1315_v45, %v1315_v45 }
 0x174   :  { %v912_v48 = vpop.f32.mrb[48].mxu0  ;;  %v1128_v49 = vpop.f32.mrb[48].mxu1 }
 0x175   :  { %1788 = vst.msk [vmem:[%s3369_s3 + $0x5c] sm:$0xf] %vm1764_vm0, %v2125_v46  ;;  %v913_v50 = vadd.f32 %v2834_v60, %v912_v48  ;;  %v914_v51 = vpop.f32.mrb[49].mxu0  ;;  %1842 = vst.msk [vmem:[%s3369_s3 + $0x134] sm:$0xf] %vm1764_vm0, %v2179_v47  ;;  %v1129_v52 = vadd.f32 %v2834_v60, %v1128_v49  ;;  %v1130_v53 = vpop.f32.mrb[49].mxu1 }
 0x176   :  { %v915_v54 = vpop.f32.mrb[50].mxu0  ;;  %v1131_v55 = vpop.f32.mrb[50].mxu1 }
 0x177   :  { %v1262_v56 = vmax.f32 %v913_v50, 0.0  ;;  %v916_v57 = vadd.f32 %v2834_v60, %v915_v54  ;;  %v917_v58 = vpop.f32.mrb[51].mxu0  ;;  %v1316_v59 = vmax.f32 %v1129_v52, 0.0  ;;  %v1132_v61 = vadd.f32 %v2834_v60, %v1131_v55  ;;  %v1133_v62 = vpop.f32.mrb[51].mxu1 }
 0x179   :  { %v2126_v63 = vpack.c.bf16 %v1262_v56, %v1262_v56  ;;  %v1263_v0 = vmax.f32 %v916_v57, 0.0  ;;  %v2180_v1 = vpack.c.bf16 %v1316_v59, %v1316_v59  ;;  %v1317_v2 = vmax.f32 %v1132_v61, 0.0 }
 0x17b   :  { %1789 = vst.msk [vmem:[%s3369_s3 + $0x60] sm:$0xf] %vm1764_vm0, %v2126_v63  ;;  %v2127_v3 = vpack.c.bf16 %v1263_v0, %v1263_v0  ;;  %1843 = vst.msk [vmem:[%s3369_s3 + $0x138] sm:$0xf] %vm1764_vm0, %v2180_v1  ;;  %v2181_v4 = vpack.c.bf16 %v1317_v2, %v1317_v2 }
 0x17c   :  { %v920_v5 = vpop.f32.mrb[52].mxu0  ;;  %v1136_v6 = vpop.f32.mrb[52].mxu1 }
 0x17d   :  { %1790 = vst.msk [vmem:[%s3369_s3 + $0x64] sm:$0xf] %vm1764_vm0, %v2127_v3  ;;  %v921_v7 = vadd.f32 %v2834_v60, %v920_v5  ;;  %v922_v8 = vpop.f32.mrb[53].mxu0  ;;  %1844 = vst.msk [vmem:[%s3369_s3 + $0x13c] sm:$0xf] %vm1764_vm0, %v2181_v4  ;;  %v1137_v9 = vadd.f32 %v2834_v60, %v1136_v6  ;;  %v1138_v10 = vpop.f32.mrb[53].mxu1 }
 0x17e   :  { %v923_v11 = vpop.f32.mrb[54].mxu0  ;;  %v1139_v12 = vpop.f32.mrb[54].mxu1 }
 0x17f   :  { %v1264_v13 = vmax.f32 %v921_v7, 0.0  ;;  %v924_v14 = vadd.f32 %v2834_v60, %v923_v11  ;;  %v925_v15 = vpop.f32.mrb[55].mxu0  ;;  %v1318_v16 = vmax.f32 %v1137_v9, 0.0  ;;  %v1140_v17 = vadd.f32 %v2834_v60, %v1139_v12  ;;  %v1141_v18 = vpop.f32.mrb[55].mxu1 }
 0x181   :  { %v2128_v19 = vpack.c.bf16 %v1264_v13, %v1264_v13  ;;  %v1265_v20 = vmax.f32 %v924_v14, 0.0  ;;  %v2182_v21 = vpack.c.bf16 %v1318_v16, %v1318_v16  ;;  %v1319_v22 = vmax.f32 %v1140_v17, 0.0 }
 0x183   :  { %1791 = vst.msk [vmem:[%s3369_s3 + $0x68] sm:$0xf] %vm1764_vm0, %v2128_v19  ;;  %v2129_v23 = vpack.c.bf16 %v1265_v20, %v1265_v20  ;;  %1845 = vst.msk [vmem:[%s3369_s3 + $0x140] sm:$0xf] %vm1764_vm0, %v2182_v21  ;;  %v2183_v24 = vpack.c.bf16 %v1319_v22, %v1319_v22 }
 0x184   :  { %v928_v25 = vpop.f32.mrb[56].mxu0  ;;  %v1144_v26 = vpop.f32.mrb[56].mxu1 }
 0x185   :  { %1792 = vst.msk [vmem:[%s3369_s3 + $0x6c] sm:$0xf] %vm1764_vm0, %v2129_v23  ;;  %v929_v27 = vadd.f32 %v2834_v60, %v928_v25  ;;  %v930_v28 = vpop.f32.mrb[57].mxu0  ;;  %1846 = vst.msk [vmem:[%s3369_s3 + $0x144] sm:$0xf] %vm1764_vm0, %v2183_v24  ;;  %v1145_v29 = vadd.f32 %v2834_v60, %v1144_v26  ;;  %v1146_v30 = vpop.f32.mrb[57].mxu1 }
 0x186   :  { %v931_v31 = vpop.f32.mrb[58].mxu0  ;;  %v1147_v32 = vpop.f32.mrb[58].mxu1 }
 0x187   :  { %v1266_v33 = vmax.f32 %v929_v27, 0.0  ;;  %v932_v34 = vadd.f32 %v2834_v60, %v931_v31  ;;  %v933_v35 = vpop.f32.mrb[59].mxu0  ;;  %v1320_v36 = vmax.f32 %v1145_v29, 0.0  ;;  %v1148_v37 = vadd.f32 %v2834_v60, %v1147_v32  ;;  %v1149_v38 = vpop.f32.mrb[59].mxu1 }
 0x189   :  { %v2130_v39 = vpack.c.bf16 %v1266_v33, %v1266_v33  ;;  %v1267_v40 = vmax.f32 %v932_v34, 0.0  ;;  %v2184_v41 = vpack.c.bf16 %v1320_v36, %v1320_v36  ;;  %v1321_v42 = vmax.f32 %v1148_v37, 0.0 }
 0x18b   :  { %1793 = vst.msk [vmem:[%s3369_s3 + $0x70] sm:$0xf] %vm1764_vm0, %v2130_v39  ;;  %v2131_v43 = vpack.c.bf16 %v1267_v40, %v1267_v40  ;;  %1847 = vst.msk [vmem:[%s3369_s3 + $0x148] sm:$0xf] %vm1764_vm0, %v2184_v41  ;;  %v2185_v44 = vpack.c.bf16 %v1321_v42, %v1321_v42 }
 0x18c   :  { %v936_v45 = vpop.f32.mrb[60].mxu0  ;;  %v1152_v46 = vpop.f32.mrb[60].mxu1 }
 0x18d   :  { %1794 = vst.msk [vmem:[%s3369_s3 + $0x74] sm:$0xf] %vm1764_vm0, %v2131_v43  ;;  %v937_v47 = vadd.f32 %v2834_v60, %v936_v45  ;;  %v938_v48 = vpop.f32.mrb[61].mxu0  ;;  %1848 = vst.msk [vmem:[%s3369_s3 + $0x14c] sm:$0xf] %vm1764_vm0, %v2185_v44  ;;  %v1153_v49 = vadd.f32 %v2834_v60, %v1152_v46  ;;  %v1154_v50 = vpop.f32.mrb[61].mxu1 }
 0x18e   :  { %v939_v51 = vpop.f32.mrb[62].mxu0  ;;  %v1155_v52 = vpop.f32.mrb[62].mxu1 }
 0x18f   :  { %v1268_v53 = vmax.f32 %v937_v47, 0.0  ;;  %v940_v54 = vadd.f32 %v2834_v60, %v939_v51  ;;  %v941_v55 = vpop.f32.mrb[63].mxu0  ;;  %v1322_v56 = vmax.f32 %v1153_v49, 0.0  ;;  %v1156_v57 = vadd.f32 %v2834_v60, %v1155_v52  ;;  %v1157_v58 = vpop.f32.mrb[63].mxu1 }
 0x191   :  { %v2132_v59 = vpack.c.bf16 %v1268_v53, %v1268_v53  ;;  %v1269_v61 = vmax.f32 %v940_v54, 0.0  ;;  %v2186_v62 = vpack.c.bf16 %v1322_v56, %v1322_v56  ;;  %v1323_v63 = vmax.f32 %v1156_v57, 0.0 }
 0x193   :  { %1795 = vst.msk [vmem:[%s3369_s3 + $0x78] sm:$0xf] %vm1764_vm0, %v2132_v59  ;;  %v2133_v0 = vpack.c.bf16 %v1269_v61, %v1269_v61  ;;  %1849 = vst.msk [vmem:[%s3369_s3 + $0x150] sm:$0xf] %vm1764_vm0, %v2186_v62  ;;  %v2187_v1 = vpack.c.bf16 %v1323_v63, %v1323_v63 }
 0x194   :  { %v944_v2 = vpop.f32.mrb[64].mxu0  ;;  %v1160_v3 = vpop.f32.mrb[64].mxu1 }
 0x195   :  { %1796 = vst.msk [vmem:[%s3369_s3 + $0x7c] sm:$0xf] %vm1764_vm0, %v2133_v0  ;;  %v945_v4 = vadd.f32 %v2834_v60, %v944_v2  ;;  %v946_v5 = vpop.f32.mrb[65].mxu0  ;;  %1850 = vst.msk [vmem:[%s3369_s3 + $0x154] sm:$0xf] %vm1764_vm0, %v2187_v1  ;;  %v1161_v6 = vadd.f32 %v2834_v60, %v1160_v3  ;;  %v1162_v7 = vpop.f32.mrb[65].mxu1 }
 0x196   :  { %v947_v8 = vpop.f32.mrb[66].mxu0  ;;  %v1163_v9 = vpop.f32.mrb[66].mxu1 }
 0x197   :  { %v1270_v10 = vmax.f32 %v945_v4, 0.0  ;;  %v948_v11 = vadd.f32 %v2834_v60, %v947_v8  ;;  %v949_v12 = vpop.f32.mrb[67].mxu0  ;;  %v1324_v13 = vmax.f32 %v1161_v6, 0.0  ;;  %v1164_v14 = vadd.f32 %v2834_v60, %v1163_v9  ;;  %v1165_v15 = vpop.f32.mrb[67].mxu1 }
 0x199   :  { %v2134_v16 = vpack.c.bf16 %v1270_v10, %v1270_v10  ;;  %v1271_v17 = vmax.f32 %v948_v11, 0.0  ;;  %v2188_v18 = vpack.c.bf16 %v1324_v13, %v1324_v13  ;;  %v1325_v19 = vmax.f32 %v1164_v14, 0.0 }
 0x19b   :  { %1797 = vst.msk [vmem:[%s3369_s3 + $0x80] sm:$0xf] %vm1764_vm0, %v2134_v16  ;;  %v2135_v20 = vpack.c.bf16 %v1271_v17, %v1271_v17  ;;  %1851 = vst.msk [vmem:[%s3369_s3 + $0x158] sm:$0xf] %vm1764_vm0, %v2188_v18  ;;  %v2189_v21 = vpack.c.bf16 %v1325_v19, %v1325_v19 }
 0x19c   :  { %v952_v22 = vpop.f32.mrb[68].mxu0  ;;  %v1168_v23 = vpop.f32.mrb[68].mxu1 }
 0x19d   :  { %1798 = vst.msk [vmem:[%s3369_s3 + $0x84] sm:$0xf] %vm1764_vm0, %v2135_v20  ;;  %v953_v24 = vadd.f32 %v2834_v60, %v952_v22  ;;  %v954_v25 = vpop.f32.mrb[69].mxu0  ;;  %1852 = vst.msk [vmem:[%s3369_s3 + $0x15c] sm:$0xf] %vm1764_vm0, %v2189_v21  ;;  %v1169_v26 = vadd.f32 %v2834_v60, %v1168_v23  ;;  %v1170_v27 = vpop.f32.mrb[69].mxu1 }
 0x19e   :  { %v955_v28 = vpop.f32.mrb[70].mxu0  ;;  %v1171_v29 = vpop.f32.mrb[70].mxu1 }
 0x19f   :  { %v1272_v30 = vmax.f32 %v953_v24, 0.0  ;;  %v956_v31 = vadd.f32 %v2834_v60, %v955_v28  ;;  %v957_v32 = vpop.f32.mrb[71].mxu0  ;;  %v1326_v33 = vmax.f32 %v1169_v26, 0.0  ;;  %v1172_v34 = vadd.f32 %v2834_v60, %v1171_v29  ;;  %v1173_v35 = vpop.f32.mrb[71].mxu1 }
 0x1a1   :  { %v2136_v36 = vpack.c.bf16 %v1272_v30, %v1272_v30  ;;  %v1273_v37 = vmax.f32 %v956_v31, 0.0  ;;  %v2190_v38 = vpack.c.bf16 %v1326_v33, %v1326_v33  ;;  %v1327_v39 = vmax.f32 %v1172_v34, 0.0 }
 0x1a3   :  { %1799 = vst.msk [vmem:[%s3369_s3 + $0x88] sm:$0xf] %vm1764_vm0, %v2136_v36  ;;  %v2137_v40 = vpack.c.bf16 %v1273_v37, %v1273_v37  ;;  %1853 = vst.msk [vmem:[%s3369_s3 + $0x160] sm:$0xf] %vm1764_vm0, %v2190_v38  ;;  %v2191_v41 = vpack.c.bf16 %v1327_v39, %v1327_v39 }
 0x1a4   :  { %v960_v42 = vpop.f32.mrb[72].mxu0  ;;  %v1176_v43 = vpop.f32.mrb[72].mxu1 }
 0x1a5   :  { %1800 = vst.msk [vmem:[%s3369_s3 + $0x8c] sm:$0xf] %vm1764_vm0, %v2137_v40  ;;  %v961_v44 = vadd.f32 %v2834_v60, %v960_v42  ;;  %v962_v45 = vpop.f32.mrb[73].mxu0  ;;  %1854 = vst.msk [vmem:[%s3369_s3 + $0x164] sm:$0xf] %vm1764_vm0, %v2191_v41  ;;  %v1177_v46 = vadd.f32 %v2834_v60, %v1176_v43  ;;  %v1178_v47 = vpop.f32.mrb[73].mxu1 }
 0x1a6   :  { %v963_v48 = vpop.f32.mrb[74].mxu0  ;;  %v1179_v49 = vpop.f32.mrb[74].mxu1 }
 0x1a7   :  { %v1274_v50 = vmax.f32 %v961_v44, 0.0  ;;  %v964_v51 = vadd.f32 %v2834_v60, %v963_v48  ;;  %v965_v52 = vpop.f32.mrb[75].mxu0  ;;  %v1328_v53 = vmax.f32 %v1177_v46, 0.0  ;;  %v1180_v54 = vadd.f32 %v2834_v60, %v1179_v49  ;;  %v1181_v55 = vpop.f32.mrb[75].mxu1  ;;  %v3261_v48 = vld [vmem:[%s3368_s2] ss:$0 sm:$0xff] }
 0x1a9   :  { %v2138_v56 = vpack.c.bf16 %v1274_v50, %v1274_v50  ;;  %v1275_v57 = vmax.f32 %v964_v51, 0.0  ;;  %v2192_v58 = vpack.c.bf16 %v1328_v53, %v1328_v53  ;;  %v1329_v59 = vmax.f32 %v1180_v54, 0.0 }
 0x1ab   :  { %1801 = vst.msk [vmem:[%s3369_s3 + $0x90] sm:$0xf] %vm1764_vm0, %v2138_v56  ;;  %v2139_v61 = vpack.c.bf16 %v1275_v57, %v1275_v57  ;;  %1855 = vst.msk [vmem:[%s3369_s3 + $0x168] sm:$0xf] %vm1764_vm0, %v2192_v58  ;;  %v2193_v62 = vpack.c.bf16 %v1329_v59, %v1329_v59 }
 0x1ac   :  { %v968_v63 = vpop.f32.mrb[76].mxu0  ;;  %v1184_v0 = vpop.f32.mrb[76].mxu1 }
 0x1ad   :  { %1802 = vst.msk [vmem:[%s3369_s3 + $0x94] sm:$0xf] %vm1764_vm0, %v2139_v61  ;;  %v969_v1 = vadd.f32 %v2834_v60, %v968_v63  ;;  %v970_v2 = vpop.f32.mrb[77].mxu0  ;;  %1856 = vst.msk [vmem:[%s3369_s3 + $0x16c] sm:$0xf] %vm1764_vm0, %v2193_v62  ;;  %v1185_v3 = vadd.f32 %v2834_v60, %v1184_v0  ;;  %v1186_v4 = vpop.f32.mrb[77].mxu1 }
 0x1ae   :  { %v971_v5 = vpop.f32.mrb[78].mxu0  ;;  %v1187_v6 = vpop.f32.mrb[78].mxu1 }
 0x1af   :  { %v1276_v7 = vmax.f32 %v969_v1, 0.0  ;;  %v972_v8 = vadd.f32 %v2834_v60, %v971_v5  ;;  %v973_v9 = vpop.f32.mrb[79].mxu0  ;;  %v1330_v10 = vmax.f32 %v1185_v3, 0.0  ;;  %v1188_v11 = vadd.f32 %v2834_v60, %v1187_v6  ;;  %v1189_v12 = vpop.f32.mrb[79].mxu1 }
 0x1b1   :  { %v2140_v13 = vpack.c.bf16 %v1276_v7, %v1276_v7  ;;  %v1277_v14 = vmax.f32 %v972_v8, 0.0  ;;  %v2194_v15 = vpack.c.bf16 %v1330_v10, %v1330_v10  ;;  %v1331_v16 = vmax.f32 %v1188_v11, 0.0 }
 0x1b3   :  { %1803 = vst.msk [vmem:[%s3369_s3 + $0x98] sm:$0xf] %vm1764_vm0, %v2140_v13  ;;  %v2141_v17 = vpack.c.bf16 %v1277_v14, %v1277_v14  ;;  %1857 = vst.msk [vmem:[%s3369_s3 + $0x170] sm:$0xf] %vm1764_vm0, %v2194_v15  ;;  %v2195_v18 = vpack.c.bf16 %v1331_v16, %v1331_v16 }
 0x1b4   :  { %v976_v19 = vpop.f32.mrb[80].mxu0  ;;  %v1192_v20 = vpop.f32.mrb[80].mxu1 }
 0x1b5   :  { %1804 = vst.msk [vmem:[%s3369_s3 + $0x9c] sm:$0xf] %vm1764_vm0, %v2141_v17  ;;  %v977_v21 = vadd.f32 %v2834_v60, %v976_v19  ;;  %v978_v22 = vpop.f32.mrb[81].mxu0  ;;  %1858 = vst.msk [vmem:[%s3369_s3 + $0x174] sm:$0xf] %vm1764_vm0, %v2195_v18  ;;  %v1193_v23 = vadd.f32 %v2834_v60, %v1192_v20  ;;  %v1194_v24 = vpop.f32.mrb[81].mxu1 }
 0x1b6   :  { %v979_v25 = vpop.f32.mrb[82].mxu0  ;;  %v1195_v26 = vpop.f32.mrb[82].mxu1 }
 0x1b7   :  { %v1278_v27 = vmax.f32 %v977_v21, 0.0  ;;  %v980_v28 = vadd.f32 %v2834_v60, %v979_v25  ;;  %v981_v29 = vpop.f32.mrb[83].mxu0  ;;  %v1332_v30 = vmax.f32 %v1193_v23, 0.0  ;;  %v1196_v31 = vadd.f32 %v2834_v60, %v1195_v26  ;;  %v1197_v32 = vpop.f32.mrb[83].mxu1 }
 0x1b9   :  { %v2142_v33 = vpack.c.bf16 %v1278_v27, %v1278_v27  ;;  %v1279_v34 = vmax.f32 %v980_v28, 0.0  ;;  %v2196_v35 = vpack.c.bf16 %v1332_v30, %v1332_v30  ;;  %v1333_v36 = vmax.f32 %v1196_v31, 0.0 }
 0x1bb   :  { %1805 = vst.msk [vmem:[%s3369_s3 + $0xa0] sm:$0xf] %vm1764_vm0, %v2142_v33  ;;  %v2143_v37 = vpack.c.bf16 %v1279_v34, %v1279_v34  ;;  %1859 = vst.msk [vmem:[%s3369_s3 + $0x178] sm:$0xf] %vm1764_vm0, %v2196_v35  ;;  %v2197_v38 = vpack.c.bf16 %v1333_v36, %v1333_v36 }
 0x1bc   :  { %v984_v39 = vpop.f32.mrb[84].mxu0  ;;  %v1200_v40 = vpop.f32.mrb[84].mxu1 }
 0x1bd   :  { %1806 = vst.msk [vmem:[%s3369_s3 + $0xa4] sm:$0xf] %vm1764_vm0, %v2143_v37  ;;  %v985_v41 = vadd.f32 %v2834_v60, %v984_v39  ;;  %v986_v42 = vpop.f32.mrb[85].mxu0  ;;  %1860 = vst.msk [vmem:[%s3369_s3 + $0x17c] sm:$0xf] %vm1764_vm0, %v2197_v38  ;;  %v1201_v43 = vadd.f32 %v2834_v60, %v1200_v40  ;;  %v1202_v44 = vpop.f32.mrb[85].mxu1 }
 0x1be   :  { %v987_v45 = vpop.f32.mrb[86].mxu0  ;;  %v1203_v46 = vpop.f32.mrb[86].mxu1 }
 0x1bf   :  { %v1280_v47 = vmax.f32 %v985_v41, 0.0  ;;  %v988_v49 = vadd.f32 %v3261_v48, %v987_v45  ;;  %v989_v50 = vpop.f32.mrb[87].mxu0  ;;  %v1334_v51 = vmax.f32 %v1201_v43, 0.0  ;;  %v1204_v52 = vadd.f32 %v3261_v48, %v1203_v46  ;;  %v1205_v53 = vpop.f32.mrb[87].mxu1 }
 0x1c1   :  { %v2144_v54 = vpack.c.bf16 %v1280_v47, %v1280_v47  ;;  %v1281_v55 = vmax.f32 %v988_v49, 0.0  ;;  %v2198_v56 = vpack.c.bf16 %v1334_v51, %v1334_v51  ;;  %v1335_v60 = vmax.f32 %v1204_v52, 0.0 }
 0x1c3   :  { %1807 = vst.msk [vmem:[%s3369_s3 + $0xa8] sm:$0xf] %vm1764_vm0, %v2144_v54  ;;  %v2145_v57 = vpack.c.bf16 %v1281_v55, %v1281_v55  ;;  %1861 = vst.msk [vmem:[%s3369_s3 + $0x180] sm:$0xf] %vm1764_vm0, %v2198_v56  ;;  %v2199_v58 = vpack.c.bf16 %v1335_v60, %v1335_v60 }
 0x1c4   :  { %v992_v59 = vpop.f32.mrb[88].mxu0  ;;  %v1208_v61 = vpop.f32.mrb[88].mxu1 }
 0x1c5   :  { %1808 = vst.msk [vmem:[%s3369_s3 + $0xac] sm:$0xf] %vm1764_vm0, %v2145_v57  ;;  %v993_v62 = vadd.f32 %v3261_v48, %v992_v59  ;;  %v994_v63 = vpop.f32.mrb[89].mxu0  ;;  %1862 = vst.msk [vmem:[%s3369_s3 + $0x184] sm:$0xf] %vm1764_vm0, %v2199_v58  ;;  %v1209_v0 = vadd.f32 %v3261_v48, %v1208_v61  ;;  %v1210_v1 = vpop.f32.mrb[89].mxu1 }
 0x1c6   :  { %v995_v2 = vpop.f32.mrb[90].mxu0  ;;  %v1211_v3 = vpop.f32.mrb[90].mxu1 }
 0x1c7   :  { %v1282_v4 = vmax.f32 %v993_v62, 0.0  ;;  %v996_v5 = vadd.f32 %v3261_v48, %v995_v2  ;;  %v997_v6 = vpop.f32.mrb[91].mxu0  ;;  %v1336_v7 = vmax.f32 %v1209_v0, 0.0  ;;  %v1212_v8 = vadd.f32 %v3261_v48, %v1211_v3  ;;  %v1213_v9 = vpop.f32.mrb[91].mxu1 }
 0x1c9   :  { %v2146_v10 = vpack.c.bf16 %v1282_v4, %v1282_v4  ;;  %v1283_v11 = vmax.f32 %v996_v5, 0.0  ;;  %v2200_v12 = vpack.c.bf16 %v1336_v7, %v1336_v7  ;;  %v1337_v13 = vmax.f32 %v1212_v8, 0.0 }
 0x1cb   :  { %1809 = vst.msk [vmem:[%s3369_s3 + $0xb0] sm:$0xf] %vm1764_vm0, %v2146_v10  ;;  %v2147_v14 = vpack.c.bf16 %v1283_v11, %v1283_v11  ;;  %1863 = vst.msk [vmem:[%s3369_s3 + $0x188] sm:$0xf] %vm1764_vm0, %v2200_v12  ;;  %v2201_v15 = vpack.c.bf16 %v1337_v13, %v1337_v13 }
 0x1cc   :  { %v1000_v16 = vpop.f32.mrb[92].mxu0  ;;  %v1216_v17 = vpop.f32.mrb[92].mxu1 }
 0x1cd   :  { %1810 = vst.msk [vmem:[%s3369_s3 + $0xb4] sm:$0xf] %vm1764_vm0, %v2147_v14  ;;  %v1001_v18 = vadd.f32 %v3261_v48, %v1000_v16  ;;  %v1002_v19 = vpop.f32.mrb[93].mxu0  ;;  %1864 = vst.msk [vmem:[%s3369_s3 + $0x18c] sm:$0xf] %vm1764_vm0, %v2201_v15  ;;  %v1217_v20 = vadd.f32 %v3261_v48, %v1216_v17  ;;  %v1218_v21 = vpop.f32.mrb[93].mxu1 }
 0x1ce   :  { %v1003_v22 = vpop.f32.mrb[94].mxu0  ;;  %v1219_v23 = vpop.f32.mrb[94].mxu1 }
 0x1cf   :  { %v1284_v24 = vmax.f32 %v1001_v18, 0.0  ;;  %v1004_v25 = vadd.f32 %v3261_v48, %v1003_v22  ;;  %v1005_v26 = vpop.f32.mrb[95].mxu0  ;;  %v1338_v27 = vmax.f32 %v1217_v20, 0.0  ;;  %v1220_v28 = vadd.f32 %v3261_v48, %v1219_v23  ;;  %v1221_v29 = vpop.f32.mrb[95].mxu1 }
 0x1d1   :  { %v2148_v30 = vpack.c.bf16 %v1284_v24, %v1284_v24  ;;  %v1285_v31 = vmax.f32 %v1004_v25, 0.0  ;;  %v2202_v32 = vpack.c.bf16 %v1338_v27, %v1338_v27  ;;  %v1339_v33 = vmax.f32 %v1220_v28, 0.0 }
 0x1d3   :  { %1811 = vst.msk [vmem:[%s3369_s3 + $0xb8] sm:$0xf] %vm1764_vm0, %v2148_v30  ;;  %v2149_v34 = vpack.c.bf16 %v1285_v31, %v1285_v31  ;;  %1865 = vst.msk [vmem:[%s3369_s3 + $0x190] sm:$0xf] %vm1764_vm0, %v2202_v32  ;;  %v2203_v35 = vpack.c.bf16 %v1339_v33, %v1339_v33 }
 0x1d4   :  { %v1008_v36 = vpop.f32.mrb[96].mxu0  ;;  %v1224_v37 = vpop.f32.mrb[96].mxu1 }
 0x1d5   :  { %1812 = vst.msk [vmem:[%s3369_s3 + $0xbc] sm:$0xf] %vm1764_vm0, %v2149_v34  ;;  %v1009_v38 = vadd.f32 %v3261_v48, %v1008_v36  ;;  %v1010_v39 = vpop.f32.mrb[97].mxu0  ;;  %1866 = vst.msk [vmem:[%s3369_s3 + $0x194] sm:$0xf] %vm1764_vm0, %v2203_v35  ;;  %v1225_v40 = vadd.f32 %v3261_v48, %v1224_v37  ;;  %v1226_v41 = vpop.f32.mrb[97].mxu1 }
 0x1d6   :  { %v1011_v42 = vpop.f32.mrb[98].mxu0  ;;  %v1227_v43 = vpop.f32.mrb[98].mxu1 }
 0x1d7   :  { %v1286_v44 = vmax.f32 %v1009_v38, 0.0  ;;  %v1012_v45 = vadd.f32 %v3261_v48, %v1011_v42  ;;  %v1013_v46 = vpop.f32.mrb[99].mxu0  ;;  %v1340_v47 = vmax.f32 %v1225_v40, 0.0  ;;  %v1228_v49 = vadd.f32 %v3261_v48, %v1227_v43  ;;  %v1229_v50 = vpop.f32.mrb[99].mxu1 }
 0x1d9   :  { %v2150_v51 = vpack.c.bf16 %v1286_v44, %v1286_v44  ;;  %v1287_v52 = vmax.f32 %v1012_v45, 0.0  ;;  %v2204_v53 = vpack.c.bf16 %v1340_v47, %v1340_v47  ;;  %v1341_v54 = vmax.f32 %v1228_v49, 0.0 }
 0x1db   :  { %1813 = vst.msk [vmem:[%s3369_s3 + $0xc0] sm:$0xf] %vm1764_vm0, %v2150_v51  ;;  %v2151_v55 = vpack.c.bf16 %v1287_v52, %v1287_v52  ;;  %1867 = vst.msk [vmem:[%s3369_s3 + $0x198] sm:$0xf] %vm1764_vm0, %v2204_v53  ;;  %v2205_v56 = vpack.c.bf16 %v1341_v54, %v1341_v54 }
 0x1dc   :  { %v1016_v60 = vpop.f32.mrb[100].mxu0  ;;  %v1232_v57 = vpop.f32.mrb[100].mxu1 }
 0x1dd   :  { %1814 = vst.msk [vmem:[%s3369_s3 + $0xc4] sm:$0xf] %vm1764_vm0, %v2151_v55  ;;  %v1017_v58 = vadd.f32 %v3261_v48, %v1016_v60  ;;  %v1018_v59 = vpop.f32.mrb[101].mxu0  ;;  %1868 = vst.msk [vmem:[%s3369_s3 + $0x19c] sm:$0xf] %vm1764_vm0, %v2205_v56  ;;  %v1233_v61 = vadd.f32 %v3261_v48, %v1232_v57  ;;  %v1234_v62 = vpop.f32.mrb[101].mxu1 }
 0x1de   :  { %v1019_v63 = vpop.f32.mrb[102].mxu0  ;;  %v1235_v0 = vpop.f32.mrb[102].mxu1 }
 0x1df   :  { %v1288_v1 = vmax.f32 %v1017_v58, 0.0  ;;  %v1020_v2 = vadd.f32 %v3261_v48, %v1019_v63  ;;  %v1021_v3 = vpop.f32.mrb[103].mxu0  ;;  %v1342_v4 = vmax.f32 %v1233_v61, 0.0  ;;  %v1236_v5 = vpop.f32.mrb[103].mxu1 }
 0x1e1   :  { %v2152_v6 = vpack.c.bf16 %v1288_v1, %v1288_v1  ;;  %v1289_v7 = vmax.f32 %v1020_v2, 0.0  ;;  %v2206_v8 = vpack.c.bf16 %v1342_v4, %v1342_v4 }
 0x1e3   :  { %1815 = vst.msk [vmem:[%s3369_s3 + $0xc8] sm:$0xf] %vm1764_vm0, %v2152_v6  ;;  %v2153_v9 = vpack.c.bf16 %v1289_v7, %v1289_v7  ;;  %1869 = vst.msk [vmem:[%s3369_s3 + $0x1a0] sm:$0xf] %vm1764_vm0, %v2206_v8 }
 0x1e4   :  { %v1024_v10 = vpop.f32.mrb[104].mxu0 }
 0x1e5   :  { %1816 = vst.msk [vmem:[%s3369_s3 + $0xcc] sm:$0xf] %vm1764_vm0, %v2153_v9  ;;  %v1025_v11 = vadd.f32 %v3261_v48, %v1024_v10  ;;  %v1026_v12 = vpop.f32.mrb[105].mxu0 }
 0x1e6   :  { %v1027_v13 = vpop.f32.mrb[106].mxu0 }
 0x1e7   :  { %v1290_v14 = vmax.f32 %v1025_v11, 0.0  ;;  %v1028_v15 = vadd.f32 %v3261_v48, %v1027_v13  ;;  %v1029_v16 = vpop.f32.mrb[107].mxu0 }
 0x1e9   :  { %v2154_v17 = vpack.c.bf16 %v1290_v14, %v1290_v14  ;;  %v1291_v18 = vmax.f32 %v1028_v15, 0.0 }
 0x1eb   :  { %1817 = vst.msk [vmem:[%s3369_s3 + $0xd0] sm:$0xf] %vm1764_vm0, %v2154_v17  ;;  %v2155_v19 = vpack.c.bf16 %v1291_v18, %v1291_v18 }
 0x1ed   :  { %1818 = vst.msk [vmem:[%s3369_s3 + $0xd4] sm:$0xf] %vm1764_vm0, %v2155_v19 }

// kernel: dueling_cnn_forward.5
= control target key start
LH: loop header
LB: loop body
LE: loop exit
PB: predicated region body
PF: predicated region fallthrough
CT: control target
= control target key end

     0   :  { %vm880_vm0 = vcmask 519168   ;;  %vm901_vm1 = vcmask 516096   ;;  %s1637_s1 = inlined_call_operand.vmem [shape: bf16[512,64], index: 1, kind: input, shape index: {}]   ;;  %s1638_s0 = inlined_call_operand.vmem [shape: bf16[162,512], index: 0, kind: input, shape index: {}]   ;;  %s1639_s2 = inlined_call_operand.vmem [shape: f32[1,64], index: 2, kind: input, shape index: {}]   ;;  %s1640_s3 = inlined_call_operand.vmem [shape: bf16[162,64], index: 3, kind: output, shape index: {}]  }
   0x1   :  { %v1190_v0 = vld [vmem:[%s1637_s1 + $0x40] sm:$0xff]   ;;  %v1194_v4 = vld [vmem:[%s1637_s1 + $0x48] sm:$0xff]   ;;  %v1198_v8 = vld [vmem:[%s1637_s1 + $0x50] sm:$0xff]  }
   0x2   :  { %v1191_v1 = vld [vmem:[%s1637_s1 + $0xc0] sm:$0xff]   ;;  %1026 = vmatprep.subr.bf16.mxu0 %v1190_v0  ;;  %v1195_v5 = vld [vmem:[%s1637_s1 + $0xc8] sm:$0xff]   ;;  %v1199_v9 = vld [vmem:[%s1637_s1 + $0xd0] sm:$0xff]  }
   0x3   :  { %v1192_v2 = vld [vmem:[%s1637_s1] sm:$0xff]   ;;  %1108 = vmatprep.subr.bf16.mxu1 %v1191_v1  ;;  %v1196_v6 = vld [vmem:[%s1637_s1 + $0x8] sm:$0xff]   ;;  %v1200_v10 = vld [vmem:[%s1637_s1 + $0x10] sm:$0xff]  }
   0x4   :  { %v1193_v3 = vld [vmem:[%s1637_s1 + $0x80] sm:$0xff]   ;;  %1027 = vmatpush3.bf16.msra.mxu0 %v1192_v2  ;;  %v1197_v7 = vld [vmem:[%s1637_s1 + $0x88] sm:$0xff]   ;;  %v1201_v11 = vld [vmem:[%s1637_s1 + $0x90] sm:$0xff]  }
   0x5   :  { %1109 = vmatpush3.bf16.msra.mxu1 %v1193_v3  ;;  %1028 = vmatprep.subr.bf16.mxu0 %v1194_v4  ;;  %v1202_v12 = vld [vmem:[%s1637_s1 + $0x58] sm:$0xff]   ;;  %v1206_v16 = vld [vmem:[%s1637_s1 + $0x60] sm:$0xff]   ;;  %v1210_v20 = vld [vmem:[%s1637_s1 + $0x68] sm:$0xff]  }
   0x6   :  { %1110 = vmatprep.subr.bf16.mxu1 %v1195_v5  ;;  %v1203_v13 = vld [vmem:[%s1637_s1 + $0xd8] sm:$0xff]   ;;  %v1207_v17 = vld [vmem:[%s1637_s1 + $0xe0] sm:$0xff]   ;;  %v1211_v21 = vld [vmem:[%s1637_s1 + $0xe8] sm:$0xff]  }
   0x7   :  { %v1204_v14 = vld [vmem:[%s1637_s1 + $0x18] sm:$0xff]   ;;  %v1208_v18 = vld [vmem:[%s1637_s1 + $0x20] sm:$0xff]   ;;  %v1212_v22 = vld [vmem:[%s1637_s1 + $0x28] sm:$0xff]  }
   0x8   :  { %1029 = vmatpush3.bf16.msra.mxu0 %v1196_v6  ;;  %v1205_v15 = vld [vmem:[%s1637_s1 + $0x98] sm:$0xff]   ;;  %v1209_v19 = vld [vmem:[%s1637_s1 + $0xa0] sm:$0xff]   ;;  %v1213_v23 = vld [vmem:[%s1637_s1 + $0xa8] sm:$0xff]  }
   0x9   :  { %1111 = vmatpush3.bf16.msra.mxu1 %v1197_v7  ;;  %1030 = vmatprep.subr.bf16.mxu0 %v1198_v8  ;;  %v1214_v24 = vld [vmem:[%s1637_s1 + $0x70] sm:$0xff]   ;;  %v1218_v28 = vld [vmem:[%s1637_s1 + $0x78] sm:$0xff]   ;;  %v55_v6 = vld [vmem:[%s1638_s0 + $0x140] sm:$0x11] }
   0xa   :  { %1112 = vmatprep.subr.bf16.mxu1 %v1199_v9  ;;  %v1215_v25 = vld [vmem:[%s1637_s1 + $0xf0] sm:$0xff]   ;;  %v1219_v29 = vld [vmem:[%s1637_s1 + $0xf8] sm:$0xff]   ;;  %v56_v7 = vld [vmem:[%s1638_s0 + $0x148] sm:$0x11] }
   0xb   :  { %v1216_v26 = vld [vmem:[%s1637_s1 + $0x30] sm:$0xff]   ;;  %v1220_v30 = vld [vmem:[%s1637_s1 + $0x38] sm:$0xff]  }
   0xc   :  { %1031 = vmatpush3.bf16.msra.mxu0 %v1200_v10  ;;  %v1217_v27 = vld [vmem:[%s1637_s1 + $0xb0] sm:$0xff]   ;;  %v1221_v31 = vld [vmem:[%s1637_s1 + $0xb8] sm:$0xff]   ;;  %v949_v10 = vcombine.high %v55_v6, %v55_v6 }
   0xd   :  { %1113 = vmatpush3.bf16.msra.mxu1 %v1201_v11  ;;  %1032 = vmatprep.subr.bf16.mxu0 %v1202_v12  ;;  %v1222_v32 = vld [vmem:[%s1638_s0] ss:$16 sps:$4 sm:$0xff]   ;;  %v1224_v33 = vld [vmem:[%s1638_s0 + $0x4] ss:$16 sps:$4 sm:$0xff]   ;;  %v1225_v34 = vld [vmem:[%s1638_s0 + $0x8] ss:$16 sps:$4 sm:$0xff]   ;;  %v951_v11 = vcombine.high %v56_v7, %v56_v7  ;;  %v948_v12 = vcombine.low %v55_v6, %v55_v6 }
   0xe   :  { %1114 = vmatprep.subr.bf16.mxu1 %v1203_v13  ;;  %v1227_v35 = vld [vmem:[%s1638_s0 + $0xc] ss:$16 sps:$4 sm:$0xff]   ;;  %566 = vmatprep.mubr.bf16.mxu0 %v1224_v33  ;;  %v1228_v36 = vld [vmem:[%s1638_s0 + $0x24] ss:$16 sps:$4 sm:$0xff]   ;;  %v1232_v38 = vld [vmem:[%s1638_s0 + $0x20] ss:$16 sps:$4 sm:$0xff]   ;;  %v950_v13 = vcombine.low %v56_v7, %v56_v7 }
   0xf   :  { %686 = vmatprep.mubr.bf16.mxu1 %v1227_v35  ;;  %v1230_v37 = vld [vmem:[%s1638_s0 + $0x2c] ss:$16 sps:$4 sm:$0xff]   ;;  %v1233_v39 = vld [vmem:[%s1638_s0 + $0x28] ss:$16 sps:$4 sm:$0xff]   ;;  %v1234_v40 = vld [vmem:[%s1638_s0 + $0x44] ss:$16 sps:$4 sm:$0xff]  }
  0x10   :  { %1033 = vmatpush3.bf16.msra.mxu0 %v1204_v14  ;;  %v1236_v41 = vld [vmem:[%s1638_s0 + $0x4c] ss:$16 sps:$4 sm:$0xff]   ;;  %v1238_v42 = vld [vmem:[%s1638_s0 + $0x40] ss:$16 sps:$4 sm:$0xff]   ;;  %v1239_v43 = vld [vmem:[%s1638_s0 + $0x48] ss:$16 sps:$4 sm:$0xff]  }
  0x11   :  { %1115 = vmatpush3.bf16.msra.mxu1 %v1205_v15  ;;  %1034 = vmatprep.subr.bf16.mxu0 %v1206_v16  ;;  %v1240_v44 = vld [vmem:[%s1638_s0 + $0x64] ss:$16 sps:$4 sm:$0xff]   ;;  %v1242_v45 = vld [vmem:[%s1638_s0 + $0x6c] ss:$16 sps:$4 sm:$0xff]   ;;  %v1244_v46 = vld [vmem:[%s1638_s0 + $0x60] ss:$16 sps:$4 sm:$0xff]  }
  0x12   :  { %1116 = vmatprep.subr.bf16.mxu1 %v1207_v17  ;;  %v1245_v47 = vld [vmem:[%s1638_s0 + $0x68] ss:$16 sps:$4 sm:$0xff]   ;;  %v1246_v48 = vld [vmem:[%s1638_s0 + $0x84] ss:$16 sps:$4 sm:$0xff]   ;;  %v1248_v49 = vld [vmem:[%s1638_s0 + $0x8c] ss:$16 sps:$4 sm:$0xff]  }
  0x13   :  { %v1250_v50 = vld [vmem:[%s1638_s0 + $0x80] ss:$16 sps:$4 sm:$0xff]   ;;  %v1251_v51 = vld [vmem:[%s1638_s0 + $0x88] ss:$16 sps:$4 sm:$0xff]   ;;  %v1252_v52 = vld [vmem:[%s1638_s0 + $0xa4] ss:$16 sps:$4 sm:$0xff]  }
  0x14   :  { %1035 = vmatpush3.bf16.msra.mxu0 %v1208_v18  ;;  %v1254_v53 = vld [vmem:[%s1638_s0 + $0xac] ss:$16 sps:$4 sm:$0xff]   ;;  %v1256_v54 = vld [vmem:[%s1638_s0 + $0xa0] ss:$16 sps:$4 sm:$0xff]   ;;  %v1257_v55 = vld [vmem:[%s1638_s0 + $0xa8] ss:$16 sps:$4 sm:$0xff]  }
  0x15   :  { %1117 = vmatpush3.bf16.msra.mxu1 %v1209_v19  ;;  %1036 = vmatprep.subr.bf16.mxu0 %v1210_v20  ;;  %v1258_v56 = vld [vmem:[%s1638_s0 + $0xc4] ss:$16 sps:$4 sm:$0xff]   ;;  %v1260_v57 = vld [vmem:[%s1638_s0 + $0xcc] ss:$16 sps:$4 sm:$0xff]   ;;  %v1262_v58 = vld [vmem:[%s1638_s0 + $0xc0] ss:$16 sps:$4 sm:$0xff]  }
  0x16   :  { %1118 = vmatprep.subr.bf16.mxu1 %v1211_v21  ;;  %v1263_v59 = vld [vmem:[%s1638_s0 + $0xc8] ss:$16 sps:$4 sm:$0xff]   ;;  %v1264_v60 = vld [vmem:[%s1638_s0 + $0xe4] ss:$16 sps:$4 sm:$0xff]   ;;  %v1266_v61 = vld [vmem:[%s1638_s0 + $0xec] ss:$16 sps:$4 sm:$0xff]  }
  0x17   :  { %v1268_v62 = vld [vmem:[%s1638_s0 + $0xe0] ss:$16 sps:$4 sm:$0xff]   ;;  %v1269_v63 = vld [vmem:[%s1638_s0 + $0xe8] ss:$16 sps:$4 sm:$0xff]   ;;  %v1270_v0 = vld [vmem:[%s1638_s0 + $0x104] ss:$16 sps:$4 sm:$0xff]  }
  0x18   :  { %1037 = vmatpush3.bf16.msra.mxu0 %v1212_v22  ;;  %v1272_v1 = vld [vmem:[%s1638_s0 + $0x10c] ss:$16 sps:$4 sm:$0xff]   ;;  %v1274_v2 = vld [vmem:[%s1638_s0 + $0x100] ss:$16 sps:$4 sm:$0xff]   ;;  %v1275_v3 = vld [vmem:[%s1638_s0 + $0x108] ss:$16 sps:$4 sm:$0xff]  }
  0x19   :  { %1119 = vmatpush3.bf16.msra.mxu1 %v1213_v23  ;;  %1038 = vmatprep.subr.bf16.mxu0 %v1214_v24  ;;  %v1276_v4 = vld [vmem:[%s1638_s0 + $0x124] ss:$16 sps:$4 sm:$0xff]   ;;  %v1278_v5 = vld [vmem:[%s1638_s0 + $0x12c] ss:$16 sps:$4 sm:$0xff]   ;;  %v1280_v8 = vld [vmem:[%s1638_s0 + $0x120] ss:$16 sps:$4 sm:$0xff]  }
  0x1a   :  { %1120 = vmatprep.subr.bf16.mxu1 %v1215_v25  ;;  %v1281_v9 = vld [vmem:[%s1638_s0 + $0x128] ss:$16 sps:$4 sm:$0xff]   ;;  %v1531_v16 = vld [vmem:[%s1639_s2] ss:$0 sm:$0xff] }
  0x1c   :  { %1039 = vmatpush3.bf16.msra.mxu0 %v1216_v26 }
  0x1d   :  { %1121 = vmatpush3.bf16.msra.mxu1 %v1217_v27  ;;  %1040 = vmatprep.subr.bf16.mxu0 %v1218_v28 }
  0x1e   :  { %1122 = vmatprep.subr.bf16.mxu1 %v1219_v29 }
  0x20   :  { %1041 = vmatpush3.bf16.msra.mxu0 %v1220_v30 }
  0x21   :  { %1123 = vmatpush3.bf16.msra.mxu1 %v1221_v31 }
  0x23   :  { %567 = vmatmul.mubr.bf16.vlgmr.msra.gmra.mrb[0].mxu0 %v1222_v32 }
  0x24   :  { %687 = vmatmul.mubr.bf16.vlgmr.msra.gmra.mrb[0].mxu1 %v1225_v34  ;;  %574 = vmatprep.mubr.bf16.mxu0 %v1228_v36 }
  0x25   :  { %694 = vmatprep.mubr.bf16.mxu1 %v1230_v37 }
  0x2b   :  { %575 = vmatmul.mubr.bf16.gmra.mrb[4].mxu0 %v1232_v38 }
  0x2c   :  { %695 = vmatmul.mubr.bf16.gmra.mrb[4].mxu1 %v1233_v39  ;;  %582 = vmatprep.mubr.bf16.mxu0 %v1234_v40 }
  0x2d   :  { %702 = vmatprep.mubr.bf16.mxu1 %v1236_v41 }
  0x33   :  { %583 = vmatmul.mubr.bf16.gmra.mrb[8].mxu0 %v1238_v42 }
  0x34   :  { %703 = vmatmul.mubr.bf16.gmra.mrb[8].mxu1 %v1239_v43  ;;  %590 = vmatprep.mubr.bf16.mxu0 %v1240_v44 }
  0x35   :  { %710 = vmatprep.mubr.bf16.mxu1 %v1242_v45 }
  0x3b   :  { %591 = vmatmul.mubr.bf16.gmra.mrb[12].mxu0 %v1244_v46 }
  0x3c   :  { %711 = vmatmul.mubr.bf16.gmra.mrb[12].mxu1 %v1245_v47  ;;  %598 = vmatprep.mubr.bf16.mxu0 %v1246_v48 }
  0x3d   :  { %718 = vmatprep.mubr.bf16.mxu1 %v1248_v49 }
  0x43   :  { %599 = vmatmul.mubr.bf16.gmra.mrb[16].mxu0 %v1250_v50 }
  0x44   :  { %719 = vmatmul.mubr.bf16.gmra.mrb[16].mxu1 %v1251_v51  ;;  %606 = vmatprep.mubr.bf16.mxu0 %v1252_v52 }
  0x45   :  { %726 = vmatprep.mubr.bf16.mxu1 %v1254_v53 }
  0x4b   :  { %607 = vmatmul.mubr.bf16.gmra.mrb[20].mxu0 %v1256_v54 }
  0x4c   :  { %727 = vmatmul.mubr.bf16.gmra.mrb[20].mxu1 %v1257_v55  ;;  %614 = vmatprep.mubr.bf16.mxu0 %v1258_v56 }
  0x4d   :  { %734 = vmatprep.mubr.bf16.mxu1 %v1260_v57 }
  0x53   :  { %615 = vmatmul.mubr.bf16.gmra.mrb[24].mxu0 %v1262_v58 }
  0x54   :  { %735 = vmatmul.mubr.bf16.gmra.mrb[24].mxu1 %v1263_v59  ;;  %622 = vmatprep.mubr.bf16.mxu0 %v1264_v60 }
  0x55   :  { %742 = vmatprep.mubr.bf16.mxu1 %v1266_v61 }
  0x5b   :  { %623 = vmatmul.mubr.bf16.gmra.mrb[28].mxu0 %v1268_v62 }
  0x5c   :  { %743 = vmatmul.mubr.bf16.gmra.mrb[28].mxu1 %v1269_v63  ;;  %630 = vmatprep.mubr.bf16.mxu0 %v1270_v0 }
  0x5d   :  { %750 = vmatprep.mubr.bf16.mxu1 %v1272_v1 }
  0x63   :  { %631 = vmatmul.mubr.bf16.gmra.mrb[32].mxu0 %v1274_v2 }
  0x64   :  { %751 = vmatmul.mubr.bf16.gmra.mrb[32].mxu1 %v1275_v3  ;;  %638 = vmatprep.mubr.bf16.mxu0 %v1276_v4 }
  0x65   :  { %758 = vmatprep.mubr.bf16.mxu1 %v1278_v5 }
  0x6b   :  { %639 = vmatmul.mubr.bf16.gmra.mrb[36].mxu0 %v1280_v8 }
  0x6c   :  { %759 = vmatmul.mubr.bf16.gmra.mrb[36].mxu1 %v1281_v9  ;;  %646 = vmatprep.mubr.bf16.mxu0 %v949_v10 }
  0x6d   :  { %766 = vmatprep.mubr.bf16.mxu1 %v951_v11 }
  0x73   :  { %647 = vmatmul.mubr.bf16.gmra.mrb[40].mxu0 %v948_v12 }
  0x74   :  { %767 = vmatmul.mubr.bf16.gmra.mrb[40].mxu1 %v950_v13 }
  0xf6   :  { %v1042_v14 = vpop.f32.mrb[0].mxu0 }
  0xf7   :  { %v1124_v15 = vpop.f32.mrb[0].mxu1  ;;  %v1043_v17 = vpop.f32.mrb[1].mxu0 }
  0xf8   :  { %v1044_v18 = vadd.f32 %v1043_v17, %v1042_v14  ;;  %v1125_v19 = vpop.f32.mrb[1].mxu1  ;;  %v1045_v20 = vpop.f32.mrb[2].mxu0 }
  0xf9   :  { %v1126_v21 = vadd.f32 %v1125_v19, %v1124_v15  ;;  %v1127_v22 = vpop.f32.mrb[2].mxu1  ;;  %v1046_v23 = vpop.f32.mrb[3].mxu0 }
  0xfa   :  { %v569_v24 = vadd.f32 %v1044_v18, %v1531_v16  ;;  %v1047_v25 = vadd.f32 %v1046_v23, %v1045_v20  ;;  %v1128_v26 = vpop.f32.mrb[3].mxu1 }
  0xfb   :  { %v1129_v27 = vadd.f32 %v1128_v26, %v1127_v22 }
  0xfc   :  { %v689_v28 = vadd.f32 %v1126_v21, %v569_v24  ;;  %v572_v29 = vadd.f32 %v1047_v25, %v1531_v16 }
  0xfe   :  { %v774_v30 = vmax.f32 %v689_v28, 0.0  ;;  %v692_v31 = vadd.f32 %v1129_v27, %v572_v29  ;;  %v1048_v32 = vpop.f32.mrb[4].mxu0 }
  0xff   :  { %v1130_v33 = vpop.f32.mrb[4].mxu1  ;;  %v1049_v34 = vpop.f32.mrb[5].mxu0 }
 0x100   :  { %v1005_v35 = vpack.c.bf16 %v774_v30, %v774_v30  ;;  %v775_v36 = vmax.f32 %v692_v31, 0.0  ;;  %v1050_v37 = vadd.f32 %v1049_v34, %v1048_v32  ;;  %v1131_v38 = vpop.f32.mrb[5].mxu1  ;;  %v1051_v39 = vpop.f32.mrb[6].mxu0 }
 0x101   :  { %v1132_v40 = vadd.f32 %v1131_v38, %v1130_v33  ;;  %v1133_v41 = vpop.f32.mrb[6].mxu1  ;;  %v1052_v42 = vpop.f32.mrb[7].mxu0 }
 0x102   :  { %881 = vst.msk [vmem:[%s1640_s3] sm:$0xf] %vm880_vm0, %v1005_v35  ;;  %v1006_v43 = vpack.c.bf16 %v775_v36, %v775_v36  ;;  %v577_v44 = vadd.f32 %v1050_v37, %v1531_v16  ;;  %v1053_v45 = vadd.f32 %v1052_v42, %v1051_v39  ;;  %v1134_v46 = vpop.f32.mrb[7].mxu1 }
 0x103   :  { %v1135_v47 = vadd.f32 %v1134_v46, %v1133_v41 }
 0x104   :  { %882 = vst.msk [vmem:[%s1640_s3 + $0x4] sm:$0xf] %vm880_vm0, %v1006_v43  ;;  %v697_v48 = vadd.f32 %v1132_v40, %v577_v44  ;;  %v580_v49 = vadd.f32 %v1053_v45, %v1531_v16 }
 0x106   :  { %v776_v50 = vmax.f32 %v697_v48, 0.0  ;;  %v700_v51 = vadd.f32 %v1135_v47, %v580_v49  ;;  %v1054_v52 = vpop.f32.mrb[8].mxu0 }
 0x107   :  { %v1136_v53 = vpop.f32.mrb[8].mxu1  ;;  %v1055_v54 = vpop.f32.mrb[9].mxu0 }
 0x108   :  { %v1007_v55 = vpack.c.bf16 %v776_v50, %v776_v50  ;;  %v777_v56 = vmax.f32 %v700_v51, 0.0  ;;  %v1056_v57 = vadd.f32 %v1055_v54, %v1054_v52  ;;  %v1137_v58 = vpop.f32.mrb[9].mxu1  ;;  %v1057_v59 = vpop.f32.mrb[10].mxu0 }
 0x109   :  { %v1138_v60 = vadd.f32 %v1137_v58, %v1136_v53  ;;  %v1139_v61 = vpop.f32.mrb[10].mxu1  ;;  %v1058_v62 = vpop.f32.mrb[11].mxu0 }
 0x10a   :  { %883 = vst.msk [vmem:[%s1640_s3 + $0x8] sm:$0xf] %vm880_vm0, %v1007_v55  ;;  %v1008_v63 = vpack.c.bf16 %v777_v56, %v777_v56  ;;  %v585_v0 = vadd.f32 %v1056_v57, %v1531_v16  ;;  %v1059_v1 = vadd.f32 %v1058_v62, %v1057_v59  ;;  %v1140_v2 = vpop.f32.mrb[11].mxu1 }
 0x10b   :  { %v1141_v3 = vadd.f32 %v1140_v2, %v1139_v61 }
 0x10c   :  { %884 = vst.msk [vmem:[%s1640_s3 + $0xc] sm:$0xf] %vm880_vm0, %v1008_v63  ;;  %v705_v4 = vadd.f32 %v1138_v60, %v585_v0  ;;  %v588_v5 = vadd.f32 %v1059_v1, %v1531_v16 }
 0x10e   :  { %v778_v6 = vmax.f32 %v705_v4, 0.0  ;;  %v708_v7 = vadd.f32 %v1141_v3, %v588_v5  ;;  %v1060_v8 = vpop.f32.mrb[12].mxu0 }
 0x10f   :  { %v1142_v9 = vpop.f32.mrb[12].mxu1  ;;  %v1061_v10 = vpop.f32.mrb[13].mxu0 }
 0x110   :  { %v1009_v11 = vpack.c.bf16 %v778_v6, %v778_v6  ;;  %v779_v12 = vmax.f32 %v708_v7, 0.0  ;;  %v1062_v13 = vadd.f32 %v1061_v10, %v1060_v8  ;;  %v1143_v14 = vpop.f32.mrb[13].mxu1  ;;  %v1063_v15 = vpop.f32.mrb[14].mxu0 }
 0x111   :  { %v1144_v17 = vadd.f32 %v1143_v14, %v1142_v9  ;;  %v1145_v18 = vpop.f32.mrb[14].mxu1  ;;  %v1064_v19 = vpop.f32.mrb[15].mxu0 }
 0x112   :  { %885 = vst.msk [vmem:[%s1640_s3 + $0x10] sm:$0xf] %vm880_vm0, %v1009_v11  ;;  %v1010_v20 = vpack.c.bf16 %v779_v12, %v779_v12  ;;  %v593_v21 = vadd.f32 %v1062_v13, %v1531_v16  ;;  %v1065_v22 = vadd.f32 %v1064_v19, %v1063_v15  ;;  %v1146_v23 = vpop.f32.mrb[15].mxu1 }
 0x113   :  { %v1147_v24 = vadd.f32 %v1146_v23, %v1145_v18 }
 0x114   :  { %886 = vst.msk [vmem:[%s1640_s3 + $0x14] sm:$0xf] %vm880_vm0, %v1010_v20  ;;  %v713_v25 = vadd.f32 %v1144_v17, %v593_v21  ;;  %v596_v26 = vadd.f32 %v1065_v22, %v1531_v16 }
 0x116   :  { %v780_v27 = vmax.f32 %v713_v25, 0.0  ;;  %v716_v28 = vadd.f32 %v1147_v24, %v596_v26  ;;  %v1066_v29 = vpop.f32.mrb[16].mxu0 }
 0x117   :  { %v1148_v30 = vpop.f32.mrb[16].mxu1  ;;  %v1067_v31 = vpop.f32.mrb[17].mxu0 }
 0x118   :  { %v1011_v32 = vpack.c.bf16 %v780_v27, %v780_v27  ;;  %v781_v33 = vmax.f32 %v716_v28, 0.0  ;;  %v1068_v34 = vadd.f32 %v1067_v31, %v1066_v29  ;;  %v1149_v35 = vpop.f32.mrb[17].mxu1  ;;  %v1069_v36 = vpop.f32.mrb[18].mxu0 }
 0x119   :  { %v1150_v37 = vadd.f32 %v1149_v35, %v1148_v30  ;;  %v1151_v38 = vpop.f32.mrb[18].mxu1  ;;  %v1070_v39 = vpop.f32.mrb[19].mxu0 }
 0x11a   :  { %887 = vst.msk [vmem:[%s1640_s3 + $0x18] sm:$0xf] %vm880_vm0, %v1011_v32  ;;  %v1012_v40 = vpack.c.bf16 %v781_v33, %v781_v33  ;;  %v601_v41 = vadd.f32 %v1068_v34, %v1531_v16  ;;  %v1071_v42 = vadd.f32 %v1070_v39, %v1069_v36  ;;  %v1152_v43 = vpop.f32.mrb[19].mxu1 }
 0x11b   :  { %v1153_v44 = vadd.f32 %v1152_v43, %v1151_v38 }
 0x11c   :  { %888 = vst.msk [vmem:[%s1640_s3 + $0x1c] sm:$0xf] %vm880_vm0, %v1012_v40  ;;  %v721_v45 = vadd.f32 %v1150_v37, %v601_v41  ;;  %v604_v46 = vadd.f32 %v1071_v42, %v1531_v16 }
 0x11e   :  { %v782_v47 = vmax.f32 %v721_v45, 0.0  ;;  %v724_v48 = vadd.f32 %v1153_v44, %v604_v46  ;;  %v1072_v49 = vpop.f32.mrb[20].mxu0 }
 0x11f   :  { %v1154_v50 = vpop.f32.mrb[20].mxu1  ;;  %v1073_v51 = vpop.f32.mrb[21].mxu0 }
 0x120   :  { %v1013_v52 = vpack.c.bf16 %v782_v47, %v782_v47  ;;  %v783_v53 = vmax.f32 %v724_v48, 0.0  ;;  %v1074_v54 = vadd.f32 %v1073_v51, %v1072_v49  ;;  %v1155_v55 = vpop.f32.mrb[21].mxu1  ;;  %v1075_v56 = vpop.f32.mrb[22].mxu0 }
 0x121   :  { %v1156_v57 = vadd.f32 %v1155_v55, %v1154_v50  ;;  %v1157_v58 = vpop.f32.mrb[22].mxu1  ;;  %v1076_v59 = vpop.f32.mrb[23].mxu0 }
 0x122   :  { %889 = vst.msk [vmem:[%s1640_s3 + $0x20] sm:$0xf] %vm880_vm0, %v1013_v52  ;;  %v1014_v60 = vpack.c.bf16 %v783_v53, %v783_v53  ;;  %v609_v61 = vadd.f32 %v1074_v54, %v1531_v16  ;;  %v1077_v62 = vadd.f32 %v1076_v59, %v1075_v56  ;;  %v1158_v63 = vpop.f32.mrb[23].mxu1 }
 0x123   :  { %v1159_v0 = vadd.f32 %v1158_v63, %v1157_v58 }
 0x124   :  { %890 = vst.msk [vmem:[%s1640_s3 + $0x24] sm:$0xf] %vm880_vm0, %v1014_v60  ;;  %v729_v1 = vadd.f32 %v1156_v57, %v609_v61  ;;  %v612_v2 = vadd.f32 %v1077_v62, %v1531_v16 }
 0x126   :  { %v784_v3 = vmax.f32 %v729_v1, 0.0  ;;  %v732_v4 = vadd.f32 %v1159_v0, %v612_v2  ;;  %v1078_v5 = vpop.f32.mrb[24].mxu0 }
 0x127   :  { %v1160_v6 = vpop.f32.mrb[24].mxu1  ;;  %v1079_v7 = vpop.f32.mrb[25].mxu0 }
 0x128   :  { %v1015_v8 = vpack.c.bf16 %v784_v3, %v784_v3  ;;  %v785_v9 = vmax.f32 %v732_v4, 0.0  ;;  %v1080_v10 = vadd.f32 %v1079_v7, %v1078_v5  ;;  %v1161_v11 = vpop.f32.mrb[25].mxu1  ;;  %v1081_v12 = vpop.f32.mrb[26].mxu0 }
 0x129   :  { %v1162_v13 = vadd.f32 %v1161_v11, %v1160_v6  ;;  %v1163_v14 = vpop.f32.mrb[26].mxu1  ;;  %v1082_v15 = vpop.f32.mrb[27].mxu0 }
 0x12a   :  { %891 = vst.msk [vmem:[%s1640_s3 + $0x28] sm:$0xf] %vm880_vm0, %v1015_v8  ;;  %v1016_v17 = vpack.c.bf16 %v785_v9, %v785_v9  ;;  %v617_v18 = vadd.f32 %v1080_v10, %v1531_v16  ;;  %v1083_v19 = vadd.f32 %v1082_v15, %v1081_v12  ;;  %v1164_v20 = vpop.f32.mrb[27].mxu1 }
 0x12b   :  { %v1165_v21 = vadd.f32 %v1164_v20, %v1163_v14 }
 0x12c   :  { %892 = vst.msk [vmem:[%s1640_s3 + $0x2c] sm:$0xf] %vm880_vm0, %v1016_v17  ;;  %v737_v22 = vadd.f32 %v1162_v13, %v617_v18  ;;  %v620_v23 = vadd.f32 %v1083_v19, %v1531_v16 }
 0x12e   :  { %v786_v24 = vmax.f32 %v737_v22, 0.0  ;;  %v740_v25 = vadd.f32 %v1165_v21, %v620_v23  ;;  %v1084_v26 = vpop.f32.mrb[28].mxu0 }
 0x12f   :  { %v1166_v27 = vpop.f32.mrb[28].mxu1  ;;  %v1085_v28 = vpop.f32.mrb[29].mxu0 }
 0x130   :  { %v1017_v29 = vpack.c.bf16 %v786_v24, %v786_v24  ;;  %v787_v30 = vmax.f32 %v740_v25, 0.0  ;;  %v1086_v31 = vadd.f32 %v1085_v28, %v1084_v26  ;;  %v1167_v32 = vpop.f32.mrb[29].mxu1  ;;  %v1087_v33 = vpop.f32.mrb[30].mxu0 }
 0x131   :  { %v1168_v34 = vadd.f32 %v1167_v32, %v1166_v27  ;;  %v1169_v35 = vpop.f32.mrb[30].mxu1  ;;  %v1088_v36 = vpop.f32.mrb[31].mxu0 }
 0x132   :  { %893 = vst.msk [vmem:[%s1640_s3 + $0x30] sm:$0xf] %vm880_vm0, %v1017_v29  ;;  %v1018_v37 = vpack.c.bf16 %v787_v30, %v787_v30  ;;  %v625_v38 = vadd.f32 %v1086_v31, %v1531_v16  ;;  %v1089_v39 = vadd.f32 %v1088_v36, %v1087_v33  ;;  %v1170_v40 = vpop.f32.mrb[31].mxu1 }
 0x133   :  { %v1171_v41 = vadd.f32 %v1170_v40, %v1169_v35 }
 0x134   :  { %894 = vst.msk [vmem:[%s1640_s3 + $0x34] sm:$0xf] %vm880_vm0, %v1018_v37  ;;  %v745_v42 = vadd.f32 %v1168_v34, %v625_v38  ;;  %v628_v43 = vadd.f32 %v1089_v39, %v1531_v16 }
 0x136   :  { %v788_v44 = vmax.f32 %v745_v42, 0.0  ;;  %v748_v45 = vadd.f32 %v1171_v41, %v628_v43  ;;  %v1090_v46 = vpop.f32.mrb[32].mxu0 }
 0x137   :  { %v1172_v47 = vpop.f32.mrb[32].mxu1  ;;  %v1091_v48 = vpop.f32.mrb[33].mxu0 }
 0x138   :  { %v1019_v49 = vpack.c.bf16 %v788_v44, %v788_v44  ;;  %v789_v50 = vmax.f32 %v748_v45, 0.0  ;;  %v1092_v51 = vadd.f32 %v1091_v48, %v1090_v46  ;;  %v1173_v52 = vpop.f32.mrb[33].mxu1  ;;  %v1093_v53 = vpop.f32.mrb[34].mxu0 }
 0x139   :  { %v1174_v54 = vadd.f32 %v1173_v52, %v1172_v47  ;;  %v1175_v55 = vpop.f32.mrb[34].mxu1  ;;  %v1094_v56 = vpop.f32.mrb[35].mxu0 }
 0x13a   :  { %895 = vst.msk [vmem:[%s1640_s3 + $0x38] sm:$0xf] %vm880_vm0, %v1019_v49  ;;  %v1020_v57 = vpack.c.bf16 %v789_v50, %v789_v50  ;;  %v633_v58 = vadd.f32 %v1092_v51, %v1531_v16  ;;  %v1095_v59 = vadd.f32 %v1094_v56, %v1093_v53  ;;  %v1176_v60 = vpop.f32.mrb[35].mxu1 }
 0x13b   :  { %v1177_v61 = vadd.f32 %v1176_v60, %v1175_v55 }
 0x13c   :  { %896 = vst.msk [vmem:[%s1640_s3 + $0x3c] sm:$0xf] %vm880_vm0, %v1020_v57  ;;  %v753_v62 = vadd.f32 %v1174_v54, %v633_v58  ;;  %v636_v63 = vadd.f32 %v1095_v59, %v1531_v16 }
 0x13e   :  { %v790_v0 = vmax.f32 %v753_v62, 0.0  ;;  %v756_v1 = vadd.f32 %v1177_v61, %v636_v63  ;;  %v1096_v2 = vpop.f32.mrb[36].mxu0 }
 0x13f   :  { %v1178_v3 = vpop.f32.mrb[36].mxu1  ;;  %v1097_v4 = vpop.f32.mrb[37].mxu0 }
 0x140   :  { %v1021_v5 = vpack.c.bf16 %v790_v0, %v790_v0  ;;  %v791_v6 = vmax.f32 %v756_v1, 0.0  ;;  %v1098_v7 = vadd.f32 %v1097_v4, %v1096_v2  ;;  %v1179_v8 = vpop.f32.mrb[37].mxu1  ;;  %v1099_v9 = vpop.f32.mrb[38].mxu0 }
 0x141   :  { %v1180_v10 = vadd.f32 %v1179_v8, %v1178_v3  ;;  %v1181_v11 = vpop.f32.mrb[38].mxu1  ;;  %v1100_v12 = vpop.f32.mrb[39].mxu0 }
 0x142   :  { %897 = vst.msk [vmem:[%s1640_s3 + $0x40] sm:$0xf] %vm880_vm0, %v1021_v5  ;;  %v1022_v13 = vpack.c.bf16 %v791_v6, %v791_v6  ;;  %v641_v14 = vadd.f32 %v1098_v7, %v1531_v16  ;;  %v1101_v15 = vadd.f32 %v1100_v12, %v1099_v9  ;;  %v1182_v17 = vpop.f32.mrb[39].mxu1 }
 0x143   :  { %v1183_v18 = vadd.f32 %v1182_v17, %v1181_v11 }
 0x144   :  { %898 = vst.msk [vmem:[%s1640_s3 + $0x44] sm:$0xf] %vm880_vm0, %v1022_v13  ;;  %v761_v19 = vadd.f32 %v1180_v10, %v641_v14  ;;  %v644_v20 = vadd.f32 %v1101_v15, %v1531_v16 }
 0x146   :  { %v792_v21 = vmax.f32 %v761_v19, 0.0  ;;  %v764_v22 = vadd.f32 %v1183_v18, %v644_v20  ;;  %v1102_v23 = vpop.f32.mrb[40].mxu0 }
 0x147   :  { %v1184_v24 = vpop.f32.mrb[40].mxu1  ;;  %v1103_v25 = vpop.f32.mrb[41].mxu0 }
 0x148   :  { %v1023_v26 = vpack.c.bf16 %v792_v21, %v792_v21  ;;  %v793_v27 = vmax.f32 %v764_v22, 0.0  ;;  %v1104_v28 = vadd.f32 %v1103_v25, %v1102_v23  ;;  %v1185_v29 = vpop.f32.mrb[41].mxu1  ;;  %v1105_v30 = vpop.f32.mrb[42].mxu0 }
 0x149   :  { %v1186_v31 = vadd.f32 %v1185_v29, %v1184_v24  ;;  %v1187_v32 = vpop.f32.mrb[42].mxu1  ;;  %v1106_v33 = vpop.f32.mrb[43].mxu0 }
 0x14a   :  { %899 = vst.msk [vmem:[%s1640_s3 + $0x48] sm:$0xf] %vm880_vm0, %v1023_v26  ;;  %v1024_v34 = vpack.c.bf16 %v793_v27, %v793_v27  ;;  %v649_v35 = vadd.f32 %v1104_v28, %v1531_v16  ;;  %v1188_v36 = vpop.f32.mrb[43].mxu1 }
 0x14c   :  { %900 = vst.msk [vmem:[%s1640_s3 + $0x4c] sm:$0xf] %vm880_vm0, %v1024_v34  ;;  %v769_v37 = vadd.f32 %v1186_v31, %v649_v35 }
 0x14e   :  { %v794_v38 = vmax.f32 %v769_v37, 0.0 }
 0x150   :  { %v1025_v39 = vpack.c.bf16 %v794_v38, %v794_v38 }
 0x152   :  { %902 = vst.msk [vmem:[%s1640_s3 + $0x50] sm:$0x1] %vm901_vm1, %v1025_v39 }

// kernel: dueling_cnn_forward.6
= control target key start
LH: loop header
LB: loop body
LE: loop exit
PB: predicated region body
PF: predicated region fallthrough
CT: control target
= control target key end

     0   :  { %v1248_v34 = vmov 0.0   ;;  %vm1249_vm0 = vmmov 0   ;;  %vm516_vm1 = vcmask 523264   ;;  %vm868_vm2 = vcmask 519168   ;;  %s1599_s1 = inlined_call_operand.vmem [shape: bf16[576,64], index: 1, kind: input, shape index: {}]   ;;  %s1600_s0 = inlined_call_operand.vmem [shape: bf16[98,576], index: 0, kind: input, shape index: {}]   ;;  %s1601_s2 = inlined_call_operand.vmem [shape: f32[1,64], index: 2, kind: input, shape index: {}]   ;;  %s1602_s3 = inlined_call_operand.vmem [shape: bf16[98,64], index: 3, kind: output, shape index: {}]  }
   0x1   :  { %v1165_v0 = vld [vmem:[%s1599_s1 + $0x40] sm:$0xff]   ;;  %v1169_v4 = vld [vmem:[%s1599_s1 + $0x48] sm:$0xff]   ;;  %v1173_v8 = vld [vmem:[%s1599_s1 + $0x50] sm:$0xff]   ;;  %vm881_vm3 = vcmask 516096  }
   0x2   :  { %v1166_v1 = vld [vmem:[%s1599_s1 + $0xc0] sm:$0xff]   ;;  %992 = vmatprep.subr.bf16.mxu0 %v1165_v0  ;;  %v1170_v5 = vld [vmem:[%s1599_s1 + $0xc8] sm:$0xff]   ;;  %v1174_v9 = vld [vmem:[%s1599_s1 + $0xd0] sm:$0xff]  }
   0x3   :  { %v1167_v2 = vld [vmem:[%s1599_s1] sm:$0xff]   ;;  %1050 = vmatprep.subr.bf16.mxu1 %v1166_v1  ;;  %v1171_v6 = vld [vmem:[%s1599_s1 + $0x8] sm:$0xff]   ;;  %v1175_v10 = vld [vmem:[%s1599_s1 + $0x10] sm:$0xff]  }
   0x4   :  { %v1168_v3 = vld [vmem:[%s1599_s1 + $0x80] sm:$0xff]   ;;  %993 = vmatpush3.bf16.msra.mxu0 %v1167_v2  ;;  %v1172_v7 = vld [vmem:[%s1599_s1 + $0x88] sm:$0xff]   ;;  %v1176_v11 = vld [vmem:[%s1599_s1 + $0x90] sm:$0xff]  }
   0x5   :  { %1051 = vmatpush3.bf16.msra.mxu1 %v1168_v3  ;;  %994 = vmatprep.subr.bf16.mxu0 %v1169_v4  ;;  %v1177_v12 = vld [vmem:[%s1599_s1 + $0x58] sm:$0xff]   ;;  %v1181_v16 = vld [vmem:[%s1599_s1 + $0x60] sm:$0xff]   ;;  %v1185_v20 = vld [vmem:[%s1599_s1 + $0x68] sm:$0xff]  }
   0x6   :  { %1052 = vmatprep.subr.bf16.mxu1 %v1170_v5  ;;  %v1178_v13 = vld [vmem:[%s1599_s1 + $0xd8] sm:$0xff]   ;;  %v1182_v17 = vld [vmem:[%s1599_s1 + $0xe0] sm:$0xff]   ;;  %v1186_v21 = vld [vmem:[%s1599_s1 + $0xe8] sm:$0xff]  }
   0x7   :  { %v1179_v14 = vld [vmem:[%s1599_s1 + $0x18] sm:$0xff]   ;;  %v1183_v18 = vld [vmem:[%s1599_s1 + $0x20] sm:$0xff]   ;;  %v1187_v22 = vld [vmem:[%s1599_s1 + $0x28] sm:$0xff]  }
   0x8   :  { %995 = vmatpush3.bf16.msra.mxu0 %v1171_v6  ;;  %v1180_v15 = vld [vmem:[%s1599_s1 + $0x98] sm:$0xff]   ;;  %v1184_v19 = vld [vmem:[%s1599_s1 + $0xa0] sm:$0xff]   ;;  %v1188_v23 = vld [vmem:[%s1599_s1 + $0xa8] sm:$0xff]  }
   0x9   :  { %1053 = vmatpush3.bf16.msra.mxu1 %v1172_v7  ;;  %996 = vmatprep.subr.bf16.mxu0 %v1173_v8  ;;  %v1189_v24 = vld [vmem:[%s1599_s1 + $0x70] sm:$0xff]   ;;  %v1193_v28 = vld [vmem:[%s1599_s1 + $0x78] sm:$0xff]   ;;  %v1202_v36 = vld [vmem:[%s1600_s0 + $0xc] ss:$20 sps:$4 sm:$0xff]  }
   0xa   :  { %1054 = vmatprep.subr.bf16.mxu1 %v1174_v9  ;;  %v1190_v25 = vld [vmem:[%s1599_s1 + $0xf0] sm:$0xff]   ;;  %v1194_v29 = vld [vmem:[%s1599_s1 + $0xf8] sm:$0xff]   ;;  %v1203_v37 = vld [vmem:[%s1599_s1 + $0x100] sm:$0xff]   ;;  %658 = vmatprep.mubr.bf16.mxu1 %v1202_v36 }
   0xb   :  { %v1191_v26 = vld [vmem:[%s1599_s1 + $0x30] sm:$0xff]   ;;  %v1195_v30 = vld [vmem:[%s1599_s1 + $0x38] sm:$0xff]   ;;  %v1204_v38 = vld [vmem:[%s1600_s0 + $0x2c] ss:$20 sps:$4 sm:$0xff]  }
   0xc   :  { %997 = vmatpush3.bf16.msra.mxu0 %v1175_v10  ;;  %v1192_v27 = vld [vmem:[%s1599_s1 + $0xb0] sm:$0xff]   ;;  %v1196_v31 = vld [vmem:[%s1599_s1 + $0xb8] sm:$0xff]   ;;  %v1214_v43 = vld [vmem:[%s1599_s1 + $0x108] sm:$0xff]  }
   0xd   :  { %1055 = vmatpush3.bf16.msra.mxu1 %v1176_v11  ;;  %998 = vmatprep.subr.bf16.mxu0 %v1177_v12  ;;  %v1197_v32 = vld [vmem:[%s1600_s0] ss:$20 sps:$4 sm:$0xff]   ;;  %v1199_v33 = vld [vmem:[%s1600_s0 + $0x4] ss:$20 sps:$4 sm:$0xff]   ;;  %v1200_v35 = vld [vmem:[%s1600_s0 + $0x8] ss:$20 sps:$4 sm:$0xff]  }
   0xe   :  { %1056 = vmatprep.subr.bf16.mxu1 %v1178_v13  ;;  %570 = vmatprep.mubr.bf16.mxu0 %v1199_v33  ;;  %v1206_v39 = vld [vmem:[%s1600_s0 + $0x34] ss:$20 sps:$4 sm:$0xff]   ;;  %v1209_v41 = vld [vmem:[%s1600_s0 + $0x30] ss:$20 sps:$4 sm:$0xff]   ;;  %v1216_v47 = vld [vmem:[%s1600_s0 + $0x58] ss:$20 sps:$4 sm:$0xff]  }
   0xf   :  { %v1208_v40 = vld [vmem:[%s1600_s0 + $0x28] ss:$20 sps:$4 sm:$0xff]   ;;  %v1223_v45 = vld [vmem:[%s1599_s1 + $0x110] sm:$0xff]   ;;  %v1219_v49 = vld [vmem:[%s1600_s0 + $0x84] ss:$20 sps:$4 sm:$0xff]  }
  0x10   :  { %999 = vmatpush3.bf16.msra.mxu0 %v1179_v14  ;;  %v1210_v42 = vld [vmem:[%s1600_s0 + $0x54] ss:$20 sps:$4 sm:$0xff]   ;;  %v1212_v44 = vld [vmem:[%s1600_s0 + $0x5c] ss:$20 sps:$4 sm:$0xff]   ;;  %v1221_v51 = vld [vmem:[%s1600_s0 + $0x78] ss:$20 sps:$4 sm:$0xff]  }
  0x11   :  { %1057 = vmatpush3.bf16.msra.mxu1 %v1180_v15  ;;  %1000 = vmatprep.subr.bf16.mxu0 %v1181_v16  ;;  %v1215_v46 = vld [vmem:[%s1600_s0 + $0x50] ss:$20 sps:$4 sm:$0xff]   ;;  %v1236_v50 = vld [vmem:[%s1599_s1 + $0x118] sm:$0xff]   ;;  %v1222_v52 = vld [vmem:[%s1600_s0 + $0x80] ss:$20 sps:$4 sm:$0xff]  }
  0x12   :  { %1058 = vmatprep.subr.bf16.mxu1 %v1182_v17  ;;  %v1217_v48 = vld [vmem:[%s1600_s0 + $0x7c] ss:$20 sps:$4 sm:$0xff]   ;;  %v1224_v53 = vld [vmem:[%s1600_s0 + $0xa4] ss:$20 sps:$4 sm:$0xff]   ;;  %v1226_v54 = vld [vmem:[%s1600_s0 + $0xac] ss:$20 sps:$4 sm:$0xff]  }
  0x13   :  { %v1228_v55 = vld [vmem:[%s1600_s0 + $0xa0] ss:$20 sps:$4 sm:$0xff]   ;;  %v1229_v56 = vld [vmem:[%s1600_s0 + $0xa8] ss:$20 sps:$4 sm:$0xff]   ;;  %v1235_v62 = vld [vmem:[%s1600_s0 + $0xd0] ss:$20 sps:$4 sm:$0xff]  }
  0x14   :  { %1001 = vmatpush3.bf16.msra.mxu0 %v1183_v18  ;;  %v1230_v57 = vld [vmem:[%s1600_s0 + $0xcc] ss:$20 sps:$4 sm:$0xff]   ;;  %v1232_v58 = vld [vmem:[%s1600_s0 + $0xd4] ss:$20 sps:$4 sm:$0xff]   ;;  %v52_v60 = vld [vmem:[%s1600_s0 + $0xf8] sm:$0x11] }
  0x15   :  { %1059 = vmatpush3.bf16.msra.mxu1 %v1184_v19  ;;  %1002 = vmatprep.subr.bf16.mxu0 %v1185_v20  ;;  %v51_v59 = vld [vmem:[%s1600_s0 + $0xf0] sm:$0x11]  ;;  %v1234_v61 = vld [vmem:[%s1600_s0 + $0xc8] ss:$20 sps:$4 sm:$0xff]   ;;  %v921_v0 = vcombine.high %v52_v60, %v52_v60  ;;  %v920_v2 = vcombine.low %v52_v60, %v52_v60  ;;  %v1243_v5 = vld [vmem:[%s1600_s0 + $0x38] ss:$20 sps:$4 sm:$0xff]  }
  0x16   :  { %1060 = vmatprep.subr.bf16.mxu1 %v1186_v21  ;;  %v919_v63 = vcombine.high %v51_v59, %v51_v59  ;;  %v918_v1 = vcombine.low %v51_v59, %v51_v59  ;;  %v1241_v3 = vld [vmem:[%s1600_s0 + $0x10] ss:$20 sps:$4 sm:$0xff]   ;;  %v1244_v6 = vld [vmem:[%s1600_s0 + $0xd8] ss:$20 sps:$4 sm:$0xff]   ;;  %v1245_v7 = vld [vmem:[%s1600_s0 + $0x60] ss:$20 sps:$4 sm:$0xff]  }
  0x17   :  { %v1242_v4 = vld [vmem:[%s1600_s0 + $0xb0] ss:$20 sps:$4 sm:$0xff]   ;;  %v1246_v8 = vld [vmem:[%s1600_s0 + $0x100] ss:$0 sps:$4 sm:$0x11]  }
  0x18   :  { %1003 = vmatpush3.bf16.msra.mxu0 %v1187_v22  ;;  %v1247_v9 = vld [vmem:[%s1600_s0 + $0x88] ss:$20 sps:$4 sm:$0xff]   ;;  %v1509_v11 = vld [vmem:[%s1601_s2] ss:$0 sm:$0xff] }
  0x19   :  { %1061 = vmatpush3.bf16.msra.mxu1 %v1188_v23  ;;  %1004 = vmatprep.subr.bf16.mxu0 %v1189_v24 }
  0x1a   :  { %1062 = vmatprep.subr.bf16.mxu1 %v1190_v25 }
  0x1c   :  { %1005 = vmatpush3.bf16.msra.mxu0 %v1191_v26 }
  0x1d   :  { %1063 = vmatpush3.bf16.msra.mxu1 %v1192_v27  ;;  %1006 = vmatprep.subr.bf16.mxu0 %v1193_v28 }
  0x1e   :  { %1064 = vmatprep.subr.bf16.mxu1 %v1194_v29 }
  0x20   :  { %1007 = vmatpush3.bf16.msra.mxu0 %v1195_v30 }
  0x21   :  { %1065 = vmatpush3.bf16.msra.mxu1 %v1196_v31  ;;  %1119 = vmatprep.subr.bf16.mxu0 %v1248_v34 }
  0x22   :  { %1155 = vmatprep.subr.bf16.mxu1 %v1248_v34 }
  0x23   :  { %571 = vmatmul.mubr.bf16.vlgmr.msra.gmra.mrb[0].mxu0 %v1197_v32 }
  0x24   :  { %659 = vmatmul.mubr.bf16.vlgmr.msra.gmra.mrb[0].mxu1 %v1200_v35  ;;  %1120 = vmatpush3.bf16.msra.mxu0 %v1203_v37 }
  0x25   :  { %578 = vmatprep.mubr.bf16.mxu0 %v1204_v38  ;;  %1159 = vmatpush3.bf16.msra.mxu1 %v1203_v37 }
  0x26   :  { %666 = vmatprep.mubr.bf16.mxu1 %v1206_v39  ;;  %1121 = vmatprep.subr.bf16.mxu0 %v1248_v34 }
  0x27   :  { %1156 = vmatprep.subr.bf16.mxu1 %v1248_v34 }
  0x28   :  { %1122 = vmatpush3.bf16.msra.mxu0 %v1214_v43 }
  0x29   :  { %1160 = vmatpush3.bf16.msra.mxu1 %v1214_v43  ;;  %1123 = vmatprep.subr.bf16.mxu0 %v1248_v34 }
  0x2a   :  { %1157 = vmatprep.subr.bf16.mxu1 %v1248_v34 }
  0x2b   :  { %579 = vmatmul.mubr.bf16.gmra.mrb[4].mxu0 %v1208_v40 }
  0x2c   :  { %667 = vmatmul.mubr.bf16.gmra.mrb[4].mxu1 %v1209_v41  ;;  %586 = vmatprep.mubr.bf16.mxu0 %v1210_v42 }
  0x2d   :  { %674 = vmatprep.mubr.bf16.mxu1 %v1212_v44  ;;  %1124 = vmatpush3.bf16.msra.mxu0 %v1223_v45 }
  0x2e   :  { %1161 = vmatpush3.bf16.msra.mxu1 %v1223_v45  ;;  %1125 = vmatprep.subr.bf16.mxu0 %v1248_v34 }
  0x2f   :  { %1158 = vmatprep.subr.bf16.mxu1 %v1248_v34 }
  0x31   :  { %1126 = vmatpush3.bf16.msra.mxu0 %v1236_v50 }
  0x32   :  { %1162 = vmatpush3.bf16.msra.mxu1 %v1236_v50 }
  0x33   :  { %587 = vmatmul.mubr.bf16.gmra.mrb[8].mxu0 %v1215_v46 }
  0x34   :  { %675 = vmatmul.mubr.bf16.gmra.mrb[8].mxu1 %v1216_v47  ;;  %594 = vmatprep.mubr.bf16.mxu0 %v1217_v48 }
  0x35   :  { %682 = vmatprep.mubr.bf16.mxu1 %v1219_v49 }
  0x3b   :  { %595 = vmatmul.mubr.bf16.gmra.mrb[12].mxu0 %v1221_v51 }
  0x3c   :  { %683 = vmatmul.mubr.bf16.gmra.mrb[12].mxu1 %v1222_v52  ;;  %602 = vmatprep.mubr.bf16.mxu0 %v1224_v53 }
  0x3d   :  { %690 = vmatprep.mubr.bf16.mxu1 %v1226_v54 }
  0x43   :  { %603 = vmatmul.mubr.bf16.gmra.mrb[16].mxu0 %v1228_v55 }
  0x44   :  { %691 = vmatmul.mubr.bf16.gmra.mrb[16].mxu1 %v1229_v56  ;;  %610 = vmatprep.mubr.bf16.mxu0 %v1230_v57 }
  0x45   :  { %698 = vmatprep.mubr.bf16.mxu1 %v1232_v58 }
  0x4b   :  { %611 = vmatmul.mubr.bf16.gmra.mrb[20].mxu0 %v1234_v61 }
  0x4c   :  { %699 = vmatmul.mubr.bf16.gmra.mrb[20].mxu1 %v1235_v62  ;;  %618 = vmatprep.mubr.bf16.mxu0 %v919_v63 }
  0x4d   :  { %706 = vmatprep.mubr.bf16.mxu1 %v921_v0 }
  0x53   :  { %619 = vmatmul.mubr.bf16.gmra.mrb[24].mxu0 %v918_v1 }
  0x54   :  { %707 = vmatmul.mubr.bf16.gmra.mrb[24].mxu1 %v920_v2  ;;  %1127 = vmatprep.mubr.msk.bf16.mxu0 %vm1249_vm0, %v1248_v34 }
  0x55   :  { %1143 = vmatprep.mubr.msk.bf16.mxu1 %vm1249_vm0, %v1248_v34 }
  0x5b   :  { %1128 = vmatmul.mubr.msk.bf16.vlgmr.msra.gmra.mrb[28].mxu0 %vm516_vm1, %v1241_v3 }
  0x5c   :  { %1144 = vmatmul.mubr.msk.bf16.vlgmr.msra.gmra.mrb[28].mxu1 %vm516_vm1, %v1242_v4  ;;  %1131 = vmatprep.mubr.msk.bf16.mxu0 %vm1249_vm0, %v1248_v34 }
  0x5d   :  { %1147 = vmatprep.mubr.msk.bf16.mxu1 %vm1249_vm0, %v1248_v34 }
  0x63   :  { %1132 = vmatmul.mubr.msk.bf16.gmra.mrb[32].mxu0 %vm516_vm1, %v1243_v5 }
  0x64   :  { %1148 = vmatmul.mubr.msk.bf16.gmra.mrb[32].mxu1 %vm516_vm1, %v1244_v6  ;;  %1135 = vmatprep.mubr.msk.bf16.mxu0 %vm1249_vm0, %v1248_v34 }
  0x65   :  { %1151 = vmatprep.mubr.msk.bf16.mxu1 %vm1249_vm0, %v1248_v34 }
  0x6b   :  { %1136 = vmatmul.mubr.msk.bf16.gmra.mrb[36].mxu0 %vm516_vm1, %v1245_v7 }
  0x6c   :  { %1152 = vmatmul.mubr.msk.bf16.gmra.mrb[36].mxu1 %vm516_vm1, %v1246_v8  ;;  %1139 = vmatprep.mubr.msk.bf16.mxu0 %vm1249_vm0, %v1248_v34 }
  0x73   :  { %1140 = vmatmul.mubr.msk.bf16.gmra.mrb[40].mxu0 %vm516_vm1, %v1247_v9 }
  0xf6   :  { %v1008_v10 = vpop.f32.mrb[0].mxu0 }
  0xf7   :  { %v1009_v12 = vpop.f32.mrb[1].mxu0  ;;  %v1066_v13 = vpop.f32.mrb[0].mxu1 }
  0xf8   :  { %v1010_v14 = vadd.f32 %v1009_v12, %v1008_v10  ;;  %v1011_v15 = vpop.f32.mrb[2].mxu0  ;;  %v1067_v16 = vpop.f32.mrb[1].mxu1 }
  0xf9   :  { %v1012_v17 = vpop.f32.mrb[3].mxu0  ;;  %v1068_v18 = vadd.f32 %v1067_v16, %v1066_v13  ;;  %v1069_v19 = vpop.f32.mrb[2].mxu1 }
  0xfa   :  { %v573_v20 = vadd.f32 %v1010_v14, %v1509_v11  ;;  %v1013_v21 = vadd.f32 %v1012_v17, %v1011_v15  ;;  %v1070_v22 = vpop.f32.mrb[3].mxu1 }
  0xfb   :  { %v1071_v23 = vadd.f32 %v1070_v22, %v1069_v19 }
  0xfc   :  { %v576_v24 = vadd.f32 %v1013_v21, %v1509_v11  ;;  %v1513_v25 = vadd.f32 %v1068_v18, %v573_v20 }
  0xfe   :  { %v1014_v26 = vpop.f32.mrb[4].mxu0  ;;  %v1515_v27 = vadd.f32 %v1071_v23, %v576_v24 }
  0xff   :  { %v1015_v28 = vpop.f32.mrb[5].mxu0  ;;  %v1072_v29 = vpop.f32.mrb[4].mxu1 }
 0x100   :  { %v1016_v30 = vadd.f32 %v1015_v28, %v1014_v26  ;;  %v1017_v31 = vpop.f32.mrb[6].mxu0  ;;  %v1073_v32 = vpop.f32.mrb[5].mxu1 }
 0x101   :  { %v1018_v33 = vpop.f32.mrb[7].mxu0  ;;  %v1074_v34 = vadd.f32 %v1073_v32, %v1072_v29  ;;  %v1075_v35 = vpop.f32.mrb[6].mxu1 }
 0x102   :  { %v581_v36 = vadd.f32 %v1016_v30, %v1509_v11  ;;  %v1019_v37 = vadd.f32 %v1018_v33, %v1017_v31  ;;  %v1076_v38 = vpop.f32.mrb[7].mxu1 }
 0x103   :  { %v1077_v39 = vadd.f32 %v1076_v38, %v1075_v35 }
 0x104   :  { %v584_v40 = vadd.f32 %v1019_v37, %v1509_v11  ;;  %v1519_v41 = vadd.f32 %v1074_v34, %v581_v36 }
 0x106   :  { %v1020_v42 = vpop.f32.mrb[8].mxu0  ;;  %v1521_v43 = vadd.f32 %v1077_v39, %v584_v40 }
 0x107   :  { %v1021_v44 = vpop.f32.mrb[9].mxu0  ;;  %v1078_v45 = vpop.f32.mrb[8].mxu1 }
 0x108   :  { %v1022_v46 = vadd.f32 %v1021_v44, %v1020_v42  ;;  %v1023_v47 = vpop.f32.mrb[10].mxu0  ;;  %v1079_v48 = vpop.f32.mrb[9].mxu1 }
 0x109   :  { %v1024_v49 = vpop.f32.mrb[11].mxu0  ;;  %v1080_v50 = vadd.f32 %v1079_v48, %v1078_v45  ;;  %v1081_v51 = vpop.f32.mrb[10].mxu1 }
 0x10a   :  { %v589_v52 = vadd.f32 %v1022_v46, %v1509_v11  ;;  %v1025_v53 = vadd.f32 %v1024_v49, %v1023_v47  ;;  %v1082_v54 = vpop.f32.mrb[11].mxu1 }
 0x10b   :  { %v1083_v55 = vadd.f32 %v1082_v54, %v1081_v51 }
 0x10c   :  { %v592_v56 = vadd.f32 %v1025_v53, %v1509_v11  ;;  %v1525_v57 = vadd.f32 %v1080_v50, %v589_v52 }
 0x10e   :  { %v1026_v58 = vpop.f32.mrb[12].mxu0  ;;  %v1527_v59 = vadd.f32 %v1083_v55, %v592_v56 }
 0x10f   :  { %v1027_v60 = vpop.f32.mrb[13].mxu0  ;;  %v1084_v61 = vpop.f32.mrb[12].mxu1 }
 0x110   :  { %v1028_v62 = vadd.f32 %v1027_v60, %v1026_v58  ;;  %v1029_v63 = vpop.f32.mrb[14].mxu0  ;;  %v1085_v0 = vpop.f32.mrb[13].mxu1 }
 0x111   :  { %v1030_v1 = vpop.f32.mrb[15].mxu0  ;;  %v1086_v2 = vadd.f32 %v1085_v0, %v1084_v61  ;;  %v1087_v3 = vpop.f32.mrb[14].mxu1 }
 0x112   :  { %v597_v4 = vadd.f32 %v1028_v62, %v1509_v11  ;;  %v1031_v5 = vadd.f32 %v1030_v1, %v1029_v63  ;;  %v1088_v6 = vpop.f32.mrb[15].mxu1 }
 0x113   :  { %v1089_v7 = vadd.f32 %v1088_v6, %v1087_v3 }
 0x114   :  { %v600_v8 = vadd.f32 %v1031_v5, %v1509_v11  ;;  %v1531_v9 = vadd.f32 %v1086_v2, %v597_v4 }
 0x116   :  { %v1032_v10 = vpop.f32.mrb[16].mxu0  ;;  %v1533_v12 = vadd.f32 %v1089_v7, %v600_v8 }
 0x117   :  { %v1033_v13 = vpop.f32.mrb[17].mxu0  ;;  %v1090_v14 = vpop.f32.mrb[16].mxu1 }
 0x118   :  { %v1034_v15 = vadd.f32 %v1033_v13, %v1032_v10  ;;  %v1035_v16 = vpop.f32.mrb[18].mxu0  ;;  %v1091_v17 = vpop.f32.mrb[17].mxu1 }
 0x119   :  { %v1036_v18 = vpop.f32.mrb[19].mxu0  ;;  %v1092_v19 = vadd.f32 %v1091_v17, %v1090_v14  ;;  %v1093_v20 = vpop.f32.mrb[18].mxu1 }
 0x11a   :  { %v605_v21 = vadd.f32 %v1034_v15, %v1509_v11  ;;  %v1037_v22 = vadd.f32 %v1036_v18, %v1035_v16  ;;  %v1094_v23 = vpop.f32.mrb[19].mxu1 }
 0x11b   :  { %v1095_v24 = vadd.f32 %v1094_v23, %v1093_v20 }
 0x11c   :  { %v608_v26 = vadd.f32 %v1037_v22, %v1509_v11  ;;  %v693_v28 = vadd.f32 %v1092_v19, %v605_v21 }
 0x11e   :  { %v1038_v29 = vpop.f32.mrb[20].mxu0  ;;  %v696_v30 = vadd.f32 %v1095_v24, %v608_v26 }
 0x11f   :  { %v1039_v31 = vpop.f32.mrb[21].mxu0  ;;  %v1096_v32 = vpop.f32.mrb[20].mxu1 }
 0x120   :  { %v1040_v33 = vadd.f32 %v1039_v31, %v1038_v29  ;;  %v1041_v34 = vpop.f32.mrb[22].mxu0  ;;  %v1097_v35 = vpop.f32.mrb[21].mxu1 }
 0x121   :  { %v1042_v36 = vpop.f32.mrb[23].mxu0  ;;  %v1098_v37 = vadd.f32 %v1097_v35, %v1096_v32  ;;  %v1099_v38 = vpop.f32.mrb[22].mxu1 }
 0x122   :  { %v613_v39 = vadd.f32 %v1040_v33, %v1509_v11  ;;  %v1043_v40 = vadd.f32 %v1042_v36, %v1041_v34  ;;  %v1100_v42 = vpop.f32.mrb[23].mxu1 }
 0x123   :  { %v1101_v44 = vadd.f32 %v1100_v42, %v1099_v38 }
 0x124   :  { %v616_v45 = vadd.f32 %v1043_v40, %v1509_v11  ;;  %v701_v46 = vadd.f32 %v1098_v37, %v613_v39 }
 0x126   :  { %v1044_v47 = vpop.f32.mrb[24].mxu0  ;;  %v704_v48 = vadd.f32 %v1101_v44, %v616_v45 }
 0x127   :  { %v1045_v49 = vpop.f32.mrb[25].mxu0  ;;  %v1102_v50 = vpop.f32.mrb[24].mxu1 }
 0x128   :  { %v1046_v51 = vadd.f32 %v1045_v49, %v1044_v47  ;;  %v1047_v52 = vpop.f32.mrb[26].mxu0  ;;  %v1103_v53 = vpop.f32.mrb[25].mxu1 }
 0x129   :  { %v1048_v54 = vpop.f32.mrb[27].mxu0  ;;  %v1104_v55 = vadd.f32 %v1103_v53, %v1102_v50  ;;  %v1105_v56 = vpop.f32.mrb[26].mxu1 }
 0x12a   :  { %v621_v58 = vadd.f32 %v1046_v51, %v1509_v11  ;;  %v1106_v60 = vpop.f32.mrb[27].mxu1 }
 0x12c   :  { %v709_v61 = vadd.f32 %v1104_v55, %v621_v58 }
 0x12e   :  { %v748_v62 = vpop.f32.mrb[28].mxu0 }
 0x12f   :  { %v749_v63 = vadd.f32 %v748_v62, %v1513_v25  ;;  %v780_v0 = vpop.f32.mrb[28].mxu1  ;;  %v1129_v1 = vpop.f32.mrb[29].mxu0 }
 0x130   :  { %v781_v2 = vadd.f32 %v780_v0, %v693_v28  ;;  %v1145_v3 = vpop.f32.mrb[29].mxu1  ;;  %v751_v4 = vpop.f32.mrb[30].mxu0 }
 0x131   :  { %v802_v5 = vmax.f32 %v749_v63, 0.0  ;;  %v752_v6 = vadd.f32 %v751_v4, %v1515_v27  ;;  %v783_v7 = vpop.f32.mrb[30].mxu1  ;;  %v1130_v8 = vpop.f32.mrb[31].mxu0 }
 0x132   :  { %v810_v10 = vmax.f32 %v781_v2, 0.0  ;;  %v784_v13 = vadd.f32 %v783_v7, %v696_v30  ;;  %v1146_v14 = vpop.f32.mrb[31].mxu1 }
 0x133   :  { %v979_v11 = vpack.c.bf16 %v802_v5, %v802_v5  ;;  %v803_v15 = vmax.f32 %v752_v6, 0.0 }
 0x134   :  { %v987_v16 = vpack.c.bf16 %v810_v10, %v810_v10  ;;  %v811_v17 = vmax.f32 %v784_v13, 0.0 }
 0x135   :  { %869 = vst.msk [vmem:[%s1602_s3] sm:$0xf] %vm868_vm2, %v979_v11  ;;  %v980_v25 = vpack.c.bf16 %v803_v15, %v803_v15 }
 0x136   :  { %877 = vst.msk [vmem:[%s1602_s3 + $0x20] sm:$0xf] %vm868_vm2, %v987_v16  ;;  %v988_v27 = vpack.c.bf16 %v811_v17, %v811_v17  ;;  %v756_v18 = vpop.f32.mrb[32].mxu0 }
 0x137   :  { %870 = vst.msk [vmem:[%s1602_s3 + $0x4] sm:$0xf] %vm868_vm2, %v980_v25  ;;  %v757_v19 = vadd.f32 %v756_v18, %v1519_v41  ;;  %v788_v20 = vpop.f32.mrb[32].mxu1  ;;  %v1133_v21 = vpop.f32.mrb[33].mxu0 }
 0x138   :  { %878 = vst.msk [vmem:[%s1602_s3 + $0x24] sm:$0xf] %vm868_vm2, %v988_v27  ;;  %v789_v22 = vadd.f32 %v788_v20, %v701_v46  ;;  %v1149_v23 = vpop.f32.mrb[33].mxu1  ;;  %v759_v24 = vpop.f32.mrb[34].mxu0 }
 0x139   :  { %v804_v26 = vmax.f32 %v757_v19, 0.0  ;;  %v760_v28 = vadd.f32 %v759_v24, %v1521_v43  ;;  %v791_v29 = vpop.f32.mrb[34].mxu1  ;;  %v1134_v30 = vpop.f32.mrb[35].mxu0 }
 0x13a   :  { %v812_v31 = vmax.f32 %v789_v22, 0.0  ;;  %v792_v32 = vadd.f32 %v791_v29, %v704_v48  ;;  %v1150_v33 = vpop.f32.mrb[35].mxu1 }
 0x13b   :  { %v981_v34 = vpack.c.bf16 %v804_v26, %v804_v26  ;;  %v805_v41 = vmax.f32 %v760_v28, 0.0 }
 0x13c   :  { %v989_v35 = vpack.c.bf16 %v812_v31, %v812_v31  ;;  %v813_v36 = vmax.f32 %v792_v32, 0.0 }
 0x13d   :  { %871 = vst.msk [vmem:[%s1602_s3 + $0x8] sm:$0xf] %vm868_vm2, %v981_v34  ;;  %v982_v37 = vpack.c.bf16 %v805_v41, %v805_v41 }
 0x13e   :  { %879 = vst.msk [vmem:[%s1602_s3 + $0x28] sm:$0xf] %vm868_vm2, %v989_v35  ;;  %v990_v43 = vpack.c.bf16 %v813_v36, %v813_v36  ;;  %v764_v38 = vpop.f32.mrb[36].mxu0 }
 0x13f   :  { %872 = vst.msk [vmem:[%s1602_s3 + $0xc] sm:$0xf] %vm868_vm2, %v982_v37  ;;  %v765_v39 = vadd.f32 %v764_v38, %v1525_v57  ;;  %v796_v40 = vpop.f32.mrb[36].mxu1  ;;  %v1137_v42 = vpop.f32.mrb[37].mxu0 }
 0x140   :  { %880 = vst.msk [vmem:[%s1602_s3 + $0x2c] sm:$0xf] %vm868_vm2, %v990_v43  ;;  %v797_v44 = vadd.f32 %v796_v40, %v709_v61  ;;  %v767_v45 = vpop.f32.mrb[38].mxu0  ;;  %v1153_v46 = vpop.f32.mrb[37].mxu1 }
 0x141   :  { %v806_v47 = vmax.f32 %v765_v39, 0.0  ;;  %v768_v48 = vadd.f32 %v767_v45, %v1527_v59  ;;  %v1138_v49 = vpop.f32.mrb[39].mxu0  ;;  %v799_v50 = vpop.f32.mrb[38].mxu1 }
 0x142   :  { %v814_v51 = vmax.f32 %v797_v44, 0.0  ;;  %v1154_v52 = vpop.f32.mrb[39].mxu1 }
 0x143   :  { %v983_v53 = vpack.c.bf16 %v806_v47, %v806_v47  ;;  %v807_v57 = vmax.f32 %v768_v48, 0.0 }
 0x144   :  { %v991_v54 = vpack.c.bf16 %v814_v51, %v814_v51 }
 0x145   :  { %873 = vst.msk [vmem:[%s1602_s3 + $0x10] sm:$0xf] %vm868_vm2, %v983_v53  ;;  %v984_v55 = vpack.c.bf16 %v807_v57, %v807_v57 }
 0x146   :  { %882 = vst.msk [vmem:[%s1602_s3 + $0x30] sm:$0x1] %vm881_vm3, %v991_v54  ;;  %v772_v56 = vpop.f32.mrb[40].mxu0 }
 0x147   :  { %874 = vst.msk [vmem:[%s1602_s3 + $0x14] sm:$0xf] %vm868_vm2, %v984_v55  ;;  %v773_v59 = vadd.f32 %v772_v56, %v1531_v9  ;;  %v1141_v58 = vpop.f32.mrb[41].mxu0 }
 0x148   :  { %v775_v60 = vpop.f32.mrb[42].mxu0 }
 0x149   :  { %v808_v61 = vmax.f32 %v773_v59, 0.0  ;;  %v776_v62 = vadd.f32 %v775_v60, %v1533_v12  ;;  %v1142_v63 = vpop.f32.mrb[43].mxu0 }
 0x14b   :  { %v985_v0 = vpack.c.bf16 %v808_v61, %v808_v61  ;;  %v809_v1 = vmax.f32 %v776_v62, 0.0 }
 0x14d   :  { %875 = vst.msk [vmem:[%s1602_s3 + $0x18] sm:$0xf] %vm868_vm2, %v985_v0  ;;  %v986_v2 = vpack.c.bf16 %v809_v1, %v809_v1 }
 0x14f   :  { %876 = vst.msk [vmem:[%s1602_s3 + $0x1c] sm:$0xf] %vm868_vm2, %v986_v2 }

// kernel: dueling_cnn_forward.7
= control target key start
LH: loop header
LB: loop body
LE: loop exit
PB: predicated region body
PF: predicated region fallthrough
CT: control target
= control target key end

     0   :  { %10 = vsyncpa [#allocation4], 0  ;;  %s8462_s18 = smov 0   ;;  %s9904_s0 = inlined_call_operand.vmem [shape: bf16[2,3328], index: 0, kind: input, shape index: {}]   ;;  %s9905_s1 = inlined_call_operand.vmem [shape: bf16[3328,1024], index: 1, kind: input, shape index: {}]   ;;  %s9906_s2 = inlined_call_operand.vmem [shape: f32[1,1024], index: 2, kind: input, shape index: {}]   ;;  %s9907_s3 = inlined_call_operand.vmem [shape: f32[1024,7], index: 3, kind: input, shape index: {}]   ;;  %s9908_s4 = inlined_call_operand.vmem [shape: f32[1,7], index: 4, kind: input, shape index: {}]   ;;  %s9909_s5 = inlined_call_operand.hbm [shape: f32[2,6], index: 5, kind: output, shape index: {}]  }
   0x1 LB: > { %s8468_s19 = sadd.s32 4294967295, %s8423_s18   ;;  %p7155_p0 = scmp.ge.s32.totalorder %s8423_s18, 1  ;;  %s8423_s18 = sphi %s8462_s18, %s16_s18  }
   0x2   : > { %p195_p1 = scmp.lt.s32.totalorder %s8423_s18, 3 }
   0x4   : > { %p196_p2 = pnand %p7155_p0, %p195_p1 }
   0x5   : > { %s223_s20 = smul.u32 (!%p196_p2), 13, %s8468_s19  ;;  %p7158_p5 = scmp.ne.s32.totalorder (!%p196_p2), %s8468_s19, 0 }
   0x6   : > { %199 = sbr.rel (%p196_p2) target bundleno = 1746 (0x6d2), region = 40 }
   0x7   : > { %s228_s21 = smul.u32 (!%p196_p2), 208, %s8468_s19  ;;  %p224_p3 = scmp.lt.s32.totalorder (!%p196_p2), %s223_s20, 25 }
   0x9   : > { %p229_p4 = scmp.lt.s32.totalorder (!%p196_p2), %s228_s21, 415 }
   0xd   : > { %s9911_s20 = smov (!%p224_p3, %s223_s20), 25  ;;  %s9913_s21 = smov (!%p229_p4, %s228_s21), 415 }
   0xe   : > { %s8477_s24 = scalar_lea.vmem %s9904_s0, %s9911_s20  ;;  %s7997_s25 = sshll.u32 %s9913_s21, 5  ;;  %v8425_v0 = vmov (!%p7158_p5), 0.0  }
   0xf   : > { %s8482_s28 = scalar_lea.vmem %s9905_s1, %s7997_s25  ;;  %239 = sbr.rel (%p7158_p5) target bundleno = 22 (0x16), region = 44  ;;  %240 = vst [vmem:[#allocation2] sm:$0xff] (!%p7158_p5), %v8425_v0  ;;  %241 = vst [vmem:[#allocation2 + $0x8] sm:$0xff] (!%p7158_p5), %v8425_v0 }
  0x16 PF: > { %v246_v1 = vld [vmem:[%s8482_s28] sm:$0xff]  ;;  %v247_v3 = vld [vmem:[%s8482_s28 + $0x8] sm:$0xff]  ;;  %v8426_v33 = vmov 1966171168   ;;  %v1084_v35 = vlaneseq  ;;  %p7991_p6 = scmp.ne.s32.totalorder %s8468_s19, 1 }
  0x17   : > { %v250_v2 = vld [vmem:[%s8482_s28 + $0x20] sm:$0xff]  ;;  %v251_v5 = vld [vmem:[%s8482_s28 + $0x28] sm:$0xff]  ;;  %v1082_v34 = vunpack.c.l.s4 %v8426_v33  ;;  %s8430_s11 = smov (!%p7991_p6), 127   ;;  %vm7085_vm0 = vcmask (!%p7991_p6), 41984  }
  0x18   : > { %v7160_v4 = vcombine.high %v246_v1, %v250_v2  ;;  %v7159_v6 = vcombine.low %v246_v1, %v250_v2  ;;  %v254_v7 = vld [vmem:[%s8482_s28 + $0x40] sm:$0xff]  ;;  %v7162_v9 = vcombine.high %v247_v3, %v251_v5  ;;  %v7161_v10 = vcombine.low %v247_v3, %v251_v5  ;;  %v255_v12 = vld [vmem:[%s8482_s28 + $0x48] sm:$0xff] }
  0x19   : > { %v258_v8 = vld [vmem:[%s8482_s28 + $0x60] sm:$0xff]  ;;  %v259_v13 = vld [vmem:[%s8482_s28 + $0x68] sm:$0xff]  ;;  %v1083_v44 = vunpack.c.0.s8 %v1082_v34  ;;  %v8507_v45 = vshrl.u32 %v1084_v35, 7 }
  0x1a   : > { %v7168_v11 = vcombine.high %v254_v7, %v258_v8  ;;  %v262_v14 = vld [vmem:[%s8482_s28 + $0x80] sm:$0xff]  ;;  %5341 = vmatprep.subr.bf16.mxu0 %v7160_v4  ;;  %v7170_v15 = vcombine.high %v255_v12, %v259_v13  ;;  %v263_v17 = vld [vmem:[%s8482_s28 + $0x88] sm:$0xff]  ;;  %5628 = vmatprep.subr.bf16.mxu1 %v7162_v9  ;;  %v7167_v19 = vcombine.low %v254_v7, %v258_v8 }
  0x1b   : > { %v266_v16 = vld [vmem:[%s8482_s28 + $0xa0] sm:$0xff]  ;;  %v267_v18 = vld [vmem:[%s8482_s28 + $0xa8] sm:$0xff]  ;;  %5342 = vmatpush1.bf16.msra.mxu0 %v7159_v6  ;;  %5629 = vmatpush1.bf16.msra.mxu1 %v7161_v10  ;;  %v7169_v20 = vcombine.low %v255_v12, %v259_v13  ;;  %v8514_v54 = vsub.s32 %v1083_v44, %v8507_v45 }
  0x1c   : > { %5343 = vmatprep.subr.bf16.mxu0 %v7168_v11  ;;  %v7176_v21 = vcombine.high %v262_v14, %v266_v16  ;;  %5630 = vmatprep.subr.bf16.mxu1 %v7170_v15  ;;  %v7178_v22 = vcombine.high %v263_v17, %v267_v18  ;;  %v270_v23 = vld [vmem:[%s8482_s28 + $0xc0] sm:$0xff]  ;;  %v271_v25 = vld [vmem:[%s8482_s28 + $0xc8] sm:$0xff]  ;;  %v7175_v27 = vcombine.low %v262_v14, %v266_v16 }
  0x1d   : > { %v274_v24 = vld [vmem:[%s8482_s28 + $0xe0] sm:$0xff]  ;;  %v275_v26 = vld [vmem:[%s8482_s28 + $0xe8] sm:$0xff]  ;;  %v7177_v28 = vcombine.low %v263_v17, %v267_v18 }
  0x1e   : > { %v7184_v29 = vcombine.high %v270_v23, %v274_v24  ;;  %v7186_v30 = vcombine.high %v271_v25, %v275_v26  ;;  %v278_v31 = vld [vmem:[%s8482_s28 + $0x100] sm:$0xff]  ;;  %v279_v36 = vld [vmem:[%s8482_s28 + $0x108] sm:$0xff]  ;;  %v7183_v38 = vcombine.low %v270_v23, %v274_v24  ;;  %v7185_v39 = vcombine.low %v271_v25, %v275_v26 }
  0x1f   : > { %5344 = vmatpush1.bf16.msra.mxu0 %v7167_v19  ;;  %5631 = vmatpush1.bf16.msra.mxu1 %v7169_v20  ;;  %v282_v32 = vld [vmem:[%s8482_s28 + $0x120] sm:$0xff]  ;;  %v283_v37 = vld [vmem:[%s8482_s28 + $0x128] sm:$0xff] }
  0x20   : > { %5345 = vmatprep.subr.bf16.mxu0 %v7176_v21  ;;  %5632 = vmatprep.subr.bf16.mxu1 %v7178_v22  ;;  %v7192_v40 = vcombine.high %v278_v31, %v282_v32  ;;  %v7194_v41 = vcombine.high %v279_v36, %v283_v37  ;;  %v286_v42 = vld [vmem:[%s8482_s28 + $0x140] sm:$0xff]  ;;  %v287_v46 = vld [vmem:[%s8482_s28 + $0x148] sm:$0xff]  ;;  %v7191_v48 = vcombine.low %v278_v31, %v282_v32 }
  0x21   : > { %v290_v43 = vld [vmem:[%s8482_s28 + $0x160] sm:$0xff]  ;;  %v291_v47 = vld [vmem:[%s8482_s28 + $0x168] sm:$0xff]  ;;  %v7193_v49 = vcombine.low %v279_v36, %v283_v37 }
  0x22   : > { %v7200_v50 = vcombine.high %v286_v42, %v290_v43  ;;  %v7202_v51 = vcombine.high %v287_v46, %v291_v47  ;;  %v294_v52 = vld [vmem:[%s8482_s28 + $0x180] sm:$0xff]  ;;  %v295_v55 = vld [vmem:[%s8482_s28 + $0x188] sm:$0xff]  ;;  %v7199_v57 = vcombine.low %v286_v42, %v290_v43  ;;  %v7201_v58 = vcombine.low %v287_v46, %v291_v47 }
  0x23   : > { %5346 = vmatpush1.bf16.msra.mxu0 %v7175_v27  ;;  %5633 = vmatpush1.bf16.msra.mxu1 %v7177_v28  ;;  %v298_v53 = vld [vmem:[%s8482_s28 + $0x1a0] sm:$0xff]  ;;  %v299_v56 = vld [vmem:[%s8482_s28 + $0x1a8] sm:$0xff] }
  0x24   : > { %5347 = vmatprep.subr.bf16.mxu0 %v7184_v29  ;;  %5634 = vmatprep.subr.bf16.mxu1 %v7186_v30  ;;  %v7208_v59 = vcombine.high %v294_v52, %v298_v53  ;;  %v8519_v60 = vld [vmem:[%s8477_s24] sm:$0xff]  ;;  %v7210_v61 = vcombine.high %v295_v55, %v299_v56  ;;  %v303_v1 = vld [vmem:[%s8482_s28 + $0x1c8] sm:$0xff]  ;;  %v7207_v3 = vcombine.low %v294_v52, %v298_v53 }
  0x25   : > { %v302_v62 = vld [vmem:[%s8482_s28 + $0x1c0] sm:$0xff]  ;;  %v8525_v0 = vrot.slane %v8519_v60, %v8514_v54  ;;  %v307_v2 = vld [vmem:[%s8482_s28 + $0x1e8] sm:$0xff]  ;;  %v7209_v5 = vcombine.low %v295_v55, %v299_v56 }
  0x26   : > { %v306_v63 = vld [vmem:[%s8482_s28 + $0x1e0] sm:$0xff]  ;;  %v7218_v7 = vcombine.high %v303_v1, %v307_v2  ;;  %v311_v11 = vld [vmem:[%s8482_s28 + $0x208] sm:$0xff]  ;;  %v7217_v14 = vcombine.low %v303_v1, %v307_v2 }
  0x27   : > { %5348 = vmatpush1.bf16.msra.mxu0 %v7183_v38  ;;  %5635 = vmatpush1.bf16.msra.mxu1 %v7185_v39  ;;  %v1095_v4 = vcombine.high %v8525_v0, %v8525_v0  ;;  %v7216_v6 = vcombine.high %v302_v62, %v306_v63  ;;  %v310_v8 = vld [vmem:[%s8482_s28 + $0x200] sm:$0xff]  ;;  %v315_v12 = vld [vmem:[%s8482_s28 + $0x228] sm:$0xff]  ;;  %v7215_v13 = vcombine.low %v302_v62, %v306_v63 }
  0x28   : > { %5349 = vmatprep.subr.bf16.mxu0 %v7192_v40  ;;  %5636 = vmatprep.subr.bf16.mxu1 %v7194_v41  ;;  %v314_v9 = vld [vmem:[%s8482_s28 + $0x220] sm:$0xff]  ;;  %v7226_v16 = vcombine.high %v311_v11, %v315_v12  ;;  %v319_v19 = vld [vmem:[%s8482_s28 + $0x248] sm:$0xff]  ;;  %v7225_v22 = vcombine.low %v311_v11, %v315_v12 }
  0x29   : > { %v8534_v10 = vrot.slane %v1095_v4, %v8514_v54  ;;  %v7224_v15 = vcombine.high %v310_v8, %v314_v9  ;;  %v318_v17 = vld [vmem:[%s8482_s28 + $0x240] sm:$0xff]  ;;  %v323_v20 = vld [vmem:[%s8482_s28 + $0x268] sm:$0xff]  ;;  %v7223_v21 = vcombine.low %v310_v8, %v314_v9 }
  0x2a   : > { %v322_v18 = vld [vmem:[%s8482_s28 + $0x260] sm:$0xff]  ;;  %v7234_v24 = vcombine.high %v319_v19, %v323_v20  ;;  %v327_v27 = vld [vmem:[%s8482_s28 + $0x288] sm:$0xff]  ;;  %v7233_v30 = vcombine.low %v319_v19, %v323_v20 }
  0x2b   : > { %5350 = vmatpush1.bf16.msra.mxu0 %v7191_v48  ;;  %5637 = vmatpush1.bf16.msra.mxu1 %v7193_v49  ;;  %v7232_v23 = vcombine.high %v318_v17, %v322_v18  ;;  %v326_v25 = vld [vmem:[%s8482_s28 + $0x280] sm:$0xff]  ;;  %v331_v28 = vld [vmem:[%s8482_s28 + $0x2a8] sm:$0xff]  ;;  %v7231_v29 = vcombine.low %v318_v17, %v322_v18 }
  0x2c   : > { %5351 = vmatprep.subr.bf16.mxu0 %v7200_v50  ;;  %5638 = vmatprep.subr.bf16.mxu1 %v7202_v51  ;;  %v330_v26 = vld [vmem:[%s8482_s28 + $0x2a0] sm:$0xff]  ;;  %v7242_v32 = vcombine.high %v327_v27, %v331_v28  ;;  %v335_v35 = vld [vmem:[%s8482_s28 + $0x2c8] sm:$0xff]  ;;  %v7241_v38 = vcombine.low %v327_v27, %v331_v28 }
  0x2d   : > { %5373 = vmatprep.mubr.bf16.mxu0 %v8534_v10  ;;  %5660 = vmatprep.mubr.bf16.mxu1 %v8534_v10  ;;  %v7240_v31 = vcombine.high %v326_v25, %v330_v26  ;;  %v334_v33 = vld [vmem:[%s8482_s28 + $0x2c0] sm:$0xff]  ;;  %v339_v36 = vld [vmem:[%s8482_s28 + $0x2e8] sm:$0xff]  ;;  %v7239_v37 = vcombine.low %v326_v25, %v330_v26 }
  0x2e   : > { %v338_v34 = vld [vmem:[%s8482_s28 + $0x2e0] sm:$0xff]  ;;  %v7250_v40 = vcombine.high %v335_v35, %v339_v36  ;;  %v343_v43 = vld [vmem:[%s8482_s28 + $0x308] sm:$0xff]  ;;  %v7249_v47 = vcombine.low %v335_v35, %v339_v36 }
  0x2f   : > { %5352 = vmatpush1.bf16.msra.mxu0 %v7199_v57  ;;  %5639 = vmatpush1.bf16.msra.mxu1 %v7201_v58  ;;  %v7248_v39 = vcombine.high %v334_v33, %v338_v34  ;;  %v342_v41 = vld [vmem:[%s8482_s28 + $0x300] sm:$0xff]  ;;  %v347_v44 = vld [vmem:[%s8482_s28 + $0x328] sm:$0xff]  ;;  %v7247_v46 = vcombine.low %v334_v33, %v338_v34  ;;  %v8584_v33 = vcombine.high %v8534_v10, %v8534_v10 }
  0x30   : > { %5353 = vmatprep.subr.bf16.mxu0 %v7208_v59  ;;  %5640 = vmatprep.subr.bf16.mxu1 %v7210_v61  ;;  %v346_v42 = vld [vmem:[%s8482_s28 + $0x320] sm:$0xff]  ;;  %v7258_v49 = vcombine.high %v343_v43, %v347_v44  ;;  %v351_v52 = vld [vmem:[%s8482_s28 + $0x348] sm:$0xff]  ;;  %v7257_v56 = vcombine.low %v343_v43, %v347_v44 }
  0x31   : > { %v7256_v48 = vcombine.high %v342_v41, %v346_v42  ;;  %v350_v50 = vld [vmem:[%s8482_s28 + $0x340] sm:$0xff]  ;;  %v355_v53 = vld [vmem:[%s8482_s28 + $0x368] sm:$0xff]  ;;  %v7255_v55 = vcombine.low %v342_v41, %v346_v42 }
  0x32   : > { %v354_v51 = vld [vmem:[%s8482_s28 + $0x360] sm:$0xff]  ;;  %v7266_v58 = vcombine.high %v351_v52, %v355_v53  ;;  %v359_v62 = vld [vmem:[%s8482_s28 + $0x388] sm:$0xff]  ;;  %v7265_v2 = vcombine.low %v351_v52, %v355_v53 }
  0x33   : > { %5354 = vmatpush1.bf16.msra.mxu0 %v7207_v3  ;;  %5641 = vmatpush1.bf16.msra.mxu1 %v7209_v5  ;;  %v7264_v57 = vcombine.high %v350_v50, %v354_v51  ;;  %v358_v59 = vld [vmem:[%s8482_s28 + $0x380] sm:$0xff]  ;;  %v363_v63 = vld [vmem:[%s8482_s28 + $0x3a8] sm:$0xff]  ;;  %v7263_v1 = vcombine.low %v350_v50, %v354_v51 }
  0x34   : > { %5355 = vmatprep.subr.bf16.mxu0 %v7216_v6  ;;  %5642 = vmatprep.subr.bf16.mxu1 %v7218_v7  ;;  %v362_v61 = vld [vmem:[%s8482_s28 + $0x3a0] sm:$0xff]  ;;  %v7274_v4 = vcombine.high %v359_v62, %v363_v63  ;;  %v367_v7 = vld [vmem:[%s8482_s28 + $0x3c8] sm:$0xff]  ;;  %v7273_v11 = vcombine.low %v359_v62, %v363_v63 }
  0x35   : > { %v7272_v3 = vcombine.high %v358_v59, %v362_v61  ;;  %v366_v5 = vld [vmem:[%s8482_s28 + $0x3c0] sm:$0xff]  ;;  %v371_v8 = vld [vmem:[%s8482_s28 + $0x3e8] sm:$0xff]  ;;  %v7271_v9 = vcombine.low %v358_v59, %v362_v61 }
  0x36   : > { %v370_v6 = vld [vmem:[%s8482_s28 + $0x3e0] sm:$0xff]  ;;  %v379_v17 = vld [vmem:[%s8482_s28 + $0x428] sm:$0xff]  ;;  %v7281_v19 = vcombine.low %v367_v7, %v371_v8 }
  0x37   : > { %5356 = vmatpush1.bf16.msra.mxu0 %v7215_v13  ;;  %5643 = vmatpush1.bf16.msra.mxu1 %v7217_v14  ;;  %v7280_v12 = vcombine.high %v366_v5, %v370_v6  ;;  %v7282_v13 = vcombine.high %v367_v7, %v371_v8  ;;  %v374_v14 = vld [vmem:[%s8482_s28 + $0x400] sm:$0xff]  ;;  %v7279_v18 = vcombine.low %v366_v5, %v370_v6  ;;  %v383_v25 = vld [vmem:[%s8482_s28 + $0x448] sm:$0xff] }
  0x38   : > { %5357 = vmatprep.subr.bf16.mxu0 %v7224_v15  ;;  %5644 = vmatprep.subr.bf16.mxu1 %v7226_v16  ;;  %v378_v15 = vld [vmem:[%s8482_s28 + $0x420] sm:$0xff]  ;;  %v375_v16 = vld [vmem:[%s8482_s28 + $0x408] sm:$0xff] }
  0x39   : > { %v7288_v20 = vcombine.high %v374_v14, %v378_v15  ;;  %v387_v26 = vld [vmem:[%s8482_s28 + $0x468] sm:$0xff]  ;;  %v7287_v27 = vcombine.low %v374_v14, %v378_v15  ;;  %v7289_v28 = vcombine.low %v375_v16, %v379_v17 }
  0x3a   : > { %v395_v34 = vld [vmem:[%s8482_s28 + $0x4a8] sm:$0xff]  ;;  %v7297_v36 = vcombine.low %v383_v25, %v387_v26 }
  0x3b   : > { %5358 = vmatpush1.bf16.msra.mxu0 %v7223_v21  ;;  %5645 = vmatpush1.bf16.msra.mxu1 %v7225_v22  ;;  %v7290_v21 = vcombine.high %v375_v16, %v379_v17  ;;  %v382_v22 = vld [vmem:[%s8482_s28 + $0x440] sm:$0xff]  ;;  %v399_v41 = vld [vmem:[%s8482_s28 + $0x4c8] sm:$0xff] }
  0x3c   : > { %5359 = vmatprep.subr.bf16.mxu0 %v7232_v23  ;;  %5646 = vmatprep.subr.bf16.mxu1 %v7234_v24  ;;  %v386_v23 = vld [vmem:[%s8482_s28 + $0x460] sm:$0xff]  ;;  %v8576_v24 = vrot.slane %v8525_v0, %v8514_v54  ;;  %v391_v0 = vld [vmem:[%s8482_s28 + $0x488] sm:$0xff] }
  0x3d   : > { %v7295_v35 = vcombine.low %v382_v22, %v386_v23  ;;  %v403_v42 = vld [vmem:[%s8482_s28 + $0x4e8] sm:$0xff]  ;;  %v7305_v44 = vcombine.low %v391_v0, %v395_v34 }
  0x3e   : > { %v407_v50 = vld [vmem:[%s8482_s28 + $0x508] sm:$0xff]  ;;  %v7313_v53 = vcombine.low %v399_v41, %v403_v42 }
  0x3f   : > { %5360 = vmatpush1.bf16.msra.mxu0 %v7231_v29  ;;  %5647 = vmatpush1.bf16.msra.mxu1 %v7233_v30  ;;  %v7296_v29 = vcombine.high %v382_v22, %v386_v23  ;;  %v7298_v30 = vcombine.high %v383_v25, %v387_v26  ;;  %v411_v51 = vld [vmem:[%s8482_s28 + $0x528] sm:$0xff] }
  0x40   : > { %5361 = vmatprep.subr.bf16.mxu0 %v7240_v31  ;;  %5648 = vmatprep.subr.bf16.mxu1 %v7242_v32  ;;  %v390_v31 = vld [vmem:[%s8482_s28 + $0x480] sm:$0xff]  ;;  %v415_v59 = vld [vmem:[%s8482_s28 + $0x548] sm:$0xff]  ;;  %v7321_v63 = vcombine.low %v407_v50, %v411_v51 }
  0x41   : > { %v394_v32 = vld [vmem:[%s8482_s28 + $0x4a0] sm:$0xff]  ;;  %v419_v61 = vld [vmem:[%s8482_s28 + $0x568] sm:$0xff] }
  0x42   : > { %v7303_v43 = vcombine.low %v390_v31, %v394_v32  ;;  %v423_v5 = vld [vmem:[%s8482_s28 + $0x588] sm:$0xff]  ;;  %v7329_v8 = vcombine.low %v415_v59, %v419_v61 }
  0x43   : > { %5362 = vmatpush1.bf16.msra.mxu0 %v7239_v37  ;;  %5649 = vmatpush1.bf16.msra.mxu1 %v7241_v38  ;;  %v7304_v37 = vcombine.high %v390_v31, %v394_v32  ;;  %v7306_v38 = vcombine.high %v391_v0, %v395_v34  ;;  %v427_v6 = vld [vmem:[%s8482_s28 + $0x5a8] sm:$0xff] }
  0x44   : > { %5363 = vmatprep.subr.bf16.mxu0 %v7248_v39  ;;  %5650 = vmatprep.subr.bf16.mxu1 %v7250_v40  ;;  %v398_v39 = vld [vmem:[%s8482_s28 + $0x4c0] sm:$0xff]  ;;  %v431_v14 = vld [vmem:[%s8482_s28 + $0x5c8] sm:$0xff]  ;;  %v7337_v17 = vcombine.low %v423_v5, %v427_v6 }
  0x45   : > { %v402_v40 = vld [vmem:[%s8482_s28 + $0x4e0] sm:$0xff]  ;;  %v435_v15 = vld [vmem:[%s8482_s28 + $0x5e8] sm:$0xff] }
  0x46   : > { %v7311_v52 = vcombine.low %v398_v39, %v402_v40  ;;  %v439_v22 = vld [vmem:[%s8482_s28 + $0x608] sm:$0xff]  ;;  %v7345_v26 = vcombine.low %v431_v14, %v435_v15 }
  0x47   : > { %5364 = vmatpush1.bf16.msra.mxu0 %v7247_v46  ;;  %5651 = vmatpush1.bf16.msra.mxu1 %v7249_v47  ;;  %v7312_v46 = vcombine.high %v398_v39, %v402_v40  ;;  %v7314_v47 = vcombine.high %v399_v41, %v403_v42  ;;  %v443_v23 = vld [vmem:[%s8482_s28 + $0x628] sm:$0xff] }
  0x48   : > { %5365 = vmatprep.subr.bf16.mxu0 %v7256_v48  ;;  %5652 = vmatprep.subr.bf16.mxu1 %v7258_v49  ;;  %v406_v48 = vld [vmem:[%s8482_s28 + $0x500] sm:$0xff]  ;;  %v447_v31 = vld [vmem:[%s8482_s28 + $0x648] sm:$0xff]  ;;  %v7353_v34 = vcombine.low %v439_v22, %v443_v23 }
  0x49   : > { %v410_v49 = vld [vmem:[%s8482_s28 + $0x520] sm:$0xff]  ;;  %v451_v32 = vld [vmem:[%s8482_s28 + $0x668] sm:$0xff] }
  0x4a   : > { %v7319_v62 = vcombine.low %v406_v48, %v410_v49  ;;  %v455_v39 = vld [vmem:[%s8482_s28 + $0x688] sm:$0xff]  ;;  %v7361_v42 = vcombine.low %v447_v31, %v451_v32 }
  0x4b   : > { %5366 = vmatpush1.bf16.msra.mxu0 %v7255_v55  ;;  %5653 = vmatpush1.bf16.msra.mxu1 %v7257_v56  ;;  %v7320_v55 = vcombine.high %v406_v48, %v410_v49  ;;  %v7322_v56 = vcombine.high %v407_v50, %v411_v51  ;;  %v459_v40 = vld [vmem:[%s8482_s28 + $0x6a8] sm:$0xff] }
  0x4c   : > { %5367 = vmatprep.subr.bf16.mxu0 %v7264_v57  ;;  %5654 = vmatprep.subr.bf16.mxu1 %v7266_v58  ;;  %v414_v57 = vld [vmem:[%s8482_s28 + $0x540] sm:$0xff]  ;;  %v463_v48 = vld [vmem:[%s8482_s28 + $0x6c8] sm:$0xff]  ;;  %v7369_v51 = vcombine.low %v455_v39, %v459_v40 }
  0x4d   : > { %v418_v58 = vld [vmem:[%s8482_s28 + $0x560] sm:$0xff]  ;;  %v467_v49 = vld [vmem:[%s8482_s28 + $0x6e8] sm:$0xff] }
  0x4e   : > { %v7327_v7 = vcombine.low %v414_v57, %v418_v58 }
  0x4f   : > { %5368 = vmatpush1.bf16.msra.mxu0 %v7263_v1  ;;  %5655 = vmatpush1.bf16.msra.mxu1 %v7265_v2  ;;  %v7328_v1 = vcombine.high %v414_v57, %v418_v58  ;;  %v7330_v2 = vcombine.high %v415_v59, %v419_v61  ;;  %v471_v57 = vld [vmem:[%s8482_s28 + $0x708] sm:$0xff]  ;;  %v7377_v61 = vcombine.low %v463_v48, %v467_v49 }
  0x50   : > { %5369 = vmatprep.subr.bf16.mxu0 %v7272_v3  ;;  %5656 = vmatprep.subr.bf16.mxu1 %v7274_v4  ;;  %v422_v3 = vld [vmem:[%s8482_s28 + $0x580] sm:$0xff]  ;;  %v475_v58 = vld [vmem:[%s8482_s28 + $0x728] sm:$0xff] }
  0x51   : > { %v426_v4 = vld [vmem:[%s8482_s28 + $0x5a0] sm:$0xff] }
  0x52   : > { %v7335_v16 = vcombine.low %v422_v3, %v426_v4 }
  0x53   : > { %5370 = vmatpush1.bf16.msra.mxu0 %v7271_v9  ;;  %5657 = vmatpush1.bf16.msra.mxu1 %v7273_v11  ;;  %v7336_v9 = vcombine.high %v422_v3, %v426_v4  ;;  %v7338_v11 = vcombine.high %v423_v5, %v427_v6  ;;  %v479_v3 = vld [vmem:[%s8482_s28 + $0x748] sm:$0xff]  ;;  %v7385_v6 = vcombine.low %v471_v57, %v475_v58 }
  0x54   : > { %5371 = vmatprep.subr.bf16.mxu0 %v7280_v12  ;;  %5658 = vmatprep.subr.bf16.mxu1 %v7282_v13  ;;  %v430_v12 = vld [vmem:[%s8482_s28 + $0x5c0] sm:$0xff]  ;;  %v483_v4 = vld [vmem:[%s8482_s28 + $0x768] sm:$0xff] }
  0x55   : > { %v434_v13 = vld [vmem:[%s8482_s28 + $0x5e0] sm:$0xff] }
  0x56   : > { %v7343_v25 = vcombine.low %v430_v12, %v434_v13 }
  0x57   : > { %5372 = vmatpush1.bf16.msra.mxu0 %v7279_v18  ;;  %5659 = vmatpush1.bf16.msra.mxu1 %v7281_v19  ;;  %v7344_v18 = vcombine.high %v430_v12, %v434_v13  ;;  %v7346_v19 = vcombine.high %v431_v14, %v435_v15  ;;  %v487_v12 = vld [vmem:[%s8482_s28 + $0x788] sm:$0xff]  ;;  %v7393_v15 = vcombine.low %v479_v3, %v483_v4 }
  0x58   : > { %5382 = vmatprep.subr.bf16.mxu0 %v7288_v20  ;;  %5669 = vmatprep.subr.bf16.mxu1 %v7290_v21  ;;  %v438_v20 = vld [vmem:[%s8482_s28 + $0x600] sm:$0xff]  ;;  %v491_v13 = vld [vmem:[%s8482_s28 + $0x7a8] sm:$0xff] }
  0x59   : > { %v442_v21 = vld [vmem:[%s8482_s28 + $0x620] sm:$0xff] }
  0x5a   : > { %5374 = vmatmul.mubr.bf16.vlgmr.msra.gmra.mrb[0].mxu0 %v8576_v24  ;;  %5661 = vmatmul.mubr.bf16.vlgmr.msra.gmra.mrb[0].mxu1 %v8576_v24  ;;  %v7351_v0 = vcombine.low %v438_v20, %v442_v21 }
  0x5b   : > { %5383 = vmatpush1.bf16.msra.mxu0 %v7287_v27  ;;  %5670 = vmatpush1.bf16.msra.mxu1 %v7289_v28  ;;  %v7352_v27 = vcombine.high %v438_v20, %v442_v21  ;;  %v7354_v28 = vcombine.high %v439_v22, %v443_v23  ;;  %v1080_v20 = vcombine.high %v8519_v60, %v8519_v60  ;;  %v495_v21 = vld [vmem:[%s8482_s28 + $0x7c8] sm:$0xff] }
  0x5c   : > { %5384 = vmatprep.subr.bf16.mxu0 %v7296_v29  ;;  %5671 = vmatprep.subr.bf16.mxu1 %v7298_v30  ;;  %v446_v29 = vld [vmem:[%s8482_s28 + $0x640] sm:$0xff]  ;;  %v499_v22 = vld [vmem:[%s8482_s28 + $0x7e8] sm:$0xff] }
  0x5d   : > { %5414 = vmatprep.mubr.bf16.mxu0 %v8584_v33  ;;  %5701 = vmatprep.mubr.bf16.mxu1 %v8584_v33  ;;  %v450_v30 = vld [vmem:[%s8482_s28 + $0x660] sm:$0xff]  ;;  %v503_v60 = vld [vmem:[%s8482_s28 + $0x808] sm:$0xff] }
  0x5e   : > { %v7359_v41 = vcombine.low %v446_v29, %v450_v30 }
  0x5f   : > { %5385 = vmatpush1.bf16.msra.mxu0 %v7295_v35  ;;  %5672 = vmatpush1.bf16.msra.mxu1 %v7297_v36  ;;  %v7360_v35 = vcombine.high %v446_v29, %v450_v30  ;;  %v7362_v36 = vcombine.high %v447_v31, %v451_v32  ;;  %v506_v29 = vld [vmem:[%s8482_s28 + $0x820] sm:$0xff]  ;;  %v8649_v30 = vrot.slane %v1080_v20, %v8514_v54  ;;  %v507_v31 = vld [vmem:[%s8482_s28 + $0x828] sm:$0xff] }
  0x60   : > { %5386 = vmatprep.subr.bf16.mxu0 %v7304_v37  ;;  %5673 = vmatprep.subr.bf16.mxu1 %v7306_v38  ;;  %v454_v37 = vld [vmem:[%s8482_s28 + $0x680] sm:$0xff] }
  0x61   : > { %v458_v38 = vld [vmem:[%s8482_s28 + $0x6a0] sm:$0xff] }
  0x62   : > { %v7367_v50 = vcombine.low %v454_v37, %v458_v38  ;;  %v550_v20 = vld [vmem:[%s8482_s28 + $0x980] sm:$0xff] }
  0x63   : > { %5387 = vmatpush1.bf16.msra.mxu0 %v7303_v43  ;;  %5674 = vmatpush1.bf16.msra.mxu1 %v7305_v44  ;;  %v7368_v43 = vcombine.high %v454_v37, %v458_v38  ;;  %v7370_v44 = vcombine.high %v455_v39, %v459_v40  ;;  %v514_v37 = vld [vmem:[%s8482_s28 + $0x860] sm:$0xff]  ;;  %v1096_v38 = vcombine.high %v8649_v30, %v8649_v30  ;;  %v511_v40 = vld [vmem:[%s8482_s28 + $0x848] sm:$0xff] }
  0x64   : > { %5388 = vmatprep.subr.bf16.mxu0 %v7312_v46  ;;  %5675 = vmatprep.subr.bf16.mxu1 %v7314_v47  ;;  %v462_v46 = vld [vmem:[%s8482_s28 + $0x6c0] sm:$0xff]  ;;  %v8659_v39 = vcombine.high %v8576_v24, %v8576_v24 }
  0x65   : > { %v466_v47 = vld [vmem:[%s8482_s28 + $0x6e0] sm:$0xff] }
  0x66   : > { %v7375_v59 = vcombine.low %v462_v46, %v466_v47 }
  0x67   : > { %5389 = vmatpush1.bf16.msra.mxu0 %v7311_v52  ;;  %5676 = vmatpush1.bf16.msra.mxu1 %v7313_v53  ;;  %v7376_v52 = vcombine.high %v462_v46, %v466_v47  ;;  %v7378_v53 = vcombine.high %v463_v48, %v467_v49  ;;  %v518_v47 = vld [vmem:[%s8482_s28 + $0x880] sm:$0xff]  ;;  %v8666_v49 = vrot.slane %v1096_v38, %v8514_v54 }
  0x68   : > { %5390 = vmatprep.subr.bf16.mxu0 %v7320_v55  ;;  %5677 = vmatprep.subr.bf16.mxu1 %v7322_v56  ;;  %v470_v55 = vld [vmem:[%s8482_s28 + $0x700] sm:$0xff] }
  0x69   : > { %v474_v56 = vld [vmem:[%s8482_s28 + $0x720] sm:$0xff] }
  0x6a   : > { %v7383_v5 = vcombine.low %v470_v55, %v474_v56  ;;  %v522_v48 = vld [vmem:[%s8482_s28 + $0x8a0] sm:$0xff] }
  0x6b   : > { %5391 = vmatpush1.bf16.msra.mxu0 %v7319_v62  ;;  %5678 = vmatpush1.bf16.msra.mxu1 %v7321_v63  ;;  %v7384_v62 = vcombine.high %v470_v55, %v474_v56  ;;  %v7386_v63 = vcombine.high %v471_v57, %v475_v58  ;;  %v7432_v55 = vcombine.high %v518_v47, %v522_v48  ;;  %v526_v57 = vld [vmem:[%s8482_s28 + $0x8c0] sm:$0xff] }
  0x6c   : > { %5392 = vmatprep.subr.bf16.mxu0 %v7328_v1  ;;  %5679 = vmatprep.subr.bf16.mxu1 %v7330_v2  ;;  %v478_v1 = vld [vmem:[%s8482_s28 + $0x740] sm:$0xff] }
  0x6d   : > { %v482_v2 = vld [vmem:[%s8482_s28 + $0x760] sm:$0xff] }
  0x6e   : > { %v7391_v14 = vcombine.low %v478_v1, %v482_v2  ;;  %v530_v58 = vld [vmem:[%s8482_s28 + $0x8e0] sm:$0xff] }
  0x6f   : > { %5393 = vmatpush1.bf16.msra.mxu0 %v7327_v7  ;;  %5680 = vmatpush1.bf16.msra.mxu1 %v7329_v8  ;;  %v7392_v7 = vcombine.high %v478_v1, %v482_v2  ;;  %v7394_v8 = vcombine.high %v479_v3, %v483_v4  ;;  %v7440_v1 = vcombine.high %v526_v57, %v530_v58  ;;  %v534_v3 = vld [vmem:[%s8482_s28 + $0x900] sm:$0xff] }
  0x70   : > { %5394 = vmatprep.subr.bf16.mxu0 %v7336_v9  ;;  %5681 = vmatprep.subr.bf16.mxu1 %v7338_v11  ;;  %v486_v9 = vld [vmem:[%s8482_s28 + $0x780] sm:$0xff] }
  0x71   : > { %v490_v11 = vld [vmem:[%s8482_s28 + $0x7a0] sm:$0xff] }
  0x72   : > { %v7399_v23 = vcombine.low %v486_v9, %v490_v11  ;;  %v538_v4 = vld [vmem:[%s8482_s28 + $0x920] sm:$0xff] }
  0x73   : > { %5395 = vmatpush1.bf16.msra.mxu0 %v7335_v16  ;;  %5682 = vmatpush1.bf16.msra.mxu1 %v7337_v17  ;;  %v7400_v16 = vcombine.high %v486_v9, %v490_v11  ;;  %v7402_v17 = vcombine.high %v487_v12, %v491_v13  ;;  %v7448_v9 = vcombine.high %v534_v3, %v538_v4  ;;  %v570_v38 = vld [vmem:[%s8482_s28 + $0xa20] sm:$0xff] }
  0x74   : > { %5396 = vmatprep.subr.bf16.mxu0 %v7344_v18  ;;  %5683 = vmatprep.subr.bf16.mxu1 %v7346_v19  ;;  %v494_v18 = vld [vmem:[%s8482_s28 + $0x7c0] sm:$0xff] }
  0x75   : > { %v498_v19 = vld [vmem:[%s8482_s28 + $0x7e0] sm:$0xff] }
  0x76   : > { %v7407_v32 = vcombine.low %v494_v18, %v498_v19 }
  0x77   : > { %5397 = vmatpush1.bf16.msra.mxu0 %v7343_v25  ;;  %5684 = vmatpush1.bf16.msra.mxu1 %v7345_v26  ;;  %v7401_v25 = vcombine.low %v487_v12, %v491_v13  ;;  %v7408_v26 = vcombine.high %v494_v18, %v498_v19  ;;  %v542_v12 = vld [vmem:[%s8482_s28 + $0x940] sm:$0xff] }
  0x78   : > { %5398 = vmatprep.subr.bf16.mxu0 %v7352_v27  ;;  %5685 = vmatprep.subr.bf16.mxu1 %v7354_v28  ;;  %v7410_v27 = vcombine.high %v495_v21, %v499_v22  ;;  %v502_v28 = vld [vmem:[%s8482_s28 + $0x800] sm:$0xff] }
  0x79   : > { %v546_v13 = vld [vmem:[%s8482_s28 + $0x960] sm:$0xff] }
  0x7a   : > { %v7456_v18 = vcombine.high %v542_v12, %v546_v13 }
  0x7b   : > { %5399 = vmatpush1.bf16.msra.mxu0 %v7351_v0  ;;  %5686 = vmatpush1.bf16.msra.mxu1 %v7353_v34  ;;  %v7409_v0 = vcombine.low %v495_v21, %v499_v22  ;;  %v7416_v34 = vcombine.high %v502_v28, %v506_v29  ;;  %v554_v21 = vld [vmem:[%s8482_s28 + $0x9a0] sm:$0xff]  ;;  %v551_v22 = vld [vmem:[%s8482_s28 + $0x988] sm:$0xff] }
  0x7c   : > { %5400 = vmatprep.subr.bf16.mxu0 %v7360_v35  ;;  %5687 = vmatprep.subr.bf16.mxu1 %v7362_v36  ;;  %v7418_v35 = vcombine.high %v503_v60, %v507_v31  ;;  %v510_v36 = vld [vmem:[%s8482_s28 + $0x840] sm:$0xff] }
  0x7f   : > { %5401 = vmatpush1.bf16.msra.mxu0 %v7359_v41  ;;  %5688 = vmatpush1.bf16.msra.mxu1 %v7361_v42  ;;  %v515_v41 = vld [vmem:[%s8482_s28 + $0x868] sm:$0xff]  ;;  %v7415_v42 = vcombine.low %v502_v28, %v506_v29  ;;  %v558_v29 = vld [vmem:[%s8482_s28 + $0x9c0] sm:$0xff] }
  0x80   : > { %5402 = vmatprep.subr.bf16.mxu0 %v7368_v43  ;;  %5689 = vmatprep.subr.bf16.mxu1 %v7370_v44  ;;  %v7417_v43 = vcombine.low %v503_v60, %v507_v31  ;;  %v7424_v44 = vcombine.high %v510_v36, %v514_v37  ;;  %v7426_v46 = vcombine.high %v511_v40, %v515_v41  ;;  %v562_v60 = vld [vmem:[%s8482_s28 + $0x9e0] sm:$0xff]  ;;  %v559_v31 = vld [vmem:[%s8482_s28 + $0x9c8] sm:$0xff] }
  0x83   : > { %5403 = vmatpush1.bf16.msra.mxu0 %v7367_v50  ;;  %5690 = vmatpush1.bf16.msra.mxu1 %v7369_v51  ;;  %v519_v50 = vld [vmem:[%s8482_s28 + $0x888] sm:$0xff] }
  0x84   : > { %5404 = vmatprep.subr.bf16.mxu0 %v7376_v52  ;;  %5691 = vmatprep.subr.bf16.mxu1 %v7378_v53  ;;  %v523_v51 = vld [vmem:[%s8482_s28 + $0x8a8] sm:$0xff]  ;;  %v7423_v52 = vcombine.low %v510_v36, %v514_v37  ;;  %v7425_v53 = vcombine.low %v511_v40, %v515_v41  ;;  %v566_v37 = vld [vmem:[%s8482_s28 + $0xa00] sm:$0xff] }
  0x85   : > { %v7434_v56 = vcombine.high %v519_v50, %v523_v51  ;;  %v567_v40 = vld [vmem:[%s8482_s28 + $0xa08] sm:$0xff] }
  0x86   : > { %v571_v41 = vld [vmem:[%s8482_s28 + $0xa28] sm:$0xff] }
  0x87   : > { %5405 = vmatpush1.bf16.msra.mxu0 %v7375_v59  ;;  %5692 = vmatpush1.bf16.msra.mxu1 %v7377_v61  ;;  %v527_v59 = vld [vmem:[%s8482_s28 + $0x8c8] sm:$0xff] }
  0x88   : > { %5406 = vmatprep.subr.bf16.mxu0 %v7384_v62  ;;  %5693 = vmatprep.subr.bf16.mxu1 %v7386_v63  ;;  %v531_v61 = vld [vmem:[%s8482_s28 + $0x8e8] sm:$0xff]  ;;  %v7431_v62 = vcombine.low %v518_v47, %v522_v48  ;;  %v7433_v63 = vcombine.low %v519_v50, %v523_v51  ;;  %v574_v47 = vld [vmem:[%s8482_s28 + $0xa40] sm:$0xff] }
  0x89   : > { %v7442_v2 = vcombine.high %v527_v59, %v531_v61  ;;  %v578_v48 = vld [vmem:[%s8482_s28 + $0xa60] sm:$0xff]  ;;  %v575_v50 = vld [vmem:[%s8482_s28 + $0xa48] sm:$0xff] }
  0x8a   : > { %v579_v51 = vld [vmem:[%s8482_s28 + $0xa68] sm:$0xff] }
  0x8b   : > { %5407 = vmatpush1.bf16.msra.mxu0 %v7383_v5  ;;  %5694 = vmatpush1.bf16.msra.mxu1 %v7385_v6  ;;  %v535_v5 = vld [vmem:[%s8482_s28 + $0x908] sm:$0xff] }
  0x8c   : > { %5408 = vmatprep.subr.bf16.mxu0 %v7392_v7  ;;  %5695 = vmatprep.subr.bf16.mxu1 %v7394_v8  ;;  %v539_v6 = vld [vmem:[%s8482_s28 + $0x928] sm:$0xff]  ;;  %v7439_v7 = vcombine.low %v526_v57, %v530_v58  ;;  %v7441_v8 = vcombine.low %v527_v59, %v531_v61  ;;  %v582_v57 = vld [vmem:[%s8482_s28 + $0xa80] sm:$0xff] }
  0x8d   : > { %v7450_v11 = vcombine.high %v535_v5, %v539_v6  ;;  %v586_v58 = vld [vmem:[%s8482_s28 + $0xaa0] sm:$0xff]  ;;  %v583_v59 = vld [vmem:[%s8482_s28 + $0xa88] sm:$0xff] }
  0x8e   : > { %v587_v61 = vld [vmem:[%s8482_s28 + $0xaa8] sm:$0xff] }
  0x8f   : > { %5409 = vmatpush1.bf16.msra.mxu0 %v7391_v14  ;;  %5696 = vmatpush1.bf16.msra.mxu1 %v7393_v15  ;;  %v543_v14 = vld [vmem:[%s8482_s28 + $0x948] sm:$0xff] }
  0x90   : > { %5410 = vmatprep.subr.bf16.mxu0 %v7400_v16  ;;  %5697 = vmatprep.subr.bf16.mxu1 %v7402_v17  ;;  %v547_v15 = vld [vmem:[%s8482_s28 + $0x968] sm:$0xff]  ;;  %v7447_v16 = vcombine.low %v534_v3, %v538_v4  ;;  %v7449_v17 = vcombine.low %v535_v5, %v539_v6  ;;  %v590_v3 = vld [vmem:[%s8482_s28 + $0xac0] sm:$0xff] }
  0x91   : > { %v7458_v19 = vcombine.high %v543_v14, %v547_v15  ;;  %v594_v4 = vld [vmem:[%s8482_s28 + $0xae0] sm:$0xff]  ;;  %v591_v5 = vld [vmem:[%s8482_s28 + $0xac8] sm:$0xff] }
  0x92   : > { %v595_v6 = vld [vmem:[%s8482_s28 + $0xae8] sm:$0xff] }
  0x93   : > { %5411 = vmatpush1.bf16.msra.mxu0 %v7399_v23  ;;  %5698 = vmatpush1.bf16.msra.mxu1 %v7401_v25  ;;  %v555_v23 = vld [vmem:[%s8482_s28 + $0x9a8] sm:$0xff]  ;;  %v7455_v25 = vcombine.low %v542_v12, %v546_v13  ;;  %v598_v12 = vld [vmem:[%s8482_s28 + $0xb00] sm:$0xff] }
  0x94   : > { %5412 = vmatprep.subr.bf16.mxu0 %v7408_v26  ;;  %5699 = vmatprep.subr.bf16.mxu1 %v7410_v27  ;;  %v7457_v26 = vcombine.low %v543_v14, %v547_v15  ;;  %v7464_v27 = vcombine.high %v550_v20, %v554_v21  ;;  %v7466_v28 = vcombine.high %v551_v22, %v555_v23  ;;  %v602_v13 = vld [vmem:[%s8482_s28 + $0xb20] sm:$0xff]  ;;  %v599_v14 = vld [vmem:[%s8482_s28 + $0xb08] sm:$0xff] }
  0x95   : > { %v603_v15 = vld [vmem:[%s8482_s28 + $0xb28] sm:$0xff] }
  0x97   : > { %5413 = vmatpush1.bf16.msra.mxu0 %v7407_v32  ;;  %5700 = vmatpush1.bf16.msra.mxu1 %v7409_v0  ;;  %v563_v32 = vld [vmem:[%s8482_s28 + $0x9e8] sm:$0xff]  ;;  %v7463_v0 = vcombine.low %v550_v20, %v554_v21  ;;  %v606_v20 = vld [vmem:[%s8482_s28 + $0xb40] sm:$0xff] }
  0x98   : > { %5423 = vmatprep.subr.bf16.mxu0 %v7416_v34  ;;  %5710 = vmatprep.subr.bf16.mxu1 %v7418_v35  ;;  %v7465_v34 = vcombine.low %v551_v22, %v555_v23  ;;  %v7472_v35 = vcombine.high %v558_v29, %v562_v60  ;;  %v7474_v36 = vcombine.high %v559_v31, %v563_v32  ;;  %v610_v21 = vld [vmem:[%s8482_s28 + $0xb60] sm:$0xff]  ;;  %v607_v22 = vld [vmem:[%s8482_s28 + $0xb48] sm:$0xff] }
  0x99   : > { %v611_v23 = vld [vmem:[%s8482_s28 + $0xb68] sm:$0xff] }
  0x9a   : > { %5415 = vmatmul.mubr.bf16.vlgmr.msra.gmra.mrb[0].mxu0 %v8659_v39  ;;  %5702 = vmatmul.mubr.bf16.vlgmr.msra.gmra.mrb[0].mxu1 %v8659_v39 }
  0x9b   : > { %5424 = vmatpush1.bf16.msra.mxu0 %v7415_v42  ;;  %5711 = vmatpush1.bf16.msra.mxu1 %v7417_v43  ;;  %v7471_v42 = vcombine.low %v558_v29, %v562_v60  ;;  %v7473_v43 = vcombine.low %v559_v31, %v563_v32  ;;  %v614_v29 = vld [vmem:[%s8482_s28 + $0xb80] sm:$0xff]  ;;  %v615_v31 = vld [vmem:[%s8482_s28 + $0xb88] sm:$0xff] }
  0x9c   : > { %5425 = vmatprep.subr.bf16.mxu0 %v7424_v44  ;;  %5712 = vmatprep.subr.bf16.mxu1 %v7426_v46  ;;  %v7480_v44 = vcombine.high %v566_v37, %v570_v38  ;;  %v7482_v46 = vcombine.high %v567_v40, %v571_v41  ;;  %v618_v60 = vld [vmem:[%s8482_s28 + $0xba0] sm:$0xff]  ;;  %v619_v32 = vld [vmem:[%s8482_s28 + $0xba8] sm:$0xff] }
  0x9d   : > { %5455 = vmatprep.mubr.bf16.mxu0 %v8666_v49  ;;  %5742 = vmatprep.mubr.bf16.mxu1 %v8666_v49 }
  0x9f   : > { %5426 = vmatpush1.bf16.msra.mxu0 %v7423_v52  ;;  %5713 = vmatpush1.bf16.msra.mxu1 %v7425_v53  ;;  %v7479_v52 = vcombine.low %v566_v37, %v570_v38  ;;  %v7481_v53 = vcombine.low %v567_v40, %v571_v41  ;;  %v622_v37 = vld [vmem:[%s8482_s28 + $0xbc0] sm:$0xff]  ;;  %v623_v40 = vld [vmem:[%s8482_s28 + $0xbc8] sm:$0xff] }
  0xa0   : > { %5427 = vmatprep.subr.bf16.mxu0 %v7432_v55  ;;  %5714 = vmatprep.subr.bf16.mxu1 %v7434_v56  ;;  %v7488_v55 = vcombine.high %v574_v47, %v578_v48  ;;  %v7490_v56 = vcombine.high %v575_v50, %v579_v51  ;;  %v626_v38 = vld [vmem:[%s8482_s28 + $0xbe0] sm:$0xff]  ;;  %v627_v41 = vld [vmem:[%s8482_s28 + $0xbe8] sm:$0xff] }
  0xa3   : > { %5428 = vmatpush1.bf16.msra.mxu0 %v7431_v62  ;;  %5715 = vmatpush1.bf16.msra.mxu1 %v7433_v63  ;;  %v7487_v62 = vcombine.low %v574_v47, %v578_v48  ;;  %v7489_v63 = vcombine.low %v575_v50, %v579_v51  ;;  %v630_v47 = vld [vmem:[%s8482_s28 + $0xc00] sm:$0xff]  ;;  %v631_v50 = vld [vmem:[%s8482_s28 + $0xc08] sm:$0xff] }
  0xa4   : > { %5429 = vmatprep.subr.bf16.mxu0 %v7440_v1  ;;  %5716 = vmatprep.subr.bf16.mxu1 %v7442_v2  ;;  %v7496_v1 = vcombine.high %v582_v57, %v586_v58  ;;  %v7498_v2 = vcombine.high %v583_v59, %v587_v61  ;;  %v634_v48 = vld [vmem:[%s8482_s28 + $0xc20] sm:$0xff]  ;;  %v635_v51 = vld [vmem:[%s8482_s28 + $0xc28] sm:$0xff] }
  0xa7   : > { %5430 = vmatpush1.bf16.msra.mxu0 %v7439_v7  ;;  %5717 = vmatpush1.bf16.msra.mxu1 %v7441_v8  ;;  %v7495_v7 = vcombine.low %v582_v57, %v586_v58  ;;  %v7497_v8 = vcombine.low %v583_v59, %v587_v61  ;;  %v638_v57 = vld [vmem:[%s8482_s28 + $0xc40] sm:$0xff]  ;;  %v8734_v59 = vrot.slane %v8649_v30, %v8514_v54  ;;  %v639_v61 = vld [vmem:[%s8482_s28 + $0xc48] sm:$0xff] }
  0xa8   : > { %5431 = vmatprep.subr.bf16.mxu0 %v7448_v9  ;;  %5718 = vmatprep.subr.bf16.mxu1 %v7450_v11  ;;  %v7504_v9 = vcombine.high %v590_v3, %v594_v4  ;;  %v7506_v11 = vcombine.high %v591_v5, %v595_v6  ;;  %v642_v58 = vld [vmem:[%s8482_s28 + $0xc60] sm:$0xff]  ;;  %v647_v30 = vld [vmem:[%s8482_s28 + $0xc88] sm:$0xff] }
  0xab   : > { %5432 = vmatpush1.bf16.msra.mxu0 %v7447_v16  ;;  %5719 = vmatpush1.bf16.msra.mxu1 %v7449_v17  ;;  %v7503_v16 = vcombine.low %v590_v3, %v594_v4  ;;  %v7505_v17 = vcombine.low %v591_v5, %v595_v6  ;;  %v646_v4 = vld [vmem:[%s8482_s28 + $0xc80] sm:$0xff]  ;;  %v8742_v6 = vcombine.high %v8666_v49, %v8666_v49 }
  0xac   : > { %5433 = vmatprep.subr.bf16.mxu0 %v7456_v18  ;;  %5720 = vmatprep.subr.bf16.mxu1 %v7458_v19  ;;  %v7512_v18 = vcombine.high %v598_v12, %v602_v13  ;;  %v7514_v19 = vcombine.high %v599_v14, %v603_v15  ;;  %v650_v5 = vld [vmem:[%s8482_s28 + $0xca0] sm:$0xff] }
  0xaf   : > { %5434 = vmatpush1.bf16.msra.mxu0 %v7455_v25  ;;  %5721 = vmatpush1.bf16.msra.mxu1 %v7457_v26  ;;  %v7511_v25 = vcombine.low %v598_v12, %v602_v13  ;;  %v7513_v26 = vcombine.low %v599_v14, %v603_v15  ;;  %v654_v13 = vld [vmem:[%s8482_s28 + $0xcc0] sm:$0xff]  ;;  %v655_v15 = vld [vmem:[%s8482_s28 + $0xcc8] sm:$0xff] }
  0xb0   : > { %5435 = vmatprep.subr.bf16.mxu0 %v7464_v27  ;;  %5722 = vmatprep.subr.bf16.mxu1 %v7466_v28  ;;  %v7520_v27 = vcombine.high %v606_v20, %v610_v21  ;;  %v7522_v28 = vcombine.high %v607_v22, %v611_v23  ;;  %v658_v14 = vld [vmem:[%s8482_s28 + $0xce0] sm:$0xff] }
  0xb3   : > { %5436 = vmatpush1.bf16.msra.mxu0 %v7463_v0  ;;  %5723 = vmatpush1.bf16.msra.mxu1 %v7465_v34  ;;  %v7519_v0 = vcombine.low %v606_v20, %v610_v21  ;;  %v7521_v34 = vcombine.low %v607_v22, %v611_v23  ;;  %v662_v21 = vld [vmem:[%s8482_s28 + $0xd00] sm:$0xff]  ;;  %v663_v23 = vld [vmem:[%s8482_s28 + $0xd08] sm:$0xff] }
  0xb4   : > { %5437 = vmatprep.subr.bf16.mxu0 %v7472_v35  ;;  %5724 = vmatprep.subr.bf16.mxu1 %v7474_v36  ;;  %v7528_v35 = vcombine.high %v614_v29, %v618_v60  ;;  %v7530_v36 = vcombine.high %v615_v31, %v619_v32  ;;  %v666_v22 = vld [vmem:[%s8482_s28 + $0xd20] sm:$0xff] }
  0xb7   : > { %5438 = vmatpush1.bf16.msra.mxu0 %v7471_v42  ;;  %5725 = vmatpush1.bf16.msra.mxu1 %v7473_v43  ;;  %v7527_v42 = vcombine.low %v614_v29, %v618_v60  ;;  %v7529_v43 = vcombine.low %v615_v31, %v619_v32  ;;  %v670_v60 = vld [vmem:[%s8482_s28 + $0xd40] sm:$0xff]  ;;  %v671_v32 = vld [vmem:[%s8482_s28 + $0xd48] sm:$0xff] }
  0xb8   : > { %5439 = vmatprep.subr.bf16.mxu0 %v7480_v44  ;;  %5726 = vmatprep.subr.bf16.mxu1 %v7482_v46  ;;  %v7536_v44 = vcombine.high %v622_v37, %v626_v38  ;;  %v7538_v46 = vcombine.high %v623_v40, %v627_v41  ;;  %v674_v31 = vld [vmem:[%s8482_s28 + $0xd60] sm:$0xff] }
  0xbb   : > { %5440 = vmatpush1.bf16.msra.mxu0 %v7479_v52  ;;  %5727 = vmatpush1.bf16.msra.mxu1 %v7481_v53  ;;  %v7535_v52 = vcombine.low %v622_v37, %v626_v38  ;;  %v7537_v53 = vcombine.low %v623_v40, %v627_v41  ;;  %v678_v38 = vld [vmem:[%s8482_s28 + $0xd80] sm:$0xff]  ;;  %v679_v41 = vld [vmem:[%s8482_s28 + $0xd88] sm:$0xff] }
  0xbc   : > { %5441 = vmatprep.subr.bf16.mxu0 %v7488_v55  ;;  %5728 = vmatprep.subr.bf16.mxu1 %v7490_v56  ;;  %v7544_v55 = vcombine.high %v630_v47, %v634_v48  ;;  %v7546_v56 = vcombine.high %v631_v50, %v635_v51  ;;  %v682_v40 = vld [vmem:[%s8482_s28 + $0xda0] sm:$0xff] }
  0xbf   : > { %5442 = vmatpush1.bf16.msra.mxu0 %v7487_v62  ;;  %5729 = vmatpush1.bf16.msra.mxu1 %v7489_v63  ;;  %v643_v62 = vld [vmem:[%s8482_s28 + $0xc68] sm:$0xff]  ;;  %v7543_v63 = vcombine.low %v630_v47, %v634_v48  ;;  %v686_v48 = vld [vmem:[%s8482_s28 + $0xdc0] sm:$0xff] }
  0xc0   : > { %5443 = vmatprep.subr.bf16.mxu0 %v7496_v1  ;;  %5730 = vmatprep.subr.bf16.mxu1 %v7498_v2  ;;  %v7545_v1 = vcombine.low %v631_v50, %v635_v51  ;;  %v7552_v2 = vcombine.high %v638_v57, %v642_v58  ;;  %v7554_v3 = vcombine.high %v639_v61, %v643_v62  ;;  %v690_v50 = vld [vmem:[%s8482_s28 + $0xde0] sm:$0xff]  ;;  %v687_v51 = vld [vmem:[%s8482_s28 + $0xdc8] sm:$0xff] }
  0xc3   : > { %5444 = vmatpush1.bf16.msra.mxu0 %v7495_v7  ;;  %5731 = vmatpush1.bf16.msra.mxu1 %v7497_v8  ;;  %v651_v7 = vld [vmem:[%s8482_s28 + $0xca8] sm:$0xff]  ;;  %v7551_v8 = vcombine.low %v638_v57, %v642_v58  ;;  %v694_v58 = vld [vmem:[%s8482_s28 + $0xe00] sm:$0xff] }
  0xc4   : > { %5445 = vmatprep.subr.bf16.mxu0 %v7504_v9  ;;  %5732 = vmatprep.subr.bf16.mxu1 %v7506_v11  ;;  %v7553_v9 = vcombine.low %v639_v61, %v643_v62  ;;  %v7560_v11 = vcombine.high %v646_v4, %v650_v5  ;;  %v7562_v12 = vcombine.high %v647_v30, %v651_v7  ;;  %v698_v61 = vld [vmem:[%s8482_s28 + $0xe20] sm:$0xff]  ;;  %v695_v62 = vld [vmem:[%s8482_s28 + $0xe08] sm:$0xff] }
  0xc7   : > { %5446 = vmatpush1.bf16.msra.mxu0 %v7503_v16  ;;  %5733 = vmatpush1.bf16.msra.mxu1 %v7505_v17  ;;  %v659_v16 = vld [vmem:[%s8482_s28 + $0xce8] sm:$0xff]  ;;  %v7559_v17 = vcombine.low %v646_v4, %v650_v5  ;;  %v702_v5 = vld [vmem:[%s8482_s28 + $0xe40] sm:$0xff] }
  0xc8   : > { %5447 = vmatprep.subr.bf16.mxu0 %v7512_v18  ;;  %5734 = vmatprep.subr.bf16.mxu1 %v7514_v19  ;;  %v7561_v18 = vcombine.low %v647_v30, %v651_v7  ;;  %v7568_v19 = vcombine.high %v654_v13, %v658_v14  ;;  %v7570_v20 = vcombine.high %v655_v15, %v659_v16  ;;  %v706_v30 = vld [vmem:[%s8482_s28 + $0xe60] sm:$0xff]  ;;  %v703_v7 = vld [vmem:[%s8482_s28 + $0xe48] sm:$0xff] }
  0xcb   : > { %5448 = vmatpush1.bf16.msra.mxu0 %v7511_v25  ;;  %5735 = vmatpush1.bf16.msra.mxu1 %v7513_v26  ;;  %v667_v25 = vld [vmem:[%s8482_s28 + $0xd28] sm:$0xff]  ;;  %v7567_v26 = vcombine.low %v654_v13, %v658_v14  ;;  %v710_v14 = vld [vmem:[%s8482_s28 + $0xe80] sm:$0xff] }
  0xcc   : > { %5449 = vmatprep.subr.bf16.mxu0 %v7520_v27  ;;  %5736 = vmatprep.subr.bf16.mxu1 %v7522_v28  ;;  %v7569_v27 = vcombine.low %v655_v15, %v659_v16  ;;  %v7576_v28 = vcombine.high %v662_v21, %v666_v22  ;;  %v7578_v29 = vcombine.high %v663_v23, %v667_v25  ;;  %v714_v15 = vld [vmem:[%s8482_s28 + $0xea0] sm:$0xff]  ;;  %v711_v16 = vld [vmem:[%s8482_s28 + $0xe88] sm:$0xff] }
  0xcf   : > { %5450 = vmatpush1.bf16.msra.mxu0 %v7519_v0  ;;  %5737 = vmatpush1.bf16.msra.mxu1 %v7521_v34  ;;  %v675_v0 = vld [vmem:[%s8482_s28 + $0xd68] sm:$0xff]  ;;  %v7575_v34 = vcombine.low %v662_v21, %v666_v22  ;;  %v718_v22 = vld [vmem:[%s8482_s28 + $0xec0] sm:$0xff] }
  0xd0   : > { %5451 = vmatprep.subr.bf16.mxu0 %v7528_v35  ;;  %5738 = vmatprep.subr.bf16.mxu1 %v7530_v36  ;;  %v7577_v35 = vcombine.low %v663_v23, %v667_v25  ;;  %v7584_v36 = vcombine.high %v670_v60, %v674_v31  ;;  %v7586_v37 = vcombine.high %v671_v32, %v675_v0  ;;  %v722_v23 = vld [vmem:[%s8482_s28 + $0xee0] sm:$0xff]  ;;  %v719_v25 = vld [vmem:[%s8482_s28 + $0xec8] sm:$0xff] }
  0xd3   : > { %5452 = vmatpush1.bf16.msra.mxu0 %v7527_v42  ;;  %5739 = vmatpush1.bf16.msra.mxu1 %v7529_v43  ;;  %v683_v42 = vld [vmem:[%s8482_s28 + $0xda8] sm:$0xff]  ;;  %v7583_v43 = vcombine.low %v670_v60, %v674_v31  ;;  %v726_v31 = vld [vmem:[%s8482_s28 + $0xf00] sm:$0xff] }
  0xd4   : > { %5453 = vmatprep.subr.bf16.mxu0 %v7536_v44  ;;  %5740 = vmatprep.subr.bf16.mxu1 %v7538_v46  ;;  %v7585_v44 = vcombine.low %v671_v32, %v675_v0  ;;  %v7592_v46 = vcombine.high %v678_v38, %v682_v40  ;;  %v7594_v47 = vcombine.high %v679_v41, %v683_v42  ;;  %v730_v32 = vld [vmem:[%s8482_s28 + $0xf20] sm:$0xff]  ;;  %v727_v0 = vld [vmem:[%s8482_s28 + $0xf08] sm:$0xff] }
  0xd7   : > { %5454 = vmatpush1.bf16.msra.mxu0 %v7535_v52  ;;  %5741 = vmatpush1.bf16.msra.mxu1 %v7537_v53  ;;  %v691_v52 = vld [vmem:[%s8482_s28 + $0xde8] sm:$0xff]  ;;  %v7591_v53 = vcombine.low %v678_v38, %v682_v40  ;;  %v734_v40 = vld [vmem:[%s8482_s28 + $0xf40] sm:$0xff] }
  0xd8   : > { %5464 = vmatprep.subr.bf16.mxu0 %v7544_v55  ;;  %5751 = vmatprep.subr.bf16.mxu1 %v7546_v56  ;;  %v7593_v55 = vcombine.low %v679_v41, %v683_v42  ;;  %v7600_v56 = vcombine.high %v686_v48, %v690_v50  ;;  %v7602_v57 = vcombine.high %v687_v51, %v691_v52  ;;  %v738_v41 = vld [vmem:[%s8482_s28 + $0xf60] sm:$0xff]  ;;  %v735_v42 = vld [vmem:[%s8482_s28 + $0xf48] sm:$0xff] }
  0xda   : > { %5456 = vmatmul.mubr.bf16.vlgmr.msra.gmra.mrb[0].mxu0 %v8734_v59  ;;  %5743 = vmatmul.mubr.bf16.vlgmr.msra.gmra.mrb[0].mxu1 %v8734_v59 }
  0xdb   : > { %5465 = vmatpush1.bf16.msra.mxu0 %v7543_v63  ;;  %5752 = vmatpush1.bf16.msra.mxu1 %v7545_v1  ;;  %v699_v63 = vld [vmem:[%s8482_s28 + $0xe28] sm:$0xff]  ;;  %v7599_v1 = vcombine.low %v686_v48, %v690_v50  ;;  %v742_v50 = vld [vmem:[%s8482_s28 + $0xf80] sm:$0xff] }
  0xdc   : > { %5466 = vmatprep.subr.bf16.mxu0 %v7552_v2  ;;  %5753 = vmatprep.subr.bf16.mxu1 %v7554_v3  ;;  %v7601_v2 = vcombine.low %v687_v51, %v691_v52  ;;  %v7608_v3 = vcombine.high %v694_v58, %v698_v61  ;;  %v7610_v4 = vcombine.high %v695_v62, %v699_v63  ;;  %v746_v51 = vld [vmem:[%s8482_s28 + $0xfa0] sm:$0xff]  ;;  %v743_v52 = vld [vmem:[%s8482_s28 + $0xf88] sm:$0xff] }
  0xdd   : > { %5496 = vmatprep.mubr.bf16.mxu0 %v8742_v6  ;;  %5783 = vmatprep.mubr.bf16.mxu1 %v8742_v6 }
  0xdf   : > { %5467 = vmatpush1.bf16.msra.mxu0 %v7551_v8  ;;  %5754 = vmatpush1.bf16.msra.mxu1 %v7553_v9  ;;  %v707_v8 = vld [vmem:[%s8482_s28 + $0xe68] sm:$0xff]  ;;  %v7607_v9 = vcombine.low %v694_v58, %v698_v61  ;;  %v750_v61 = vld [vmem:[%s8482_s28 + $0xfc0] sm:$0xff] }
  0xe0   : > { %5468 = vmatprep.subr.bf16.mxu0 %v7560_v11  ;;  %5755 = vmatprep.subr.bf16.mxu1 %v7562_v12  ;;  %v7609_v11 = vcombine.low %v695_v62, %v699_v63  ;;  %v7616_v12 = vcombine.high %v702_v5, %v706_v30  ;;  %v7618_v13 = vcombine.high %v703_v7, %v707_v8  ;;  %v754_v62 = vld [vmem:[%s8482_s28 + $0xfe0] sm:$0xff]  ;;  %v751_v63 = vld [vmem:[%s8482_s28 + $0xfc8] sm:$0xff] }
  0xe3   : > { %5469 = vmatpush1.bf16.msra.mxu0 %v7559_v17  ;;  %5756 = vmatpush1.bf16.msra.mxu1 %v7561_v18  ;;  %v715_v17 = vld [vmem:[%s8482_s28 + $0xea8] sm:$0xff]  ;;  %v7615_v18 = vcombine.low %v702_v5, %v706_v30  ;;  %v7664_v5 = vcombine.high %v750_v61, %v754_v62 }
  0xe4   : > { %5470 = vmatprep.subr.bf16.mxu0 %v7568_v19  ;;  %5757 = vmatprep.subr.bf16.mxu1 %v7570_v20  ;;  %v7617_v19 = vcombine.low %v703_v7, %v707_v8  ;;  %v7624_v20 = vcombine.high %v710_v14, %v714_v15  ;;  %v7626_v21 = vcombine.high %v711_v16, %v715_v17  ;;  %v758_v7 = vld [vmem:[%s8482_s28 + $0x1000] sm:$0xff] }
  0xe5   : > { %v762_v8 = vld [vmem:[%s8482_s28 + $0x1020] sm:$0xff] }
  0xe7   : > { %5471 = vmatpush1.bf16.msra.mxu0 %v7567_v26  ;;  %5758 = vmatpush1.bf16.msra.mxu1 %v7569_v27  ;;  %v723_v26 = vld [vmem:[%s8482_s28 + $0xee8] sm:$0xff]  ;;  %v7623_v27 = vcombine.low %v710_v14, %v714_v15  ;;  %v7672_v15 = vcombine.high %v758_v7, %v762_v8 }
  0xe8   : > { %5472 = vmatprep.subr.bf16.mxu0 %v7576_v28  ;;  %5759 = vmatprep.subr.bf16.mxu1 %v7578_v29  ;;  %v7625_v28 = vcombine.low %v711_v16, %v715_v17  ;;  %v7632_v29 = vcombine.high %v718_v22, %v722_v23  ;;  %v7634_v60 = vcombine.high %v719_v25, %v723_v26  ;;  %v766_v17 = vld [vmem:[%s8482_s28 + $0x1040] sm:$0xff] }
  0xeb   : > { %5473 = vmatpush1.bf16.msra.mxu0 %v7575_v34  ;;  %5760 = vmatpush1.bf16.msra.mxu1 %v7577_v35  ;;  %v731_v34 = vld [vmem:[%s8482_s28 + $0xf28] sm:$0xff]  ;;  %v7631_v35 = vcombine.low %v718_v22, %v722_v23  ;;  %v7671_v23 = vcombine.low %v758_v7, %v762_v8 }
  0xec   : > { %5474 = vmatprep.subr.bf16.mxu0 %v7584_v36  ;;  %5761 = vmatprep.subr.bf16.mxu1 %v7586_v37  ;;  %v7633_v36 = vcombine.low %v719_v25, %v723_v26  ;;  %v7640_v37 = vcombine.high %v726_v31, %v730_v32  ;;  %v7642_v38 = vcombine.high %v727_v0, %v731_v34  ;;  %v771_v22 = vld [vmem:[%s8482_s28 + $0x1068] sm:$0xff] }
  0xed   : > { %v807_v7 = vld [vmem:[%s8482_s28 + $0x1188] sm:$0xff] }
  0xee   : > { %v811_v8 = vld [vmem:[%s8482_s28 + $0x11a8] sm:$0xff] }
  0xef   : > { %5475 = vmatpush1.bf16.msra.mxu0 %v7583_v43  ;;  %5762 = vmatpush1.bf16.msra.mxu1 %v7585_v44  ;;  %v739_v43 = vld [vmem:[%s8482_s28 + $0xf68] sm:$0xff]  ;;  %v7639_v44 = vcombine.low %v726_v31, %v730_v32 }
  0xf0   : > { %5476 = vmatprep.subr.bf16.mxu0 %v7592_v46  ;;  %5763 = vmatprep.subr.bf16.mxu1 %v7594_v47  ;;  %v7641_v46 = vcombine.low %v727_v0, %v731_v34  ;;  %v7648_v47 = vcombine.high %v734_v40, %v738_v41  ;;  %v7650_v48 = vcombine.high %v735_v42, %v739_v43  ;;  %v775_v31 = vld [vmem:[%s8482_s28 + $0x1088] sm:$0xff] }
  0xf1   : > { %v779_v32 = vld [vmem:[%s8482_s28 + $0x10a8] sm:$0xff] }
  0xf3   : > { %5477 = vmatpush1.bf16.msra.mxu0 %v7591_v53  ;;  %5764 = vmatpush1.bf16.msra.mxu1 %v7593_v55  ;;  %v747_v53 = vld [vmem:[%s8482_s28 + $0xfa8] sm:$0xff]  ;;  %v7647_v55 = vcombine.low %v734_v40, %v738_v41 }
  0xf4   : > { %5478 = vmatprep.subr.bf16.mxu0 %v7600_v56  ;;  %5765 = vmatprep.subr.bf16.mxu1 %v7602_v57  ;;  %v7649_v56 = vcombine.low %v735_v42, %v739_v43  ;;  %v7656_v57 = vcombine.high %v742_v50, %v746_v51  ;;  %v7658_v58 = vcombine.high %v743_v52, %v747_v53  ;;  %v783_v40 = vld [vmem:[%s8482_s28 + $0x10c8] sm:$0xff] }
  0xf5   : > { %v787_v41 = vld [vmem:[%s8482_s28 + $0x10e8] sm:$0xff]  ;;  %v7689_v43 = vcombine.low %v775_v31, %v779_v32 }
  0xf7   : > { %5479 = vmatpush1.bf16.msra.mxu0 %v7599_v1  ;;  %5766 = vmatpush1.bf16.msra.mxu1 %v7601_v2  ;;  %v755_v1 = vld [vmem:[%s8482_s28 + $0xfe8] sm:$0xff] }
  0xf8   : > { %5480 = vmatprep.subr.bf16.mxu0 %v7608_v3  ;;  %5767 = vmatprep.subr.bf16.mxu1 %v7610_v4  ;;  %v8803_v2 = vld [vmem:[%s8477_s24 + $0x8] sm:$0x1f]  ;;  %v7655_v3 = vcombine.low %v742_v50, %v746_v51  ;;  %v7657_v4 = vcombine.low %v743_v52, %v747_v53  ;;  %v7666_v30 = vcombine.high %v751_v63, %v755_v1 }
  0xf9   : > { %v7665_v14 = vcombine.low %v751_v63, %v755_v1  ;;  %v791_v50 = vld [vmem:[%s8482_s28 + $0x1108] sm:$0xff]  ;;  %v7697_v53 = vcombine.low %v783_v40, %v787_v41 }
  0xfa   : > { %v795_v51 = vld [vmem:[%s8482_s28 + $0x1128] sm:$0xff] }
  0xfb   : > { %5481 = vmatpush1.bf16.msra.mxu0 %v7607_v9  ;;  %5768 = vmatpush1.bf16.msra.mxu1 %v7609_v11  ;;  %v8809_v9 = vrot.slane %v8803_v2, %v8514_v54  ;;  %v759_v11 = vld [vmem:[%s8482_s28 + $0x1008] sm:$0xff]  ;;  %v7705_v1 = vcombine.low %v791_v50, %v795_v51 }
  0xfc   : > { %5482 = vmatprep.subr.bf16.mxu0 %v7616_v12  ;;  %5769 = vmatprep.subr.bf16.mxu1 %v7618_v13  ;;  %v763_v12 = vld [vmem:[%s8482_s28 + $0x1028] sm:$0xff]  ;;  %v7663_v13 = vcombine.low %v750_v61, %v754_v62 }
  0xfd   : > { %v7674_v16 = vcombine.high %v759_v11, %v763_v12  ;;  %v7673_v25 = vcombine.low %v759_v11, %v763_v12  ;;  %v799_v61 = vld [vmem:[%s8482_s28 + $0x1148] sm:$0xff] }
  0xfe   : > { %v803_v62 = vld [vmem:[%s8482_s28 + $0x1168] sm:$0xff] }
  0xff   : > { %5483 = vmatpush1.bf16.msra.mxu0 %v7615_v18  ;;  %5770 = vmatpush1.bf16.msra.mxu1 %v7617_v19  ;;  %v770_v18 = vld [vmem:[%s8482_s28 + $0x1060] sm:$0xff]  ;;  %v1144_v19 = vcombine.high %v8809_v9, %v8809_v9  ;;  %v7713_v12 = vcombine.low %v799_v61, %v803_v62 }
 0x100   : > { %5484 = vmatprep.subr.bf16.mxu0 %v7624_v20  ;;  %5771 = vmatprep.subr.bf16.mxu1 %v7626_v21  ;;  %v8819_v20 = vcombine.high %v8734_v59, %v8734_v59  ;;  %v767_v21 = vld [vmem:[%s8482_s28 + $0x1048] sm:$0xff]  ;;  %v7680_v26 = vcombine.high %v766_v17, %v770_v18  ;;  %v7679_v0 = vcombine.low %v766_v17, %v770_v18 }
 0x101   : > { %v7681_v34 = vcombine.low %v767_v21, %v771_v22  ;;  %v815_v17 = vld [vmem:[%s8482_s28 + $0x11c8] sm:$0xff] }
 0x102   : > { %v819_v18 = vld [vmem:[%s8482_s28 + $0x11e8] sm:$0xff] }
 0x103   : > { %5485 = vmatpush1.bf16.msra.mxu0 %v7623_v27  ;;  %5772 = vmatpush1.bf16.msra.mxu1 %v7625_v28  ;;  %v7682_v27 = vcombine.high %v767_v21, %v771_v22  ;;  %v774_v28 = vld [vmem:[%s8482_s28 + $0x1080] sm:$0xff]  ;;  %v7721_v21 = vcombine.low %v807_v7, %v811_v8 }
 0x104   : > { %5486 = vmatprep.subr.bf16.mxu0 %v7632_v29  ;;  %5773 = vmatprep.subr.bf16.mxu1 %v7634_v60  ;;  %v778_v29 = vld [vmem:[%s8482_s28 + $0x10a0] sm:$0xff]  ;;  %v8826_v60 = vrot.slane %v1144_v19, %v8514_v54 }
 0x105   : > { %v7687_v42 = vcombine.low %v774_v28, %v778_v29 }
 0x107   : > { %5487 = vmatpush1.bf16.msra.mxu0 %v7631_v35  ;;  %5774 = vmatpush1.bf16.msra.mxu1 %v7633_v36  ;;  %v7688_v35 = vcombine.high %v774_v28, %v778_v29  ;;  %v7690_v36 = vcombine.high %v775_v31, %v779_v32  ;;  %v827_v28 = vld [vmem:[%s8482_s28 + $0x1228] sm:$0xff]  ;;  %v7729_v31 = vcombine.low %v815_v17, %v819_v18 }
 0x108   : > { %5488 = vmatprep.subr.bf16.mxu0 %v7640_v37  ;;  %5775 = vmatprep.subr.bf16.mxu1 %v7642_v38  ;;  %v782_v37 = vld [vmem:[%s8482_s28 + $0x10c0] sm:$0xff] }
 0x109   : > { %v786_v38 = vld [vmem:[%s8482_s28 + $0x10e0] sm:$0xff] }
 0x10a   : > { %v7695_v52 = vcombine.low %v782_v37, %v786_v38 }
 0x10b   : > { %5489 = vmatpush1.bf16.msra.mxu0 %v7639_v44  ;;  %5776 = vmatpush1.bf16.msra.mxu1 %v7641_v46  ;;  %v7696_v44 = vcombine.high %v782_v37, %v786_v38  ;;  %v7698_v46 = vcombine.high %v783_v40, %v787_v41  ;;  %v835_v37 = vld [vmem:[%s8482_s28 + $0x1268] sm:$0xff] }
 0x10c   : > { %5490 = vmatprep.subr.bf16.mxu0 %v7648_v47  ;;  %5777 = vmatprep.subr.bf16.mxu1 %v7650_v48  ;;  %v790_v47 = vld [vmem:[%s8482_s28 + $0x1100] sm:$0xff] }
 0x10d   : > { %v794_v48 = vld [vmem:[%s8482_s28 + $0x1120] sm:$0xff] }
 0x10e   : > { %v7703_v63 = vcombine.low %v790_v47, %v794_v48 }
 0x10f   : > { %5491 = vmatpush1.bf16.msra.mxu0 %v7647_v55  ;;  %5778 = vmatpush1.bf16.msra.mxu1 %v7649_v56  ;;  %v7704_v55 = vcombine.high %v790_v47, %v794_v48  ;;  %v7706_v56 = vcombine.high %v791_v50, %v795_v51  ;;  %v843_v47 = vld [vmem:[%s8482_s28 + $0x12a8] sm:$0xff] }
 0x110   : > { %5492 = vmatprep.subr.bf16.mxu0 %v7656_v57  ;;  %5779 = vmatprep.subr.bf16.mxu1 %v7658_v58  ;;  %v798_v57 = vld [vmem:[%s8482_s28 + $0x1140] sm:$0xff] }
 0x111   : > { %v802_v58 = vld [vmem:[%s8482_s28 + $0x1160] sm:$0xff] }
 0x112   : > { %v7711_v11 = vcombine.low %v798_v57, %v802_v58 }
 0x113   : > { %5493 = vmatpush1.bf16.msra.mxu0 %v7655_v3  ;;  %5780 = vmatpush1.bf16.msra.mxu1 %v7657_v4  ;;  %v7712_v3 = vcombine.high %v798_v57, %v802_v58  ;;  %v7714_v4 = vcombine.high %v799_v61, %v803_v62  ;;  %v851_v57 = vld [vmem:[%s8482_s28 + $0x12e8] sm:$0xff] }
 0x114   : > { %5494 = vmatprep.subr.bf16.mxu0 %v7664_v5  ;;  %5781 = vmatprep.subr.bf16.mxu1 %v7666_v30  ;;  %v806_v5 = vld [vmem:[%s8482_s28 + $0x1180] sm:$0xff] }
 0x115   : > { %v810_v30 = vld [vmem:[%s8482_s28 + $0x11a0] sm:$0xff] }
 0x116   : > { %v7719_v19 = vcombine.low %v806_v5, %v810_v30 }
 0x117   : > { %5495 = vmatpush1.bf16.msra.mxu0 %v7663_v13  ;;  %5782 = vmatpush1.bf16.msra.mxu1 %v7665_v14  ;;  %v7720_v13 = vcombine.high %v806_v5, %v810_v30  ;;  %v7722_v14 = vcombine.high %v807_v7, %v811_v8  ;;  %v859_v5 = vld [vmem:[%s8482_s28 + $0x1328] sm:$0xff] }
 0x118   : > { %5505 = vmatprep.subr.bf16.mxu0 %v7672_v15  ;;  %5792 = vmatprep.subr.bf16.mxu1 %v7674_v16  ;;  %v814_v15 = vld [vmem:[%s8482_s28 + $0x11c0] sm:$0xff] }
 0x119   : > { %v818_v16 = vld [vmem:[%s8482_s28 + $0x11e0] sm:$0xff] }
 0x11a   : > { %5497 = vmatmul.mubr.bf16.vlgmr.msra.gmra.mrb[0].mxu0 %v8819_v20  ;;  %5784 = vmatmul.mubr.bf16.vlgmr.msra.gmra.mrb[0].mxu1 %v8819_v20  ;;  %v7728_v22 = vcombine.high %v814_v15, %v818_v16  ;;  %v7727_v29 = vcombine.low %v814_v15, %v818_v16  ;;  %v867_v15 = vld [vmem:[%s8482_s28 + $0x1368] sm:$0xff] }
 0x11b   : > { %5506 = vmatpush1.bf16.msra.mxu0 %v7671_v23  ;;  %5793 = vmatpush1.bf16.msra.mxu1 %v7673_v25  ;;  %v7730_v23 = vcombine.high %v815_v17, %v819_v18  ;;  %v822_v25 = vld [vmem:[%s8482_s28 + $0x1200] sm:$0xff] }
 0x11c   : > { %5507 = vmatprep.subr.bf16.mxu0 %v7680_v26  ;;  %5794 = vmatprep.subr.bf16.mxu1 %v7682_v27  ;;  %v826_v26 = vld [vmem:[%s8482_s28 + $0x1220] sm:$0xff]  ;;  %v823_v27 = vld [vmem:[%s8482_s28 + $0x1208] sm:$0xff] }
 0x11d   : > { %5537 = vmatprep.mubr.bf16.mxu0 %v8826_v60  ;;  %5824 = vmatprep.mubr.bf16.mxu1 %v8826_v60  ;;  %v7736_v32 = vcombine.high %v822_v25, %v826_v26  ;;  %v7735_v38 = vcombine.low %v822_v25, %v826_v26  ;;  %v7737_v40 = vcombine.low %v823_v27, %v827_v28  ;;  %v875_v25 = vld [vmem:[%s8482_s28 + $0x13a8] sm:$0xff] }
 0x11f   : > { %5508 = vmatpush1.bf16.msra.mxu0 %v7679_v0  ;;  %5795 = vmatpush1.bf16.msra.mxu1 %v7681_v34  ;;  %v7738_v0 = vcombine.high %v823_v27, %v827_v28  ;;  %v830_v34 = vld [vmem:[%s8482_s28 + $0x1240] sm:$0xff] }
 0x120   : > { %5509 = vmatprep.subr.bf16.mxu0 %v7688_v35  ;;  %5796 = vmatprep.subr.bf16.mxu1 %v7690_v36  ;;  %v834_v35 = vld [vmem:[%s8482_s28 + $0x1260] sm:$0xff]  ;;  %v831_v36 = vld [vmem:[%s8482_s28 + $0x1248] sm:$0xff] }
 0x121   : > { %v7744_v41 = vcombine.high %v830_v34, %v834_v35  ;;  %v7743_v48 = vcombine.low %v830_v34, %v834_v35  ;;  %v7745_v50 = vcombine.low %v831_v36, %v835_v37  ;;  %v883_v34 = vld [vmem:[%s8482_s28 + $0x13e8] sm:$0xff] }
 0x123   : > { %5510 = vmatpush1.bf16.msra.mxu0 %v7687_v42  ;;  %5797 = vmatpush1.bf16.msra.mxu1 %v7689_v43  ;;  %v7746_v42 = vcombine.high %v831_v36, %v835_v37  ;;  %v838_v43 = vld [vmem:[%s8482_s28 + $0x1280] sm:$0xff] }
 0x124   : > { %5511 = vmatprep.subr.bf16.mxu0 %v7696_v44  ;;  %5798 = vmatprep.subr.bf16.mxu1 %v7698_v46  ;;  %v842_v44 = vld [vmem:[%s8482_s28 + $0x12a0] sm:$0xff]  ;;  %v839_v46 = vld [vmem:[%s8482_s28 + $0x1288] sm:$0xff] }
 0x125   : > { %v7752_v51 = vcombine.high %v838_v43, %v842_v44  ;;  %v7751_v58 = vcombine.low %v838_v43, %v842_v44  ;;  %v7753_v61 = vcombine.low %v839_v46, %v843_v47  ;;  %v891_v43 = vld [vmem:[%s8482_s28 + $0x1428] sm:$0xff] }
 0x127   : > { %5512 = vmatpush1.bf16.msra.mxu0 %v7695_v52  ;;  %5799 = vmatpush1.bf16.msra.mxu1 %v7697_v53  ;;  %v7754_v52 = vcombine.high %v839_v46, %v843_v47  ;;  %v846_v53 = vld [vmem:[%s8482_s28 + $0x12c0] sm:$0xff] }
 0x128   : > { %5513 = vmatprep.subr.bf16.mxu0 %v7704_v55  ;;  %5800 = vmatprep.subr.bf16.mxu1 %v7706_v56  ;;  %v850_v55 = vld [vmem:[%s8482_s28 + $0x12e0] sm:$0xff]  ;;  %v847_v56 = vld [vmem:[%s8482_s28 + $0x12c8] sm:$0xff] }
 0x129   : > { %v7760_v62 = vcombine.high %v846_v53, %v850_v55  ;;  %v7759_v30 = vcombine.low %v846_v53, %v850_v55  ;;  %v7761_v7 = vcombine.low %v847_v56, %v851_v57  ;;  %v895_v53 = vld [vmem:[%s8482_s28 + $0x1448] sm:$0xff] }
 0x12a   : > { %v899_v55 = vld [vmem:[%s8482_s28 + $0x1468] sm:$0xff] }
 0x12b   : > { %5514 = vmatpush1.bf16.msra.mxu0 %v7703_v63  ;;  %5801 = vmatpush1.bf16.msra.mxu1 %v7705_v1  ;;  %v7762_v63 = vcombine.high %v847_v56, %v851_v57  ;;  %v854_v1 = vld [vmem:[%s8482_s28 + $0x1300] sm:$0xff] }
 0x12c   : > { %5515 = vmatprep.subr.bf16.mxu0 %v7712_v3  ;;  %5802 = vmatprep.subr.bf16.mxu1 %v7714_v4  ;;  %v858_v3 = vld [vmem:[%s8482_s28 + $0x1320] sm:$0xff]  ;;  %v855_v4 = vld [vmem:[%s8482_s28 + $0x1308] sm:$0xff] }
 0x12d   : > { %v7768_v8 = vcombine.high %v854_v1, %v858_v3  ;;  %v7767_v16 = vcombine.low %v854_v1, %v858_v3  ;;  %v7769_v17 = vcombine.low %v855_v4, %v859_v5  ;;  %v8902_v1 = vcombine.high %v8826_v60, %v8826_v60  ;;  %v907_v3 = vld [vmem:[%s8482_s28 + $0x14a8] sm:$0xff] }
 0x12f   : > { %5516 = vmatpush1.bf16.msra.mxu0 %v7711_v11  ;;  %5803 = vmatpush1.bf16.msra.mxu1 %v7713_v12  ;;  %v7770_v11 = vcombine.high %v855_v4, %v859_v5  ;;  %v862_v12 = vld [vmem:[%s8482_s28 + $0x1340] sm:$0xff]  ;;  %v7809_v5 = vcombine.low %v895_v53, %v899_v55 }
 0x130   : > { %5517 = vmatprep.subr.bf16.mxu0 %v7720_v13  ;;  %5804 = vmatprep.subr.bf16.mxu1 %v7722_v14  ;;  %v866_v13 = vld [vmem:[%s8482_s28 + $0x1360] sm:$0xff]  ;;  %v863_v14 = vld [vmem:[%s8482_s28 + $0x1348] sm:$0xff] }
 0x131   : > { %v7776_v18 = vcombine.high %v862_v12, %v866_v13  ;;  %v7775_v26 = vcombine.low %v862_v12, %v866_v13  ;;  %v7777_v27 = vcombine.low %v863_v14, %v867_v15  ;;  %v911_v12 = vld [vmem:[%s8482_s28 + $0x14c8] sm:$0xff] }
 0x132   : > { %v915_v13 = vld [vmem:[%s8482_s28 + $0x14e8] sm:$0xff] }
 0x133   : > { %5518 = vmatpush1.bf16.msra.mxu0 %v7719_v19  ;;  %5805 = vmatpush1.bf16.msra.mxu1 %v7721_v21  ;;  %v7778_v19 = vcombine.high %v863_v14, %v867_v15  ;;  %v870_v21 = vld [vmem:[%s8482_s28 + $0x1380] sm:$0xff] }
 0x134   : > { %5519 = vmatprep.subr.bf16.mxu0 %v7728_v22  ;;  %5806 = vmatprep.subr.bf16.mxu1 %v7730_v23  ;;  %v874_v22 = vld [vmem:[%s8482_s28 + $0x13a0] sm:$0xff]  ;;  %v871_v23 = vld [vmem:[%s8482_s28 + $0x1388] sm:$0xff] }
 0x135   : > { %v7784_v28 = vcombine.high %v870_v21, %v874_v22  ;;  %v7783_v35 = vcombine.low %v870_v21, %v874_v22  ;;  %v7785_v36 = vcombine.low %v871_v23, %v875_v25  ;;  %v919_v21 = vld [vmem:[%s8482_s28 + $0x1508] sm:$0xff] }
 0x136   : > { %v923_v22 = vld [vmem:[%s8482_s28 + $0x1528] sm:$0xff] }
 0x137   : > { %5520 = vmatpush1.bf16.msra.mxu0 %v7727_v29  ;;  %5807 = vmatpush1.bf16.msra.mxu1 %v7729_v31  ;;  %v7786_v29 = vcombine.high %v871_v23, %v875_v25  ;;  %v878_v31 = vld [vmem:[%s8482_s28 + $0x13c0] sm:$0xff]  ;;  %v7825_v25 = vcombine.low %v911_v12, %v915_v13 }
 0x138   : > { %5521 = vmatprep.subr.bf16.mxu0 %v7736_v32  ;;  %5808 = vmatprep.subr.bf16.mxu1 %v7738_v0  ;;  %v882_v32 = vld [vmem:[%s8482_s28 + $0x13e0] sm:$0xff]  ;;  %v879_v0 = vld [vmem:[%s8482_s28 + $0x13c8] sm:$0xff] }
 0x139   : > { %v7792_v37 = vcombine.high %v878_v31, %v882_v32  ;;  %v7791_v44 = vcombine.low %v878_v31, %v882_v32  ;;  %v7793_v46 = vcombine.low %v879_v0, %v883_v34  ;;  %v927_v31 = vld [vmem:[%s8482_s28 + $0x1548] sm:$0xff] }
 0x13a   : > { %v931_v32 = vld [vmem:[%s8482_s28 + $0x1568] sm:$0xff] }
 0x13b   : > { %5522 = vmatpush1.bf16.msra.mxu0 %v7735_v38  ;;  %5809 = vmatpush1.bf16.msra.mxu1 %v7737_v40  ;;  %v7794_v38 = vcombine.high %v879_v0, %v883_v34  ;;  %v886_v40 = vld [vmem:[%s8482_s28 + $0x1400] sm:$0xff]  ;;  %v7833_v34 = vcombine.low %v919_v21, %v923_v22 }
 0x13c   : > { %5523 = vmatprep.subr.bf16.mxu0 %v7744_v41  ;;  %5810 = vmatprep.subr.bf16.mxu1 %v7746_v42  ;;  %v890_v41 = vld [vmem:[%s8482_s28 + $0x1420] sm:$0xff]  ;;  %v887_v42 = vld [vmem:[%s8482_s28 + $0x1408] sm:$0xff] }
 0x13d   : > { %v7800_v47 = vcombine.high %v886_v40, %v890_v41  ;;  %v7799_v56 = vcombine.low %v886_v40, %v890_v41  ;;  %v7801_v57 = vcombine.low %v887_v42, %v891_v43  ;;  %v935_v40 = vld [vmem:[%s8482_s28 + $0x1588] sm:$0xff] }
 0x13e   : > { %v939_v41 = vld [vmem:[%s8482_s28 + $0x15a8] sm:$0xff] }
 0x13f   : > { %5524 = vmatpush1.bf16.msra.mxu0 %v7743_v48  ;;  %5811 = vmatpush1.bf16.msra.mxu1 %v7745_v50  ;;  %v7802_v48 = vcombine.high %v887_v42, %v891_v43  ;;  %v894_v50 = vld [vmem:[%s8482_s28 + $0x1440] sm:$0xff]  ;;  %v7841_v43 = vcombine.low %v927_v31, %v931_v32 }
 0x140   : > { %5525 = vmatprep.subr.bf16.mxu0 %v7752_v51  ;;  %5812 = vmatprep.subr.bf16.mxu1 %v7754_v52  ;;  %v898_v51 = vld [vmem:[%s8482_s28 + $0x1460] sm:$0xff]  ;;  %v8894_v52 = vrot.slane %v8809_v9, %v8514_v54  ;;  %v903_v9 = vld [vmem:[%s8482_s28 + $0x1488] sm:$0xff] }
 0x141   : > { %v7807_v4 = vcombine.low %v894_v50, %v898_v51  ;;  %v7817_v15 = vcombine.low %v903_v9, %v907_v3 }
 0x143   : > { %5526 = vmatpush1.bf16.msra.mxu0 %v7751_v58  ;;  %5813 = vmatpush1.bf16.msra.mxu1 %v7753_v61  ;;  %v7808_v58 = vcombine.high %v894_v50, %v898_v51  ;;  %v7810_v61 = vcombine.high %v895_v53, %v899_v55  ;;  %v943_v50 = vld [vmem:[%s8482_s28 + $0x15c8] sm:$0xff]  ;;  %v7849_v55 = vcombine.low %v935_v40, %v939_v41 }
 0x144   : > { %5527 = vmatprep.subr.bf16.mxu0 %v7760_v62  ;;  %5814 = vmatprep.subr.bf16.mxu1 %v7762_v63  ;;  %v902_v62 = vld [vmem:[%s8482_s28 + $0x1480] sm:$0xff]  ;;  %v947_v51 = vld [vmem:[%s8482_s28 + $0x15e8] sm:$0xff] }
 0x145   : > { %v906_v63 = vld [vmem:[%s8482_s28 + $0x14a0] sm:$0xff] }
 0x146   : > { %v7815_v14 = vcombine.low %v902_v62, %v906_v63 }
 0x147   : > { %5528 = vmatpush1.bf16.msra.mxu0 %v7759_v30  ;;  %5815 = vmatpush1.bf16.msra.mxu1 %v7761_v7  ;;  %v7816_v30 = vcombine.high %v902_v62, %v906_v63  ;;  %v7818_v7 = vcombine.high %v903_v9, %v907_v3  ;;  %v951_v62 = vld [vmem:[%s8482_s28 + $0x1608] sm:$0xff]  ;;  %v7857_v3 = vcombine.low %v943_v50, %v947_v51 }
 0x148   : > { %5529 = vmatprep.subr.bf16.mxu0 %v7768_v8  ;;  %5816 = vmatprep.subr.bf16.mxu1 %v7770_v11  ;;  %v910_v8 = vld [vmem:[%s8482_s28 + $0x14c0] sm:$0xff]  ;;  %v955_v63 = vld [vmem:[%s8482_s28 + $0x1628] sm:$0xff] }
 0x149   : > { %v914_v11 = vld [vmem:[%s8482_s28 + $0x14e0] sm:$0xff] }
 0x14a   : > { %v7823_v23 = vcombine.low %v910_v8, %v914_v11 }
 0x14b   : > { %5530 = vmatpush1.bf16.msra.mxu0 %v7767_v16  ;;  %5817 = vmatpush1.bf16.msra.mxu1 %v7769_v17  ;;  %v7824_v16 = vcombine.high %v910_v8, %v914_v11  ;;  %v7826_v17 = vcombine.high %v911_v12, %v915_v13  ;;  %v959_v8 = vld [vmem:[%s8482_s28 + $0x1648] sm:$0xff]  ;;  %v7865_v13 = vcombine.low %v951_v62, %v955_v63 }
 0x14c   : > { %5531 = vmatprep.subr.bf16.mxu0 %v7776_v18  ;;  %5818 = vmatprep.subr.bf16.mxu1 %v7778_v19  ;;  %v918_v18 = vld [vmem:[%s8482_s28 + $0x1500] sm:$0xff]  ;;  %v963_v11 = vld [vmem:[%s8482_s28 + $0x1668] sm:$0xff] }
 0x14d   : > { %v922_v19 = vld [vmem:[%s8482_s28 + $0x1520] sm:$0xff] }
 0x14e   : > { %v7831_v0 = vcombine.low %v918_v18, %v922_v19 }
 0x14f   : > { %5532 = vmatpush1.bf16.msra.mxu0 %v7775_v26  ;;  %5819 = vmatpush1.bf16.msra.mxu1 %v7777_v27  ;;  %v7832_v26 = vcombine.high %v918_v18, %v922_v19  ;;  %v7834_v27 = vcombine.high %v919_v21, %v923_v22  ;;  %v967_v18 = vld [vmem:[%s8482_s28 + $0x1688] sm:$0xff]  ;;  %v7873_v22 = vcombine.low %v959_v8, %v963_v11 }
 0x150   : > { %5533 = vmatprep.subr.bf16.mxu0 %v7784_v28  ;;  %5820 = vmatprep.subr.bf16.mxu1 %v7786_v29  ;;  %v926_v28 = vld [vmem:[%s8482_s28 + $0x1540] sm:$0xff]  ;;  %v971_v19 = vld [vmem:[%s8482_s28 + $0x16a8] sm:$0xff] }
 0x151   : > { %v930_v29 = vld [vmem:[%s8482_s28 + $0x1560] sm:$0xff] }
 0x152   : > { %v7839_v42 = vcombine.low %v926_v28, %v930_v29 }
 0x153   : > { %5534 = vmatpush1.bf16.msra.mxu0 %v7783_v35  ;;  %5821 = vmatpush1.bf16.msra.mxu1 %v7785_v36  ;;  %v7840_v35 = vcombine.high %v926_v28, %v930_v29  ;;  %v7842_v36 = vcombine.high %v927_v31, %v931_v32  ;;  %v975_v28 = vld [vmem:[%s8482_s28 + $0x16c8] sm:$0xff]  ;;  %v7881_v32 = vcombine.low %v967_v18, %v971_v19 }
 0x154   : > { %5535 = vmatprep.subr.bf16.mxu0 %v7792_v37  ;;  %5822 = vmatprep.subr.bf16.mxu1 %v7794_v38  ;;  %v934_v37 = vld [vmem:[%s8482_s28 + $0x1580] sm:$0xff]  ;;  %v979_v29 = vld [vmem:[%s8482_s28 + $0x16e8] sm:$0xff] }
 0x155   : > { %v938_v38 = vld [vmem:[%s8482_s28 + $0x15a0] sm:$0xff] }
 0x156   : > { %v7847_v53 = vcombine.low %v934_v37, %v938_v38 }
 0x157   : > { %5536 = vmatpush1.bf16.msra.mxu0 %v7791_v44  ;;  %5823 = vmatpush1.bf16.msra.mxu1 %v7793_v46  ;;  %v7848_v44 = vcombine.high %v934_v37, %v938_v38  ;;  %v7850_v46 = vcombine.high %v935_v40, %v939_v41  ;;  %v983_v37 = vld [vmem:[%s8482_s28 + $0x1708] sm:$0xff]  ;;  %v7889_v41 = vcombine.low %v975_v28, %v979_v29 }
 0x158   : > { %5546 = vmatprep.subr.bf16.mxu0 %v7800_v47  ;;  %5833 = vmatprep.subr.bf16.mxu1 %v7802_v48  ;;  %v942_v47 = vld [vmem:[%s8482_s28 + $0x15c0] sm:$0xff]  ;;  %v987_v38 = vld [vmem:[%s8482_s28 + $0x1728] sm:$0xff] }
 0x159   : > { %v946_v48 = vld [vmem:[%s8482_s28 + $0x15e0] sm:$0xff] }
 0x15a   : > { %5538 = vmatmul.mubr.bf16.vlgmr.msra.gmra.mrb[0].mxu0 %v8894_v52  ;;  %5825 = vmatmul.mubr.bf16.vlgmr.msra.gmra.mrb[0].mxu1 %v8894_v52  ;;  %v7855_v9 = vcombine.low %v942_v47, %v946_v48 }
 0x15b   : > { %5547 = vmatpush1.bf16.msra.mxu0 %v7799_v56  ;;  %5834 = vmatpush1.bf16.msra.mxu1 %v7801_v57  ;;  %v7856_v56 = vcombine.high %v942_v47, %v946_v48  ;;  %v7858_v57 = vcombine.high %v943_v50, %v947_v51  ;;  %v991_v47 = vld [vmem:[%s8482_s28 + $0x1748] sm:$0xff]  ;;  %v7897_v51 = vcombine.low %v983_v37, %v987_v38 }
 0x15c   : > { %5548 = vmatprep.subr.bf16.mxu0 %v7808_v58  ;;  %5835 = vmatprep.subr.bf16.mxu1 %v7810_v61  ;;  %v950_v58 = vld [vmem:[%s8482_s28 + $0x1600] sm:$0xff]  ;;  %v995_v48 = vld [vmem:[%s8482_s28 + $0x1768] sm:$0xff] }
 0x15d   : > { %5578 = vmatprep.mubr.bf16.mxu0 %v8902_v1  ;;  %5865 = vmatprep.mubr.bf16.mxu1 %v8902_v1  ;;  %v954_v61 = vld [vmem:[%s8482_s28 + $0x1620] sm:$0xff] }
 0x15e   : > { %v7863_v12 = vcombine.low %v950_v58, %v954_v61 }
 0x15f   : > { %5549 = vmatpush1.bf16.msra.mxu0 %v7807_v4  ;;  %5836 = vmatpush1.bf16.msra.mxu1 %v7809_v5  ;;  %v7864_v4 = vcombine.high %v950_v58, %v954_v61  ;;  %v7866_v5 = vcombine.high %v951_v62, %v955_v63  ;;  %v999_v58 = vld [vmem:[%s8482_s28 + $0x1788] sm:$0xff]  ;;  %v7905_v63 = vcombine.low %v991_v47, %v995_v48 }
 0x160   : > { %5550 = vmatprep.subr.bf16.mxu0 %v7816_v30  ;;  %5837 = vmatprep.subr.bf16.mxu1 %v7818_v7  ;;  %v958_v30 = vld [vmem:[%s8482_s28 + $0x1640] sm:$0xff]  ;;  %v1003_v61 = vld [vmem:[%s8482_s28 + $0x17a8] sm:$0xff] }
 0x161   : > { %v962_v7 = vld [vmem:[%s8482_s28 + $0x1660] sm:$0xff] }
 0x162   : > { %v7871_v21 = vcombine.low %v958_v30, %v962_v7 }
 0x163   : > { %5551 = vmatpush1.bf16.msra.mxu0 %v7815_v14  ;;  %5838 = vmatpush1.bf16.msra.mxu1 %v7817_v15  ;;  %v7872_v14 = vcombine.high %v958_v30, %v962_v7  ;;  %v7874_v15 = vcombine.high %v959_v8, %v963_v11  ;;  %v1007_v30 = vld [vmem:[%s8482_s28 + $0x17c8] sm:$0xff]  ;;  %v7913_v11 = vcombine.low %v999_v58, %v1003_v61 }
 0x164   : > { %5552 = vmatprep.subr.bf16.mxu0 %v7824_v16  ;;  %5839 = vmatprep.subr.bf16.mxu1 %v7826_v17  ;;  %v966_v16 = vld [vmem:[%s8482_s28 + $0x1680] sm:$0xff]  ;;  %v1011_v7 = vld [vmem:[%s8482_s28 + $0x17e8] sm:$0xff] }
 0x165   : > { %v970_v17 = vld [vmem:[%s8482_s28 + $0x16a0] sm:$0xff] }
 0x166   : > { %v7879_v31 = vcombine.low %v966_v16, %v970_v17 }
 0x167   : > { %5553 = vmatpush1.bf16.msra.mxu0 %v7823_v23  ;;  %5840 = vmatpush1.bf16.msra.mxu1 %v7825_v25  ;;  %v7880_v23 = vcombine.high %v966_v16, %v970_v17  ;;  %v7882_v25 = vcombine.high %v967_v18, %v971_v19  ;;  %v1015_v16 = vld [vmem:[%s8482_s28 + $0x1808] sm:$0xff]  ;;  %v7921_v19 = vcombine.low %v1007_v30, %v1011_v7 }
 0x168   : > { %5554 = vmatprep.subr.bf16.mxu0 %v7832_v26  ;;  %5841 = vmatprep.subr.bf16.mxu1 %v7834_v27  ;;  %v974_v26 = vld [vmem:[%s8482_s28 + $0x16c0] sm:$0xff]  ;;  %v1019_v17 = vld [vmem:[%s8482_s28 + $0x1828] sm:$0xff] }
 0x169   : > { %v978_v27 = vld [vmem:[%s8482_s28 + $0x16e0] sm:$0xff] }
 0x16a   : > { %v7887_v40 = vcombine.low %v974_v26, %v978_v27 }
 0x16b   : > { %5555 = vmatpush1.bf16.msra.mxu0 %v7831_v0  ;;  %5842 = vmatpush1.bf16.msra.mxu1 %v7833_v34  ;;  %v7888_v0 = vcombine.high %v974_v26, %v978_v27  ;;  %v7890_v34 = vcombine.high %v975_v28, %v979_v29  ;;  %v8970_v26 = vcombine.high %v8894_v52, %v8894_v52  ;;  %v1023_v27 = vld [vmem:[%s8482_s28 + $0x1848] sm:$0xff] }
 0x16c   : > { %5556 = vmatprep.subr.bf16.mxu0 %v7840_v35  ;;  %5843 = vmatprep.subr.bf16.mxu1 %v7842_v36  ;;  %v982_v35 = vld [vmem:[%s8482_s28 + $0x1700] sm:$0xff]  ;;  %v1027_v28 = vld [vmem:[%s8482_s28 + $0x1868] sm:$0xff] }
 0x16d   : > { %v986_v36 = vld [vmem:[%s8482_s28 + $0x1720] sm:$0xff] }
 0x16e   : > { %v7895_v50 = vcombine.low %v982_v35, %v986_v36 }
 0x16f   : > { %5557 = vmatpush1.bf16.msra.mxu0 %v7839_v42  ;;  %5844 = vmatpush1.bf16.msra.mxu1 %v7841_v43  ;;  %v7896_v42 = vcombine.high %v982_v35, %v986_v36  ;;  %v7898_v43 = vcombine.high %v983_v37, %v987_v38  ;;  %v1034_v35 = vld [vmem:[%s8482_s28 + $0x18a0] sm:$0xff]  ;;  %v1031_v36 = vld [vmem:[%s8482_s28 + $0x1888] sm:$0xff] }
 0x170   : > { %5558 = vmatprep.subr.bf16.mxu0 %v7848_v44  ;;  %5845 = vmatprep.subr.bf16.mxu1 %v7850_v46  ;;  %v990_v44 = vld [vmem:[%s8482_s28 + $0x1740] sm:$0xff]  ;;  %v1035_v37 = vld [vmem:[%s8482_s28 + $0x18a8] sm:$0xff] }
 0x171   : > { %v994_v46 = vld [vmem:[%s8482_s28 + $0x1760] sm:$0xff] }
 0x172   : > { %v7903_v62 = vcombine.low %v990_v44, %v994_v46 }
 0x173   : > { %5559 = vmatpush1.bf16.msra.mxu0 %v7847_v53  ;;  %5846 = vmatpush1.bf16.msra.mxu1 %v7849_v55  ;;  %v7904_v53 = vcombine.high %v990_v44, %v994_v46  ;;  %v7906_v55 = vcombine.high %v991_v47, %v995_v48  ;;  %v1042_v44 = vld [vmem:[%s8482_s28 + $0x18e0] sm:$0xff]  ;;  %v8427_v46 = vmov 0   ;;  %v1039_v47 = vld [vmem:[%s8482_s28 + $0x18c8] sm:$0xff] }
 0x174   : > { %5560 = vmatprep.subr.bf16.mxu0 %v7856_v56  ;;  %5847 = vmatprep.subr.bf16.mxu1 %v7858_v57  ;;  %v998_v56 = vld [vmem:[%s8482_s28 + $0x1780] sm:$0xff]  ;;  %v1043_v48 = vld [vmem:[%s8482_s28 + $0x18e8] sm:$0xff] }
 0x175   : > { %v1002_v57 = vld [vmem:[%s8482_s28 + $0x17a0] sm:$0xff] }
 0x176   : > { %v7911_v8 = vcombine.low %v998_v56, %v1002_v57 }
 0x177   : > { %5561 = vmatpush1.bf16.msra.mxu0 %v7855_v9  ;;  %5848 = vmatpush1.bf16.msra.mxu1 %v7857_v3  ;;  %v7912_v9 = vcombine.high %v998_v56, %v1002_v57  ;;  %v7914_v3 = vcombine.high %v999_v58, %v1003_v61  ;;  %v1046_v56 = vld [vmem:[%s8482_s28 + $0x1900] sm:$0xff]  ;;  %v1047_v58 = vld [vmem:[%s8482_s28 + $0x1908] sm:$0xff] }
 0x178   : > { %5562 = vmatprep.subr.bf16.mxu0 %v7864_v4  ;;  %5849 = vmatprep.subr.bf16.mxu1 %v7866_v5  ;;  %v1006_v4 = vld [vmem:[%s8482_s28 + $0x17c0] sm:$0xff]  ;;  %v1051_v61 = vld [vmem:[%s8482_s28 + $0x1928] sm:$0xff] }
 0x179   : > { %v1010_v5 = vld [vmem:[%s8482_s28 + $0x17e0] sm:$0xff] }
 0x17a   : > { %v7919_v18 = vcombine.low %v1006_v4, %v1010_v5  ;;  %v1050_v57 = vld [vmem:[%s8482_s28 + $0x1920] sm:$0xff] }
 0x17b   : > { %5563 = vmatpush1.bf16.msra.mxu0 %v7863_v12  ;;  %5850 = vmatpush1.bf16.msra.mxu1 %v7865_v13  ;;  %v7920_v12 = vcombine.high %v1006_v4, %v1010_v5  ;;  %v7922_v13 = vcombine.high %v1007_v30, %v1011_v7  ;;  %v1054_v4 = vld [vmem:[%s8482_s28 + $0x1940] sm:$0xff]  ;;  %v1055_v30 = vld [vmem:[%s8482_s28 + $0x1948] sm:$0xff] }
 0x17c   : > { %5564 = vmatprep.subr.bf16.mxu0 %v7872_v14  ;;  %5851 = vmatprep.subr.bf16.mxu1 %v7874_v15  ;;  %v1014_v14 = vld [vmem:[%s8482_s28 + $0x1800] sm:$0xff]  ;;  %v1059_v7 = vld [vmem:[%s8482_s28 + $0x1968] sm:$0xff] }
 0x17d   : > { %v1018_v15 = vld [vmem:[%s8482_s28 + $0x1820] sm:$0xff] }
 0x17e   : > { %v7927_v29 = vcombine.low %v1014_v14, %v1018_v15  ;;  %v1058_v5 = vld [vmem:[%s8482_s28 + $0x1960] sm:$0xff] }
 0x17f   : > { %5565 = vmatpush1.bf16.msra.mxu0 %v7871_v21  ;;  %5852 = vmatpush1.bf16.msra.mxu1 %v7873_v22  ;;  %v7928_v21 = vcombine.high %v1014_v14, %v1018_v15  ;;  %v7930_v22 = vcombine.high %v1015_v16, %v1019_v17  ;;  %v1062_v14 = vld [vmem:[%s8482_s28 + $0x1980] sm:$0xff] }
 0x180   : > { %5566 = vmatprep.subr.bf16.mxu0 %v7880_v23  ;;  %5853 = vmatprep.subr.bf16.mxu1 %v7882_v25  ;;  %v1022_v23 = vld [vmem:[%s8482_s28 + $0x1840] sm:$0xff] }
 0x181   : > { %v1026_v25 = vld [vmem:[%s8482_s28 + $0x1860] sm:$0xff] }
 0x182   : > { %v7935_v38 = vcombine.low %v1022_v23, %v1026_v25  ;;  %v1066_v15 = vld [vmem:[%s8482_s28 + $0x19a0] sm:$0xff] }
 0x183   : > { %5567 = vmatpush1.bf16.msra.mxu0 %v7879_v31  ;;  %5854 = vmatpush1.bf16.msra.mxu1 %v7881_v32  ;;  %v7929_v31 = vcombine.low %v1015_v16, %v1019_v17  ;;  %v7936_v32 = vcombine.high %v1022_v23, %v1026_v25  ;;  %v1063_v16 = vld [vmem:[%s8482_s28 + $0x1988] sm:$0xff]  ;;  %v1070_v23 = vld [vmem:[%s8482_s28 + $0x19c0] sm:$0xff] }
 0x184   : > { %5568 = vmatprep.subr.bf16.mxu0 %v7888_v0  ;;  %5855 = vmatprep.subr.bf16.mxu1 %v7890_v34  ;;  %v7938_v0 = vcombine.high %v1023_v27, %v1027_v28  ;;  %v1030_v34 = vld [vmem:[%s8482_s28 + $0x1880] sm:$0xff]  ;;  %v1067_v17 = vld [vmem:[%s8482_s28 + $0x19a8] sm:$0xff] }
 0x185   : > { %v1074_v25 = vld [vmem:[%s8482_s28 + $0x19e0] sm:$0xff] }
 0x187   : > { %5569 = vmatpush1.bf16.msra.mxu0 %v7887_v40  ;;  %5856 = vmatpush1.bf16.msra.mxu1 %v7889_v41  ;;  %v7937_v40 = vcombine.low %v1023_v27, %v1027_v28  ;;  %v7944_v41 = vcombine.high %v1030_v34, %v1034_v35  ;;  %v1071_v27 = vld [vmem:[%s8482_s28 + $0x19c8] sm:$0xff] }
 0x188   : > { %5570 = vmatprep.subr.bf16.mxu0 %v7896_v42  ;;  %5857 = vmatprep.subr.bf16.mxu1 %v7898_v43  ;;  %v7946_v42 = vcombine.high %v1031_v36, %v1035_v37  ;;  %v1038_v43 = vld [vmem:[%s8482_s28 + $0x18c0] sm:$0xff]  ;;  %v1075_v28 = vld [vmem:[%s8482_s28 + $0x19e8] sm:$0xff] }
 0x18b   : > { %5571 = vmatpush1.bf16.msra.mxu0 %v7895_v50  ;;  %5858 = vmatpush1.bf16.msra.mxu1 %v7897_v51  ;;  %v7943_v50 = vcombine.low %v1030_v34, %v1034_v35  ;;  %v7945_v51 = vcombine.low %v1031_v36, %v1035_v37  ;;  %v7986_v34 = vcombine.high %v1071_v27, %v1075_v28  ;;  %v248_v35 = vld [vmem:[%s8482_s28 + $0x10] sm:$0xff] }
 0x18c   : > { %5572 = vmatprep.subr.bf16.mxu0 %v7904_v53  ;;  %5859 = vmatprep.subr.bf16.mxu1 %v7906_v55  ;;  %v7952_v53 = vcombine.high %v1038_v43, %v1042_v44  ;;  %v7954_v55 = vcombine.high %v1039_v47, %v1043_v48  ;;  %v252_v36 = vld [vmem:[%s8482_s28 + $0x30] sm:$0xff] }
 0x18f   : > { %5573 = vmatpush1.bf16.msra.mxu0 %v7903_v62  ;;  %5860 = vmatpush1.bf16.msra.mxu1 %v7905_v63  ;;  %v7951_v62 = vcombine.low %v1038_v43, %v1042_v44  ;;  %v7953_v63 = vcombine.low %v1039_v47, %v1043_v48  ;;  %v256_v44 = vld [vmem:[%s8482_s28 + $0x50] sm:$0xff] }
 0x190   : > { %5574 = vmatprep.subr.bf16.mxu0 %v7912_v9  ;;  %5861 = vmatprep.subr.bf16.mxu1 %v7914_v3  ;;  %v7960_v9 = vcombine.high %v1046_v56, %v1050_v57  ;;  %v7962_v3 = vcombine.high %v1047_v58, %v1051_v61  ;;  %v260_v47 = vld [vmem:[%s8482_s28 + $0x70] sm:$0xff] }
 0x193   : > { %5575 = vmatpush1.bf16.msra.mxu0 %v7911_v8  ;;  %5862 = vmatpush1.bf16.msra.mxu1 %v7913_v11  ;;  %v7959_v8 = vcombine.low %v1046_v56, %v1050_v57  ;;  %v7961_v11 = vcombine.low %v1047_v58, %v1051_v61  ;;  %v7172_v56 = vcombine.high %v256_v44, %v260_v47  ;;  %v264_v58 = vld [vmem:[%s8482_s28 + $0x90] sm:$0xff] }
 0x194   : > { %5576 = vmatprep.subr.bf16.mxu0 %v7920_v12  ;;  %5863 = vmatprep.subr.bf16.mxu1 %v7922_v13  ;;  %v7968_v12 = vcombine.high %v1054_v4, %v1058_v5  ;;  %v7970_v13 = vcombine.high %v1055_v30, %v1059_v7  ;;  %v268_v61 = vld [vmem:[%s8482_s28 + $0xb0] sm:$0xff] }
 0x197   : > { %5577 = vmatpush1.bf16.msra.mxu0 %v7919_v18  ;;  %5864 = vmatpush1.bf16.msra.mxu1 %v7921_v19  ;;  %v7967_v18 = vcombine.low %v1054_v4, %v1058_v5  ;;  %v7969_v19 = vcombine.low %v1055_v30, %v1059_v7  ;;  %v272_v5 = vld [vmem:[%s8482_s28 + $0xd0] sm:$0xff]  ;;  %v273_v7 = vld [vmem:[%s8482_s28 + $0xd8] sm:$0xff] }
 0x198   : > { %5587 = vmatprep.subr.bf16.mxu0 %v7928_v21  ;;  %5874 = vmatprep.subr.bf16.mxu1 %v7930_v22  ;;  %v7976_v21 = vcombine.high %v1062_v14, %v1066_v15  ;;  %v7978_v22 = vcombine.high %v1063_v16, %v1067_v17  ;;  %v276_v30 = vld [vmem:[%s8482_s28 + $0xf0] sm:$0xff] }
 0x19a   : > { %5579 = vmatmul.mubr.bf16.vlgmr.msra.gmra.mrb[0].mxu0 %v8970_v26  ;;  %5866 = vmatmul.mubr.bf16.vlgmr.msra.gmra.mrb[0].mxu1 %v8970_v26 }
 0x19b   : > { %5588 = vmatpush1.bf16.msra.mxu0 %v7927_v29  ;;  %5875 = vmatpush1.bf16.msra.mxu1 %v7929_v31  ;;  %v1129_v29 = vcombine.high %v8803_v2, %v8803_v2  ;;  %v7975_v31 = vcombine.low %v1062_v14, %v1066_v15  ;;  %v7983_v2 = vcombine.low %v1070_v23, %v1074_v25  ;;  %v280_v15 = vld [vmem:[%s8482_s28 + $0x110] sm:$0xff] }
 0x19c   : > { %5589 = vmatprep.subr.bf16.mxu0 %v7936_v32  ;;  %5876 = vmatprep.subr.bf16.mxu1 %v7938_v0  ;;  %v7977_v32 = vcombine.low %v1063_v16, %v1067_v17  ;;  %v7984_v0 = vcombine.high %v1070_v23, %v1074_v25  ;;  %v284_v16 = vld [vmem:[%s8482_s28 + $0x130] sm:$0xff]  ;;  %v281_v17 = vld [vmem:[%s8482_s28 + $0x118] sm:$0xff] }
 0x19d   : > { %5619 = vmatprep.mubr.bf16.mxu0 %v8427_v46  ;;  %5906 = vmatprep.mubr.bf16.mxu1 %v8427_v46  ;;  %v1143_v37 = vrot.slane %v1129_v29, %v8514_v54  ;;  %v288_v23 = vld [vmem:[%s8482_s28 + $0x150] sm:$0xff]  ;;  %v7195_v29 = vcombine.low %v280_v15, %v284_v16 }
 0x19e   : > { %v292_v25 = vld [vmem:[%s8482_s28 + $0x170] sm:$0xff] }
 0x19f   : > { %5590 = vmatpush1.bf16.msra.mxu0 %v7935_v38  ;;  %5877 = vmatpush1.bf16.msra.mxu1 %v7937_v40  ;;  %v249_v38 = vld [vmem:[%s8482_s28 + $0x18] sm:$0xff]  ;;  %v9012_v48 = vrot.slane %v1143_v37, %v8514_v54 }
 0x1a0   : > { %5591 = vmatprep.subr.bf16.mxu0 %v7944_v41  ;;  %5878 = vmatprep.subr.bf16.mxu1 %v7946_v42  ;;  %v253_v40 = vld [vmem:[%s8482_s28 + $0x38] sm:$0xff]  ;;  %v7985_v41 = vcombine.low %v1071_v27, %v1075_v28  ;;  %v7164_v42 = vcombine.high %v248_v35, %v252_v36 }
 0x1a1   : > { %v7166_v43 = vcombine.high %v249_v38, %v253_v40  ;;  %v265_v54 = vld [vmem:[%s8482_s28 + $0x98] sm:$0xff] }
 0x1a2   : > { %v289_v27 = vld [vmem:[%s8482_s28 + $0x158] sm:$0xff] }
 0x1a3   : > { %5592 = vmatpush1.bf16.msra.mxu0 %v7943_v50  ;;  %5879 = vmatpush1.bf16.msra.mxu1 %v7945_v51  ;;  %v257_v50 = vld [vmem:[%s8482_s28 + $0x58] sm:$0xff] }
 0x1a4   : > { %5593 = vmatprep.subr.bf16.mxu0 %v7952_v53  ;;  %5880 = vmatprep.subr.bf16.mxu1 %v7954_v55  ;;  %v261_v51 = vld [vmem:[%s8482_s28 + $0x78] sm:$0xff]  ;;  %v7163_v53 = vcombine.low %v248_v35, %v252_v36  ;;  %v7165_v55 = vcombine.low %v249_v38, %v253_v40  ;;  %v300_v35 = vld [vmem:[%s8482_s28 + $0x1b0] sm:$0xff]  ;;  %v7203_v38 = vcombine.low %v288_v23, %v292_v25 }
 0x1a5   : > { %v7174_v57 = vcombine.high %v257_v50, %v261_v51  ;;  %v293_v28 = vld [vmem:[%s8482_s28 + $0x178] sm:$0xff] }
 0x1a6   : > { %v297_v36 = vld [vmem:[%s8482_s28 + $0x198] sm:$0xff]  ;;  %v7205_v40 = vcombine.low %v289_v27, %v293_v28 }
 0x1a7   : > { %5594 = vmatpush1.bf16.msra.mxu0 %v7951_v62  ;;  %5881 = vmatpush1.bf16.msra.mxu1 %v7953_v63  ;;  %v269_v62 = vld [vmem:[%s8482_s28 + $0xb8] sm:$0xff]  ;;  %v7171_v63 = vcombine.low %v256_v44, %v260_v47 }
 0x1a8   : > { %5595 = vmatprep.subr.bf16.mxu0 %v7960_v9  ;;  %5882 = vmatprep.subr.bf16.mxu1 %v7962_v3  ;;  %v7173_v9 = vcombine.low %v257_v50, %v261_v51  ;;  %v7180_v3 = vcombine.high %v264_v58, %v268_v61  ;;  %v7182_v4 = vcombine.high %v265_v54, %v269_v62  ;;  %v301_v37 = vld [vmem:[%s8482_s28 + $0x1b8] sm:$0xff] }
 0x1a9   : > { %v305_v44 = vld [vmem:[%s8482_s28 + $0x1d8] sm:$0xff]  ;;  %v7213_v51 = vcombine.low %v297_v36, %v301_v37 }
 0x1aa   : > { %v309_v47 = vld [vmem:[%s8482_s28 + $0x1f8] sm:$0xff] }
 0x1ab   : > { %5596 = vmatpush1.bf16.msra.mxu0 %v7959_v8  ;;  %5883 = vmatpush1.bf16.msra.mxu1 %v7961_v11  ;;  %v277_v8 = vld [vmem:[%s8482_s28 + $0xf8] sm:$0xff]  ;;  %v7179_v11 = vcombine.low %v264_v58, %v268_v61 }
 0x1ac   : > { %5597 = vmatprep.subr.bf16.mxu0 %v7968_v12  ;;  %5884 = vmatprep.subr.bf16.mxu1 %v7970_v13  ;;  %v7181_v12 = vcombine.low %v265_v54, %v269_v62  ;;  %v7188_v13 = vcombine.high %v272_v5, %v276_v30  ;;  %v7190_v14 = vcombine.high %v273_v7, %v277_v8  ;;  %v313_v58 = vld [vmem:[%s8482_s28 + $0x218] sm:$0xff] }
 0x1ad   : > { %v317_v61 = vld [vmem:[%s8482_s28 + $0x238] sm:$0xff]  ;;  %v7221_v62 = vcombine.low %v305_v44, %v309_v47 }
 0x1af   : > { %5598 = vmatpush1.bf16.msra.mxu0 %v7967_v18  ;;  %5885 = vmatpush1.bf16.msra.mxu1 %v7969_v19  ;;  %v285_v18 = vld [vmem:[%s8482_s28 + $0x138] sm:$0xff]  ;;  %v7187_v19 = vcombine.low %v272_v5, %v276_v30 }
 0x1b0   : > { %5599 = vmatprep.subr.bf16.mxu0 %v7976_v21  ;;  %5886 = vmatprep.subr.bf16.mxu1 %v7978_v22  ;;  %v7196_v21 = vcombine.high %v280_v15, %v284_v16  ;;  %v7198_v22 = vcombine.high %v281_v17, %v285_v18  ;;  %v321_v5 = vld [vmem:[%s8482_s28 + $0x258] sm:$0xff] }
 0x1b1   : > { %v325_v30 = vld [vmem:[%s8482_s28 + $0x278] sm:$0xff] }
 0x1b2   : > { %v329_v15 = vld [vmem:[%s8482_s28 + $0x298] sm:$0xff] }
 0x1b3   : > { %5600 = vmatpush1.bf16.msra.mxu0 %v7975_v31  ;;  %5887 = vmatpush1.bf16.msra.mxu1 %v7977_v32  ;;  %v7197_v31 = vcombine.low %v281_v17, %v285_v18  ;;  %v7204_v32 = vcombine.high %v288_v23, %v292_v25  ;;  %v333_v16 = vld [vmem:[%s8482_s28 + $0x2b8] sm:$0xff]  ;;  %v7237_v18 = vcombine.low %v321_v5, %v325_v30 }
 0x1b4   : > { %5601 = vmatprep.subr.bf16.mxu0 %v7984_v0  ;;  %5888 = vmatprep.subr.bf16.mxu1 %v7986_v34  ;;  %v7206_v0 = vcombine.high %v289_v27, %v293_v28  ;;  %v296_v34 = vld [vmem:[%s8482_s28 + $0x190] sm:$0xff]  ;;  %v337_v23 = vld [vmem:[%s8482_s28 + $0x2d8] sm:$0xff]  ;;  %v7245_v28 = vcombine.low %v329_v15, %v333_v16 }
 0x1b5   : > { %v7211_v50 = vcombine.low %v296_v34, %v300_v35  ;;  %v341_v25 = vld [vmem:[%s8482_s28 + $0x2f8] sm:$0xff] }
 0x1b7   : > { %5602 = vmatpush1.bf16.msra.mxu0 %v7983_v2  ;;  %5889 = vmatpush1.bf16.msra.mxu1 %v7985_v41  ;;  %v7212_v2 = vcombine.high %v296_v34, %v300_v35  ;;  %v7214_v41 = vcombine.high %v297_v36, %v301_v37  ;;  %v345_v34 = vld [vmem:[%s8482_s28 + $0x318] sm:$0xff]  ;;  %v7253_v37 = vcombine.low %v337_v23, %v341_v25 }
 0x1b8   : > { %5915 = vmatprep.subr.bf16.mxu0 %v7164_v42  ;;  %6202 = vmatprep.subr.bf16.mxu1 %v7166_v43  ;;  %v304_v42 = vld [vmem:[%s8482_s28 + $0x1d0] sm:$0xff]  ;;  %v349_v35 = vld [vmem:[%s8482_s28 + $0x338] sm:$0xff] }
 0x1b9   : > { %v308_v43 = vld [vmem:[%s8482_s28 + $0x1f0] sm:$0xff] }
 0x1ba   : > { %5620 = vmatmul.mubr.bf16.vlgmr.msra.gmra.mrb[0].mxu0 %v9012_v48  ;;  %5907 = vmatmul.mubr.bf16.vlgmr.msra.gmra.mrb[0].mxu1 %v9012_v48  ;;  %v7219_v54 = vcombine.low %v304_v42, %v308_v43 }
 0x1bb   : > { %5916 = vmatpush1.bf16.msra.mxu0 %v7163_v53  ;;  %6203 = vmatpush1.bf16.msra.mxu1 %v7165_v55  ;;  %v7220_v53 = vcombine.high %v304_v42, %v308_v43  ;;  %v7222_v55 = vcombine.high %v305_v44, %v309_v47  ;;  %v353_v42 = vld [vmem:[%s8482_s28 + $0x358] sm:$0xff]  ;;  %v7261_v47 = vcombine.low %v345_v34, %v349_v35 }
 0x1bc   : > { %5917 = vmatprep.subr.bf16.mxu0 %v7172_v56  ;;  %6204 = vmatprep.subr.bf16.mxu1 %v7174_v57  ;;  %v312_v56 = vld [vmem:[%s8482_s28 + $0x210] sm:$0xff]  ;;  %v357_v43 = vld [vmem:[%s8482_s28 + $0x378] sm:$0xff] }
 0x1bd   : > { %5947 = vmatprep.mubr.bf16.mxu0 %v8534_v10  ;;  %6234 = vmatprep.mubr.bf16.mxu1 %v8534_v10  ;;  %v7189_v10 = vcombine.low %v273_v7, %v277_v8  ;;  %v316_v57 = vld [vmem:[%s8482_s28 + $0x230] sm:$0xff]  ;;  %v7229_v8 = vcombine.low %v313_v58, %v317_v61 }
 0x1be   : > { %v7227_v7 = vcombine.low %v312_v56, %v316_v57 }
 0x1bf   : > { %5918 = vmatpush1.bf16.msra.mxu0 %v7171_v63  ;;  %6205 = vmatpush1.bf16.msra.mxu1 %v7173_v9  ;;  %v7228_v63 = vcombine.high %v312_v56, %v316_v57  ;;  %v7230_v9 = vcombine.high %v313_v58, %v317_v61  ;;  %v361_v56 = vld [vmem:[%s8482_s28 + $0x398] sm:$0xff]  ;;  %v7269_v61 = vcombine.low %v353_v42, %v357_v43 }
 0x1c0   : > { %5919 = vmatprep.subr.bf16.mxu0 %v7180_v3  ;;  %6206 = vmatprep.subr.bf16.mxu1 %v7182_v4  ;;  %v320_v3 = vld [vmem:[%s8482_s28 + $0x250] sm:$0xff]  ;;  %v365_v57 = vld [vmem:[%s8482_s28 + $0x3b8] sm:$0xff] }
 0x1c1   : > { %v324_v4 = vld [vmem:[%s8482_s28 + $0x270] sm:$0xff] }
 0x1c2   : > { %v7235_v17 = vcombine.low %v320_v3, %v324_v4 }
 0x1c3   : > { %5920 = vmatpush1.bf16.msra.mxu0 %v7179_v11  ;;  %6207 = vmatpush1.bf16.msra.mxu1 %v7181_v12  ;;  %v7236_v11 = vcombine.high %v320_v3, %v324_v4  ;;  %v7238_v12 = vcombine.high %v321_v5, %v325_v30  ;;  %v369_v3 = vld [vmem:[%s8482_s28 + $0x3d8] sm:$0xff]  ;;  %v7277_v30 = vcombine.low %v361_v56, %v365_v57 }
 0x1c4   : > { %5921 = vmatprep.subr.bf16.mxu0 %v7188_v13  ;;  %6208 = vmatprep.subr.bf16.mxu1 %v7190_v14  ;;  %v328_v13 = vld [vmem:[%s8482_s28 + $0x290] sm:$0xff]  ;;  %v373_v4 = vld [vmem:[%s8482_s28 + $0x3f8] sm:$0xff] }
 0x1c5   : > { %v332_v14 = vld [vmem:[%s8482_s28 + $0x2b0] sm:$0xff] }
 0x1c6   : > { %v7243_v27 = vcombine.low %v328_v13, %v332_v14 }
 0x1c7   : > { %5922 = vmatpush1.bf16.msra.mxu0 %v7187_v19  ;;  %6209 = vmatpush1.bf16.msra.mxu1 %v7189_v10  ;;  %v7244_v19 = vcombine.high %v328_v13, %v332_v14  ;;  %v7246_v10 = vcombine.high %v329_v15, %v333_v16  ;;  %v377_v13 = vld [vmem:[%s8482_s28 + $0x418] sm:$0xff]  ;;  %v7285_v16 = vcombine.low %v369_v3, %v373_v4 }
 0x1c8   : > { %5923 = vmatprep.subr.bf16.mxu0 %v7196_v21  ;;  %6210 = vmatprep.subr.bf16.mxu1 %v7198_v22  ;;  %v336_v21 = vld [vmem:[%s8482_s28 + $0x2d0] sm:$0xff]  ;;  %v381_v14 = vld [vmem:[%s8482_s28 + $0x438] sm:$0xff] }
 0x1c9   : > { %v340_v22 = vld [vmem:[%s8482_s28 + $0x2f0] sm:$0xff] }
 0x1ca   : > { %v7251_v36 = vcombine.low %v336_v21, %v340_v22 }
 0x1cb   : > { %5924 = vmatpush1.bf16.msra.mxu0 %v7195_v29  ;;  %6211 = vmatpush1.bf16.msra.mxu1 %v7197_v31  ;;  %v7252_v29 = vcombine.high %v336_v21, %v340_v22  ;;  %v7254_v31 = vcombine.high %v337_v23, %v341_v25  ;;  %v385_v21 = vld [vmem:[%s8482_s28 + $0x458] sm:$0xff]  ;;  %v7293_v25 = vcombine.low %v377_v13, %v381_v14 }
 0x1cc   : > { %5925 = vmatprep.subr.bf16.mxu0 %v7204_v32  ;;  %6212 = vmatprep.subr.bf16.mxu1 %v7206_v0  ;;  %v344_v32 = vld [vmem:[%s8482_s28 + $0x310] sm:$0xff]  ;;  %v389_v22 = vld [vmem:[%s8482_s28 + $0x478] sm:$0xff] }
 0x1cd   : > { %v348_v0 = vld [vmem:[%s8482_s28 + $0x330] sm:$0xff] }
 0x1ce   : > { %v7259_v44 = vcombine.low %v344_v32, %v348_v0 }
 0x1cf   : > { %5926 = vmatpush1.bf16.msra.mxu0 %v7203_v38  ;;  %6213 = vmatpush1.bf16.msra.mxu1 %v7205_v40  ;;  %v7260_v38 = vcombine.high %v344_v32, %v348_v0  ;;  %v7262_v40 = vcombine.high %v345_v34, %v349_v35  ;;  %v393_v32 = vld [vmem:[%s8482_s28 + $0x498] sm:$0xff]  ;;  %v7301_v35 = vcombine.low %v385_v21, %v389_v22 }
 0x1d0   : > { %5927 = vmatprep.subr.bf16.mxu0 %v7212_v2  ;;  %6214 = vmatprep.subr.bf16.mxu1 %v7214_v41  ;;  %v352_v2 = vld [vmem:[%s8482_s28 + $0x350] sm:$0xff]  ;;  %v397_v0 = vld [vmem:[%s8482_s28 + $0x4b8] sm:$0xff] }
 0x1d1   : > { %v356_v41 = vld [vmem:[%s8482_s28 + $0x370] sm:$0xff] }
 0x1d2   : > { %v7267_v58 = vcombine.low %v352_v2, %v356_v41 }
 0x1d3   : > { %5928 = vmatpush1.bf16.msra.mxu0 %v7211_v50  ;;  %6215 = vmatpush1.bf16.msra.mxu1 %v7213_v51  ;;  %v7268_v50 = vcombine.high %v352_v2, %v356_v41  ;;  %v7270_v51 = vcombine.high %v353_v42, %v357_v43  ;;  %v401_v2 = vld [vmem:[%s8482_s28 + $0x4d8] sm:$0xff]  ;;  %v7309_v42 = vcombine.low %v393_v32, %v397_v0 }
 0x1d4   : > { %5929 = vmatprep.subr.bf16.mxu0 %v7220_v53  ;;  %6216 = vmatprep.subr.bf16.mxu1 %v7222_v55  ;;  %v360_v53 = vld [vmem:[%s8482_s28 + $0x390] sm:$0xff]  ;;  %v405_v41 = vld [vmem:[%s8482_s28 + $0x4f8] sm:$0xff] }
 0x1d5   : > { %v364_v55 = vld [vmem:[%s8482_s28 + $0x3b0] sm:$0xff] }
 0x1d6   : > { %v7275_v5 = vcombine.low %v360_v53, %v364_v55 }
 0x1d7   : > { %5930 = vmatpush1.bf16.msra.mxu0 %v7219_v54  ;;  %6217 = vmatpush1.bf16.msra.mxu1 %v7221_v62  ;;  %v7276_v54 = vcombine.high %v360_v53, %v364_v55  ;;  %v7278_v62 = vcombine.high %v361_v56, %v365_v57  ;;  %v413_v53 = vld [vmem:[%s8482_s28 + $0x538] sm:$0xff] }
 0x1d8   : > { %5931 = vmatprep.subr.bf16.mxu0 %v7228_v63  ;;  %6218 = vmatprep.subr.bf16.mxu1 %v7230_v9  ;;  %v368_v63 = vld [vmem:[%s8482_s28 + $0x3d0] sm:$0xff] }
 0x1d9   : > { %v372_v9 = vld [vmem:[%s8482_s28 + $0x3f0] sm:$0xff] }
 0x1da   : > { %v7283_v15 = vcombine.low %v368_v63, %v372_v9 }
 0x1db   : > { %5932 = vmatpush1.bf16.msra.mxu0 %v7227_v7  ;;  %6219 = vmatpush1.bf16.msra.mxu1 %v7229_v8  ;;  %v7284_v7 = vcombine.high %v368_v63, %v372_v9  ;;  %v7286_v8 = vcombine.high %v369_v3, %v373_v4 }
 0x1dc   : > { %5933 = vmatprep.subr.bf16.mxu0 %v7236_v11  ;;  %6220 = vmatprep.subr.bf16.mxu1 %v7238_v12  ;;  %v376_v11 = vld [vmem:[%s8482_s28 + $0x410] sm:$0xff] }
 0x1dd   : > { %v380_v12 = vld [vmem:[%s8482_s28 + $0x430] sm:$0xff] }
 0x1de   : > { %v7291_v23 = vcombine.low %v376_v11, %v380_v12 }
 0x1df   : > { %5934 = vmatpush1.bf16.msra.mxu0 %v7235_v17  ;;  %6221 = vmatpush1.bf16.msra.mxu1 %v7237_v18  ;;  %v7292_v17 = vcombine.high %v376_v11, %v380_v12  ;;  %v7294_v18 = vcombine.high %v377_v13, %v381_v14 }
 0x1e0   : > { %5935 = vmatprep.subr.bf16.mxu0 %v7244_v19  ;;  %6222 = vmatprep.subr.bf16.mxu1 %v7246_v10  ;;  %v384_v19 = vld [vmem:[%s8482_s28 + $0x450] sm:$0xff] }
 0x1e1   : > { %v388_v10 = vld [vmem:[%s8482_s28 + $0x470] sm:$0xff] }
 0x1e2   : > { %v7299_v34 = vcombine.low %v384_v19, %v388_v10 }
 0x1e3   : > { %5936 = vmatpush1.bf16.msra.mxu0 %v7243_v27  ;;  %6223 = vmatpush1.bf16.msra.mxu1 %v7245_v28  ;;  %v7300_v27 = vcombine.high %v384_v19, %v388_v10  ;;  %v7302_v28 = vcombine.high %v385_v21, %v389_v22 }
 0x1e4   : > { %5937 = vmatprep.subr.bf16.mxu0 %v7252_v29  ;;  %6224 = vmatprep.subr.bf16.mxu1 %v7254_v31  ;;  %v392_v29 = vld [vmem:[%s8482_s28 + $0x490] sm:$0xff] }
 0x1e5   : > { %v396_v31 = vld [vmem:[%s8482_s28 + $0x4b0] sm:$0xff] }
 0x1e7   : > { %5938 = vmatpush1.bf16.msra.mxu0 %v7251_v36  ;;  %6225 = vmatpush1.bf16.msra.mxu1 %v7253_v37  ;;  %v7308_v36 = vcombine.high %v392_v29, %v396_v31  ;;  %v7310_v37 = vcombine.high %v393_v32, %v397_v0 }
 0x1e8   : > { %5939 = vmatprep.subr.bf16.mxu0 %v7260_v38  ;;  %6226 = vmatprep.subr.bf16.mxu1 %v7262_v40  ;;  %v400_v38 = vld [vmem:[%s8482_s28 + $0x4d0] sm:$0xff] }
 0x1e9   : > { %v404_v40 = vld [vmem:[%s8482_s28 + $0x4f0] sm:$0xff] }
 0x1ea   : > { %v7316_v43 = vcombine.high %v400_v38, %v404_v40  ;;  %v7315_v55 = vcombine.low %v400_v38, %v404_v40 }
 0x1eb   : > { %5940 = vmatpush1.bf16.msra.mxu0 %v7259_v44  ;;  %6227 = vmatpush1.bf16.msra.mxu1 %v7261_v47  ;;  %v7318_v44 = vcombine.high %v401_v2, %v405_v41  ;;  %v408_v47 = vld [vmem:[%s8482_s28 + $0x510] sm:$0xff] }
 0x1ec   : > { %5941 = vmatprep.subr.bf16.mxu0 %v7268_v50  ;;  %6228 = vmatprep.subr.bf16.mxu1 %v7270_v51  ;;  %v412_v50 = vld [vmem:[%s8482_s28 + $0x530] sm:$0xff]  ;;  %v409_v51 = vld [vmem:[%s8482_s28 + $0x518] sm:$0xff] }
 0x1ed   : > { %v7324_v56 = vcombine.high %v408_v47, %v412_v50  ;;  %v7326_v57 = vcombine.high %v409_v51, %v413_v53  ;;  %v7323_v63 = vcombine.low %v408_v47, %v412_v50  ;;  %v7325_v9 = vcombine.low %v409_v51, %v413_v53 }
 0x1ef   : > { %5942 = vmatpush1.bf16.msra.mxu0 %v7267_v58  ;;  %6229 = vmatpush1.bf16.msra.mxu1 %v7269_v61  ;;  %v416_v58 = vld [vmem:[%s8482_s28 + $0x550] sm:$0xff] }
 0x1f0   : > { %5943 = vmatprep.subr.bf16.mxu0 %v7276_v54  ;;  %6230 = vmatprep.subr.bf16.mxu1 %v7278_v62  ;;  %v420_v61 = vld [vmem:[%s8482_s28 + $0x570] sm:$0xff]  ;;  %v417_v54 = vld [vmem:[%s8482_s28 + $0x558] sm:$0xff] }
 0x1f1   : > { %v421_v62 = vld [vmem:[%s8482_s28 + $0x578] sm:$0xff]  ;;  %v7332_v3 = vcombine.high %v416_v58, %v420_v61  ;;  %v7331_v11 = vcombine.low %v416_v58, %v420_v61 }
 0x1f2   : > { %v7334_v4 = vcombine.high %v417_v54, %v421_v62  ;;  %v7333_v12 = vcombine.low %v417_v54, %v421_v62 }
 0x1f3   : > { %5944 = vmatpush1.bf16.msra.mxu0 %v7275_v5  ;;  %6231 = vmatpush1.bf16.msra.mxu1 %v7277_v30  ;;  %v424_v5 = vld [vmem:[%s8482_s28 + $0x590] sm:$0xff] }
 0x1f4   : > { %5945 = vmatprep.subr.bf16.mxu0 %v7284_v7  ;;  %6232 = vmatprep.subr.bf16.mxu1 %v7286_v8  ;;  %v428_v30 = vld [vmem:[%s8482_s28 + $0x5b0] sm:$0xff]  ;;  %v425_v7 = vld [vmem:[%s8482_s28 + $0x598] sm:$0xff] }
 0x1f5   : > { %v429_v8 = vld [vmem:[%s8482_s28 + $0x5b8] sm:$0xff]  ;;  %v7340_v13 = vcombine.high %v424_v5, %v428_v30  ;;  %v7339_v19 = vcombine.low %v424_v5, %v428_v30 }
 0x1f6   : > { %v7342_v14 = vcombine.high %v425_v7, %v429_v8  ;;  %v7341_v10 = vcombine.low %v425_v7, %v429_v8 }
 0x1f7   : > { %5946 = vmatpush1.bf16.msra.mxu0 %v7283_v15  ;;  %6233 = vmatpush1.bf16.msra.mxu1 %v7285_v16  ;;  %v432_v15 = vld [vmem:[%s8482_s28 + $0x5d0] sm:$0xff] }
 0x1f8   : > { %5956 = vmatprep.subr.bf16.mxu0 %v7292_v17  ;;  %6243 = vmatprep.subr.bf16.mxu1 %v7294_v18  ;;  %v436_v16 = vld [vmem:[%s8482_s28 + $0x5f0] sm:$0xff]  ;;  %v433_v17 = vld [vmem:[%s8482_s28 + $0x5d8] sm:$0xff] }
 0x1f9   : > { %v437_v18 = vld [vmem:[%s8482_s28 + $0x5f8] sm:$0xff]  ;;  %v7348_v21 = vcombine.high %v432_v15, %v436_v16 }
 0x1fa   : > { %5948 = vmatmul.mubr.bf16.vlgmr.msra.gmra.mrb[4].mxu0 %v8576_v24  ;;  %6235 = vmatmul.mubr.bf16.vlgmr.msra.gmra.mrb[4].mxu1 %v8576_v24  ;;  %v7307_v24 = vcombine.low %v392_v29, %v396_v31  ;;  %v7350_v22 = vcombine.high %v433_v17, %v437_v18  ;;  %v7347_v29 = vcombine.low %v432_v15, %v436_v16 }
 0x1fb   : > { %5957 = vmatpush1.bf16.msra.mxu0 %v7291_v23  ;;  %6244 = vmatpush1.bf16.msra.mxu1 %v7293_v25  ;;  %v440_v23 = vld [vmem:[%s8482_s28 + $0x610] sm:$0xff]  ;;  %v7349_v31 = vcombine.low %v433_v17, %v437_v18 }
 0x1fc   : > { %5958 = vmatprep.subr.bf16.mxu0 %v7300_v27  ;;  %6245 = vmatprep.subr.bf16.mxu1 %v7302_v28  ;;  %v444_v25 = vld [vmem:[%s8482_s28 + $0x630] sm:$0xff]  ;;  %v441_v27 = vld [vmem:[%s8482_s28 + $0x618] sm:$0xff] }
 0x1fd   : > { %5988 = vmatprep.mubr.bf16.mxu0 %v8584_v33  ;;  %6275 = vmatprep.mubr.bf16.mxu1 %v8584_v33  ;;  %v7317_v33 = vcombine.low %v401_v2, %v405_v41  ;;  %v445_v28 = vld [vmem:[%s8482_s28 + $0x638] sm:$0xff]  ;;  %v7356_v32 = vcombine.high %v440_v23, %v444_v25  ;;  %v7355_v38 = vcombine.low %v440_v23, %v444_v25 }
 0x1fe   : > { %v7358_v0 = vcombine.high %v441_v27, %v445_v28  ;;  %v7357_v40 = vcombine.low %v441_v27, %v445_v28 }
 0x1ff   : > { %5959 = vmatpush1.bf16.msra.mxu0 %v7299_v34  ;;  %6246 = vmatpush1.bf16.msra.mxu1 %v7301_v35  ;;  %v448_v34 = vld [vmem:[%s8482_s28 + $0x650] sm:$0xff] }
 0x200   : > { %5960 = vmatprep.subr.bf16.mxu0 %v7308_v36  ;;  %6247 = vmatprep.subr.bf16.mxu1 %v7310_v37  ;;  %v452_v35 = vld [vmem:[%s8482_s28 + $0x670] sm:$0xff]  ;;  %v449_v36 = vld [vmem:[%s8482_s28 + $0x658] sm:$0xff] }
 0x201   : > { %v453_v37 = vld [vmem:[%s8482_s28 + $0x678] sm:$0xff]  ;;  %v7364_v2 = vcombine.high %v448_v34, %v452_v35  ;;  %v7363_v47 = vcombine.low %v448_v34, %v452_v35 }
 0x202   : > { %v7366_v41 = vcombine.high %v449_v36, %v453_v37  ;;  %v7365_v50 = vcombine.low %v449_v36, %v453_v37 }
 0x203   : > { %5961 = vmatpush1.bf16.msra.mxu0 %v7307_v24  ;;  %6248 = vmatpush1.bf16.msra.mxu1 %v7309_v42  ;;  %v456_v24 = vld [vmem:[%s8482_s28 + $0x690] sm:$0xff] }
 0x204   : > { %5962 = vmatprep.subr.bf16.mxu0 %v7316_v43  ;;  %6249 = vmatprep.subr.bf16.mxu1 %v7318_v44  ;;  %v460_v42 = vld [vmem:[%s8482_s28 + $0x6b0] sm:$0xff]  ;;  %v457_v43 = vld [vmem:[%s8482_s28 + $0x698] sm:$0xff] }
 0x205   : > { %v461_v44 = vld [vmem:[%s8482_s28 + $0x6b8] sm:$0xff]  ;;  %v7372_v51 = vcombine.high %v456_v24, %v460_v42  ;;  %v7371_v58 = vcombine.low %v456_v24, %v460_v42 }
 0x206   : > { %v7374_v53 = vcombine.high %v457_v43, %v461_v44  ;;  %v7373_v61 = vcombine.low %v457_v43, %v461_v44 }
 0x207   : > { %5963 = vmatpush1.bf16.msra.mxu0 %v7315_v55  ;;  %6250 = vmatpush1.bf16.msra.mxu1 %v7317_v33  ;;  %v464_v55 = vld [vmem:[%s8482_s28 + $0x6d0] sm:$0xff] }
 0x208   : > { %5964 = vmatprep.subr.bf16.mxu0 %v7324_v56  ;;  %6251 = vmatprep.subr.bf16.mxu1 %v7326_v57  ;;  %v468_v33 = vld [vmem:[%s8482_s28 + $0x6f0] sm:$0xff]  ;;  %v465_v56 = vld [vmem:[%s8482_s28 + $0x6d8] sm:$0xff] }
 0x209   : > { %v469_v57 = vld [vmem:[%s8482_s28 + $0x6f8] sm:$0xff]  ;;  %v7380_v54 = vcombine.high %v464_v55, %v468_v33  ;;  %v7379_v5 = vcombine.low %v464_v55, %v468_v33 }
 0x20a   : > { %v7382_v62 = vcombine.high %v465_v56, %v469_v57  ;;  %v7381_v30 = vcombine.low %v465_v56, %v469_v57 }
 0x20b   : > { %5965 = vmatpush1.bf16.msra.mxu0 %v7323_v63  ;;  %6252 = vmatpush1.bf16.msra.mxu1 %v7325_v9  ;;  %v472_v63 = vld [vmem:[%s8482_s28 + $0x710] sm:$0xff] }
 0x20c   : > { %5966 = vmatprep.subr.bf16.mxu0 %v7332_v3  ;;  %6253 = vmatprep.subr.bf16.mxu1 %v7334_v4  ;;  %v476_v9 = vld [vmem:[%s8482_s28 + $0x730] sm:$0xff]  ;;  %v473_v3 = vld [vmem:[%s8482_s28 + $0x718] sm:$0xff] }
 0x20d   : > { %v477_v4 = vld [vmem:[%s8482_s28 + $0x738] sm:$0xff]  ;;  %v7388_v7 = vcombine.high %v472_v63, %v476_v9  ;;  %v7387_v15 = vcombine.low %v472_v63, %v476_v9 }
 0x20e   : > { %v7390_v8 = vcombine.high %v473_v3, %v477_v4  ;;  %v7389_v16 = vcombine.low %v473_v3, %v477_v4 }
 0x20f   : > { %5967 = vmatpush1.bf16.msra.mxu0 %v7331_v11  ;;  %6254 = vmatpush1.bf16.msra.mxu1 %v7333_v12  ;;  %v480_v11 = vld [vmem:[%s8482_s28 + $0x750] sm:$0xff] }
 0x210   : > { %5968 = vmatprep.subr.bf16.mxu0 %v7340_v13  ;;  %6255 = vmatprep.subr.bf16.mxu1 %v7342_v14  ;;  %v484_v12 = vld [vmem:[%s8482_s28 + $0x770] sm:$0xff]  ;;  %v481_v13 = vld [vmem:[%s8482_s28 + $0x758] sm:$0xff] }
 0x211   : > { %v485_v14 = vld [vmem:[%s8482_s28 + $0x778] sm:$0xff]  ;;  %v7396_v17 = vcombine.high %v480_v11, %v484_v12  ;;  %v7395_v23 = vcombine.low %v480_v11, %v484_v12 }
 0x212   : > { %v7398_v18 = vcombine.high %v481_v13, %v485_v14  ;;  %v7397_v25 = vcombine.low %v481_v13, %v485_v14  ;;  %v536_v14 = vld [vmem:[%s8482_s28 + $0x910] sm:$0xff] }
 0x213   : > { %5969 = vmatpush1.bf16.msra.mxu0 %v7339_v19  ;;  %6256 = vmatpush1.bf16.msra.mxu1 %v7341_v10  ;;  %v488_v19 = vld [vmem:[%s8482_s28 + $0x790] sm:$0xff] }
 0x214   : > { %5970 = vmatprep.subr.bf16.mxu0 %v7348_v21  ;;  %6257 = vmatprep.subr.bf16.mxu1 %v7350_v22  ;;  %v492_v10 = vld [vmem:[%s8482_s28 + $0x7b0] sm:$0xff]  ;;  %v489_v21 = vld [vmem:[%s8482_s28 + $0x798] sm:$0xff] }
 0x215   : > { %v493_v22 = vld [vmem:[%s8482_s28 + $0x7b8] sm:$0xff]  ;;  %v7404_v27 = vcombine.high %v488_v19, %v492_v10  ;;  %v7403_v34 = vcombine.low %v488_v19, %v492_v10 }
 0x216   : > { %v7406_v28 = vcombine.high %v489_v21, %v493_v22  ;;  %v7405_v35 = vcombine.low %v489_v21, %v493_v22  ;;  %v544_v21 = vld [vmem:[%s8482_s28 + $0x950] sm:$0xff] }
 0x217   : > { %5971 = vmatpush1.bf16.msra.mxu0 %v7347_v29  ;;  %6258 = vmatpush1.bf16.msra.mxu1 %v7349_v31  ;;  %v496_v29 = vld [vmem:[%s8482_s28 + $0x7d0] sm:$0xff] }
 0x218   : > { %5972 = vmatprep.subr.bf16.mxu0 %v7356_v32  ;;  %6259 = vmatprep.subr.bf16.mxu1 %v7358_v0  ;;  %v500_v31 = vld [vmem:[%s8482_s28 + $0x7f0] sm:$0xff]  ;;  %v497_v32 = vld [vmem:[%s8482_s28 + $0x7d8] sm:$0xff] }
 0x219   : > { %v501_v0 = vld [vmem:[%s8482_s28 + $0x7f8] sm:$0xff]  ;;  %v7412_v36 = vcombine.high %v496_v29, %v500_v31  ;;  %v7411_v24 = vcombine.low %v496_v29, %v500_v31  ;;  %v548_v22 = vld [vmem:[%s8482_s28 + $0x970] sm:$0xff] }
 0x21a   : > { %v7414_v37 = vcombine.high %v497_v32, %v501_v0  ;;  %v7413_v42 = vcombine.low %v497_v32, %v501_v0  ;;  %v7460_v29 = vcombine.high %v544_v21, %v548_v22  ;;  %v552_v32 = vld [vmem:[%s8482_s28 + $0x990] sm:$0xff] }
 0x21b   : > { %5973 = vmatpush1.bf16.msra.mxu0 %v7355_v38  ;;  %6260 = vmatpush1.bf16.msra.mxu1 %v7357_v40  ;;  %v504_v38 = vld [vmem:[%s8482_s28 + $0x810] sm:$0xff] }
 0x21c   : > { %5974 = vmatprep.subr.bf16.mxu0 %v7364_v2  ;;  %6261 = vmatprep.subr.bf16.mxu1 %v7366_v41  ;;  %v508_v40 = vld [vmem:[%s8482_s28 + $0x830] sm:$0xff]  ;;  %v505_v2 = vld [vmem:[%s8482_s28 + $0x818] sm:$0xff] }
 0x21d   : > { %v509_v41 = vld [vmem:[%s8482_s28 + $0x838] sm:$0xff]  ;;  %v7420_v43 = vcombine.high %v504_v38, %v508_v40  ;;  %v7419_v55 = vcombine.low %v504_v38, %v508_v40  ;;  %v556_v0 = vld [vmem:[%s8482_s28 + $0x9b0] sm:$0xff] }
 0x21e   : > { %v7422_v44 = vcombine.high %v505_v2, %v509_v41  ;;  %v7421_v33 = vcombine.low %v505_v2, %v509_v41  ;;  %v7468_v38 = vcombine.high %v552_v32, %v556_v0  ;;  %v560_v2 = vld [vmem:[%s8482_s28 + $0x9d0] sm:$0xff] }
 0x21f   : > { %5975 = vmatpush1.bf16.msra.mxu0 %v7363_v47  ;;  %6262 = vmatpush1.bf16.msra.mxu1 %v7365_v50  ;;  %v512_v47 = vld [vmem:[%s8482_s28 + $0x850] sm:$0xff] }
 0x220   : > { %5976 = vmatprep.subr.bf16.mxu0 %v7372_v51  ;;  %6263 = vmatprep.subr.bf16.mxu1 %v7374_v53  ;;  %v516_v50 = vld [vmem:[%s8482_s28 + $0x870] sm:$0xff]  ;;  %v513_v51 = vld [vmem:[%s8482_s28 + $0x858] sm:$0xff] }
 0x221   : > { %v517_v53 = vld [vmem:[%s8482_s28 + $0x878] sm:$0xff]  ;;  %v7428_v56 = vcombine.high %v512_v47, %v516_v50  ;;  %v7427_v63 = vcombine.low %v512_v47, %v516_v50  ;;  %v564_v41 = vld [vmem:[%s8482_s28 + $0x9f0] sm:$0xff] }
 0x222   : > { %v7430_v57 = vcombine.high %v513_v51, %v517_v53  ;;  %v7429_v9 = vcombine.low %v513_v51, %v517_v53  ;;  %v7476_v47 = vcombine.high %v560_v2, %v564_v41  ;;  %v568_v51 = vld [vmem:[%s8482_s28 + $0xa10] sm:$0xff] }
 0x223   : > { %5977 = vmatpush1.bf16.msra.mxu0 %v7371_v58  ;;  %6264 = vmatpush1.bf16.msra.mxu1 %v7373_v61  ;;  %v520_v58 = vld [vmem:[%s8482_s28 + $0x890] sm:$0xff] }
 0x224   : > { %5978 = vmatprep.subr.bf16.mxu0 %v7380_v54  ;;  %6265 = vmatprep.subr.bf16.mxu1 %v7382_v62  ;;  %v524_v61 = vld [vmem:[%s8482_s28 + $0x8b0] sm:$0xff]  ;;  %v521_v54 = vld [vmem:[%s8482_s28 + $0x898] sm:$0xff] }
 0x225   : > { %v525_v62 = vld [vmem:[%s8482_s28 + $0x8b8] sm:$0xff]  ;;  %v7436_v3 = vcombine.high %v520_v58, %v524_v61  ;;  %v572_v53 = vld [vmem:[%s8482_s28 + $0xa30] sm:$0xff] }
 0x226   : > { %v7438_v4 = vcombine.high %v521_v54, %v525_v62  ;;  %v7437_v11 = vcombine.low %v521_v54, %v525_v62  ;;  %v576_v54 = vld [vmem:[%s8482_s28 + $0xa50] sm:$0xff] }
 0x227   : > { %5979 = vmatpush1.bf16.msra.mxu0 %v7379_v5  ;;  %6266 = vmatpush1.bf16.msra.mxu1 %v7381_v30  ;;  %v528_v5 = vld [vmem:[%s8482_s28 + $0x8d0] sm:$0xff] }
 0x228   : > { %5980 = vmatprep.subr.bf16.mxu0 %v7388_v7  ;;  %6267 = vmatprep.subr.bf16.mxu1 %v7390_v8  ;;  %v532_v30 = vld [vmem:[%s8482_s28 + $0x8f0] sm:$0xff]  ;;  %v529_v7 = vld [vmem:[%s8482_s28 + $0x8d8] sm:$0xff] }
 0x229   : > { %v533_v8 = vld [vmem:[%s8482_s28 + $0x8f8] sm:$0xff]  ;;  %v7444_v12 = vcombine.high %v528_v5, %v532_v30  ;;  %v580_v62 = vld [vmem:[%s8482_s28 + $0xa70] sm:$0xff] }
 0x22a   : > { %v7446_v13 = vcombine.high %v529_v7, %v533_v8 }
 0x22b   : > { %5981 = vmatpush1.bf16.msra.mxu0 %v7387_v15  ;;  %6268 = vmatpush1.bf16.msra.mxu1 %v7389_v16  ;;  %v540_v15 = vld [vmem:[%s8482_s28 + $0x930] sm:$0xff]  ;;  %v537_v16 = vld [vmem:[%s8482_s28 + $0x918] sm:$0xff] }
 0x22c   : > { %5982 = vmatprep.subr.bf16.mxu0 %v7396_v17  ;;  %6269 = vmatprep.subr.bf16.mxu1 %v7398_v18  ;;  %v541_v17 = vld [vmem:[%s8482_s28 + $0x938] sm:$0xff]  ;;  %v7443_v18 = vcombine.low %v528_v5, %v532_v30  ;;  %v7452_v19 = vcombine.high %v536_v14, %v540_v15  ;;  %v7492_v5 = vcombine.high %v576_v54, %v580_v62 }
 0x22d   : > { %v7454_v10 = vcombine.high %v537_v16, %v541_v17 }
 0x22f   : > { %5983 = vmatpush1.bf16.msra.mxu0 %v7395_v23  ;;  %6270 = vmatpush1.bf16.msra.mxu1 %v7397_v25  ;;  %v545_v23 = vld [vmem:[%s8482_s28 + $0x958] sm:$0xff] }
 0x230   : > { %5984 = vmatprep.subr.bf16.mxu0 %v7404_v27  ;;  %6271 = vmatprep.subr.bf16.mxu1 %v7406_v28  ;;  %v549_v25 = vld [vmem:[%s8482_s28 + $0x978] sm:$0xff]  ;;  %v7451_v27 = vcombine.low %v536_v14, %v540_v15  ;;  %v7453_v28 = vcombine.low %v537_v16, %v541_v17  ;;  %v592_v16 = vld [vmem:[%s8482_s28 + $0xad0] sm:$0xff] }
 0x231   : > { %v7462_v31 = vcombine.high %v545_v23, %v549_v25  ;;  %v596_v17 = vld [vmem:[%s8482_s28 + $0xaf0] sm:$0xff] }
 0x233   : > { %5985 = vmatpush1.bf16.msra.mxu0 %v7403_v34  ;;  %6272 = vmatpush1.bf16.msra.mxu1 %v7405_v35  ;;  %v553_v34 = vld [vmem:[%s8482_s28 + $0x998] sm:$0xff] }
 0x234   : > { %5986 = vmatprep.subr.bf16.mxu0 %v7412_v36  ;;  %6273 = vmatprep.subr.bf16.mxu1 %v7414_v37  ;;  %v557_v35 = vld [vmem:[%s8482_s28 + $0x9b8] sm:$0xff]  ;;  %v7459_v36 = vcombine.low %v544_v21, %v548_v22  ;;  %v7461_v37 = vcombine.low %v545_v23, %v549_v25  ;;  %v7508_v21 = vcombine.high %v592_v16, %v596_v17  ;;  %v600_v23 = vld [vmem:[%s8482_s28 + $0xb10] sm:$0xff] }
 0x235   : > { %v7470_v40 = vcombine.high %v553_v34, %v557_v35  ;;  %v604_v25 = vld [vmem:[%s8482_s28 + $0xb30] sm:$0xff] }
 0x237   : > { %5987 = vmatpush1.bf16.msra.mxu0 %v7411_v24  ;;  %6274 = vmatpush1.bf16.msra.mxu1 %v7413_v42  ;;  %v561_v24 = vld [vmem:[%s8482_s28 + $0x9d8] sm:$0xff] }
 0x238   : > { %5997 = vmatprep.subr.bf16.mxu0 %v7420_v43  ;;  %6284 = vmatprep.subr.bf16.mxu1 %v7422_v44  ;;  %v565_v42 = vld [vmem:[%s8482_s28 + $0x9f8] sm:$0xff]  ;;  %v7467_v43 = vcombine.low %v552_v32, %v556_v0  ;;  %v7469_v44 = vcombine.low %v553_v34, %v557_v35  ;;  %v7516_v32 = vcombine.high %v600_v23, %v604_v25  ;;  %v608_v34 = vld [vmem:[%s8482_s28 + $0xb50] sm:$0xff] }
 0x239   : > { %v7478_v50 = vcombine.high %v561_v24, %v565_v42  ;;  %v612_v35 = vld [vmem:[%s8482_s28 + $0xb70] sm:$0xff] }
 0x23a   : > { %5989 = vmatmul.mubr.bf16.vlgmr.msra.gmra.mrb[4].mxu0 %v8659_v39  ;;  %6276 = vmatmul.mubr.bf16.vlgmr.msra.gmra.mrb[4].mxu1 %v8659_v39  ;;  %v7435_v39 = vcombine.low %v520_v58, %v524_v61  ;;  %v7484_v58 = vcombine.high %v568_v51, %v572_v53 }
 0x23b   : > { %5998 = vmatpush1.bf16.msra.mxu0 %v7419_v55  ;;  %6285 = vmatpush1.bf16.msra.mxu1 %v7421_v33  ;;  %v569_v55 = vld [vmem:[%s8482_s28 + $0xa18] sm:$0xff] }
 0x23c   : > { %5999 = vmatprep.subr.bf16.mxu0 %v7428_v56  ;;  %6286 = vmatprep.subr.bf16.mxu1 %v7430_v57  ;;  %v573_v33 = vld [vmem:[%s8482_s28 + $0xa38] sm:$0xff]  ;;  %v7475_v56 = vcombine.low %v560_v2, %v564_v41  ;;  %v7477_v57 = vcombine.low %v561_v24, %v565_v42  ;;  %v7524_v2 = vcombine.high %v608_v34, %v612_v35  ;;  %v616_v24 = vld [vmem:[%s8482_s28 + $0xb90] sm:$0xff] }
 0x23d   : > { %6029 = vmatprep.mubr.bf16.mxu0 %v8666_v49  ;;  %6316 = vmatprep.mubr.bf16.mxu1 %v8666_v49  ;;  %v7445_v49 = vcombine.low %v529_v7, %v533_v8  ;;  %v7486_v61 = vcombine.high %v569_v55, %v573_v33  ;;  %v584_v7 = vld [vmem:[%s8482_s28 + $0xa90] sm:$0xff] }
 0x23e   : > { %v588_v8 = vld [vmem:[%s8482_s28 + $0xab0] sm:$0xff] }
 0x23f   : > { %6000 = vmatpush1.bf16.msra.mxu0 %v7427_v63  ;;  %6287 = vmatpush1.bf16.msra.mxu1 %v7429_v9  ;;  %v577_v63 = vld [vmem:[%s8482_s28 + $0xa58] sm:$0xff]  ;;  %v7500_v14 = vcombine.high %v584_v7, %v588_v8  ;;  %v620_v42 = vld [vmem:[%s8482_s28 + $0xbb0] sm:$0xff] }
 0x240   : > { %6001 = vmatprep.subr.bf16.mxu0 %v7436_v3  ;;  %6288 = vmatprep.subr.bf16.mxu1 %v7438_v4  ;;  %v581_v9 = vld [vmem:[%s8482_s28 + $0xa78] sm:$0xff]  ;;  %v7483_v3 = vcombine.low %v568_v51, %v572_v53  ;;  %v7485_v4 = vcombine.low %v569_v55, %v573_v33  ;;  %v7532_v51 = vcombine.high %v616_v24, %v620_v42  ;;  %v624_v55 = vld [vmem:[%s8482_s28 + $0xbd0] sm:$0xff] }
 0x241   : > { %v7494_v30 = vcombine.high %v577_v63, %v581_v9  ;;  %v628_v33 = vld [vmem:[%s8482_s28 + $0xbf0] sm:$0xff] }
 0x243   : > { %6002 = vmatpush1.bf16.msra.mxu0 %v7435_v39  ;;  %6289 = vmatpush1.bf16.msra.mxu1 %v7437_v11  ;;  %v585_v39 = vld [vmem:[%s8482_s28 + $0xa98] sm:$0xff] }
 0x244   : > { %6003 = vmatprep.subr.bf16.mxu0 %v7444_v12  ;;  %6290 = vmatprep.subr.bf16.mxu1 %v7446_v13  ;;  %v589_v11 = vld [vmem:[%s8482_s28 + $0xab8] sm:$0xff]  ;;  %v7491_v12 = vcombine.low %v576_v54, %v580_v62  ;;  %v7493_v13 = vcombine.low %v577_v63, %v581_v9  ;;  %v7540_v54 = vcombine.high %v624_v55, %v628_v33  ;;  %v632_v63 = vld [vmem:[%s8482_s28 + $0xc10] sm:$0xff] }
 0x245   : > { %v7502_v15 = vcombine.high %v585_v39, %v589_v11  ;;  %v636_v9 = vld [vmem:[%s8482_s28 + $0xc30] sm:$0xff] }
 0x247   : > { %6004 = vmatpush1.bf16.msra.mxu0 %v7443_v18  ;;  %6291 = vmatpush1.bf16.msra.mxu1 %v7445_v49  ;;  %v593_v18 = vld [vmem:[%s8482_s28 + $0xad8] sm:$0xff] }
 0x248   : > { %6005 = vmatprep.subr.bf16.mxu0 %v7452_v19  ;;  %6292 = vmatprep.subr.bf16.mxu1 %v7454_v10  ;;  %v597_v49 = vld [vmem:[%s8482_s28 + $0xaf8] sm:$0xff]  ;;  %v7499_v19 = vcombine.low %v584_v7, %v588_v8  ;;  %v7501_v10 = vcombine.low %v585_v39, %v589_v11  ;;  %v7548_v7 = vcombine.high %v632_v63, %v636_v9  ;;  %v640_v39 = vld [vmem:[%s8482_s28 + $0xc50] sm:$0xff] }
 0x249   : > { %v7510_v22 = vcombine.high %v593_v18, %v597_v49  ;;  %v644_v11 = vld [vmem:[%s8482_s28 + $0xc70] sm:$0xff] }
 0x24b   : > { %6006 = vmatpush1.bf16.msra.mxu0 %v7451_v27  ;;  %6293 = vmatpush1.bf16.msra.mxu1 %v7453_v28  ;;  %v601_v27 = vld [vmem:[%s8482_s28 + $0xb18] sm:$0xff] }
 0x24c   : > { %6007 = vmatprep.subr.bf16.mxu0 %v7460_v29  ;;  %6294 = vmatprep.subr.bf16.mxu1 %v7462_v31  ;;  %v605_v28 = vld [vmem:[%s8482_s28 + $0xb38] sm:$0xff]  ;;  %v7507_v29 = vcombine.low %v592_v16, %v596_v17  ;;  %v7509_v31 = vcombine.low %v593_v18, %v597_v49  ;;  %v7556_v16 = vcombine.high %v640_v39, %v644_v11  ;;  %v648_v18 = vld [vmem:[%s8482_s28 + $0xc90] sm:$0xff] }
 0x24d   : > { %v7518_v0 = vcombine.high %v601_v27, %v605_v28  ;;  %v652_v49 = vld [vmem:[%s8482_s28 + $0xcb0] sm:$0xff] }
 0x24f   : > { %6008 = vmatpush1.bf16.msra.mxu0 %v7459_v36  ;;  %6295 = vmatpush1.bf16.msra.mxu1 %v7461_v37  ;;  %v609_v36 = vld [vmem:[%s8482_s28 + $0xb58] sm:$0xff] }
 0x250   : > { %6009 = vmatprep.subr.bf16.mxu0 %v7468_v38  ;;  %6296 = vmatprep.subr.bf16.mxu1 %v7470_v40  ;;  %v613_v37 = vld [vmem:[%s8482_s28 + $0xb78] sm:$0xff]  ;;  %v7515_v38 = vcombine.low %v600_v23, %v604_v25  ;;  %v7517_v40 = vcombine.low %v601_v27, %v605_v28  ;;  %v7564_v23 = vcombine.high %v648_v18, %v652_v49  ;;  %v656_v27 = vld [vmem:[%s8482_s28 + $0xcd0] sm:$0xff] }
 0x251   : > { %v7526_v41 = vcombine.high %v609_v36, %v613_v37  ;;  %v660_v28 = vld [vmem:[%s8482_s28 + $0xcf0] sm:$0xff] }
 0x253   : > { %6010 = vmatpush1.bf16.msra.mxu0 %v7467_v43  ;;  %6297 = vmatpush1.bf16.msra.mxu1 %v7469_v44  ;;  %v617_v43 = vld [vmem:[%s8482_s28 + $0xb98] sm:$0xff] }
 0x254   : > { %6011 = vmatprep.subr.bf16.mxu0 %v7476_v47  ;;  %6298 = vmatprep.subr.bf16.mxu1 %v7478_v50  ;;  %v621_v44 = vld [vmem:[%s8482_s28 + $0xbb8] sm:$0xff]  ;;  %v7523_v47 = vcombine.low %v608_v34, %v612_v35  ;;  %v7525_v50 = vcombine.low %v609_v36, %v613_v37  ;;  %v664_v35 = vld [vmem:[%s8482_s28 + $0xd10] sm:$0xff] }
 0x255   : > { %v7534_v53 = vcombine.high %v617_v43, %v621_v44  ;;  %v668_v36 = vld [vmem:[%s8482_s28 + $0xd30] sm:$0xff]  ;;  %v665_v37 = vld [vmem:[%s8482_s28 + $0xd18] sm:$0xff] }
 0x257   : > { %6012 = vmatpush1.bf16.msra.mxu0 %v7475_v56  ;;  %6299 = vmatpush1.bf16.msra.mxu1 %v7477_v57  ;;  %v625_v56 = vld [vmem:[%s8482_s28 + $0xbd8] sm:$0xff] }
 0x258   : > { %6013 = vmatprep.subr.bf16.mxu0 %v7484_v58  ;;  %6300 = vmatprep.subr.bf16.mxu1 %v7486_v61  ;;  %v629_v57 = vld [vmem:[%s8482_s28 + $0xbf8] sm:$0xff]  ;;  %v7531_v58 = vcombine.low %v616_v24, %v620_v42  ;;  %v7533_v61 = vcombine.low %v617_v43, %v621_v44  ;;  %v8428_v24 = vmov 1983009808   ;;  %v672_v43 = vld [vmem:[%s8482_s28 + $0xd50] sm:$0xff] }
 0x259   : > { %v7542_v62 = vcombine.high %v625_v56, %v629_v57  ;;  %v6500_v42 = vunpack.c.l.s4 %v8428_v24  ;;  %v676_v44 = vld [vmem:[%s8482_s28 + $0xd70] sm:$0xff] }
 0x25b   : > { %6014 = vmatpush1.bf16.msra.mxu0 %v7483_v3  ;;  %6301 = vmatpush1.bf16.msra.mxu1 %v7485_v4  ;;  %v633_v3 = vld [vmem:[%s8482_s28 + $0xc18] sm:$0xff] }
 0x25c   : > { %6015 = vmatprep.subr.bf16.mxu0 %v7492_v5  ;;  %6302 = vmatprep.subr.bf16.mxu1 %v7494_v30  ;;  %v637_v4 = vld [vmem:[%s8482_s28 + $0xc38] sm:$0xff]  ;;  %v7539_v5 = vcombine.low %v624_v55, %v628_v33  ;;  %v7541_v30 = vcombine.low %v625_v56, %v629_v57  ;;  %v7588_v55 = vcombine.high %v672_v43, %v676_v44  ;;  %v6501_v33 = vunpack.c.0.s8 %v6500_v42  ;;  %v680_v57 = vld [vmem:[%s8482_s28 + $0xd90] sm:$0xff] }
 0x25d   : > { %v7550_v8 = vcombine.high %v633_v3, %v637_v4 }
 0x25f   : > { %6016 = vmatpush1.bf16.msra.mxu0 %v7491_v12  ;;  %6303 = vmatpush1.bf16.msra.mxu1 %v7493_v13  ;;  %v641_v12 = vld [vmem:[%s8482_s28 + $0xc58] sm:$0xff] }
 0x260   : > { %6017 = vmatprep.subr.bf16.mxu0 %v7500_v14  ;;  %6304 = vmatprep.subr.bf16.mxu1 %v7502_v15  ;;  %v645_v13 = vld [vmem:[%s8482_s28 + $0xc78] sm:$0xff]  ;;  %v7547_v14 = vcombine.low %v632_v63, %v636_v9  ;;  %v7549_v15 = vcombine.low %v633_v3, %v637_v4  ;;  %v9245_v4 = vsub.s32 %v6501_v33, %v8507_v45 }
 0x261   : > { %v7558_v17 = vcombine.high %v641_v12, %v645_v13 }
 0x263   : > { %6018 = vmatpush1.bf16.msra.mxu0 %v7499_v19  ;;  %6305 = vmatpush1.bf16.msra.mxu1 %v7501_v10  ;;  %v649_v19 = vld [vmem:[%s8482_s28 + $0xc98] sm:$0xff] }
 0x264   : > { %6019 = vmatprep.subr.bf16.mxu0 %v7508_v21  ;;  %6306 = vmatprep.subr.bf16.mxu1 %v7510_v22  ;;  %v653_v10 = vld [vmem:[%s8482_s28 + $0xcb8] sm:$0xff]  ;;  %v7555_v21 = vcombine.low %v640_v39, %v644_v11  ;;  %v7557_v22 = vcombine.low %v641_v12, %v645_v13 }
 0x265   : > { %v7566_v25 = vcombine.high %v649_v19, %v653_v10  ;;  %v689_v11 = vld [vmem:[%s8482_s28 + $0xdd8] sm:$0xff] }
 0x266   : > { %v693_v12 = vld [vmem:[%s8482_s28 + $0xdf8] sm:$0xff] }
 0x267   : > { %6020 = vmatpush1.bf16.msra.mxu0 %v7507_v29  ;;  %6307 = vmatpush1.bf16.msra.mxu1 %v7509_v31  ;;  %v657_v29 = vld [vmem:[%s8482_s28 + $0xcd8] sm:$0xff] }
 0x268   : > { %6021 = vmatprep.subr.bf16.mxu0 %v7516_v32  ;;  %6308 = vmatprep.subr.bf16.mxu1 %v7518_v0  ;;  %v661_v31 = vld [vmem:[%s8482_s28 + $0xcf8] sm:$0xff]  ;;  %v7565_v32 = vcombine.low %v649_v19, %v653_v10  ;;  %v7572_v0 = vcombine.high %v656_v27, %v660_v28 }
 0x269   : > { %v7574_v34 = vcombine.high %v657_v29, %v661_v31 }
 0x26b   : > { %6022 = vmatpush1.bf16.msra.mxu0 %v7515_v38  ;;  %6309 = vmatpush1.bf16.msra.mxu1 %v7517_v40  ;;  %v669_v38 = vld [vmem:[%s8482_s28 + $0xd38] sm:$0xff]  ;;  %v7571_v40 = vcombine.low %v656_v27, %v660_v28  ;;  %v700_v27 = vld [vmem:[%s8482_s28 + $0xe30] sm:$0xff] }
 0x26c   : > { %6023 = vmatprep.subr.bf16.mxu0 %v7524_v2  ;;  %6310 = vmatprep.subr.bf16.mxu1 %v7526_v41  ;;  %v7580_v2 = vcombine.high %v664_v35, %v668_v36  ;;  %v7582_v41 = vcombine.high %v665_v37, %v669_v38 }
 0x26f   : > { %6024 = vmatpush1.bf16.msra.mxu0 %v7523_v47  ;;  %6311 = vmatpush1.bf16.msra.mxu1 %v7525_v50  ;;  %v673_v47 = vld [vmem:[%s8482_s28 + $0xd58] sm:$0xff] }
 0x270   : > { %6025 = vmatprep.subr.bf16.mxu0 %v7532_v51  ;;  %6312 = vmatprep.subr.bf16.mxu1 %v7534_v53  ;;  %v677_v50 = vld [vmem:[%s8482_s28 + $0xd78] sm:$0xff]  ;;  %v7579_v51 = vcombine.low %v664_v35, %v668_v36  ;;  %v7581_v53 = vcombine.low %v665_v37, %v669_v38  ;;  %v704_v37 = vld [vmem:[%s8482_s28 + $0xe50] sm:$0xff] }
 0x271   : > { %v7590_v56 = vcombine.high %v673_v47, %v677_v50  ;;  %v7589_v63 = vcombine.low %v673_v47, %v677_v50  ;;  %v708_v38 = vld [vmem:[%s8482_s28 + $0xe70] sm:$0xff]  ;;  %v713_v50 = vld [vmem:[%s8482_s28 + $0xe98] sm:$0xff] }
 0x272   : > { %v7620_v42 = vcombine.high %v704_v37, %v708_v38  ;;  %v716_v47 = vld [vmem:[%s8482_s28 + $0xeb0] sm:$0xff] }
 0x273   : > { %6026 = vmatpush1.bf16.msra.mxu0 %v7531_v58  ;;  %6313 = vmatpush1.bf16.msra.mxu1 %v7533_v61  ;;  %v684_v58 = vld [vmem:[%s8482_s28 + $0xdb0] sm:$0xff]  ;;  %v681_v61 = vld [vmem:[%s8482_s28 + $0xd98] sm:$0xff] }
 0x274   : > { %6027 = vmatprep.subr.bf16.mxu0 %v7540_v54  ;;  %6314 = vmatprep.subr.bf16.mxu1 %v7542_v62  ;;  %v685_v54 = vld [vmem:[%s8482_s28 + $0xdb8] sm:$0xff]  ;;  %v7587_v62 = vcombine.low %v672_v43, %v676_v44  ;;  %v7596_v9 = vcombine.high %v680_v57, %v684_v58  ;;  %v712_v44 = vld [vmem:[%s8482_s28 + $0xe90] sm:$0xff] }
 0x275   : > { %v7597_v19 = vcombine.low %v681_v61, %v685_v54  ;;  %v7628_v33 = vcombine.high %v712_v44, %v716_v47 }
 0x277   : > { %6028 = vmatpush1.bf16.msra.mxu0 %v7539_v5  ;;  %6315 = vmatpush1.bf16.msra.mxu1 %v7541_v30  ;;  %v7598_v5 = vcombine.high %v681_v61, %v685_v54  ;;  %v688_v30 = vld [vmem:[%s8482_s28 + $0xdd0] sm:$0xff]  ;;  %v721_v61 = vld [vmem:[%s8482_s28 + $0xed8] sm:$0xff] }
 0x278   : > { %6038 = vmatprep.subr.bf16.mxu0 %v7548_v7  ;;  %6325 = vmatprep.subr.bf16.mxu1 %v7550_v8  ;;  %v692_v7 = vld [vmem:[%s8482_s28 + $0xdf0] sm:$0xff]  ;;  %v725_v54 = vld [vmem:[%s8482_s28 + $0xef8] sm:$0xff] }
 0x279   : > { %v7604_v10 = vcombine.high %v688_v30, %v692_v7 }
 0x27a   : > { %6030 = vmatmul.mubr.bf16.vlgmr.msra.gmra.mrb[4].mxu0 %v8734_v59  ;;  %6317 = vmatmul.mubr.bf16.vlgmr.msra.gmra.mrb[4].mxu1 %v8734_v59  ;;  %v7563_v59 = vcombine.low %v648_v18, %v652_v49 }
 0x27b   : > { %6039 = vmatpush1.bf16.msra.mxu0 %v7547_v14  ;;  %6326 = vmatpush1.bf16.msra.mxu1 %v7549_v15 }
 0x27c   : > { %6040 = vmatprep.subr.bf16.mxu0 %v7556_v16  ;;  %6327 = vmatprep.subr.bf16.mxu1 %v7558_v17  ;;  %v7595_v16 = vcombine.low %v680_v57, %v684_v58  ;;  %v720_v57 = vld [vmem:[%s8482_s28 + $0xed0] sm:$0xff] }
 0x27d   : > { %6070 = vmatprep.mubr.bf16.mxu0 %v8742_v6  ;;  %6357 = vmatprep.mubr.bf16.mxu1 %v8742_v6  ;;  %v7573_v6 = vcombine.low %v657_v29, %v661_v31  ;;  %v697_v29 = vld [vmem:[%s8482_s28 + $0xe18] sm:$0xff]  ;;  %v724_v58 = vld [vmem:[%s8482_s28 + $0xef0] sm:$0xff] }
 0x27e   : > { %v701_v31 = vld [vmem:[%s8482_s28 + $0xe38] sm:$0xff] }
 0x27f   : > { %6041 = vmatpush1.bf16.msra.mxu0 %v7555_v21  ;;  %6328 = vmatpush1.bf16.msra.mxu1 %v7557_v22  ;;  %v7614_v36 = vcombine.high %v697_v29, %v701_v31  ;;  %v7613_v24 = vcombine.low %v697_v29, %v701_v31 }
 0x280   : > { %6042 = vmatprep.subr.bf16.mxu0 %v7564_v23  ;;  %6329 = vmatprep.subr.bf16.mxu1 %v7566_v25  ;;  %v7606_v23 = vcombine.high %v689_v11, %v693_v12  ;;  %v696_v25 = vld [vmem:[%s8482_s28 + $0xe10] sm:$0xff] }
 0x281   : > { %v7612_v35 = vcombine.high %v696_v25, %v700_v27 }
 0x283   : > { %6043 = vmatpush1.bf16.msra.mxu0 %v7563_v59  ;;  %6330 = vmatpush1.bf16.msra.mxu1 %v7565_v32  ;;  %v242_v59 = vld [vmem:[#allocation2] sm:$0xff]  ;;  %v7603_v32 = vcombine.low %v688_v30, %v692_v7  ;;  %v732_v30 = vld [vmem:[%s8482_s28 + $0xf30] sm:$0xff]  ;;  %v729_v7 = vld [vmem:[%s8482_s28 + $0xf18] sm:$0xff] }
 0x284   : > { %6044 = vmatprep.subr.bf16.mxu0 %v7572_v0  ;;  %6331 = vmatprep.subr.bf16.mxu1 %v7574_v34  ;;  %v7605_v34 = vcombine.low %v689_v11, %v693_v12  ;;  %v7637_v11 = vcombine.low %v721_v61, %v725_v54 }
 0x287   : > { %6045 = vmatpush1.bf16.msra.mxu0 %v7571_v40  ;;  %6332 = vmatpush1.bf16.msra.mxu1 %v7573_v6  ;;  %v705_v6 = vld [vmem:[%s8482_s28 + $0xe58] sm:$0xff] }
 0x288   : > { %6046 = vmatprep.subr.bf16.mxu0 %v7580_v2  ;;  %6333 = vmatprep.subr.bf16.mxu1 %v7582_v41  ;;  %v709_v2 = vld [vmem:[%s8482_s28 + $0xe78] sm:$0xff]  ;;  %v7611_v41 = vcombine.low %v696_v25, %v700_v27 }
 0x289   : > { %v7622_v43 = vcombine.high %v705_v6, %v709_v2  ;;  %v749_v25 = vld [vmem:[%s8482_s28 + $0xfb8] sm:$0xff] }
 0x28b   : > { %6047 = vmatpush1.bf16.msra.mxu0 %v7579_v51  ;;  %6334 = vmatpush1.bf16.msra.mxu1 %v7581_v53  ;;  %v717_v51 = vld [vmem:[%s8482_s28 + $0xeb8] sm:$0xff]  ;;  %v7619_v53 = vcombine.low %v704_v37, %v708_v38 }
 0x28c   : > { %6048 = vmatprep.subr.bf16.mxu0 %v7588_v55  ;;  %6335 = vmatprep.subr.bf16.mxu1 %v7590_v56  ;;  %v7621_v55 = vcombine.low %v705_v6, %v709_v2  ;;  %v7630_v56 = vcombine.high %v713_v50, %v717_v51  ;;  %v764_v6 = vld [vmem:[%s8482_s28 + $0x1030] sm:$0xff]  ;;  %v761_v2 = vld [vmem:[%s8482_s28 + $0x1018] sm:$0xff] }
 0x28d   : > { %v5621_v3 = vpop.f32.mrb[0].mxu0  ;;  %v5908_v8 = vpop.f32.mrb[0].mxu1 }
 0x28e   : > { %v5623_v39 = vpop.f32.mrb[1].mxu0  ;;  %v5910_v14 = vpop.f32.mrb[1].mxu1 }
 0x28f   : > { %v6497_v13 = vcombine.low %v5621_v3, %v5623_v39  ;;  %v5625_v15 = vpop.f32.mrb[2].mxu0  ;;  %6049 = vmatpush1.bf16.msra.mxu0 %v7587_v62  ;;  %v6498_v17 = vcombine.low %v5908_v8, %v5910_v14  ;;  %v5912_v18 = vpop.f32.mrb[2].mxu1  ;;  %6336 = vmatpush1.bf16.msra.mxu1 %v7589_v63  ;;  %v7627_v62 = vcombine.low %v712_v44, %v716_v47  ;;  %v733_v8 = vld [vmem:[%s8482_s28 + $0xf38] sm:$0xff]  ;;  %v736_v14 = vld [vmem:[%s8482_s28 + $0xf50] sm:$0xff] }
 0x290   : > { %v5626_v49 = vpop.f32.mrb[3].mxu0  ;;  %6050 = vmatprep.subr.bf16.mxu0 %v7596_v9  ;;  %v5913_v22 = vpop.f32.mrb[3].mxu1  ;;  %6337 = vmatprep.subr.bf16.mxu1 %v7598_v5  ;;  %v7629_v63 = vcombine.low %v713_v50, %v717_v51  ;;  %v7636_v9 = vcombine.high %v720_v57, %v724_v58  ;;  %v7638_v3 = vcombine.high %v721_v61, %v725_v54  ;;  %v728_v5 = vld [vmem:[%s8482_s28 + $0xf10] sm:$0xff]  ;;  %v769_v51 = vld [vmem:[%s8482_s28 + $0x1058] sm:$0xff] }
 0x291   : > { %v6505_v21 = vrot.slane %v6497_v13, %v9245_v4  ;;  %v6512_v28 = vrot.slane %v6498_v17, %v9245_v4  ;;  %v7635_v39 = vcombine.low %v720_v57, %v724_v58  ;;  %v7644_v12 = vcombine.high %v728_v5, %v732_v30  ;;  %v740_v15 = vld [vmem:[%s8482_s28 + $0xf70] sm:$0xff]  ;;  %v741_v17 = vld [vmem:[%s8482_s28 + $0xf78] sm:$0xff] }
 0x292   : > { %v7646_v13 = vcombine.high %v729_v7, %v733_v8  ;;  %v7643_v18 = vcombine.low %v728_v5, %v732_v30  ;;  %v7645_v49 = vcombine.low %v729_v7, %v733_v8  ;;  %v748_v22 = vld [vmem:[%s8482_s28 + $0xfb0] sm:$0xff]  ;;  %v7651_v27 = vcombine.low %v736_v14, %v740_v15  ;;  %v777_v54 = vld [vmem:[%s8482_s28 + $0x1098] sm:$0xff] }
 0x293   : > { %6051 = vmatpush1.bf16.msra.mxu0 %v7595_v16  ;;  %v6513_v0 = vcombine.low %v6505_v21, %v6512_v28  ;;  %6338 = vmatpush1.bf16.msra.mxu1 %v7597_v19  ;;  %v737_v16 = vld [vmem:[%s8482_s28 + $0xf58] sm:$0xff]  ;;  %v7652_v19 = vcombine.high %v736_v14, %v740_v15  ;;  %v744_v21 = vld [vmem:[%s8482_s28 + $0xf90] sm:$0xff] }
 0x294   : > { %6052 = vmatprep.subr.bf16.mxu0 %v7604_v10  ;;  %6339 = vmatprep.subr.bf16.mxu1 %v7606_v23  ;;  %v7654_v10 = vcombine.high %v737_v16, %v741_v17  ;;  %v745_v23 = vld [vmem:[%s8482_s28 + $0xf98] sm:$0xff]  ;;  %v7653_v28 = vcombine.low %v737_v16, %v741_v17  ;;  %v7660_v29 = vcombine.high %v744_v21, %v748_v22  ;;  %v768_v47 = vld [vmem:[%s8482_s28 + $0x1050] sm:$0xff] }
 0x295   : > { %v6533_v40 = vadd.f32 %v6513_v0, %v242_v59  ;;  %v7662_v31 = vcombine.high %v745_v23, %v749_v25  ;;  %v752_v59 = vld [vmem:[%s8482_s28 + $0xfd0] sm:$0xff]  ;;  %v753_v0 = vld [vmem:[%s8482_s28 + $0xfd8] sm:$0xff] }
 0x296   : > { %v772_v50 = vld [vmem:[%s8482_s28 + $0x1070] sm:$0xff]  ;;  %v785_v8 = vld [vmem:[%s8482_s28 + $0x10d8] sm:$0xff] }
 0x297   : > { %6053 = vmatpush1.bf16.msra.mxu0 %v7603_v32  ;;  %6535 = vst [vmem:[#allocation2] sm:$0xff] %v6533_v40  ;;  %6340 = vmatpush1.bf16.msra.mxu1 %v7605_v34  ;;  %v756_v32 = vld [vmem:[%s8482_s28 + $0xff0] sm:$0xff]  ;;  %v757_v34 = vld [vmem:[%s8482_s28 + $0xff8] sm:$0xff] }
 0x298   : > { %6054 = vmatprep.subr.bf16.mxu0 %v7612_v35  ;;  %6341 = vmatprep.subr.bf16.mxu1 %v7614_v36  ;;  %v7659_v35 = vcombine.low %v744_v21, %v748_v22  ;;  %v7661_v36 = vcombine.low %v745_v23, %v749_v25  ;;  %v7668_v37 = vcombine.high %v752_v59, %v756_v32  ;;  %v760_v40 = vld [vmem:[%s8482_s28 + $0x1010] sm:$0xff]  ;;  %v793_v16 = vld [vmem:[%s8482_s28 + $0x1118] sm:$0xff] }
 0x299   : > { %v7670_v38 = vcombine.high %v753_v0, %v757_v34  ;;  %v776_v58 = vld [vmem:[%s8482_s28 + $0x1090] sm:$0xff]  ;;  %v797_v17 = vld [vmem:[%s8482_s28 + $0x1138] sm:$0xff] }
 0x29a   : > { %v780_v61 = vld [vmem:[%s8482_s28 + $0x10b0] sm:$0xff]  ;;  %v801_v22 = vld [vmem:[%s8482_s28 + $0x1158] sm:$0xff] }
 0x29b   : > { %6055 = vmatpush1.bf16.msra.mxu0 %v7611_v41  ;;  %6342 = vmatpush1.bf16.msra.mxu1 %v7613_v24  ;;  %v765_v41 = vld [vmem:[%s8482_s28 + $0x1038] sm:$0xff]  ;;  %v7667_v24 = vcombine.low %v752_v59, %v756_v32  ;;  %v784_v30 = vld [vmem:[%s8482_s28 + $0x10d0] sm:$0xff] }
 0x29c   : > { %6056 = vmatprep.subr.bf16.mxu0 %v7620_v42  ;;  %6343 = vmatprep.subr.bf16.mxu1 %v7622_v43  ;;  %v7669_v42 = vcombine.low %v753_v0, %v757_v34  ;;  %v7676_v43 = vcombine.high %v760_v40, %v764_v6  ;;  %v7678_v44 = vcombine.high %v761_v2, %v765_v41  ;;  %v788_v7 = vld [vmem:[%s8482_s28 + $0x10f0] sm:$0xff]  ;;  %v805_v23 = vld [vmem:[%s8482_s28 + $0x1178] sm:$0xff] }
 0x29d   : > { %v792_v14 = vld [vmem:[%s8482_s28 + $0x1110] sm:$0xff]  ;;  %v809_v32 = vld [vmem:[%s8482_s28 + $0x1198] sm:$0xff] }
 0x29e   : > { %v796_v15 = vld [vmem:[%s8482_s28 + $0x1130] sm:$0xff]  ;;  %v813_v0 = vld [vmem:[%s8482_s28 + $0x11b8] sm:$0xff] }
 0x29f   : > { %6057 = vmatpush1.bf16.msra.mxu0 %v7619_v53  ;;  %6344 = vmatpush1.bf16.msra.mxu1 %v7621_v55  ;;  %v773_v53 = vld [vmem:[%s8482_s28 + $0x1078] sm:$0xff]  ;;  %v7675_v55 = vcombine.low %v760_v40, %v764_v6  ;;  %v804_v21 = vld [vmem:[%s8482_s28 + $0x1170] sm:$0xff]  ;;  %v7707_v25 = vcombine.low %v792_v14, %v796_v15 }
 0x2a0   : > { %6058 = vmatprep.subr.bf16.mxu0 %v7628_v33  ;;  %6345 = vmatprep.subr.bf16.mxu1 %v7630_v56  ;;  %v7677_v33 = vcombine.low %v761_v2, %v765_v41  ;;  %v7684_v56 = vcombine.high %v768_v47, %v772_v50  ;;  %v7686_v57 = vcombine.high %v769_v51, %v773_v53  ;;  %v812_v59 = vld [vmem:[%s8482_s28 + $0x11b0] sm:$0xff]  ;;  %v817_v6 = vld [vmem:[%s8482_s28 + $0x11d8] sm:$0xff] }
 0x2a1   : > { %v820_v40 = vld [vmem:[%s8482_s28 + $0x11f0] sm:$0xff]  ;;  %v821_v2 = vld [vmem:[%s8482_s28 + $0x11f8] sm:$0xff] }
 0x2a3   : > { %6059 = vmatpush1.bf16.msra.mxu0 %v7627_v62  ;;  %6346 = vmatpush1.bf16.msra.mxu1 %v7629_v63  ;;  %v781_v62 = vld [vmem:[%s8482_s28 + $0x10b8] sm:$0xff]  ;;  %v7683_v63 = vcombine.low %v768_v47, %v772_v50  ;;  %v828_v47 = vld [vmem:[%s8482_s28 + $0x1230] sm:$0xff] }
 0x2a4   : > { %6060 = vmatprep.subr.bf16.mxu0 %v7636_v9  ;;  %6347 = vmatprep.subr.bf16.mxu1 %v7638_v3  ;;  %v7685_v9 = vcombine.low %v769_v51, %v773_v53  ;;  %v7692_v3 = vcombine.high %v776_v58, %v780_v61  ;;  %v7694_v5 = vcombine.high %v777_v54, %v781_v62  ;;  %v825_v50 = vld [vmem:[%s8482_s28 + $0x1218] sm:$0xff] }
 0x2a5   : > { %v829_v51 = vld [vmem:[%s8482_s28 + $0x1238] sm:$0xff] }
 0x2a7   : > { %6061 = vmatpush1.bf16.msra.mxu0 %v7635_v39  ;;  %6348 = vmatpush1.bf16.msra.mxu1 %v7637_v11  ;;  %v789_v39 = vld [vmem:[%s8482_s28 + $0x10f8] sm:$0xff]  ;;  %v7693_v11 = vcombine.low %v777_v54, %v781_v62 }
 0x2a8   : > { %6062 = vmatprep.subr.bf16.mxu0 %v7644_v12  ;;  %6349 = vmatprep.subr.bf16.mxu1 %v7646_v13  ;;  %v7700_v12 = vcombine.high %v784_v30, %v788_v7  ;;  %v7702_v13 = vcombine.high %v785_v8, %v789_v39  ;;  %v837_v54 = vld [vmem:[%s8482_s28 + $0x1278] sm:$0xff] }
 0x2ab   : > { %6063 = vmatpush1.bf16.msra.mxu0 %v7643_v18  ;;  %6350 = vmatpush1.bf16.msra.mxu1 %v7645_v49  ;;  %v7699_v18 = vcombine.low %v784_v30, %v788_v7  ;;  %v7708_v49 = vcombine.high %v792_v14, %v796_v15  ;;  %v844_v30 = vld [vmem:[%s8482_s28 + $0x12b0] sm:$0xff]  ;;  %v841_v7 = vld [vmem:[%s8482_s28 + $0x1298] sm:$0xff] }
 0x2ac   : > { %6064 = vmatprep.subr.bf16.mxu0 %v7652_v19  ;;  %6351 = vmatprep.subr.bf16.mxu1 %v7654_v10  ;;  %v7710_v19 = vcombine.high %v793_v16, %v797_v17  ;;  %v800_v10 = vld [vmem:[%s8482_s28 + $0x1150] sm:$0xff]  ;;  %v849_v15 = vld [vmem:[%s8482_s28 + $0x12d8] sm:$0xff] }
 0x2ad   : > { %v7715_v34 = vcombine.low %v800_v10, %v804_v21  ;;  %v852_v14 = vld [vmem:[%s8482_s28 + $0x12f0] sm:$0xff] }
 0x2af   : > { %6065 = vmatpush1.bf16.msra.mxu0 %v7651_v27  ;;  %6352 = vmatpush1.bf16.msra.mxu1 %v7653_v28  ;;  %v7709_v27 = vcombine.low %v793_v16, %v797_v17  ;;  %v7716_v28 = vcombine.high %v800_v10, %v804_v21  ;;  %v853_v16 = vld [vmem:[%s8482_s28 + $0x12f8] sm:$0xff]  ;;  %v860_v10 = vld [vmem:[%s8482_s28 + $0x1330] sm:$0xff] }
 0x2b0   : > { %6066 = vmatprep.subr.bf16.mxu0 %v7660_v29  ;;  %6353 = vmatprep.subr.bf16.mxu1 %v7662_v31  ;;  %v7718_v29 = vcombine.high %v801_v22, %v805_v23  ;;  %v808_v31 = vld [vmem:[%s8482_s28 + $0x1190] sm:$0xff]  ;;  %v857_v21 = vld [vmem:[%s8482_s28 + $0x1318] sm:$0xff] }
 0x2b1   : > { %v7723_v41 = vcombine.low %v808_v31, %v812_v59 }
 0x2b3   : > { %6067 = vmatpush1.bf16.msra.mxu0 %v7659_v35  ;;  %6354 = vmatpush1.bf16.msra.mxu1 %v7661_v36  ;;  %v7717_v35 = vcombine.low %v801_v22, %v805_v23  ;;  %v7724_v36 = vcombine.high %v808_v31, %v812_v59  ;;  %v861_v22 = vld [vmem:[%s8482_s28 + $0x1338] sm:$0xff]  ;;  %v868_v31 = vld [vmem:[%s8482_s28 + $0x1370] sm:$0xff] }
 0x2b4   : > { %6068 = vmatprep.subr.bf16.mxu0 %v7668_v37  ;;  %6355 = vmatprep.subr.bf16.mxu1 %v7670_v38  ;;  %v7726_v37 = vcombine.high %v809_v32, %v813_v0  ;;  %v816_v38 = vld [vmem:[%s8482_s28 + $0x11d0] sm:$0xff]  ;;  %v865_v59 = vld [vmem:[%s8482_s28 + $0x1358] sm:$0xff] }
 0x2b5   : > { %v7731_v53 = vcombine.low %v816_v38, %v820_v40 }
 0x2b7   : > { %6069 = vmatpush1.bf16.msra.mxu0 %v7667_v24  ;;  %6356 = vmatpush1.bf16.msra.mxu1 %v7669_v42  ;;  %v7725_v24 = vcombine.low %v809_v32, %v813_v0  ;;  %v7732_v42 = vcombine.high %v816_v38, %v820_v40  ;;  %v869_v32 = vld [vmem:[%s8482_s28 + $0x1378] sm:$0xff]  ;;  %v876_v38 = vld [vmem:[%s8482_s28 + $0x13b0] sm:$0xff] }
 0x2b8   : > { %6079 = vmatprep.subr.bf16.mxu0 %v7676_v43  ;;  %6366 = vmatprep.subr.bf16.mxu1 %v7678_v44  ;;  %v7734_v43 = vcombine.high %v817_v6, %v821_v2  ;;  %v824_v44 = vld [vmem:[%s8482_s28 + $0x1210] sm:$0xff]  ;;  %v873_v40 = vld [vmem:[%s8482_s28 + $0x1398] sm:$0xff] }
 0x2b9   : > { %v7739_v62 = vcombine.low %v824_v44, %v828_v47 }
 0x2ba   : > { %6071 = vmatmul.mubr.bf16.vlgmr.msra.gmra.mrb[4].mxu0 %v8819_v20  ;;  %6358 = vmatmul.mubr.bf16.vlgmr.msra.gmra.mrb[4].mxu1 %v8819_v20  ;;  %v7691_v20 = vcombine.low %v776_v58, %v780_v61  ;;  %v836_v58 = vld [vmem:[%s8482_s28 + $0x1270] sm:$0xff]  ;;  %v833_v61 = vld [vmem:[%s8482_s28 + $0x1258] sm:$0xff] }
 0x2bb   : > { %6080 = vmatpush1.bf16.msra.mxu0 %v7675_v55  ;;  %6367 = vmatpush1.bf16.msra.mxu1 %v7677_v33  ;;  %v7733_v55 = vcombine.low %v817_v6, %v821_v2  ;;  %v7740_v33 = vcombine.high %v824_v44, %v828_v47  ;;  %v877_v6 = vld [vmem:[%s8482_s28 + $0x13b8] sm:$0xff]  ;;  %v884_v44 = vld [vmem:[%s8482_s28 + $0x13f0] sm:$0xff] }
 0x2bc   : > { %6081 = vmatprep.subr.bf16.mxu0 %v7684_v56  ;;  %6368 = vmatprep.subr.bf16.mxu1 %v7686_v57  ;;  %v7742_v56 = vcombine.high %v825_v50, %v829_v51  ;;  %v832_v57 = vld [vmem:[%s8482_s28 + $0x1250] sm:$0xff]  ;;  %v881_v47 = vld [vmem:[%s8482_s28 + $0x13d8] sm:$0xff] }
 0x2bd   : > { %6111 = vmatprep.mubr.bf16.mxu0 %v8826_v60  ;;  %6398 = vmatprep.mubr.bf16.mxu1 %v8826_v60  ;;  %v7701_v60 = vcombine.low %v785_v8, %v789_v39  ;;  %v845_v8 = vld [vmem:[%s8482_s28 + $0x12b8] sm:$0xff]  ;;  %v7747_v39 = vcombine.low %v832_v57, %v836_v58 }
 0x2bf   : > { %6082 = vmatpush1.bf16.msra.mxu0 %v7683_v63  ;;  %6369 = vmatpush1.bf16.msra.mxu1 %v7685_v9  ;;  %v7741_v63 = vcombine.low %v825_v50, %v829_v51  ;;  %v7748_v9 = vcombine.high %v832_v57, %v836_v58  ;;  %v885_v50 = vld [vmem:[%s8482_s28 + $0x13f8] sm:$0xff]  ;;  %v892_v57 = vld [vmem:[%s8482_s28 + $0x1430] sm:$0xff] }
 0x2c0   : > { %6083 = vmatprep.subr.bf16.mxu0 %v7692_v3  ;;  %6370 = vmatprep.subr.bf16.mxu1 %v7694_v5  ;;  %v7750_v3 = vcombine.high %v833_v61, %v837_v54  ;;  %v840_v5 = vld [vmem:[%s8482_s28 + $0x1290] sm:$0xff]  ;;  %v889_v58 = vld [vmem:[%s8482_s28 + $0x1418] sm:$0xff] }
 0x2c1   : > { %v7755_v17 = vcombine.low %v840_v5, %v844_v30 }
 0x2c3   : > { %6084 = vmatpush1.bf16.msra.mxu0 %v7691_v20  ;;  %6371 = vmatpush1.bf16.msra.mxu1 %v7693_v11  ;;  %v7749_v20 = vcombine.low %v833_v61, %v837_v54  ;;  %v7756_v11 = vcombine.high %v840_v5, %v844_v30  ;;  %v893_v61 = vld [vmem:[%s8482_s28 + $0x1438] sm:$0xff]  ;;  %v900_v5 = vld [vmem:[%s8482_s28 + $0x1470] sm:$0xff] }
 0x2c4   : > { %6085 = vmatprep.subr.bf16.mxu0 %v7700_v12  ;;  %6372 = vmatprep.subr.bf16.mxu1 %v7702_v13  ;;  %v7758_v12 = vcombine.high %v841_v7, %v845_v8  ;;  %v848_v13 = vld [vmem:[%s8482_s28 + $0x12d0] sm:$0xff]  ;;  %v897_v30 = vld [vmem:[%s8482_s28 + $0x1458] sm:$0xff] }
 0x2c5   : > { %v7763_v23 = vcombine.low %v848_v13, %v852_v14 }
 0x2c7   : > { %6086 = vmatpush1.bf16.msra.mxu0 %v7699_v18  ;;  %6373 = vmatpush1.bf16.msra.mxu1 %v7701_v60  ;;  %v7757_v18 = vcombine.low %v841_v7, %v845_v8  ;;  %v7764_v60 = vcombine.high %v848_v13, %v852_v14  ;;  %v901_v7 = vld [vmem:[%s8482_s28 + $0x1478] sm:$0xff]  ;;  %v908_v13 = vld [vmem:[%s8482_s28 + $0x14b0] sm:$0xff] }
 0x2c8   : > { %6087 = vmatprep.subr.bf16.mxu0 %v7708_v49  ;;  %6374 = vmatprep.subr.bf16.mxu1 %v7710_v19  ;;  %v7766_v49 = vcombine.high %v849_v15, %v853_v16  ;;  %v856_v19 = vld [vmem:[%s8482_s28 + $0x1310] sm:$0xff]  ;;  %v905_v14 = vld [vmem:[%s8482_s28 + $0x1498] sm:$0xff] }
 0x2c9   : > { %v7771_v0 = vcombine.low %v856_v19, %v860_v10 }
 0x2cb   : > { %6088 = vmatpush1.bf16.msra.mxu0 %v7707_v25  ;;  %6375 = vmatpush1.bf16.msra.mxu1 %v7709_v27  ;;  %v7765_v25 = vcombine.low %v849_v15, %v853_v16  ;;  %v7772_v27 = vcombine.high %v856_v19, %v860_v10  ;;  %v909_v15 = vld [vmem:[%s8482_s28 + $0x14b8] sm:$0xff]  ;;  %v916_v19 = vld [vmem:[%s8482_s28 + $0x14f0] sm:$0xff] }
 0x2cc   : > { %6089 = vmatprep.subr.bf16.mxu0 %v7716_v28  ;;  %6376 = vmatprep.subr.bf16.mxu1 %v7718_v29  ;;  %v7774_v28 = vcombine.high %v857_v21, %v861_v22  ;;  %v864_v29 = vld [vmem:[%s8482_s28 + $0x1350] sm:$0xff]  ;;  %v913_v10 = vld [vmem:[%s8482_s28 + $0x14d8] sm:$0xff] }
 0x2cd   : > { %v7779_v2 = vcombine.low %v864_v29, %v868_v31 }
 0x2cf   : > { %6090 = vmatpush1.bf16.msra.mxu0 %v7715_v34  ;;  %6377 = vmatpush1.bf16.msra.mxu1 %v7717_v35  ;;  %v7773_v34 = vcombine.low %v857_v21, %v861_v22  ;;  %v7780_v35 = vcombine.high %v864_v29, %v868_v31  ;;  %v917_v21 = vld [vmem:[%s8482_s28 + $0x14f8] sm:$0xff]  ;;  %v7821_v22 = vcombine.low %v905_v14, %v909_v15 }
 0x2d0   : > { %6091 = vmatprep.subr.bf16.mxu0 %v7724_v36  ;;  %6378 = vmatprep.subr.bf16.mxu1 %v7726_v37  ;;  %v7782_v36 = vcombine.high %v865_v59, %v869_v32  ;;  %v872_v37 = vld [vmem:[%s8482_s28 + $0x1390] sm:$0xff]  ;;  %v921_v29 = vld [vmem:[%s8482_s28 + $0x1518] sm:$0xff] }
 0x2d1   : > { %v7787_v51 = vcombine.low %v872_v37, %v876_v38  ;;  %v925_v31 = vld [vmem:[%s8482_s28 + $0x1538] sm:$0xff] }
 0x2d3   : > { %6092 = vmatpush1.bf16.msra.mxu0 %v7723_v41  ;;  %6379 = vmatpush1.bf16.msra.mxu1 %v7725_v24  ;;  %v7781_v41 = vcombine.low %v865_v59, %v869_v32  ;;  %v7788_v24 = vcombine.high %v872_v37, %v876_v38  ;;  %v933_v37 = vld [vmem:[%s8482_s28 + $0x1578] sm:$0xff] }
 0x2d4   : > { %6093 = vmatprep.subr.bf16.mxu0 %v7732_v42  ;;  %6380 = vmatprep.subr.bf16.mxu1 %v7734_v43  ;;  %v7790_v42 = vcombine.high %v873_v40, %v877_v6  ;;  %v880_v43 = vld [vmem:[%s8482_s28 + $0x13d0] sm:$0xff] }
 0x2d5   : > { %v7795_v54 = vcombine.low %v880_v43, %v884_v44 }
 0x2d7   : > { %6094 = vmatpush1.bf16.msra.mxu0 %v7731_v53  ;;  %6381 = vmatpush1.bf16.msra.mxu1 %v7733_v55  ;;  %v7789_v53 = vcombine.low %v873_v40, %v877_v6  ;;  %v7796_v55 = vcombine.high %v880_v43, %v884_v44  ;;  %v7837_v40 = vcombine.low %v921_v29, %v925_v31  ;;  %v941_v43 = vld [vmem:[%s8482_s28 + $0x15b8] sm:$0xff] }
 0x2d8   : > { %6095 = vmatprep.subr.bf16.mxu0 %v7740_v33  ;;  %6382 = vmatprep.subr.bf16.mxu1 %v7742_v56  ;;  %v7798_v33 = vcombine.high %v881_v47, %v885_v50  ;;  %v888_v56 = vld [vmem:[%s8482_s28 + $0x1410] sm:$0xff] }
 0x2d9   : > { %v7803_v8 = vcombine.low %v888_v56, %v892_v57 }
 0x2db   : > { %6096 = vmatpush1.bf16.msra.mxu0 %v7739_v62  ;;  %6383 = vmatpush1.bf16.msra.mxu1 %v7741_v63  ;;  %v7797_v62 = vcombine.low %v881_v47, %v885_v50  ;;  %v7804_v63 = vcombine.high %v888_v56, %v892_v57  ;;  %v949_v56 = vld [vmem:[%s8482_s28 + $0x15f8] sm:$0xff] }
 0x2dc   : > { %6097 = vmatprep.subr.bf16.mxu0 %v7748_v9  ;;  %6384 = vmatprep.subr.bf16.mxu1 %v7750_v3  ;;  %v7806_v9 = vcombine.high %v889_v58, %v893_v61  ;;  %v896_v3 = vld [vmem:[%s8482_s28 + $0x1450] sm:$0xff] }
 0x2dd   : > { %v7811_v16 = vcombine.low %v896_v3, %v900_v5 }
 0x2df   : > { %6098 = vmatpush1.bf16.msra.mxu0 %v7747_v39  ;;  %6385 = vmatpush1.bf16.msra.mxu1 %v7749_v20  ;;  %v7805_v39 = vcombine.low %v889_v58, %v893_v61  ;;  %v7812_v20 = vcombine.high %v896_v3, %v900_v5  ;;  %v957_v3 = vld [vmem:[%s8482_s28 + $0x1638] sm:$0xff] }
 0x2e0   : > { %6099 = vmatprep.subr.bf16.mxu0 %v7756_v11  ;;  %6386 = vmatprep.subr.bf16.mxu1 %v7758_v12  ;;  %v7814_v11 = vcombine.high %v897_v30, %v901_v7  ;;  %v904_v12 = vld [vmem:[%s8482_s28 + $0x1490] sm:$0xff] }
 0x2e3   : > { %6100 = vmatpush1.bf16.msra.mxu0 %v7755_v17  ;;  %6387 = vmatpush1.bf16.msra.mxu1 %v7757_v18  ;;  %v7813_v17 = vcombine.low %v897_v30, %v901_v7  ;;  %v7820_v18 = vcombine.high %v904_v12, %v908_v13 }
 0x2e4   : > { %6101 = vmatprep.subr.bf16.mxu0 %v7764_v60  ;;  %6388 = vmatprep.subr.bf16.mxu1 %v7766_v49  ;;  %v7822_v60 = vcombine.high %v905_v14, %v909_v15  ;;  %v912_v49 = vld [vmem:[%s8482_s28 + $0x14d0] sm:$0xff] }
 0x2e5   : > { %v7827_v59 = vcombine.low %v912_v49, %v916_v19 }
 0x2e7   : > { %6102 = vmatpush1.bf16.msra.mxu0 %v7763_v23  ;;  %6389 = vmatpush1.bf16.msra.mxu1 %v7765_v25  ;;  %v7828_v23 = vcombine.high %v912_v49, %v916_v19  ;;  %v7830_v25 = vcombine.high %v913_v10, %v917_v21  ;;  %v973_v49 = vld [vmem:[%s8482_s28 + $0x16b8] sm:$0xff] }
 0x2e8   : > { %6103 = vmatprep.subr.bf16.mxu0 %v7772_v27  ;;  %6390 = vmatprep.subr.bf16.mxu1 %v7774_v28  ;;  %v920_v27 = vld [vmem:[%s8482_s28 + $0x1510] sm:$0xff] }
 0x2e9   : > { %v924_v28 = vld [vmem:[%s8482_s28 + $0x1530] sm:$0xff] }
 0x2ea   : > { %v7836_v32 = vcombine.high %v920_v27, %v924_v28  ;;  %v7835_v38 = vcombine.low %v920_v27, %v924_v28  ;;  %v981_v27 = vld [vmem:[%s8482_s28 + $0x16f8] sm:$0xff] }
 0x2eb   : > { %6104 = vmatpush1.bf16.msra.mxu0 %v7771_v0  ;;  %6391 = vmatpush1.bf16.msra.mxu1 %v7773_v34  ;;  %v7838_v0 = vcombine.high %v921_v29, %v925_v31  ;;  %v928_v34 = vld [vmem:[%s8482_s28 + $0x1550] sm:$0xff] }
 0x2ec   : > { %6105 = vmatprep.subr.bf16.mxu0 %v7780_v35  ;;  %6392 = vmatprep.subr.bf16.mxu1 %v7782_v36  ;;  %v932_v35 = vld [vmem:[%s8482_s28 + $0x1570] sm:$0xff]  ;;  %v929_v36 = vld [vmem:[%s8482_s28 + $0x1558] sm:$0xff] }
 0x2ed   : > { %v7844_v6 = vcombine.high %v928_v34, %v932_v35  ;;  %v7843_v44 = vcombine.low %v928_v34, %v932_v35  ;;  %v7845_v47 = vcombine.low %v929_v36, %v933_v37  ;;  %v989_v34 = vld [vmem:[%s8482_s28 + $0x1738] sm:$0xff] }
 0x2ef   : > { %6106 = vmatpush1.bf16.msra.mxu0 %v7779_v2  ;;  %6393 = vmatpush1.bf16.msra.mxu1 %v7781_v41  ;;  %v7846_v2 = vcombine.high %v929_v36, %v933_v37  ;;  %v936_v41 = vld [vmem:[%s8482_s28 + $0x1590] sm:$0xff] }
 0x2f0   : > { %6107 = vmatprep.subr.bf16.mxu0 %v7788_v24  ;;  %6394 = vmatprep.subr.bf16.mxu1 %v7790_v42  ;;  %v940_v24 = vld [vmem:[%s8482_s28 + $0x15b0] sm:$0xff]  ;;  %v937_v42 = vld [vmem:[%s8482_s28 + $0x1598] sm:$0xff] }
 0x2f1   : > { %v7852_v50 = vcombine.high %v936_v41, %v940_v24  ;;  %v7851_v57 = vcombine.low %v936_v41, %v940_v24  ;;  %v7853_v58 = vcombine.low %v937_v42, %v941_v43  ;;  %v997_v41 = vld [vmem:[%s8482_s28 + $0x1778] sm:$0xff] }
 0x2f3   : > { %6108 = vmatpush1.bf16.msra.mxu0 %v7787_v51  ;;  %6395 = vmatpush1.bf16.msra.mxu1 %v7789_v53  ;;  %v7854_v51 = vcombine.high %v937_v42, %v941_v43  ;;  %v944_v53 = vld [vmem:[%s8482_s28 + $0x15d0] sm:$0xff] }
 0x2f4   : > { %6109 = vmatprep.subr.bf16.mxu0 %v7796_v55  ;;  %6396 = vmatprep.subr.bf16.mxu1 %v7798_v33  ;;  %v948_v55 = vld [vmem:[%s8482_s28 + $0x15f0] sm:$0xff]  ;;  %v945_v33 = vld [vmem:[%s8482_s28 + $0x15d8] sm:$0xff] }
 0x2f5   : > { %v7860_v61 = vcombine.high %v944_v53, %v948_v55  ;;  %v7859_v5 = vcombine.low %v944_v53, %v948_v55  ;;  %v7861_v30 = vcombine.low %v945_v33, %v949_v56  ;;  %v1005_v53 = vld [vmem:[%s8482_s28 + $0x17b8] sm:$0xff] }
 0x2f7   : > { %6110 = vmatpush1.bf16.msra.mxu0 %v7795_v54  ;;  %6397 = vmatpush1.bf16.msra.mxu1 %v7797_v62  ;;  %v7862_v54 = vcombine.high %v945_v33, %v949_v56  ;;  %v952_v62 = vld [vmem:[%s8482_s28 + $0x1610] sm:$0xff] }
 0x2f8   : > { %6120 = vmatprep.subr.bf16.mxu0 %v7804_v63  ;;  %6407 = vmatprep.subr.bf16.mxu1 %v7806_v9  ;;  %v956_v63 = vld [vmem:[%s8482_s28 + $0x1630] sm:$0xff]  ;;  %v953_v9 = vld [vmem:[%s8482_s28 + $0x1618] sm:$0xff] }
 0x2f9   : > { %v7868_v7 = vcombine.high %v952_v62, %v956_v63  ;;  %v7869_v14 = vcombine.low %v953_v9, %v957_v3 }
 0x2fa   : > { %6112 = vmatmul.mubr.bf16.vlgmr.msra.gmra.mrb[4].mxu0 %v8894_v52  ;;  %6399 = vmatmul.mubr.bf16.vlgmr.msra.gmra.mrb[4].mxu1 %v8894_v52  ;;  %v7819_v52 = vcombine.low %v904_v12, %v908_v13  ;;  %v965_v12 = vld [vmem:[%s8482_s28 + $0x1678] sm:$0xff]  ;;  %v7867_v13 = vcombine.low %v952_v62, %v956_v63 }
 0x2fb   : > { %6121 = vmatpush1.bf16.msra.mxu0 %v7803_v8  ;;  %6408 = vmatpush1.bf16.msra.mxu1 %v7805_v39  ;;  %v7870_v8 = vcombine.high %v953_v9, %v957_v3  ;;  %v960_v39 = vld [vmem:[%s8482_s28 + $0x1650] sm:$0xff]  ;;  %v1013_v62 = vld [vmem:[%s8482_s28 + $0x17f8] sm:$0xff] }
 0x2fc   : > { %6122 = vmatprep.subr.bf16.mxu0 %v7812_v20  ;;  %6409 = vmatprep.subr.bf16.mxu1 %v7814_v11  ;;  %v964_v20 = vld [vmem:[%s8482_s28 + $0x1670] sm:$0xff]  ;;  %v961_v11 = vld [vmem:[%s8482_s28 + $0x1658] sm:$0xff] }
 0x2fd   : > { %6152 = vmatprep.mubr.bf16.mxu0 %v8902_v1  ;;  %6439 = vmatprep.mubr.bf16.mxu1 %v8902_v1  ;;  %v7829_v1 = vcombine.low %v913_v10, %v917_v21  ;;  %v7876_v15 = vcombine.high %v960_v39, %v964_v20  ;;  %v7875_v19 = vcombine.low %v960_v39, %v964_v20  ;;  %v1021_v39 = vld [vmem:[%s8482_s28 + $0x1838] sm:$0xff] }
 0x2fe   : > { %v7877_v10 = vcombine.low %v961_v11, %v965_v12 }
 0x2ff   : > { %6123 = vmatpush1.bf16.msra.mxu0 %v7811_v16  ;;  %6410 = vmatpush1.bf16.msra.mxu1 %v7813_v17  ;;  %v7878_v16 = vcombine.high %v961_v11, %v965_v12  ;;  %v968_v17 = vld [vmem:[%s8482_s28 + $0x1690] sm:$0xff] }
 0x300   : > { %6124 = vmatprep.subr.bf16.mxu0 %v7820_v18  ;;  %6411 = vmatprep.subr.bf16.mxu1 %v7822_v60  ;;  %v972_v18 = vld [vmem:[%s8482_s28 + $0x16b0] sm:$0xff]  ;;  %v969_v60 = vld [vmem:[%s8482_s28 + $0x1698] sm:$0xff] }
 0x301   : > { %v7884_v21 = vcombine.high %v968_v17, %v972_v18  ;;  %v7883_v28 = vcombine.low %v968_v17, %v972_v18  ;;  %v7885_v29 = vcombine.low %v969_v60, %v973_v49  ;;  %v1029_v17 = vld [vmem:[%s8482_s28 + $0x1878] sm:$0xff] }
 0x303   : > { %6125 = vmatpush1.bf16.msra.mxu0 %v7819_v52  ;;  %6412 = vmatpush1.bf16.msra.mxu1 %v7821_v22  ;;  %v7886_v52 = vcombine.high %v969_v60, %v973_v49  ;;  %v976_v22 = vld [vmem:[%s8482_s28 + $0x16d0] sm:$0xff] }
 0x304   : > { %6126 = vmatprep.subr.bf16.mxu0 %v7828_v23  ;;  %6413 = vmatprep.subr.bf16.mxu1 %v7830_v25  ;;  %v980_v23 = vld [vmem:[%s8482_s28 + $0x16f0] sm:$0xff]  ;;  %v977_v25 = vld [vmem:[%s8482_s28 + $0x16d8] sm:$0xff] }
 0x305   : > { %v7892_v31 = vcombine.high %v976_v22, %v980_v23  ;;  %v7891_v35 = vcombine.low %v976_v22, %v980_v23  ;;  %v7893_v36 = vcombine.low %v977_v25, %v981_v27  ;;  %v1037_v22 = vld [vmem:[%s8482_s28 + $0x18b8] sm:$0xff] }
 0x307   : > { %6127 = vmatpush1.bf16.msra.mxu0 %v7827_v59  ;;  %6414 = vmatpush1.bf16.msra.mxu1 %v7829_v1  ;;  %v7894_v59 = vcombine.high %v977_v25, %v981_v27  ;;  %v984_v1 = vld [vmem:[%s8482_s28 + $0x1710] sm:$0xff] }
 0x308   : > { %6128 = vmatprep.subr.bf16.mxu0 %v7836_v32  ;;  %6415 = vmatprep.subr.bf16.mxu1 %v7838_v0  ;;  %v988_v32 = vld [vmem:[%s8482_s28 + $0x1730] sm:$0xff]  ;;  %v985_v0 = vld [vmem:[%s8482_s28 + $0x1718] sm:$0xff] }
 0x309   : > { %v7900_v37 = vcombine.high %v984_v1, %v988_v32  ;;  %v7899_v24 = vcombine.low %v984_v1, %v988_v32  ;;  %v7901_v42 = vcombine.low %v985_v0, %v989_v34  ;;  %v1045_v1 = vld [vmem:[%s8482_s28 + $0x18f8] sm:$0xff] }
 0x30b   : > { %6129 = vmatpush1.bf16.msra.mxu0 %v7835_v38  ;;  %6416 = vmatpush1.bf16.msra.mxu1 %v7837_v40  ;;  %v7902_v38 = vcombine.high %v985_v0, %v989_v34  ;;  %v992_v40 = vld [vmem:[%s8482_s28 + $0x1750] sm:$0xff] }
 0x30c   : > { %6130 = vmatprep.subr.bf16.mxu0 %v7844_v6  ;;  %6417 = vmatprep.subr.bf16.mxu1 %v7846_v2  ;;  %v996_v6 = vld [vmem:[%s8482_s28 + $0x1770] sm:$0xff]  ;;  %v993_v2 = vld [vmem:[%s8482_s28 + $0x1758] sm:$0xff] }
 0x30d   : > { %v7908_v43 = vcombine.high %v992_v40, %v996_v6  ;;  %v7907_v55 = vcombine.low %v992_v40, %v996_v6  ;;  %v7909_v33 = vcombine.low %v993_v2, %v997_v41 }
 0x30f   : > { %6131 = vmatpush1.bf16.msra.mxu0 %v7843_v44  ;;  %6418 = vmatpush1.bf16.msra.mxu1 %v7845_v47  ;;  %v7910_v44 = vcombine.high %v993_v2, %v997_v41  ;;  %v1000_v47 = vld [vmem:[%s8482_s28 + $0x1790] sm:$0xff] }
 0x310   : > { %6132 = vmatprep.subr.bf16.mxu0 %v7852_v50  ;;  %6419 = vmatprep.subr.bf16.mxu1 %v7854_v51  ;;  %v1004_v50 = vld [vmem:[%s8482_s28 + $0x17b0] sm:$0xff]  ;;  %v1001_v51 = vld [vmem:[%s8482_s28 + $0x1798] sm:$0xff] }
 0x311   : > { %v7916_v56 = vcombine.high %v1000_v47, %v1004_v50  ;;  %v7915_v63 = vcombine.low %v1000_v47, %v1004_v50  ;;  %v7917_v9 = vcombine.low %v1001_v51, %v1005_v53  ;;  %v1056_v41 = vld [vmem:[%s8482_s28 + $0x1950] sm:$0xff] }
 0x313   : > { %6133 = vmatpush1.bf16.msra.mxu0 %v7851_v57  ;;  %6420 = vmatpush1.bf16.msra.mxu1 %v7853_v58  ;;  %v7918_v57 = vcombine.high %v1001_v51, %v1005_v53  ;;  %v1008_v58 = vld [vmem:[%s8482_s28 + $0x17d0] sm:$0xff] }
 0x314   : > { %6134 = vmatprep.subr.bf16.mxu0 %v7860_v61  ;;  %6421 = vmatprep.subr.bf16.mxu1 %v7862_v54  ;;  %v1012_v61 = vld [vmem:[%s8482_s28 + $0x17f0] sm:$0xff]  ;;  %v1009_v54 = vld [vmem:[%s8482_s28 + $0x17d8] sm:$0xff] }
 0x315   : > { %v7924_v3 = vcombine.high %v1008_v58, %v1012_v61  ;;  %v7923_v20 = vcombine.low %v1008_v58, %v1012_v61  ;;  %v7925_v11 = vcombine.low %v1009_v54, %v1013_v62  ;;  %v1064_v53 = vld [vmem:[%s8482_s28 + $0x1990] sm:$0xff] }
 0x317   : > { %6135 = vmatpush1.bf16.msra.mxu0 %v7859_v5  ;;  %6422 = vmatpush1.bf16.msra.mxu1 %v7861_v30  ;;  %v7926_v5 = vcombine.high %v1009_v54, %v1013_v62  ;;  %v1016_v30 = vld [vmem:[%s8482_s28 + $0x1810] sm:$0xff] }
 0x318   : > { %6136 = vmatprep.subr.bf16.mxu0 %v7868_v7  ;;  %6423 = vmatprep.subr.bf16.mxu1 %v7870_v8  ;;  %v1020_v7 = vld [vmem:[%s8482_s28 + $0x1830] sm:$0xff]  ;;  %v1017_v8 = vld [vmem:[%s8482_s28 + $0x1818] sm:$0xff] }
 0x319   : > { %v7932_v12 = vcombine.high %v1016_v30, %v1020_v7  ;;  %v7931_v18 = vcombine.low %v1016_v30, %v1020_v7  ;;  %v7933_v60 = vcombine.low %v1017_v8, %v1021_v39  ;;  %v1072_v62 = vld [vmem:[%s8482_s28 + $0x19d0] sm:$0xff] }
 0x31b   : > { %6137 = vmatpush1.bf16.msra.mxu0 %v7867_v13  ;;  %6424 = vmatpush1.bf16.msra.mxu1 %v7869_v14  ;;  %v7934_v13 = vcombine.high %v1017_v8, %v1021_v39  ;;  %v1024_v14 = vld [vmem:[%s8482_s28 + $0x1850] sm:$0xff] }
 0x31c   : > { %6138 = vmatprep.subr.bf16.mxu0 %v7876_v15  ;;  %6425 = vmatprep.subr.bf16.mxu1 %v7878_v16  ;;  %v1028_v15 = vld [vmem:[%s8482_s28 + $0x1870] sm:$0xff]  ;;  %v1025_v16 = vld [vmem:[%s8482_s28 + $0x1858] sm:$0xff] }
 0x31d   : > { %v7940_v49 = vcombine.high %v1024_v14, %v1028_v15  ;;  %v7939_v23 = vcombine.low %v1024_v14, %v1028_v15  ;;  %v7941_v25 = vcombine.low %v1025_v16, %v1029_v17 }
 0x31f   : > { %6139 = vmatpush1.bf16.msra.mxu0 %v7875_v19  ;;  %6426 = vmatpush1.bf16.msra.mxu1 %v7877_v10  ;;  %v7942_v19 = vcombine.high %v1025_v16, %v1029_v17  ;;  %v1032_v10 = vld [vmem:[%s8482_s28 + $0x1890] sm:$0xff] }
 0x320   : > { %6140 = vmatprep.subr.bf16.mxu0 %v7884_v21  ;;  %6427 = vmatprep.subr.bf16.mxu1 %v7886_v52  ;;  %v1036_v21 = vld [vmem:[%s8482_s28 + $0x18b0] sm:$0xff]  ;;  %v1033_v52 = vld [vmem:[%s8482_s28 + $0x1898] sm:$0xff] }
 0x321   : > { %v7948_v27 = vcombine.high %v1032_v10, %v1036_v21  ;;  %v7949_v32 = vcombine.low %v1033_v52, %v1037_v22 }
 0x323   : > { %6141 = vmatpush1.bf16.msra.mxu0 %v7883_v28  ;;  %6428 = vmatpush1.bf16.msra.mxu1 %v7885_v29  ;;  %v7950_v28 = vcombine.high %v1033_v52, %v1037_v22  ;;  %v1040_v29 = vld [vmem:[%s8482_s28 + $0x18d0] sm:$0xff] }
 0x324   : > { %6142 = vmatprep.subr.bf16.mxu0 %v7892_v31  ;;  %6429 = vmatprep.subr.bf16.mxu1 %v7894_v59  ;;  %v1044_v31 = vld [vmem:[%s8482_s28 + $0x18f0] sm:$0xff]  ;;  %v1041_v59 = vld [vmem:[%s8482_s28 + $0x18d8] sm:$0xff] }
 0x325   : > { %v7956_v0 = vcombine.high %v1040_v29, %v1044_v31  ;;  %v7958_v34 = vcombine.high %v1041_v59, %v1045_v1  ;;  %v7955_v40 = vcombine.low %v1040_v29, %v1044_v31  ;;  %v6665_v29 = vld [vmem:[%s9907_s3 + $0x180] sm:$0xff] (!%p7991_p6)  ;;  %v6666_v31 = vld [vmem:[%s9907_s3 + $0x188] sm:$0xff] (!%p7991_p6) }
 0x327   : > { %6143 = vmatpush1.bf16.msra.mxu0 %v7891_v35  ;;  %6430 = vmatpush1.bf16.msra.mxu1 %v7893_v36  ;;  %v1048_v35 = vld [vmem:[%s8482_s28 + $0x1910] sm:$0xff] }
 0x328   : > { %6144 = vmatprep.subr.bf16.mxu0 %v7900_v37  ;;  %6431 = vmatprep.subr.bf16.mxu1 %v7902_v38  ;;  %v1052_v36 = vld [vmem:[%s8482_s28 + $0x1930] sm:$0xff]  ;;  %v1049_v37 = vld [vmem:[%s8482_s28 + $0x1918] sm:$0xff] }
 0x329   : > { %v1053_v38 = vld [vmem:[%s8482_s28 + $0x1938] sm:$0xff]  ;;  %v7964_v6 = vcombine.high %v1048_v35, %v1052_v36 }
 0x32a   : > { %v7966_v2 = vcombine.high %v1049_v37, %v1053_v38  ;;  %v7965_v47 = vcombine.low %v1049_v37, %v1053_v38  ;;  %v6620_v37 = vld [vmem:[%s9907_s3 + $0x18] sm:$0xff] (!%p7991_p6) }
 0x32b   : > { %6145 = vmatpush1.bf16.msra.mxu0 %v7899_v24  ;;  %6432 = vmatpush1.bf16.msra.mxu1 %v7901_v42  ;;  %v1060_v24 = vld [vmem:[%s8482_s28 + $0x1970] sm:$0xff]  ;;  %v1057_v42 = vld [vmem:[%s8482_s28 + $0x1958] sm:$0xff] }
 0x32c   : > { %6146 = vmatprep.subr.bf16.mxu0 %v7908_v43  ;;  %6433 = vmatprep.subr.bf16.mxu1 %v7910_v44  ;;  %v1061_v43 = vld [vmem:[%s8482_s28 + $0x1978] sm:$0xff]  ;;  %v7963_v44 = vcombine.low %v1048_v35, %v1052_v36  ;;  %v7972_v50 = vcombine.high %v1056_v41, %v1060_v24  ;;  %v6619_v36 = vld [vmem:[%s9907_s3 + $0x10] sm:$0xff] (!%p7991_p6) }
 0x32d   : > { %v7974_v51 = vcombine.high %v1057_v42, %v1061_v43  ;;  %v7973_v58 = vcombine.low %v1057_v42, %v1061_v43  ;;  %v6636_v35 = vld [vmem:[%s9907_s3 + $0x98] sm:$0xff] (!%p7991_p6)  ;;  %v6637_v42 = vld [vmem:[%s9907_s3 + $0xa0] sm:$0xff] (!%p7991_p6)  ;;  %v6638_v43 = vld [vmem:[%s9907_s3 + $0xa8] sm:$0xff] (!%p7991_p6) }
 0x32f   : > { %6147 = vmatpush1.bf16.msra.mxu0 %v7907_v55  ;;  %6434 = vmatpush1.bf16.msra.mxu1 %v7909_v33  ;;  %v1068_v55 = vld [vmem:[%s8482_s28 + $0x19b0] sm:$0xff]  ;;  %v1065_v33 = vld [vmem:[%s8482_s28 + $0x1998] sm:$0xff] }
 0x330   : > { %6148 = vmatprep.subr.bf16.mxu0 %v7916_v56  ;;  %6435 = vmatprep.subr.bf16.mxu1 %v7918_v57  ;;  %v1069_v56 = vld [vmem:[%s8482_s28 + $0x19b8] sm:$0xff]  ;;  %v7971_v57 = vcombine.low %v1056_v41, %v1060_v24  ;;  %v7980_v61 = vcombine.high %v1064_v53, %v1068_v55 }
 0x331   : > { %v7982_v54 = vcombine.high %v1065_v33, %v1069_v56  ;;  %v7981_v30 = vcombine.low %v1065_v33, %v1069_v56  ;;  %v6652_v24 = vld [vmem:[%s9907_s3 + $0x118] sm:$0xff] (!%p7991_p6)  ;;  %v6653_v33 = vld [vmem:[%s9907_s3 + $0x120] sm:$0xff] (!%p7991_p6)  ;;  %v6654_v56 = vld [vmem:[%s9907_s3 + $0x128] sm:$0xff] (!%p7991_p6) }
 0x333   : > { %6149 = vmatpush1.bf16.msra.mxu0 %v7915_v63  ;;  %6436 = vmatpush1.bf16.msra.mxu1 %v7917_v9  ;;  %v1076_v63 = vld [vmem:[%s8482_s28 + $0x19f0] sm:$0xff]  ;;  %v1073_v9 = vld [vmem:[%s8482_s28 + $0x19d8] sm:$0xff] }
 0x334   : > { %6150 = vmatprep.subr.bf16.mxu0 %v7924_v3  ;;  %6437 = vmatprep.subr.bf16.mxu1 %v7926_v5  ;;  %v1077_v3 = vld [vmem:[%s8482_s28 + $0x19f8] sm:$0xff]  ;;  %v7979_v5 = vcombine.low %v1064_v53, %v1068_v55  ;;  %v7988_v7 = vcombine.high %v1072_v62, %v1076_v63  ;;  %v7987_v39 = vcombine.low %v1072_v62, %v1076_v63  ;;  %v6669_v53 = vld [vmem:[%s9907_s3 + $0x1a0] sm:$0xff] (!%p7991_p6)  ;;  %v6670_v55 = vld [vmem:[%s9907_s3 + $0x1a8] sm:$0xff] (!%p7991_p6) }
 0x335   : > { %v7990_v8 = vcombine.high %v1073_v9, %v1077_v3  ;;  %v6623_v62 = vld [vmem:[%s9907_s3 + $0x30] sm:$0xff] (!%p7991_p6)  ;;  %v8180_v63 = vpack.c.bf16 (!%p7991_p6), %v6654_v56, %v6653_v33  ;;  %v6680_v33 = vld [vmem:[%s9907_s3 + $0x1f8] sm:$0xff] (!%p7991_p6) }
 0x337   : > { %6151 = vmatpush1.bf16.msra.mxu0 %v7923_v20  ;;  %6438 = vmatpush1.bf16.msra.mxu1 %v7925_v11  ;;  %v7989_v20 = vcombine.low %v1073_v9, %v1077_v3  ;;  %v6624_v3 = vld [vmem:[%s9907_s3 + $0x38] sm:$0xff] (!%p7991_p6) }
 0x338   : > { %6161 = vmatprep.subr.bf16.mxu0 %v7932_v12  ;;  %6448 = vmatprep.subr.bf16.mxu1 %v7934_v13 }
 0x33a   : > { %6153 = vmatmul.mubr.bf16.vlgmr.msra.gmra.mrb[4].mxu0 %v8970_v26  ;;  %6440 = vmatmul.mubr.bf16.vlgmr.msra.gmra.mrb[4].mxu1 %v8970_v26  ;;  %v7947_v26 = vcombine.low %v1032_v10, %v1036_v21  ;;  %v243_v21 = vld [vmem:[#allocation2 + $0x8] sm:$0xff] }
 0x33b   : > { %6162 = vmatpush1.bf16.msra.mxu0 %v7931_v18  ;;  %6449 = vmatpush1.bf16.msra.mxu1 %v7933_v60 }
 0x33c   : > { %6163 = vmatprep.subr.bf16.mxu0 %v7940_v49  ;;  %6450 = vmatprep.subr.bf16.mxu1 %v7942_v19 }
 0x33d   : > { %6193 = vmatprep.mubr.bf16.mxu0 %v8427_v46  ;;  %6480 = vmatprep.mubr.bf16.mxu1 %v8427_v46  ;;  %v7957_v46 = vcombine.low %v1041_v59, %v1045_v1  ;;  %v8170_v1 = vpack.c.bf16 (!%p7991_p6), %v6666_v31, %v6665_v29  ;;  %v6659_v29 = vld [vmem:[%s9907_s3 + $0x150] sm:$0xff] (!%p7991_p6) }
 0x33f   : > { %6164 = vmatpush1.bf16.msra.mxu0 %v7939_v23  ;;  %6451 = vmatpush1.bf16.msra.mxu1 %v7941_v25  ;;  %v6634_v23 = vld [vmem:[%s9907_s3 + $0x88] sm:$0xff] (!%p7991_p6)  ;;  %v6617_v25 = vld [vmem:[%s9907_s3] sm:$0xff] (!%p7991_p6) }
 0x340   : > { %6165 = vmatprep.subr.bf16.mxu0 %v7948_v27  ;;  %6452 = vmatprep.subr.bf16.mxu1 %v7950_v28  ;;  %v6618_v28 = vld [vmem:[%s9907_s3 + $0x8] sm:$0xff] (!%p7991_p6) }
 0x341   : > { %v8140_v59 = vpack.c.bf16 (!%p7991_p6), %v6618_v28, %v6617_v25  ;;  %v6628_v28 = vld [vmem:[%s9907_s3 + $0x58] sm:$0xff] (!%p7991_p6) }
 0x343   : > { %6166 = vmatpush1.bf16.msra.mxu0 %v7947_v26  ;;  %6453 = vmatpush1.bf16.msra.mxu1 %v7949_v32  ;;  %v6649_v26 = vld [vmem:[%s9907_s3 + $0x100] sm:$0xff] (!%p7991_p6)  ;;  %v6650_v32 = vld [vmem:[%s9907_s3 + $0x108] sm:$0xff] (!%p7991_p6) }
 0x344   : > { %6167 = vmatprep.subr.bf16.mxu0 %v7956_v0  ;;  %6454 = vmatprep.subr.bf16.mxu1 %v7958_v34  ;;  %v6635_v0 = vld [vmem:[%s9907_s3 + $0x90] sm:$0xff] (!%p7991_p6)  ;;  %v8172_v34 = vpack.c.bf16 (!%p7991_p6), %v6650_v32, %v6649_v26  ;;  %v6646_v26 = vld [vmem:[%s9907_s3 + $0xe8] sm:$0xff] (!%p7991_p6)  ;;  %v6547_v32 = vsub.s32 (!%p7991_p6), 0, %v8507_v45 }
 0x345   : > { %v8142_v38 = vpack.c.bf16 (!%p7991_p6), %v6636_v35, %v6635_v0  ;;  %v6551_v0 = vsub.s32 (!%p7991_p6), 1, %v8507_v45  ;;  %v6677_v35 = vld [vmem:[%s9907_s3 + $0x1e0] sm:$0xff] (!%p7991_p6) }
 0x347   : > { %6168 = vmatpush1.bf16.msra.mxu0 %v7955_v40  ;;  %6455 = vmatpush1.bf16.msra.mxu1 %v7957_v46  ;;  %v8144_v40 = vpack.c.bf16 (!%p7991_p6), %v6620_v37, %v6619_v36  ;;  %v6667_v46 = vld [vmem:[%s9907_s3 + $0x190] sm:$0xff] (!%p7991_p6)  ;;  %v6678_v36 = vld [vmem:[%s9907_s3 + $0x1e8] sm:$0xff] (!%p7991_p6)  ;;  %v6559_v37 = vsub.s32 (!%p7991_p6), 3, %v8507_v45 }
 0x348   : > { %6169 = vmatprep.subr.bf16.mxu0 %v7964_v6  ;;  %6456 = vmatprep.subr.bf16.mxu1 %v7966_v2  ;;  %v6668_v6 = vld [vmem:[%s9907_s3 + $0x198] sm:$0xff] (!%p7991_p6)  ;;  %v6651_v2 = vld [vmem:[%s9907_s3 + $0x110] sm:$0xff] (!%p7991_p6) }
 0x349   : > { %v8174_v41 = vpack.c.bf16 (!%p7991_p6), %v6668_v6, %v6667_v46 }
 0x34b   : > { %6170 = vmatpush1.bf16.msra.mxu0 %v7963_v44  ;;  %6457 = vmatpush1.bf16.msra.mxu1 %v7965_v47  ;;  %v8176_v44 = vpack.c.bf16 (!%p7991_p6), %v6652_v24, %v6651_v2  ;;  %v8146_v47 = vpack.c.bf16 (!%p7991_p6), %v6638_v43, %v6637_v42  ;;  %v6630_v2 = vld [vmem:[%s9907_s3 + $0x68] sm:$0xff] (!%p7991_p6)  ;;  %v6543_v24 = vld [vmem:[%s9906_s2] sm:$0xff] (!%p7991_p6)  ;;  %v8194_v42 = vpack.c.bf16 (!%p7991_p6), %v6678_v36, %v6677_v35 }
 0x34c   : > { %6171 = vmatprep.subr.bf16.mxu0 %v7972_v50  ;;  %6458 = vmatprep.subr.bf16.mxu1 %v7974_v51  ;;  %v6621_v50 = vld [vmem:[%s9907_s3 + $0x20] sm:$0xff] (!%p7991_p6)  ;;  %v6622_v51 = vld [vmem:[%s9907_s3 + $0x28] sm:$0xff] (!%p7991_p6)  ;;  %v6560_v56 = vrot.slane (!%p7991_p6), %v6543_v24, %v6559_v37 }
 0x34d   : > { %v6662_v43 = vld [vmem:[%s9907_s3 + $0x168] sm:$0xff] (!%p7991_p6) }
 0x34f   : > { %6172 = vmatpush1.bf16.msra.mxu0 %v7971_v57  ;;  %6459 = vmatpush1.bf16.msra.mxu1 %v7973_v58  ;;  %v8148_v57 = vpack.c.bf16 (!%p7991_p6), %v6622_v51, %v6621_v50  ;;  %v8178_v58 = vpack.c.bf16 (!%p7991_p6), %v6670_v55, %v6669_v53  ;;  %v6548_v50 = vrot.slane (!%p7991_p6), %v6543_v24, %v6547_v32  ;;  %v6679_v55 = vld [vmem:[%s9907_s3 + $0x1f0] sm:$0xff] (!%p7991_p6)  ;;  %v6713_v32 = vld [vmem:[%s9907_s3 + $0x300] sm:$0xff] (!%p7991_p6) }
 0x350   : > { %6173 = vmatprep.subr.bf16.mxu0 %v7980_v61  ;;  %6460 = vmatprep.subr.bf16.mxu1 %v7982_v54  ;;  %v6639_v61 = vld [vmem:[%s9907_s3 + $0xb0] sm:$0xff] (!%p7991_p6)  ;;  %v6640_v54 = vld [vmem:[%s9907_s3 + $0xb8] sm:$0xff] (!%p7991_p6)  ;;  %v6552_v51 = vrot.slane (!%p7991_p6), %v6543_v24, %v6551_v0  ;;  %v6714_v0 = vld [vmem:[%s9907_s3 + $0x308] sm:$0xff] (!%p7991_p6) }
 0x351   : > { %v8150_v9 = vpack.c.bf16 (!%p7991_p6), %v6640_v54, %v6639_v61  ;;  %v6631_v54 = vld [vmem:[%s9907_s3 + $0x70] sm:$0xff] (!%p7991_p6) }
 0x353   : > { %6174 = vmatpush1.bf16.msra.mxu0 %v7979_v5  ;;  %6461 = vmatpush1.bf16.msra.mxu1 %v7981_v30  ;;  %v6671_v5 = vld [vmem:[%s9907_s3 + $0x1b0] sm:$0xff] (!%p7991_p6)  ;;  %v6672_v30 = vld [vmem:[%s9907_s3 + $0x1b8] sm:$0xff] (!%p7991_p6) }
 0x354   : > { %6175 = vmatprep.subr.bf16.mxu0 %v7988_v7  ;;  %6462 = vmatprep.subr.bf16.mxu1 %v7990_v8  ;;  %v8182_v7 = vpack.c.bf16 (!%p7991_p6), %v6672_v30, %v6671_v5  ;;  %v6655_v8 = vld [vmem:[%s9907_s3 + $0x130] sm:$0xff] (!%p7991_p6) }
 0x357   : > { %6176 = vmatpush1.bf16.msra.mxu0 %v7987_v39  ;;  %6463 = vmatpush1.bf16.msra.mxu1 %v7989_v20  ;;  %v6656_v39 = vld [vmem:[%s9907_s3 + $0x138] sm:$0xff] (!%p7991_p6)  ;;  %v6641_v20 = vld [vmem:[%s9907_s3 + $0xc0] sm:$0xff] (!%p7991_p6) }
 0x358   : > { %8171 = vmatprep.subr.bf16.mxu1 (!%p7991_p6), %v8170_v1  ;;  %v6645_v1 = vld [vmem:[%s9907_s3 + $0xe0] sm:$0xff] (!%p7991_p6) }
 0x359   : > { %v8162_v6 = vpack.c.bf16 (!%p7991_p6), %v6646_v26, %v6645_v1  ;;  %v6699_v1 = vld [vmem:[%s9907_s3 + $0x290] sm:$0xff] (!%p7991_p6)  ;;  %v6700_v26 = vld [vmem:[%s9907_s3 + $0x298] sm:$0xff] (!%p7991_p6) }
 0x35a   : > { %6194 = vmatmul.mubr.bf16.vlgmr.msra.gmra.mrb[4].mxu0 %v9012_v48  ;;  %6481 = vmatmul.mubr.bf16.vlgmr.msra.gmra.mrb[4].mxu1 %v9012_v48  ;;  %v6633_v48 = vld [vmem:[%s9907_s3 + $0x80] sm:$0xff] (!%p7991_p6) }
 0x35b   : > { %v8138_v27 = vpack.c.bf16 (!%p7991_p6), %v6634_v23, %v6633_v48  ;;  %8173 = vmatpush3.bf16.msra.mxu1 (!%p7991_p6), %v8172_v34  ;;  %v6555_v34 = vsub.s32 (!%p7991_p6), 2, %v8507_v45 }
 0x35c   : > { %8175 = vmatprep.subr.bf16.mxu1 (!%p7991_p6), %v8174_v41  ;;  %v6661_v41 = vld [vmem:[%s9907_s3 + $0x160] sm:$0xff] (!%p7991_p6) }
 0x35d   : > { %8139 = vmatprep.subr.bf16.mxu0 (!%p7991_p6), %v8138_v27  ;;  %v6627_v27 = vld [vmem:[%s9907_s3 + $0x50] sm:$0xff] (!%p7991_p6)  ;;  %v6556_v53 = vrot.slane (!%p7991_p6), %v6543_v24, %v6555_v34  ;;  %v8196_v5 = vpack.c.bf16 (!%p7991_p6), %v6662_v43, %v6661_v41  ;;  %v6684_v41 = vld [vmem:[%s9907_s3 + $0x218] sm:$0xff] (!%p7991_p6)  ;;  %v6701_v43 = vld [vmem:[%s9907_s3 + $0x2a0] sm:$0xff] (!%p7991_p6) }
 0x35e   : > { %8141 = vmatpush3.bf16.msra.mxu0 (!%p7991_p6), %v8140_v59  ;;  %v6660_v59 = vld [vmem:[%s9907_s3 + $0x158] sm:$0xff] (!%p7991_p6) }
 0x35f   : > { %8143 = vmatprep.subr.bf16.mxu0 (!%p7991_p6), %v8142_v38  ;;  %8177 = vmatpush3.bf16.msra.mxu1 (!%p7991_p6), %v8176_v44  ;;  %v8160_v38 = vpack.c.bf16 (!%p7991_p6), %v6628_v28, %v6627_v27  ;;  %v8192_v46 = vpack.c.bf16 (!%p7991_p6), %v6660_v59, %v6659_v29  ;;  %v6647_v44 = vld [vmem:[%s9907_s3 + $0xf0] sm:$0xff] (!%p7991_p6)  ;;  %v6681_v28 = vld [vmem:[%s9907_s3 + $0x200] sm:$0xff] (!%p7991_p6)  ;;  %v6682_v29 = vld [vmem:[%s9907_s3 + $0x208] sm:$0xff] (!%p7991_p6) }
 0x360   : > { %8179 = vmatprep.subr.bf16.mxu1 (!%p7991_p6), %v8178_v58  ;;  %v6567_v58 = vsub.s32 (!%p7991_p6), 5, %v8507_v45 }
 0x362   : > { %8145 = vmatpush3.bf16.msra.mxu0 (!%p7991_p6), %v8144_v40  ;;  %v6629_v40 = vld [vmem:[%s9907_s3 + $0x60] sm:$0xff] (!%p7991_p6) }
 0x363   : > { %8147 = vmatprep.subr.bf16.mxu0 (!%p7991_p6), %v8146_v47  ;;  %8181 = vmatpush3.bf16.msra.mxu1 (!%p7991_p6), %v8180_v63  ;;  %v6648_v47 = vld [vmem:[%s9907_s3 + $0xf8] sm:$0xff] (!%p7991_p6)  ;;  %v8164_v61 = vpack.c.bf16 (!%p7991_p6), %v6630_v2, %v6629_v40  ;;  %v6577_v63 = vcombine.low (!%p7991_p6), %v6548_v50, %v6552_v51  ;;  %v6731_v40 = vld [vmem:[%s9907_s3 + $0x390] sm:$0xff] (!%p7991_p6) }
 0x364   : > { %8183 = vmatprep.subr.bf16.mxu1 (!%p7991_p6), %v8182_v7  ;;  %v8166_v30 = vpack.c.bf16 (!%p7991_p6), %v6648_v47, %v6647_v44  ;;  %v6663_v7 = vld [vmem:[%s9907_s3 + $0x170] sm:$0xff] (!%p7991_p6)  ;;  %v6702_v44 = vld [vmem:[%s9907_s3 + $0x2a8] sm:$0xff] (!%p7991_p6)  ;;  %v6716_v51 = vld [vmem:[%s9907_s3 + $0x318] sm:$0xff] (!%p7991_p6) }
 0x365   : > { %v6683_v2 = vld [vmem:[%s9907_s3 + $0x210] sm:$0xff] (!%p7991_p6) }
 0x366   : > { %8149 = vmatpush3.bf16.msra.mxu0 (!%p7991_p6), %v8148_v57  ;;  %v6563_v57 = vsub.s32 (!%p7991_p6), 4, %v8507_v45  ;;  %v6715_v50 = vld [vmem:[%s9907_s3 + $0x310] sm:$0xff] (!%p7991_p6) }
 0x367   : > { %8151 = vmatprep.subr.bf16.mxu0 (!%p7991_p6), %v8150_v9  ;;  %v6571_v9 = vsub.s32 (!%p7991_p6), 6, %v8507_v45 }
 0x42d   : > { %v6195_v11 = vpop.f32.mrb[4].mxu0  ;;  %v6482_v12 = vpop.f32.mrb[4].mxu1 }
 0x42e   : > { %v6197_v13 = vpop.f32.mrb[5].mxu0  ;;  %v6484_v15 = vpop.f32.mrb[5].mxu1 }
 0x42f   : > { %v6514_v14 = vcombine.low %v6195_v11, %v6197_v13  ;;  %v6199_v16 = vpop.f32.mrb[6].mxu0  ;;  %v6515_v17 = vcombine.low %v6482_v12, %v6484_v15  ;;  %v6486_v18 = vpop.f32.mrb[6].mxu1  ;;  %v6642_v11 = vld [vmem:[%s9907_s3 + $0xc8] sm:$0xff] (!%p7991_p6)  ;;  %v8152_v12 = vpack.c.bf16 (!%p7991_p6), %v6624_v3, %v6623_v62  ;;  %v6673_v13 = vld [vmem:[%s9907_s3 + $0x1c0] sm:$0xff] (!%p7991_p6)  ;;  %v8184_v15 = vpack.c.bf16 (!%p7991_p6), %v6656_v39, %v6655_v8  ;;  %v6632_v62 = vld [vmem:[%s9907_s3 + $0x78] sm:$0xff] (!%p7991_p6) }
 0x430   : > { %v6200_v60 = vpop.f32.mrb[7].mxu0  ;;  %v6487_v19 = vpop.f32.mrb[7].mxu1  ;;  %v8154_v16 = vpack.c.bf16 (!%p7991_p6), %v6642_v11, %v6641_v20  ;;  %v6626_v18 = vld [vmem:[%s9907_s3 + $0x48] sm:$0xff] (!%p7991_p6)  ;;  %v6575_v3 = vsub.s32 (!%p7991_p6), 7, %v8507_v45  ;;  %v6578_v8 = vcombine.low (!%p7991_p6), %v6556_v53, %v6560_v56  ;;  %v8198_v39 = vpack.c.bf16 (!%p7991_p6), %v6680_v33, %v6679_v55  ;;  %v6664_v20 = vld [vmem:[%s9907_s3 + $0x178] sm:$0xff] (!%p7991_p6)  ;;  %v6697_v45 = vld [vmem:[%s9907_s3 + $0x280] sm:$0xff] (!%p7991_p6) }
 0x431   : > { %v6522_v49 = vrot.slane %v6514_v14, %v9245_v4  ;;  %v6529_v10 = vrot.slane %v6515_v17, %v9245_v4  ;;  %6540 = sbr.rel (%p7991_p6) target bundleno = 1721 (0x6b9), region = 48  ;;  %v6674_v14 = vld [vmem:[%s9907_s3 + $0x1c8] sm:$0xff] (!%p7991_p6)  ;;  %v6625_v17 = vld [vmem:[%s9907_s3 + $0x40] sm:$0xff] (!%p7991_p6)  ;;  %8153 = vmatpush3.bf16.msra.mxu0 (!%p7991_p6), %v8152_v12  ;;  %8185 = vmatpush3.bf16.msra.mxu1 (!%p7991_p6), %v8184_v15  ;;  %v6585_v11 = vrot.slane (!%p7991_p6), %v6577_v63, %v9245_v4  ;;  %v6704_v63 = vld [vmem:[%s9907_s3 + $0x2b8] sm:$0xff] (!%p7991_p6) }
 0x432   : > { %v6657_v60 = vld [vmem:[%s9907_s3 + $0x140] sm:$0xff] (!%p7991_p6)  ;;  %v6658_v19 = vld [vmem:[%s9907_s3 + $0x148] sm:$0xff] (!%p7991_p6)  ;;  %v8156_v48 = vpack.c.bf16 (!%p7991_p6), %v6626_v18, %v6625_v17  ;;  %8155 = vmatprep.subr.bf16.mxu0 (!%p7991_p6), %v8154_v16  ;;  %v6564_v18 = vrot.slane (!%p7991_p6), %v6543_v24, %v6563_v57  ;;  %v8208_v55 = vpack.c.bf16 (!%p7991_p6), %v6684_v41, %v6683_v2  ;;  %v8210_v57 = vpack.c.bf16 (!%p7991_p6), %v6702_v44, %v6701_v43  ;;  %v6723_v2 = vld [vmem:[%s9907_s3 + $0x350] sm:$0xff] (!%p7991_p6) }
 0x433   : > { %v6530_v52 = vcombine.low %v6522_v49, %v6529_v10  ;;  %v8186_v49 = vpack.c.bf16 (!%p7991_p6), %v6674_v14, %v6673_v13  ;;  %v6643_v10 = vld [vmem:[%s9907_s3 + $0xd0] sm:$0xff] (!%p7991_p6)  ;;  %v8188_v23 = vpack.c.bf16 (!%p7991_p6), %v6658_v19, %v6657_v60  ;;  %v6698_v12 = vld [vmem:[%s9907_s3 + $0x288] sm:$0xff] (!%p7991_p6)  ;;  %v8168_v13 = vpack.c.bf16 (!%p7991_p6), %v6632_v62, %v6631_v54  ;;  %v6729_v15 = vld [vmem:[%s9907_s3 + $0x380] sm:$0xff] (!%p7991_p6) }
 0x434   : > { %v6592_v14 = vrot.slane (!%p7991_p6), %v6578_v8, %v9245_v4  ;;  %v6730_v16 = vld [vmem:[%s9907_s3 + $0x388] sm:$0xff] (!%p7991_p6)  ;;  %v6541_v17 = vld [vmem:[#allocation2] sm:$0xff] (!%p7991_p6)  ;;  %v6568_v60 = vrot.slane (!%p7991_p6), %v6543_v24, %v6567_v58  ;;  %v6576_v19 = vrot.slane (!%p7991_p6), %v6543_v24, %v6575_v3  ;;  %v8240_v54 = vpack.c.bf16 (!%p7991_p6), %v6716_v51, %v6715_v50  ;;  %v6703_v62 = vld [vmem:[%s9907_s3 + $0x2b0] sm:$0xff] (!%p7991_p6) }
 0x435   : > { %v6534_v22 = vadd.f32 %v6530_v52, %v243_v21  ;;  %v6644_v21 = vld [vmem:[%s9907_s3 + $0xd8] sm:$0xff] (!%p7991_p6)  ;;  %v6675_v52 = vld [vmem:[%s9907_s3 + $0x1d0] sm:$0xff] (!%p7991_p6)  ;;  %8187 = vmatprep.subr.bf16.mxu1 (!%p7991_p6), %v8186_v49  ;;  %8157 = vmatpush3.bf16.msra.mxu0 (!%p7991_p6), %v8156_v48  ;;  %v6572_v49 = vrot.slane (!%p7991_p6), %v6543_v24, %v6571_v9  ;;  %v6733_v33 = vld [vmem:[%s9907_s3 + $0x3a0] sm:$0xff] (!%p7991_p6) }
 0x436   : > { %v8158_v25 = vpack.c.bf16 (!%p7991_p6), %v6644_v21, %v6643_v10  ;;  %8189 = vmatpush3.bf16.msra.mxu1 (!%p7991_p6), %v8188_v23  ;;  %v8200_v10 = vpack.c.bf16 (!%p7991_p6), %v6664_v20, %v6663_v7  ;;  %v6593_v21 = vcombine.low (!%p7991_p6), %v6585_v11, %v6592_v14  ;;  %v6594_v23 = vcombine.low (!%p7991_p6), %v6564_v18, %v6568_v60  ;;  %v6734_v56 = vld [vmem:[%s9907_s3 + $0x3a8] sm:$0xff] (!%p7991_p6)  ;;  %v6685_v58 = vld [vmem:[%s9907_s3 + $0x220] sm:$0xff] (!%p7991_p6)  ;;  %v6736_v20 = vld [vmem:[%s9907_s3 + $0x3b8] sm:$0xff] (!%p7991_p6) }
 0x437   : > { %6536 = vst [vmem:[#allocation2 + $0x8] sm:$0xff] %v6534_v22  ;;  %v6676_v22 = vld [vmem:[%s9907_s3 + $0x1d8] sm:$0xff] (!%p7991_p6)  ;;  %v8242_v3 = vpack.c.bf16 (!%p7991_p6), %v6734_v56, %v6733_v33  ;;  %v8214_v11 = vpack.c.bf16 (!%p7991_p6), %v6704_v63, %v6703_v62  ;;  %v6719_v18 = vld [vmem:[%s9907_s3 + $0x330] sm:$0xff] (!%p7991_p6)  ;;  %v6742_v43 = vld [vmem:[%s9907_s3 + $0x3e8] sm:$0xff] (!%p7991_p6) }
 0x438   : > { %v8190_v31 = vpack.c.bf16 %v6676_v22, %v6675_v52  ;;  %8159 = vmatprep.subr.bf16.mxu0 %v8158_v25  ;;  %v8202_v52 = vpack.c.bf16 %v6698_v12, %v6697_v45  ;;  %v8234_v22 = vpack.c.bf16 %v6730_v16, %v6729_v15  ;;  %v6613_v48 = vadd.f32 %v6593_v21, %v6541_v17  ;;  %v6687_v45 = vld [vmem:[%s9907_s3 + $0x230] sm:$0xff]  ;;  %v6688_v12 = vld [vmem:[%s9907_s3 + $0x238] sm:$0xff]  ;;  %v6705_v15 = vld [vmem:[%s9907_s3 + $0x2c0] sm:$0xff] }
 0x439   : > { %8161 = vmatpush3.bf16.msra.mxu0 %v8160_v38  ;;  %v6595_v25 = vcombine.low %v6572_v49, %v6576_v19  ;;  %v6602_v34 = vrot.slane %v6594_v23, %v9245_v4  ;;  %v8204_v38 = vpack.c.bf16 %v6682_v29, %v6681_v28  ;;  %v6706_v16 = vld [vmem:[%s9907_s3 + $0x2c8] sm:$0xff]  ;;  %v6720_v60 = vld [vmem:[%s9907_s3 + $0x338] sm:$0xff]  ;;  %v6737_v21 = vld [vmem:[%s9907_s3 + $0x3c0] sm:$0xff] }
 0x43a   : > { %8191 = vmatprep.subr.bf16.mxu1 %v8190_v31  ;;  %8163 = vmatprep.subr.bf16.mxu0 %v8162_v6  ;;  %v6615_v27 = vmax.f32 %v6613_v48, 0.0  ;;  %v8206_v6 = vpack.c.bf16 %v6700_v26, %v6699_v1  ;;  %v6689_v48 = vld [vmem:[%s9907_s3 + $0x240] sm:$0xff]  ;;  %v6690_v23 = vld [vmem:[%s9907_s3 + $0x248] sm:$0xff]  ;;  %v8248_v28 = vpack.c.bf16 %v6720_v60, %v6719_v18  ;;  %v6707_v29 = vld [vmem:[%s9907_s3 + $0x2d0] sm:$0xff] }
 0x43b   : > { %8193 = vmatpush3.bf16.msra.mxu1 %v8192_v46  ;;  %v6609_v35 = vrot.slane %v6595_v25, %v9245_v4  ;;  %v6732_v46 = vld [vmem:[%s9907_s3 + $0x398] sm:$0xff]  ;;  %v6721_v1 = vld [vmem:[%s9907_s3 + $0x340] sm:$0xff]  ;;  %v6694_v50 = vld [vmem:[%s9907_s3 + $0x268] sm:$0xff] }
 0x43c   : > { %8195 = vmatprep.subr.bf16.mxu1 %v8194_v42  ;;  %v6761_v31 = vrot.slane %v6615_v27, %v9245_v4  ;;  %v6754_v59 = vcombine.high %v6615_v27, %v6615_v27  ;;  %v8236_v42 = vpack.c.bf16 %v6714_v0, %v6713_v32  ;;  %v8238_v47 = vpack.c.bf16 %v6732_v46, %v6731_v40  ;;  %v6739_v0 = vld [vmem:[%s9907_s3 + $0x3d0] sm:$0xff]  ;;  %v6709_v40 = vld [vmem:[%s9907_s3 + $0x2e0] sm:$0xff]  ;;  %v6710_v46 = vld [vmem:[%s9907_s3 + $0x2e8] sm:$0xff] }
 0x43d   : > { %8165 = vmatpush3.bf16.msra.mxu0 %v8164_v61  ;;  %v6610_v53 = vcombine.low %v6602_v34, %v6609_v35  ;;  %v6686_v61 = vld [vmem:[%s9907_s3 + $0x228] sm:$0xff]  ;;  %v8220_v32 = vpack.c.bf16 %v6690_v23, %v6689_v48  ;;  %v6740_v34 = vld [vmem:[%s9907_s3 + $0x3d8] sm:$0xff]  ;;  %v8226_v44 = vpack.c.bf16 %v6710_v46, %v6709_v40  ;;  %v6725_v56 = vld [vmem:[%s9907_s3 + $0x360] sm:$0xff] }
 0x43e   : > { %8167 = vmatprep.subr.bf16.mxu0 %v8166_v30  ;;  %v6769_v36 = vcombine.high %v6761_v31, %v6761_v31  ;;  %v6768_v37 = vrot.slane %v6754_v59, %v9245_v4  ;;  %v6542_v9 = vld [vmem:[#allocation2 + $0x8] sm:$0xff]  ;;  %v8212_v8 = vpack.c.bf16 %v6686_v61, %v6685_v58  ;;  %v6724_v41 = vld [vmem:[%s9907_s3 + $0x358] sm:$0xff]  ;;  %v6743_v61 = vld [vmem:[%s9907_s3 + $0x3f0] sm:$0xff] }
 0x43f   : > { %8197 = vmatpush3.bf16.msra.mxu1 %v8196_v5  ;;  %v6717_v5 = vld [vmem:[%s9907_s3 + $0x320] sm:$0xff]  ;;  %v6718_v30 = vld [vmem:[%s9907_s3 + $0x328] sm:$0xff]  ;;  %v6614_v7 = vadd.f32 %v6610_v53, %v6542_v9  ;;  %v8256_v51 = vpack.c.bf16 %v6724_v41, %v6723_v2  ;;  %v6711_v53 = vld [vmem:[%s9907_s3 + $0x2f0] sm:$0xff] }
 0x440   : > { %8199 = vmatprep.subr.bf16.mxu1 %v8198_v39  ;;  %6860 = vmatprep.mubr.f32.mxu0 %v6769_v36  ;;  %v6770_v24 = vcombine.high %v6768_v37, %v6768_v37  ;;  %v6735_v39 = vld [vmem:[%s9907_s3 + $0x3b0] sm:$0xff]  ;;  %v8244_v14 = vpack.c.bf16 %v6718_v30, %v6717_v5  ;;  %v6696_v9 = vld [vmem:[%s9907_s3 + $0x278] sm:$0xff] }
 0x441   : > { %8169 = vmatpush3.bf16.msra.mxu0 %v8168_v13  ;;  %v6616_v13 = vmax.f32 %v6614_v7, 0.0  ;;  %v8246_v17 = vpack.c.bf16 %v6736_v20, %v6735_v39  ;;  %v6691_v36 = vld [vmem:[%s9907_s3 + $0x250] sm:$0xff]  ;;  %v6728_v7 = vld [vmem:[%s9907_s3 + $0x378] sm:$0xff]  ;;  %v8429_v20 = vmov 0  }
 0x442   : > { %8203 = vmatprep.subr.bf16.mxu0 %v8202_v52  ;;  %6930 = vmatprep.mubr.f32.mxu1 %v6770_v24  ;;  %v6738_v52 = vld [vmem:[%s9907_s3 + $0x3c8] sm:$0xff]  ;;  %v6695_v63 = vld [vmem:[%s9907_s3 + $0x270] sm:$0xff] }
 0x443   : > { %8201 = vmatpush3.bf16.msra.mxu1 %v8200_v10  ;;  %v9774_v49 = vrot.slane %v6616_v13, %v9245_v4  ;;  %v6771_v19 = vcombine.high %v6616_v13, %v6616_v13  ;;  %v8216_v10 = vpack.c.bf16 %v6688_v12, %v6687_v45  ;;  %v8250_v59 = vpack.c.bf16 %v6738_v52, %v6737_v21  ;;  %v6727_v30 = vld [vmem:[%s9907_s3 + $0x370] sm:$0xff]  ;;  %v7992_v45 = vld [vmem:[%s9908_s4] ss:$0 sm:$0xff] }
 0x444   : > { %8235 = vmatprep.subr.bf16.mxu1 %v8234_v22  ;;  %6861 = vmatmul.mubr.f32.vlgmr.msra.gmra.mrb[0].mxu0 %v6761_v31  ;;  %v8218_v22 = vpack.c.bf16 %v6706_v16, %v6705_v15  ;;  %v6708_v31 = vld [vmem:[%s9907_s3 + $0x2d8] sm:$0xff]  ;;  %v8264_v39 = vpack.c.bf16 %v6728_v7, %v6727_v30 }
 0x445   : > { %8205 = vmatpush3.bf16.msra.mxu0 %v8204_v38  ;;  %v6786_v25 = vcombine.high %v9774_v49, %v9774_v49  ;;  %v9791_v27 = vrot.slane %v6771_v19, %v9245_v4  ;;  %v6722_v4 = vld [vmem:[%s9907_s3 + $0x348] sm:$0xff]  ;;  %v8222_v35 = vpack.c.bf16 %v6708_v31, %v6707_v29  ;;  %8385 = vset.pattern.permute.xlu1 %v8429_v20 }
 0x446   : > { %6931 = vmatmul.mubr.f32.vlgmr.msra.gmra.mrb[0].mxu1 %v6768_v37  ;;  %8207 = vmatprep.subr.bf16.mxu0 %v8206_v6  ;;  %v6692_v37 = vld [vmem:[%s9907_s3 + $0x258] sm:$0xff]  ;;  %v8252_v38 = vpack.c.bf16 %v6722_v4, %v6721_v1  ;;  %v8254_v6 = vpack.c.bf16 %v6740_v34, %v6739_v0 }
 0x447   : > { %8237 = vmatpush3.bf16.msra.mxu1 %v8236_v42  ;;  %7000 = vmatprep.mubr.f32.mxu0 %v6786_v25  ;;  %v6787_v26 = vcombine.high %v9791_v27, %v9791_v27  ;;  %v8224_v24 = vpack.c.bf16 %v6692_v37, %v6691_v36  ;;  %v6741_v42 = vld [vmem:[%s9907_s3 + $0x3e0] sm:$0xff] }
 0x448   : > { %8239 = vmatprep.subr.bf16.mxu1 %v8238_v47  ;;  %v6693_v47 = vld [vmem:[%s9907_s3 + $0x260] sm:$0xff]  ;;  %v8258_v33 = vpack.c.bf16 %v6742_v43, %v6741_v42  ;;  %8386 = vset.pattern.permute.xlu0 %v8429_v20 }
 0x449   : > { %8209 = vmatpush3.bf16.msra.mxu0 %v8208_v55  ;;  %7070 = vmatprep.mubr.f32.mxu1 %v6787_v26  ;;  %v6712_v55 = vld [vmem:[%s9907_s3 + $0x2f8] sm:$0xff]  ;;  %v8228_v58 = vpack.c.bf16 %v6694_v50, %v6693_v47 }
 0x44a   : > { %8211 = vmatprep.subr.bf16.mxu0 %v8210_v57  ;;  %v6726_v57 = vld [vmem:[%s9907_s3 + $0x368] sm:$0xff]  ;;  %v8230_v62 = vpack.c.bf16 %v6712_v55, %v6711_v53 }
 0x44b   : > { %8241 = vmatpush3.bf16.msra.mxu1 %v8240_v54  ;;  %v6744_v54 = vld [vmem:[%s9907_s3 + $0x3f8] sm:$0xff] }
 0x44c   : > { %8243 = vmatprep.subr.bf16.mxu1 %v8242_v3  ;;  %v8260_v3 = vpack.c.bf16 %v6726_v57, %v6725_v56  ;;  %v8262_v5 = vpack.c.bf16 %v6744_v54, %v6743_v61 }
 0x44d   : > { %8213 = vmatpush3.bf16.msra.mxu0 %v8212_v8  ;;  %v8232_v8 = vpack.c.bf16 %v6696_v9, %v6695_v63 }
 0x44e   : > { %8215 = vmatprep.subr.bf16.mxu0 %v8214_v11 }
 0x44f   : > { %8245 = vmatpush3.bf16.msra.mxu1 %v8244_v14 }
 0x450   : > { %8247 = vmatprep.subr.bf16.mxu1 %v8246_v17 }
 0x451   : > { %8217 = vmatpush3.bf16.msra.mxu0 %v8216_v10 }
 0x452   : > { %8219 = vmatprep.subr.bf16.mxu0 %v8218_v22 }
 0x453   : > { %8249 = vmatpush3.bf16.msra.mxu1 %v8248_v28 }
 0x454   : > { %8251 = vmatprep.subr.bf16.mxu1 %v8250_v59 }
 0x455   : > { %8221 = vmatpush3.bf16.msra.mxu0 %v8220_v32 }
 0x456   : > { %8223 = vmatprep.subr.bf16.mxu0 %v8222_v35 }
 0x457   : > { %8253 = vmatpush3.bf16.msra.mxu1 %v8252_v38 }
 0x458   : > { %8255 = vmatprep.subr.bf16.mxu1 %v8254_v6 }
 0x459   : > { %8225 = vmatpush3.bf16.msra.mxu0 %v8224_v24 }
 0x45a   : > { %8227 = vmatprep.subr.bf16.mxu0 %v8226_v44 }
 0x45b   : > { %8257 = vmatpush3.bf16.msra.mxu1 %v8256_v51 }
 0x45c   : > { %8259 = vmatprep.subr.bf16.mxu1 %v8258_v33 }
 0x45d   : > { %8229 = vmatpush3.bf16.msra.mxu0 %v8228_v58 }
 0x45e   : > { %8231 = vmatprep.subr.bf16.mxu0 %v8230_v62 }
 0x45f   : > { %8261 = vmatpush3.bf16.msra.mxu1 %v8260_v3 }
 0x460   : > { %8263 = vmatprep.subr.bf16.mxu1 %v8262_v5 }
 0x461   : > { %8233 = vmatpush3.bf16.msra.mxu0 %v8232_v8 }
 0x463   : > { %8265 = vmatpush3.bf16.msra.mxu1 %v8264_v39 }
 0x464   : > { %7001 = vmatmul.mubr.f32.vlgmr.msra.gmra.mrb[2].mxu0 %v9774_v49 }
 0x466   : > { %7071 = vmatmul.mubr.f32.vlgmr.msra.gmra.mrb[2].mxu1 %v9791_v27 }
 0x517   : > { %v8030_v11 = vpop.f32.mrb[0].mxu0 }
 0x518   : > { %v8031_v12 = vpop.f32.mrb[1].mxu0 }
 0x519   : > { %v8032_v13 = vadd.f32 %v8031_v12, %v8030_v11  ;;  %v8065_v14 = vpop.f32.mrb[0].mxu1 }
 0x51a   : > { %v8066_v15 = vpop.f32.mrb[1].mxu1 }
 0x51b   : > { %v6863_v16 = vadd.f32 %v8032_v13, %v7992_v45  ;;  %v8067_v17 = vadd.f32 %v8066_v15, %v8065_v14 }
 0x51d   : > { %v6933_v18 = vadd.f32 %v8067_v17, %v6863_v16 }
 0x537   : > { %v8100_v60 = vpop.f32.mrb[2].mxu0 }
 0x538   : > { %v8101_v19 = vpop.f32.mrb[3].mxu0 }
 0x539   : > { %v8102_v49 = vadd.f32 %v8101_v19, %v8100_v60  ;;  %v8135_v10 = vpop.f32.mrb[2].mxu1 }
 0x53a   : > { %v8136_v21 = vpop.f32.mrb[3].mxu1 }
 0x53b   : > { %v7003_v52 = vadd.f32 %v8102_v49, %v6933_v18  ;;  %v8137_v22 = vadd.f32 %v8136_v21, %v8135_v10 }
 0x53d   : > { %v7073_v48 = vadd.f32 %v8137_v22, %v7003_v52 }
 0x53f   : > { %7078 = vperm.xlu1 %8385, %v7073_v48   ;;  %7082 = vrot.lane.b32.xlu0 %v7073_v48, %s8430_s11 }
 0x5b1   : > { %v7083_v23 = vpop.permute.xlu0 %7082 }
 0x5b2   : > { %v7086_v25 = vsel %vm7085_vm0, %v7083_v23, 0.0 }
 0x5b3   : > { %7087 = vadd.xlane.f32.xlu0 %v7086_v25 }
 0x5be   : > { %v7079_v27 = vpop.permute.xlu1 %7078 }
 0x5bf   : > { %v7081_v29 = vadd.f32 %v7079_v27, %v7073_v48 }
 0x640   : > { %v7088_v28 = vpop.xlane.xlu0 %7087 }
 0x641   : > { %v7090_v31 = vmul.f32 0.16666667, %v7088_v28 }
 0x643   : > { %v7091_v59 = vsub.f32 %v7081_v29, %v7090_v31 }
 0x645   : > { %7093 = vrot.lane.b32.xlu1 %v7091_v59, %s8430_s11 }
 0x6b7   : > { %v7094_v1 = vpop.permute.xlu1 %7093 }
 0x6b8   : > { %7096 = vst.msk [vmem:[#allocation3] sm:$0x3] %vm7085_vm0, %v7094_v1 }
 0x6b9 PF: > { %p8366_p7 = scmp.eq.s32.totalorder %s8468_s19, 1  ;;  %s8431_s12 = smov [#allocation3]  }
 0x6ba   : > { %s7104_s13 = sshll.u32 %s8431_s12, 4  ;;  %s7105_s13 = int_to_ptr.vmem [resolvable:$true] %s7104_s13 }
 0x6bb   : > { %s8387_s14 = scalar_lea.vmem %s7105_s13, 32  ;;  %p8394_p11 = scmp.lt.s32.totalorder %s7105_s13, %s7105_s13 }
 0x6bc   : > { %p8388_p8 = scmp.ne.s32.totalorder %s7105_s13, %s8387_s14  ;;  %p8395_p12 = scmp.lt.s32.totalorder %s8387_s14, %s8387_s14 }
 0x6be   : > { %p8389_p9 = pnand %p8388_p8, %p8366_p7  ;;  %p8396_p13 = por %p8395_p12, %p8394_p11 }
 0x6c0   : > { %p8390_p10 = pneg %p8389_p9 }
 0x6c2   : > { %p8397_p0 = pnand %p8396_p13, %p8390_p10 }
 0x6c4   : > { %8400 = shalt.err (!%p8397_p0)
}
 0x6c5   : > { %s8401_s17 = scalar_lea.hbm %s9909_s5, 32 }
 0x6c6   : > { %p8402_p1 = scmp.ne.s32.totalorder %s9909_s5, %s8401_s17  ;;  %p8407_p4 = scmp.lt.u32.totalorder %s8401_s17, %s9909_s5 }
 0x6c8   : > { %p8403_p2 = pnand %p8402_p1, %p8366_p7 }
 0x6ca   : > { %p8404_p3 = pneg %p8403_p2 }
 0x6cc   : > { %p8409_p5 = pnand %p8407_p4, %p8404_p3 }
 0x6ce   : > { %8412 = shalt.err (!%p8409_p5)
}
 0x6cf   : > { %8363 = dma.vmem_to_hbm [thread:$0]  (%p8366_p7), %s7105_s13, 32, %s9909_s5, [#allocation4]  }
 0x6d0   : > { %8418 = dma.done.wait (%p8366_p7), [#allocation4], 32  }
 0x6d1   : > { %8420 = vsyncadd (%p8366_p7), [#allocation4], 4294967264 }
 0x6d2 PF: > { %s16_s18 = sadd.s32 1, %s8423_s18  }
 0x6d3   : > { %p13_p6 = scmp.ge.s32.totalorder %s16_s18, 4  }
 0x6d5   :  { %15 = sbr.rel (!%p13_p6) target bundleno = 1 (0x1), region = 78 }
 0x6dc   :  { %7117 = vsyncpa [#allocation4], 1 }
 0x6dd   :  { %7119 = vsyncpa [#allocation4 + $0x1], 1 }

</bundles_post_ra>
